<compile_context>
chip_gen: v7x
topology: tpu7x:2x2x1
jax: 0.10.0
libtpu: 0.0.40
codegen_flags: <defaults>
</compile_context>

<pallas_src>
import math
import functools

import jax
import jax.numpy as jnp
from jax import lax
from jax.experimental import pallas as pl
from jax.experimental.pallas import tpu as pltpu


# --------------------------------------------------------------------------
# Glue: 2D positional encoding (matches torch positionalencoding2d exactly)
# --------------------------------------------------------------------------
def positionalencoding2d(d_model, height, width):
    if d_model % 4 != 0:
        raise ValueError("d_model must be divisible by 4")
    pe = jnp.zeros((d_model, height, width), dtype=jnp.float32)
    d2 = d_model // 2
    div_term = jnp.exp(jnp.arange(0.0, d2, 2) * -(math.log(10000.0) / d2))
    pos_w = jnp.arange(0.0, width)[:, None]     # (w, 1)
    pos_h = jnp.arange(0.0, height)[:, None]    # (h, 1)
    sw = jnp.sin(pos_w * div_term).T[:, None, :]   # (d2/2, 1, w)
    cw = jnp.cos(pos_w * div_term).T[:, None, :]
    sh = jnp.sin(pos_h * div_term).T[:, :, None]   # (d2/2, h, 1)
    ch = jnp.cos(pos_h * div_term).T[:, :, None]
    pe = pe.at[0:d2:2, :, :].set(jnp.broadcast_to(sw, (d2 // 2, height, width)))
    pe = pe.at[1:d2:2, :, :].set(jnp.broadcast_to(cw, (d2 // 2, height, width)))
    pe = pe.at[d2::2, :, :].set(jnp.broadcast_to(sh, (d2 // 2, height, width)))
    pe = pe.at[d2 + 1::2, :, :].set(jnp.broadcast_to(ch, (d2 // 2, height, width)))
    return pe


# --------------------------------------------------------------------------
# Pallas kernel: q-tiled transformer block + final linear + spatial mean
# --------------------------------------------------------------------------
def feature_enhancer_kernel(conv_ref, pe_ref,
                            wq_ref, bq_ref, wkv_ref, bkv_ref,
                            wo_ref, bo_ref, ln1a_ref, ln1b_ref,
                            w1_ref, b1_ref, w2_ref, b2_ref,
                            ln3a_ref, ln3b_ref, wl_ref, bl_ref,
                            out_ref,
                            x_scr, k_scr, v_scr, acc_scr,
                            *, num_heads, eps, tile_q, n_total):
    qt = pl.program_id(1)
    n_qt = pl.num_programs(1)
    D = x_scr.shape[-1]
    d_k = D // num_heads

    # ---- per-batch prologue: build x = [conv ; pe], project K/V in one GEMM ----
    @pl.when(qt == 0)
    def _():
        x = jnp.concatenate([conv_ref[0], pe_ref[...]], axis=-1)     # (N, D) f32
        x_scr[...] = x
        xb = x.astype(jnp.bfloat16)
        kv = (jnp.dot(xb, wkv_ref[...], preferred_element_type=jnp.float32)
              + bkv_ref[...])                                         # (N, 2D) f32
        k_scr[...] = kv[:, :D].astype(jnp.bfloat16)
        v_scr[...] = kv[:, D:].astype(jnp.bfloat16)
        acc_scr[...] = jnp.zeros_like(acc_scr)

    def layer_norm(v, a, b):
        # matches the module's custom LayerNorm: unbiased std (D-1),
        # eps added to std OUTSIDE the sqrt (not torch.nn.LayerNorm).
        mu = jnp.mean(v, axis=-1, keepdims=True)
        diff = v - mu
        std = jnp.sqrt(jnp.sum(diff * diff, axis=-1, keepdims=True) / (D - 1))
        return (a * diff) * pl.reciprocal(std + eps, approx=True) + b

    row = pl.multiple_of(qt * tile_q, tile_q)
    x_t = x_scr[pl.ds(row, tile_q), :]                                # (T, D) f32
    x_tb = x_t.astype(jnp.bfloat16)

    # ---- multi-head self-attention for this query tile ----
    # 1/sqrt(d_k) is already folded into wq / bq in the wrapper.
    q_t = (jnp.dot(x_tb, wq_ref[...], preferred_element_type=jnp.float32)
           + bq_ref[...])                                             # (T, D) f32
    q_tb = q_t.astype(jnp.bfloat16)
    k_all = k_scr[...]                                                # (N, D) bf16
    v_all = v_scr[...]
    wo_all = wo_ref[...]                                              # (D, D) bf16

    attn = jnp.zeros((tile_q, D), jnp.float32)
    for hh in range(num_heads):                                       # small static loop
        sl = slice(hh * d_k, (hh + 1) * d_k)
        # q @ k^T without materializing a transposed copy of k
        scores = lax.dot_general(q_tb[:, sl], k_all[:, sl],
                                 dimension_numbers=(((1,), (1,)), ((), ())),
                                 preferred_element_type=jnp.float32)  # (T, N)
        m = jnp.max(scores, axis=-1, keepdims=True)
        p = jnp.exp(scores - m)
        p = p * pl.reciprocal(jnp.sum(p, axis=-1, keepdims=True), approx=True)
        ctx = jnp.dot(p.astype(jnp.bfloat16), v_all[:, sl],
                      preferred_element_type=jnp.float32)             # (T, d_k)
        # fold the wo projection into the head loop (no concatenate of heads)
        attn = attn + jnp.dot(ctx.astype(jnp.bfloat16), wo_all[sl, :],
                              preferred_element_type=jnp.float32)
    attn = attn + bo_ref[...]

    r1 = layer_norm(x_t + attn, ln1a_ref[...], ln1b_ref[...])

    # ---- positionwise feed-forward ----
    h1 = jnp.maximum(
        jnp.dot(r1.astype(jnp.bfloat16), w1_ref[...],
                preferred_element_type=jnp.float32) + b1_ref[...], 0.0)
    ff = jnp.dot(h1.astype(jnp.bfloat16), w2_ref[...],
                 preferred_element_type=jnp.float32) + b2_ref[...]
    r2 = layer_norm(r1 + ff, ln3a_ref[...], ln3b_ref[...])

    # ---- final linear (2C -> C) + running spatial sum (adaptive avg pool) ----
    y = jnp.dot(r2.astype(jnp.bfloat16), wl_ref[...],
                preferred_element_type=jnp.float32) + bl_ref[...]     # (T, C)
    acc_scr[...] += jnp.sum(y, axis=0, keepdims=True)

    @pl.when(qt == n_qt - 1)
    def _():
        out_ref[...] = (acc_scr[...] * (1.0 / n_total)).reshape(1, 1, -1)


# --------------------------------------------------------------------------
# Wrapper
# --------------------------------------------------------------------------
def feature_enhancer(conv_feature, params, channel, num_heads=4, eps=1e-6,
                     tile_q=128):
    batch, cc, h, w = conv_feature.shape
    assert cc == channel
    N = h * w
    D = 2 * channel
    d_k = D // num_heads
    scale = 1.0 / math.sqrt(d_k)

    if N % tile_q != 0 or N < tile_q:
        tile_q = N                       # fall back to a single query tile
    n_qt = N // tile_q

    # (B, N, C) conv features; (N, C) positional encoding (NOT batch-replicated)
    xc = jnp.transpose(conv_feature.reshape(batch, cc, N), (0, 2, 1)).astype(jnp.float32)
    pe = positionalencoding2d(channel, h, w).reshape(channel, N).T     # (N, C)

    # bf16 matrix weights feed the MXU; biases / LayerNorm params stay f32.
    # Fold the 1/sqrt(d_k) scale into wq/bq (exact) and fuse wk|wv into one GEMM.
    f32 = jnp.float32
    bf16 = jnp.bfloat16
    weight_list = [
        (params["wq"] * scale).astype(bf16),
        (params["bq"] * scale).astype(f32),
        jnp.concatenate([params["wk"], params["wv"]], axis=1).astype(bf16),   # (D, 2D)
        jnp.concatenate([params["bk"], params["bv"]], axis=1).astype(f32),    # (1, 2D)
        params["wo"].astype(bf16), params["bo"].astype(f32),
        params["ln1a"].astype(f32), params["ln1b"].astype(f32),
        params["w1"].astype(bf16), params["b1"].astype(f32),
        params["w2"].astype(bf16), params["b2"].astype(f32),
        params["ln3a"].astype(f32), params["ln3b"].astype(f32),
        params["wl"].astype(bf16), params["bl"].astype(f32),
    ]

    in_specs = [
        pl.BlockSpec((1, N, channel), lambda b, q: (b, 0, 0)),   # conv features
        pl.BlockSpec((N, channel), lambda b, q: (0, 0)),         # positional enc
    ]
    for wgt in weight_list:
        nd = wgt.ndim
        in_specs.append(pl.BlockSpec(wgt.shape, lambda b, q, _n=nd: (0,) * _n))

    # raise scoped VMEM above the default, but keep headroom below physical
    try:
        cap = int(pltpu.get_tpu_info().vmem_capacity_bytes)
        vmem_limit = min(cap - (16 << 20), 100 << 20)
    except Exception:
        vmem_limit = 48 << 20

    out = pl.pallas_call(
        functools.partial(feature_enhancer_kernel, num_heads=num_heads, eps=eps,
                          tile_q=tile_q, n_total=N),
        out_shape=jax.ShapeDtypeStruct((batch, 1, channel), jnp.float32),
        grid=(batch, n_qt),
        in_specs=in_specs,
        out_specs=pl.BlockSpec((1, 1, channel), lambda b, q: (b, 0, 0)),
        scratch_shapes=[
            pltpu.VMEM((N, D), jnp.float32),        # x slab = [conv ; pe]
            pltpu.VMEM((N, D), jnp.bfloat16),       # K
            pltpu.VMEM((N, D), jnp.bfloat16),       # V
            pltpu.VMEM((1, channel), jnp.float32),  # spatial-sum accumulator
        ],
        compiler_params=pltpu.CompilerParams(
            dimension_semantics=("parallel", "arbitrary"),
            vmem_limit_bytes=int(vmem_limit)),
    )(xc, pe, *weight_list)

    return out.reshape(batch, channel)


# --------------------------------------------------------------------------
# Deterministic parameter init (shapes follow FeatureEnhancer.__init__)
# --------------------------------------------------------------------------
def init_params(key, channel):
    D = 2 * channel
    keys = jax.random.split(key, 7)

    def lin(k, fin, fout):
        kw, kb = jax.random.split(k)
        w = jax.random.normal(kw, (fin, fout), jnp.float32) * 0.05
        b = jax.random.normal(kb, (1, fout), jnp.float32) * 0.05
        return w, b

    wq, bq = lin(keys[0], D, D)
    wk, bk = lin(keys[1], D, D)
    wv, bv = lin(keys[2], D, D)
    wo, bo = lin(keys[3], D, D)
    w1, b1 = lin(keys[4], D, D)     # d_ff == d_model == 2*channel
    w2, b2 = lin(keys[5], D, D)
    wl, bl = lin(keys[6], D, channel)

    return dict(
        wq=wq, bq=bq, wk=wk, bk=bk, wv=wv, bv=bv, wo=wo, bo=bo,
        ln1a=jnp.ones((1, D), jnp.float32), ln1b=jnp.zeros((1, D), jnp.float32),
        w1=w1, b1=b1, w2=w2, b2=b2,
        ln3a=jnp.ones((1, D), jnp.float32), ln3b=jnp.zeros((1, D), jnp.float32),
        wl=wl, bl=bl,
    )


# --------------------------------------------------------------------------
# Pure-JAX f32 reference (same math as the PyTorch module) for a sanity check
# --------------------------------------------------------------------------
def _ref_single(x, p, num_heads=4, eps=1e-6):
    D = x.shape[-1]
    d_k = D // num_heads

    def ln(v, a, b):
        mu = v.mean(-1, keepdims=True)
        std = jnp.sqrt(((v - mu) ** 2).sum(-1, keepdims=True) / (D - 1))
        return a * (v - mu) / (std + eps) + b

    q = x @ p["wq"] + p["bq"]
    k = x @ p["wk"] + p["bk"]
    v = x @ p["wv"] + p["bv"]
    outs = []
    for hh in range(num_heads):
        sl = slice(hh * d_k, (hh + 1) * d_k)
        s = (q[:, sl] @ k[:, sl].T) / math.sqrt(d_k)
        pmat = jax.nn.softmax(s, axis=-1)
        outs.append(pmat @ v[:, sl])
    attn = jnp.concatenate(outs, axis=-1) @ p["wo"] + p["bo"]
    r1 = ln(x + attn, p["ln1a"], p["ln1b"])
    ff = jnp.maximum(r1 @ p["w1"] + p["b1"], 0.0) @ p["w2"] + p["b2"]
    r2 = ln(r1 + ff, p["ln3a"], p["ln3b"])
    y = r2 @ p["wl"] + p["bl"]
    return y.mean(axis=0)


def reference_forward(conv_feature, params, channel):
    batch, cc, h, w = conv_feature.shape
    N = h * w
    x = conv_feature.reshape(batch, cc, N)
    pe = positionalencoding2d(channel, h, w).reshape(1, channel, N)
    pe = jnp.broadcast_to(pe, (batch, channel, N))
    x = jnp.transpose(jnp.concatenate([x, pe], axis=1), (0, 2, 1))
    return jax.vmap(lambda xb: _ref_single(xb, params))(x)


# --------------------------------------------------------------------------
if __name__ == "__main__":
    key = jax.random.PRNGKey(0)
    k_in, k_par = jax.random.split(key)

    batch, channel, H, W = 2, 4, 16, 16
    conv_feature = jax.random.normal(k_in, (batch, channel, H, W), jnp.float32)
    params = init_params(k_par, channel)

    out = feature_enhancer(conv_feature, params, channel)
    out = jax.block_until_ready(out)

    assert out.shape == (batch, channel), out.shape

    ref = reference_forward(conv_feature, params, channel)
    if not jnp.allclose(out, ref, atol=2e-2, rtol=2e-2):
        raise SystemExit(f"mismatch:\n{out}\nvs\n{ref}")

    print("KERNEL_OK")
</pallas_src>

<mosaic_0001>
module attributes {stable_mosaic.version = 11 : i64} {
  func.func @feature_enhancer_kernel(%arg0: i32, %arg1: i32, %arg2: memref<1x256x4xf32, #tpu.memory_space<vmem>>, %arg3: memref<256x4xf32, #tpu.memory_space<vmem>>, %arg4: memref<8x8xbf16, #tpu.memory_space<vmem>>, %arg5: memref<1x8xf32, #tpu.memory_space<vmem>>, %arg6: memref<8x16xbf16, #tpu.memory_space<vmem>>, %arg7: memref<1x16xf32, #tpu.memory_space<vmem>>, %arg8: memref<8x8xbf16, #tpu.memory_space<vmem>>, %arg9: memref<1x8xf32, #tpu.memory_space<vmem>>, %arg10: memref<1x8xf32, #tpu.memory_space<vmem>>, %arg11: memref<1x8xf32, #tpu.memory_space<vmem>>, %arg12: memref<8x8xbf16, #tpu.memory_space<vmem>>, %arg13: memref<1x8xf32, #tpu.memory_space<vmem>>, %arg14: memref<8x8xbf16, #tpu.memory_space<vmem>>, %arg15: memref<1x8xf32, #tpu.memory_space<vmem>>, %arg16: memref<1x8xf32, #tpu.memory_space<vmem>>, %arg17: memref<1x8xf32, #tpu.memory_space<vmem>>, %arg18: memref<8x4xbf16, #tpu.memory_space<vmem>>, %arg19: memref<1x4xf32, #tpu.memory_space<vmem>>, %arg20: memref<1x1x4xf32, #tpu.memory_space<vmem>>, %arg21: memref<256x8xf32, #tpu.memory_space<vmem>>, %arg22: memref<256x8xbf16, #tpu.memory_space<vmem>>, %arg23: memref<256x8xbf16, #tpu.memory_space<vmem>>, %arg24: memref<1x4xf32, #tpu.memory_space<vmem>>) attributes {dimension_semantics = [#tpu.dimension_semantics<parallel>, #tpu.dimension_semantics<arbitrary>], iteration_bounds = array<i64: 2, 2>, scalar_prefetch = 0 : i64, scratch_operands = 4 : i64, tpu.core_type = #tpu.core_type<tc>, window_params = [{transform_indices = @transform_0, window_bounds = array<i64: 1, 256, 4>}, {pipeline_mode = #tpu.pipeline_mode<synchronous>, transform_indices = @transform_1, window_bounds = array<i64: 256, 4>}, {pipeline_mode = #tpu.pipeline_mode<synchronous>, transform_indices = @transform_2, window_bounds = array<i64: 8, 8>}, {pipeline_mode = #tpu.pipeline_mode<synchronous>, transform_indices = @transform_3, window_bounds = array<i64: 1, 8>}, {pipeline_mode = #tpu.pipeline_mode<synchronous>, transform_indices = @transform_4, window_bounds = array<i64: 8, 16>}, {pipeline_mode = #tpu.pipeline_mode<synchronous>, transform_indices = @transform_5, window_bounds = array<i64: 1, 16>}, {pipeline_mode = #tpu.pipeline_mode<synchronous>, transform_indices = @transform_6, window_bounds = array<i64: 8, 8>}, {pipeline_mode = #tpu.pipeline_mode<synchronous>, transform_indices = @transform_7, window_bounds = array<i64: 1, 8>}, {pipeline_mode = #tpu.pipeline_mode<synchronous>, transform_indices = @transform_8, window_bounds = array<i64: 1, 8>}, {pipeline_mode = #tpu.pipeline_mode<synchronous>, transform_indices = @transform_9, window_bounds = array<i64: 1, 8>}, {pipeline_mode = #tpu.pipeline_mode<synchronous>, transform_indices = @transform_10, window_bounds = array<i64: 8, 8>}, {pipeline_mode = #tpu.pipeline_mode<synchronous>, transform_indices = @transform_11, window_bounds = array<i64: 1, 8>}, {pipeline_mode = #tpu.pipeline_mode<synchronous>, transform_indices = @transform_12, window_bounds = array<i64: 8, 8>}, {pipeline_mode = #tpu.pipeline_mode<synchronous>, transform_indices = @transform_13, window_bounds = array<i64: 1, 8>}, {pipeline_mode = #tpu.pipeline_mode<synchronous>, transform_indices = @transform_14, window_bounds = array<i64: 1, 8>}, {pipeline_mode = #tpu.pipeline_mode<synchronous>, transform_indices = @transform_15, window_bounds = array<i64: 1, 8>}, {pipeline_mode = #tpu.pipeline_mode<synchronous>, transform_indices = @transform_16, window_bounds = array<i64: 8, 4>}, {pipeline_mode = #tpu.pipeline_mode<synchronous>, transform_indices = @transform_17, window_bounds = array<i64: 1, 4>}, {transform_indices = @transform_18, window_bounds = array<i64: 1, 1, 4>}]} {
    %c0_i32 = arith.constant 0 : i32
    %0 = arith.cmpi eq, %arg1, %c0_i32 : i32
    %1 = arith.extui %0 : i1 to i32
    %c0_i32_0 = arith.constant 0 : i32
    %2 = arith.cmpi ne, %1, %c0_i32_0 : i32
    scf.if %2 {
      %c0_74 = arith.constant 0 : index
      %c0_75 = arith.constant 0 : index
      %c0_76 = arith.constant 0 : index
      %177 = vector.load %arg2[%c0_74, %c0_75, %c0_76] : memref<1x256x4xf32, #tpu.memory_space<vmem>>, vector<1x256x4xf32>
      %178 = vector.shape_cast %177 : vector<1x256x4xf32> to vector<256x4xf32>
      %c0_77 = arith.constant 0 : index
      %c0_78 = arith.constant 0 : index
      %179 = vector.load %arg3[%c0_77, %c0_78] : memref<256x4xf32, #tpu.memory_space<vmem>>, vector<256x4xf32>
      %180 = tpu.concatenate %178, %179 in 1 : vector<256x4xf32>, vector<256x4xf32> -> vector<256x8xf32>
      %c0_79 = arith.constant 0 : index
      %c0_80 = arith.constant 0 : index
      %181 = vector.load %arg21[%c0_79, %c0_80] : memref<256x8xf32, #tpu.memory_space<vmem>>, vector<256x8xf32>
      tpu.vector_store %arg21[%c0_79, %c0_80], %180 {strides = array<i32>} : memref<256x8xf32, #tpu.memory_space<vmem>>, vector<256x8xf32>,
      %182 = arith.truncf %180 : vector<256x8xf32> to vector<256x8xbf16>
      %c0_81 = arith.constant 0 : index
      %c0_82 = arith.constant 0 : index
      %183 = vector.load %arg6[%c0_81, %c0_82] : memref<8x16xbf16, #tpu.memory_space<vmem>>, vector<8x16xbf16>
      %cst_83 = arith.constant dense<0.000000e+00> : vector<256x16xf32>
      %184 = tpu.matmul %182, %183, %cst_83 {dimension_numbers = #tpu.dot_dimension_numbers<[1], [0], [0], [1], [0, 0, 1, 1], [], []>} : vector<256x8xbf16>, vector<8x16xbf16>, vector<256x16xf32> -> vector<256x16xf32>
      %c0_84 = arith.constant 0 : index
      %c0_85 = arith.constant 0 : index
      %185 = vector.load %arg7[%c0_84, %c0_85] : memref<1x16xf32, #tpu.memory_space<vmem>>, vector<1x16xf32>
      %186 = vector.broadcast %185 : vector<1x16xf32> to vector<256x16xf32>
      %187 = arith.addf %184, %186 : vector<256x16xf32>
      %188 = vector.extract_strided_slice %187 {offsets = [0, 0], sizes = [256, 8], strides = [1, 1]} : vector<256x16xf32> to vector<256x8xf32>
      %189 = arith.truncf %188 : vector<256x8xf32> to vector<256x8xbf16>
      %c0_86 = arith.constant 0 : index
      %c0_87 = arith.constant 0 : index
      %190 = vector.load %arg22[%c0_86, %c0_87] : memref<256x8xbf16, #tpu.memory_space<vmem>>, vector<256x8xbf16>
      tpu.vector_store %arg22[%c0_86, %c0_87], %189 {strides = array<i32>} : memref<256x8xbf16, #tpu.memory_space<vmem>>, vector<256x8xbf16>,
      %191 = vector.extract_strided_slice %187 {offsets = [0, 8], sizes = [256, 8], strides = [1, 1]} : vector<256x16xf32> to vector<256x8xf32>
      %192 = arith.truncf %191 : vector<256x8xf32> to vector<256x8xbf16>
      %c0_88 = arith.constant 0 : index
      %c0_89 = arith.constant 0 : index
      %193 = vector.load %arg23[%c0_88, %c0_89] : memref<256x8xbf16, #tpu.memory_space<vmem>>, vector<256x8xbf16>
      tpu.vector_store %arg23[%c0_88, %c0_89], %192 {strides = array<i32>} : memref<256x8xbf16, #tpu.memory_space<vmem>>, vector<256x8xbf16>,
      %cst_90 = arith.constant 0.000000e+00 : f32
      %194 = vector.broadcast %cst_90 : f32 to vector<1x4xf32>
      %c0_91 = arith.constant 0 : index
      %c0_92 = arith.constant 0 : index
      %195 = vector.load %arg24[%c0_91, %c0_92] : memref<1x4xf32, #tpu.memory_space<vmem>>, vector<1x4xf32>
      tpu.vector_store %arg24[%c0_91, %c0_92], %194 {strides = array<i32>} : memref<1x4xf32, #tpu.memory_space<vmem>>, vector<1x4xf32>,
    } else {
    }
    %c128_i32 = arith.constant 128 : i32
    %3 = arith.muli %arg1, %c128_i32 : i32
    %4 = tpu.assume_multiple %3, 128 : i32
    %5 = arith.index_cast %4 : i32 to index
    %c0 = arith.constant 0 : index
    %6 = vector.load %arg21[%5, %c0] : memref<256x8xf32, #tpu.memory_space<vmem>>, vector<128x8xf32>
    %7 = arith.truncf %6 : vector<128x8xf32> to vector<128x8xbf16>
    %c0_1 = arith.constant 0 : index
    %c0_2 = arith.constant 0 : index
    %8 = vector.load %arg4[%c0_1, %c0_2] : memref<8x8xbf16, #tpu.memory_space<vmem>>, vector<8x8xbf16>
    %cst = arith.constant dense<0.000000e+00> : vector<128x8xf32>
    %9 = tpu.matmul %7, %8, %cst {dimension_numbers = #tpu.dot_dimension_numbers<[1], [0], [0], [1], [0, 0, 1, 1], [], []>} : vector<128x8xbf16>, vector<8x8xbf16>, vector<128x8xf32> -> vector<128x8xf32>
    %c0_3 = arith.constant 0 : index
    %c0_4 = arith.constant 0 : index
    %10 = vector.load %arg5[%c0_3, %c0_4] : memref<1x8xf32, #tpu.memory_space<vmem>>, vector<1x8xf32>
    %11 = vector.broadcast %10 : vector<1x8xf32> to vector<128x8xf32>
    %12 = arith.addf %9, %11 : vector<128x8xf32>
    %13 = arith.truncf %12 : vector<128x8xf32> to vector<128x8xbf16>
    %c0_5 = arith.constant 0 : index
    %c0_6 = arith.constant 0 : index
    %14 = vector.load %arg22[%c0_5, %c0_6] : memref<256x8xbf16, #tpu.memory_space<vmem>>, vector<256x8xbf16>
    %c0_7 = arith.constant 0 : index
    %c0_8 = arith.constant 0 : index
    %15 = vector.load %arg23[%c0_7, %c0_8] : memref<256x8xbf16, #tpu.memory_space<vmem>>, vector<256x8xbf16>
    %c0_9 = arith.constant 0 : index
    %c0_10 = arith.constant 0 : index
    %16 = vector.load %arg8[%c0_9, %c0_10] : memref<8x8xbf16, #tpu.memory_space<vmem>>, vector<8x8xbf16>
    %cst_11 = arith.constant 0.000000e+00 : f32
    %17 = vector.broadcast %cst_11 : f32 to vector<128x8xf32>
    %18 = vector.extract_strided_slice %13 {offsets = [0, 0], sizes = [128, 2], strides = [1, 1]} : vector<128x8xbf16> to vector<128x2xbf16>
    %19 = vector.extract_strided_slice %14 {offsets = [0, 0], sizes = [256, 2], strides = [1, 1]} : vector<256x8xbf16> to vector<256x2xbf16>
    %cst_12 = arith.constant dense<0.000000e+00> : vector<128x256xf32>
    %20 = tpu.matmul %18, %19, %cst_12 {dimension_numbers = #tpu.dot_dimension_numbers<[1], [1], [0], [0], [0, 0, 1, 0], [], []>} : vector<128x2xbf16>, vector<256x2xbf16>, vector<128x256xf32> -> vector<128x256xf32>
    %cst_13 = arith.constant dense<0xFF800000> : vector<128xf32>
    %21 = vector.multi_reduction <maximumf>, %20, %cst_13 [1] : vector<128x256xf32> to vector<128xf32>
    %22 = vector.shape_cast %21 : vector<128xf32> to vector<128x1xf32>
    %23 = vector.broadcast %22 : vector<128x1xf32> to vector<128x256xf32>
    %24 = arith.subf %20, %23 : vector<128x256xf32>
    %25 = math.exp %24 : vector<128x256xf32>
    %cst_14 = arith.constant dense<0.000000e+00> : vector<128xf32>
    %26 = vector.multi_reduction <add>, %25, %cst_14 [1] : vector<128x256xf32> to vector<128xf32>
    %27 = vector.shape_cast %26 : vector<128xf32> to vector<128x1xf32>
    %28 = tpu.reciprocal %27 {approx = true} : vector<128x1xf32> -> vector<128x1xf32>
    %29 = vector.broadcast %28 : vector<128x1xf32> to vector<128x256xf32>
    %30 = arith.mulf %25, %29 : vector<128x256xf32>
    %31 = arith.truncf %30 : vector<128x256xf32> to vector<128x256xbf16>
    %32 = vector.extract_strided_slice %15 {offsets = [0, 0], sizes = [256, 2], strides = [1, 1]} : vector<256x8xbf16> to vector<256x2xbf16>
    %cst_15 = arith.constant dense<0.000000e+00> : vector<128x2xf32>
    %33 = tpu.matmul %31, %32, %cst_15 {dimension_numbers = #tpu.dot_dimension_numbers<[1], [0], [0], [1], [0, 0, 1, 1], [], []>} : vector<128x256xbf16>, vector<256x2xbf16>, vector<128x2xf32> -> vector<128x2xf32>
    %34 = arith.truncf %33 : vector<128x2xf32> to vector<128x2xbf16>
    %35 = vector.extract_strided_slice %16 {offsets = [0, 0], sizes = [2, 8], strides = [1, 1]} : vector<8x8xbf16> to vector<2x8xbf16>
    %cst_16 = arith.constant dense<0.000000e+00> : vector<128x8xf32>
    %36 = tpu.matmul %34, %35, %cst_16 {dimension_numbers = #tpu.dot_dimension_numbers<[1], [0], [0], [1], [0, 0, 1, 1], [], []>} : vector<128x2xbf16>, vector<2x8xbf16>, vector<128x8xf32> -> vector<128x8xf32>
    %37 = arith.addf %17, %36 : vector<128x8xf32>
    %38 = vector.extract_strided_slice %13 {offsets = [0, 2], sizes = [128, 2], strides = [1, 1]} : vector<128x8xbf16> to vector<128x2xbf16>
    %39 = vector.extract_strided_slice %14 {offsets = [0, 2], sizes = [256, 2], strides = [1, 1]} : vector<256x8xbf16> to vector<256x2xbf16>
    %cst_17 = arith.constant dense<0.000000e+00> : vector<128x256xf32>
    %40 = tpu.matmul %38, %39, %cst_17 {dimension_numbers = #tpu.dot_dimension_numbers<[1], [1], [0], [0], [0, 0, 1, 0], [], []>} : vector<128x2xbf16>, vector<256x2xbf16>, vector<128x256xf32> -> vector<128x256xf32>
    %cst_18 = arith.constant dense<0xFF800000> : vector<128xf32>
    %41 = vector.multi_reduction <maximumf>, %40, %cst_18 [1] : vector<128x256xf32> to vector<128xf32>
    %42 = vector.shape_cast %41 : vector<128xf32> to vector<128x1xf32>
    %43 = vector.broadcast %42 : vector<128x1xf32> to vector<128x256xf32>
    %44 = arith.subf %40, %43 : vector<128x256xf32>
    %45 = math.exp %44 : vector<128x256xf32>
    %cst_19 = arith.constant dense<0.000000e+00> : vector<128xf32>
    %46 = vector.multi_reduction <add>, %45, %cst_19 [1] : vector<128x256xf32> to vector<128xf32>
    %47 = vector.shape_cast %46 : vector<128xf32> to vector<128x1xf32>
    %48 = tpu.reciprocal %47 {approx = true} : vector<128x1xf32> -> vector<128x1xf32>
    %49 = vector.broadcast %48 : vector<128x1xf32> to vector<128x256xf32>
    %50 = arith.mulf %45, %49 : vector<128x256xf32>
    %51 = arith.truncf %50 : vector<128x256xf32> to vector<128x256xbf16>
    %52 = vector.extract_strided_slice %15 {offsets = [0, 2], sizes = [256, 2], strides = [1, 1]} : vector<256x8xbf16> to vector<256x2xbf16>
    %cst_20 = arith.constant dense<0.000000e+00> : vector<128x2xf32>
    %53 = tpu.matmul %51, %52, %cst_20 {dimension_numbers = #tpu.dot_dimension_numbers<[1], [0], [0], [1], [0, 0, 1, 1], [], []>} : vector<128x256xbf16>, vector<256x2xbf16>, vector<128x2xf32> -> vector<128x2xf32>
    %54 = arith.truncf %53 : vector<128x2xf32> to vector<128x2xbf16>
    %55 = vector.extract_strided_slice %16 {offsets = [2, 0], sizes = [2, 8], strides = [1, 1]} : vector<8x8xbf16> to vector<2x8xbf16>
    %cst_21 = arith.constant dense<0.000000e+00> : vector<128x8xf32>
    %56 = tpu.matmul %54, %55, %cst_21 {dimension_numbers = #tpu.dot_dimension_numbers<[1], [0], [0], [1], [0, 0, 1, 1], [], []>} : vector<128x2xbf16>, vector<2x8xbf16>, vector<128x8xf32> -> vector<128x8xf32>
    %57 = arith.addf %37, %56 : vector<128x8xf32>
    %58 = vector.extract_strided_slice %13 {offsets = [0, 4], sizes = [128, 2], strides = [1, 1]} : vector<128x8xbf16> to vector<128x2xbf16>
    %59 = vector.extract_strided_slice %14 {offsets = [0, 4], sizes = [256, 2], strides = [1, 1]} : vector<256x8xbf16> to vector<256x2xbf16>
    %cst_22 = arith.constant dense<0.000000e+00> : vector<128x256xf32>
    %60 = tpu.matmul %58, %59, %cst_22 {dimension_numbers = #tpu.dot_dimension_numbers<[1], [1], [0], [0], [0, 0, 1, 0], [], []>} : vector<128x2xbf16>, vector<256x2xbf16>, vector<128x256xf32> -> vector<128x256xf32>
    %cst_23 = arith.constant dense<0xFF800000> : vector<128xf32>
    %61 = vector.multi_reduction <maximumf>, %60, %cst_23 [1] : vector<128x256xf32> to vector<128xf32>
    %62 = vector.shape_cast %61 : vector<128xf32> to vector<128x1xf32>
    %63 = vector.broadcast %62 : vector<128x1xf32> to vector<128x256xf32>
    %64 = arith.subf %60, %63 : vector<128x256xf32>
    %65 = math.exp %64 : vector<128x256xf32>
    %cst_24 = arith.constant dense<0.000000e+00> : vector<128xf32>
    %66 = vector.multi_reduction <add>, %65, %cst_24 [1] : vector<128x256xf32> to vector<128xf32>
    %67 = vector.shape_cast %66 : vector<128xf32> to vector<128x1xf32>
    %68 = tpu.reciprocal %67 {approx = true} : vector<128x1xf32> -> vector<128x1xf32>
    %69 = vector.broadcast %68 : vector<128x1xf32> to vector<128x256xf32>
    %70 = arith.mulf %65, %69 : vector<128x256xf32>
    %71 = arith.truncf %70 : vector<128x256xf32> to vector<128x256xbf16>
    %72 = vector.extract_strided_slice %15 {offsets = [0, 4], sizes = [256, 2], strides = [1, 1]} : vector<256x8xbf16> to vector<256x2xbf16>
    %cst_25 = arith.constant dense<0.000000e+00> : vector<128x2xf32>
    %73 = tpu.matmul %71, %72, %cst_25 {dimension_numbers = #tpu.dot_dimension_numbers<[1], [0], [0], [1], [0, 0, 1, 1], [], []>} : vector<128x256xbf16>, vector<256x2xbf16>, vector<128x2xf32> -> vector<128x2xf32>
    %74 = arith.truncf %73 : vector<128x2xf32> to vector<128x2xbf16>
    %75 = vector.extract_strided_slice %16 {offsets = [4, 0], sizes = [2, 8], strides = [1, 1]} : vector<8x8xbf16> to vector<2x8xbf16>
    %cst_26 = arith.constant dense<0.000000e+00> : vector<128x8xf32>
    %76 = tpu.matmul %74, %75, %cst_26 {dimension_numbers = #tpu.dot_dimension_numbers<[1], [0], [0], [1], [0, 0, 1, 1], [], []>} : vector<128x2xbf16>, vector<2x8xbf16>, vector<128x8xf32> -> vector<128x8xf32>
    %77 = arith.addf %57, %76 : vector<128x8xf32>
    %78 = vector.extract_strided_slice %13 {offsets = [0, 6], sizes = [128, 2], strides = [1, 1]} : vector<128x8xbf16> to vector<128x2xbf16>
    %79 = vector.extract_strided_slice %14 {offsets = [0, 6], sizes = [256, 2], strides = [1, 1]} : vector<256x8xbf16> to vector<256x2xbf16>
    %cst_27 = arith.constant dense<0.000000e+00> : vector<128x256xf32>
    %80 = tpu.matmul %78, %79, %cst_27 {dimension_numbers = #tpu.dot_dimension_numbers<[1], [1], [0], [0], [0, 0, 1, 0], [], []>} : vector<128x2xbf16>, vector<256x2xbf16>, vector<128x256xf32> -> vector<128x256xf32>
    %cst_28 = arith.constant dense<0xFF800000> : vector<128xf32>
    %81 = vector.multi_reduction <maximumf>, %80, %cst_28 [1] : vector<128x256xf32> to vector<128xf32>
    %82 = vector.shape_cast %81 : vector<128xf32> to vector<128x1xf32>
    %83 = vector.broadcast %82 : vector<128x1xf32> to vector<128x256xf32>
    %84 = arith.subf %80, %83 : vector<128x256xf32>
    %85 = math.exp %84 : vector<128x256xf32>
    %cst_29 = arith.constant dense<0.000000e+00> : vector<128xf32>
    %86 = vector.multi_reduction <add>, %85, %cst_29 [1] : vector<128x256xf32> to vector<128xf32>
    %87 = vector.shape_cast %86 : vector<128xf32> to vector<128x1xf32>
    %88 = tpu.reciprocal %87 {approx = true} : vector<128x1xf32> -> vector<128x1xf32>
    %89 = vector.broadcast %88 : vector<128x1xf32> to vector<128x256xf32>
    %90 = arith.mulf %85, %89 : vector<128x256xf32>
    %91 = arith.truncf %90 : vector<128x256xf32> to vector<128x256xbf16>
    %92 = vector.extract_strided_slice %15 {offsets = [0, 6], sizes = [256, 2], strides = [1, 1]} : vector<256x8xbf16> to vector<256x2xbf16>
    %cst_30 = arith.constant dense<0.000000e+00> : vector<128x2xf32>
    %93 = tpu.matmul %91, %92, %cst_30 {dimension_numbers = #tpu.dot_dimension_numbers<[1], [0], [0], [1], [0, 0, 1, 1], [], []>} : vector<128x256xbf16>, vector<256x2xbf16>, vector<128x2xf32> -> vector<128x2xf32>
    %94 = arith.truncf %93 : vector<128x2xf32> to vector<128x2xbf16>
    %95 = vector.extract_strided_slice %16 {offsets = [6, 0], sizes = [2, 8], strides = [1, 1]} : vector<8x8xbf16> to vector<2x8xbf16>
    %cst_31 = arith.constant dense<0.000000e+00> : vector<128x8xf32>
    %96 = tpu.matmul %94, %95, %cst_31 {dimension_numbers = #tpu.dot_dimension_numbers<[1], [0], [0], [1], [0, 0, 1, 1], [], []>} : vector<128x2xbf16>, vector<2x8xbf16>, vector<128x8xf32> -> vector<128x8xf32>
    %97 = arith.addf %77, %96 : vector<128x8xf32>
    %c0_32 = arith.constant 0 : index
    %c0_33 = arith.constant 0 : index
    %98 = vector.load %arg9[%c0_32, %c0_33] : memref<1x8xf32, #tpu.memory_space<vmem>>, vector<1x8xf32>
    %99 = vector.broadcast %98 : vector<1x8xf32> to vector<128x8xf32>
    %100 = arith.addf %97, %99 : vector<128x8xf32>
    %101 = arith.addf %6, %100 : vector<128x8xf32>
    %c0_34 = arith.constant 0 : index
    %c0_35 = arith.constant 0 : index
    %102 = vector.load %arg10[%c0_34, %c0_35] : memref<1x8xf32, #tpu.memory_space<vmem>>, vector<1x8xf32>
    %c0_36 = arith.constant 0 : index
    %c0_37 = arith.constant 0 : index
    %103 = vector.load %arg11[%c0_36, %c0_37] : memref<1x8xf32, #tpu.memory_space<vmem>>, vector<1x8xf32>
    %cst_38 = arith.constant dense<0.000000e+00> : vector<128xf32>
    %104 = vector.multi_reduction <add>, %101, %cst_38 [1] : vector<128x8xf32> to vector<128xf32>
    %105 = vector.shape_cast %104 : vector<128xf32> to vector<128x1xf32>
    %cst_39 = arith.constant 8.000000e+00 : f32
    %106 = vector.broadcast %cst_39 : f32 to vector<128x1xf32>
    %107 = arith.divf %105, %106 : vector<128x1xf32>
    %108 = vector.broadcast %107 : vector<128x1xf32> to vector<128x8xf32>
    %109 = arith.subf %101, %108 : vector<128x8xf32>
    %110 = arith.mulf %109, %109 : vector<128x8xf32>
    %cst_40 = arith.constant dense<0.000000e+00> : vector<128xf32>
    %111 = vector.multi_reduction <add>, %110, %cst_40 [1] : vector<128x8xf32> to vector<128xf32>
    %112 = vector.shape_cast %111 : vector<128xf32> to vector<128x1xf32>
    %cst_41 = arith.constant 7.000000e+00 : f32
    %113 = vector.broadcast %cst_41 : f32 to vector<128x1xf32>
    %114 = arith.divf %112, %113 : vector<128x1xf32>
    %115 = math.sqrt %114 : vector<128x1xf32>
    %116 = vector.broadcast %102 : vector<1x8xf32> to vector<128x8xf32>
    %117 = arith.mulf %116, %109 : vector<128x8xf32>
    %cst_42 = arith.constant 9.99999997E-7 : f32
    %118 = vector.broadcast %cst_42 : f32 to vector<128x1xf32>
    %119 = arith.addf %115, %118 : vector<128x1xf32>
    %120 = tpu.reciprocal %119 {approx = true} : vector<128x1xf32> -> vector<128x1xf32>
    %121 = vector.broadcast %120 : vector<128x1xf32> to vector<128x8xf32>
    %122 = arith.mulf %117, %121 : vector<128x8xf32>
    %123 = vector.broadcast %103 : vector<1x8xf32> to vector<128x8xf32>
    %124 = arith.addf %122, %123 : vector<128x8xf32>
    %125 = arith.truncf %124 : vector<128x8xf32> to vector<128x8xbf16>
    %c0_43 = arith.constant 0 : index
    %c0_44 = arith.constant 0 : index
    %126 = vector.load %arg12[%c0_43, %c0_44] : memref<8x8xbf16, #tpu.memory_space<vmem>>, vector<8x8xbf16>
    %cst_45 = arith.constant dense<0.000000e+00> : vector<128x8xf32>
    %127 = tpu.matmul %125, %126, %cst_45 {dimension_numbers = #tpu.dot_dimension_numbers<[1], [0], [0], [1], [0, 0, 1, 1], [], []>} : vector<128x8xbf16>, vector<8x8xbf16>, vector<128x8xf32> -> vector<128x8xf32>
    %c0_46 = arith.constant 0 : index
    %c0_47 = arith.constant 0 : index
    %128 = vector.load %arg13[%c0_46, %c0_47] : memref<1x8xf32, #tpu.memory_space<vmem>>, vector<1x8xf32>
    %129 = vector.broadcast %128 : vector<1x8xf32> to vector<128x8xf32>
    %130 = arith.addf %127, %129 : vector<128x8xf32>
    %cst_48 = arith.constant 0.000000e+00 : f32
    %131 = vector.broadcast %cst_48 : f32 to vector<128x8xf32>
    %132 = arith.maximumf %130, %131 : vector<128x8xf32>
    %133 = arith.truncf %132 : vector<128x8xf32> to vector<128x8xbf16>
    %c0_49 = arith.constant 0 : index
    %c0_50 = arith.constant 0 : index
    %134 = vector.load %arg14[%c0_49, %c0_50] : memref<8x8xbf16, #tpu.memory_space<vmem>>, vector<8x8xbf16>
    %cst_51 = arith.constant dense<0.000000e+00> : vector<128x8xf32>
    %135 = tpu.matmul %133, %134, %cst_51 {dimension_numbers = #tpu.dot_dimension_numbers<[1], [0], [0], [1], [0, 0, 1, 1], [], []>} : vector<128x8xbf16>, vector<8x8xbf16>, vector<128x8xf32> -> vector<128x8xf32>
    %c0_52 = arith.constant 0 : index
    %c0_53 = arith.constant 0 : index
    %136 = vector.load %arg15[%c0_52, %c0_53] : memref<1x8xf32, #tpu.memory_space<vmem>>, vector<1x8xf32>
    %137 = vector.broadcast %136 : vector<1x8xf32> to vector<128x8xf32>
    %138 = arith.addf %135, %137 : vector<128x8xf32>
    %139 = arith.addf %124, %138 : vector<128x8xf32>
    %c0_54 = arith.constant 0 : index
    %c0_55 = arith.constant 0 : index
    %140 = vector.load %arg16[%c0_54, %c0_55] : memref<1x8xf32, #tpu.memory_space<vmem>>, vector<1x8xf32>
    %c0_56 = arith.constant 0 : index
    %c0_57 = arith.constant 0 : index
    %141 = vector.load %arg17[%c0_56, %c0_57] : memref<1x8xf32, #tpu.memory_space<vmem>>, vector<1x8xf32>
    %cst_58 = arith.constant dense<0.000000e+00> : vector<128xf32>
    %142 = vector.multi_reduction <add>, %139, %cst_58 [1] : vector<128x8xf32> to vector<128xf32>
    %143 = vector.shape_cast %142 : vector<128xf32> to vector<128x1xf32>
    %cst_59 = arith.constant 8.000000e+00 : f32
    %144 = vector.broadcast %cst_59 : f32 to vector<128x1xf32>
    %145 = arith.divf %143, %144 : vector<128x1xf32>
    %146 = vector.broadcast %145 : vector<128x1xf32> to vector<128x8xf32>
    %147 = arith.subf %139, %146 : vector<128x8xf32>
    %148 = arith.mulf %147, %147 : vector<128x8xf32>
    %cst_60 = arith.constant dense<0.000000e+00> : vector<128xf32>
    %149 = vector.multi_reduction <add>, %148, %cst_60 [1] : vector<128x8xf32> to vector<128xf32>
    %150 = vector.shape_cast %149 : vector<128xf32> to vector<128x1xf32>
    %cst_61 = arith.constant 7.000000e+00 : f32
    %151 = vector.broadcast %cst_61 : f32 to vector<128x1xf32>
    %152 = arith.divf %150, %151 : vector<128x1xf32>
    %153 = math.sqrt %152 : vector<128x1xf32>
    %154 = vector.broadcast %140 : vector<1x8xf32> to vector<128x8xf32>
    %155 = arith.mulf %154, %147 : vector<128x8xf32>
    %cst_62 = arith.constant 9.99999997E-7 : f32
    %156 = vector.broadcast %cst_62 : f32 to vector<128x1xf32>
    %157 = arith.addf %153, %156 : vector<128x1xf32>
    %158 = tpu.reciprocal %157 {approx = true} : vector<128x1xf32> -> vector<128x1xf32>
    %159 = vector.broadcast %158 : vector<128x1xf32> to vector<128x8xf32>
    %160 = arith.mulf %155, %159 : vector<128x8xf32>
    %161 = vector.broadcast %141 : vector<1x8xf32> to vector<128x8xf32>
    %162 = arith.addf %160, %161 : vector<128x8xf32>
    %163 = arith.truncf %162 : vector<128x8xf32> to vector<128x8xbf16>
    %c0_63 = arith.constant 0 : index
    %c0_64 = arith.constant 0 : index
    %164 = vector.load %arg18[%c0_63, %c0_64] : memref<8x4xbf16, #tpu.memory_space<vmem>>, vector<8x4xbf16>
    %cst_65 = arith.constant dense<0.000000e+00> : vector<128x4xf32>
    %165 = tpu.matmul %163, %164, %cst_65 {dimension_numbers = #tpu.dot_dimension_numbers<[1], [0], [0], [1], [0, 0, 1, 1], [], []>} : vector<128x8xbf16>, vector<8x4xbf16>, vector<128x4xf32> -> vector<128x4xf32>
    %c0_66 = arith.constant 0 : index
    %c0_67 = arith.constant 0 : index
    %166 = vector.load %arg19[%c0_66, %c0_67] : memref<1x4xf32, #tpu.memory_space<vmem>>, vector<1x4xf32>
    %167 = vector.broadcast %166 : vector<1x4xf32> to vector<128x4xf32>
    %168 = arith.addf %165, %167 : vector<128x4xf32>
    %c0_68 = arith.constant 0 : index
    %c0_69 = arith.constant 0 : index
    %169 = vector.load %arg24[%c0_68, %c0_69] : memref<1x4xf32, #tpu.memory_space<vmem>>, vector<1x4xf32>
    %cst_70 = arith.constant dense<0.000000e+00> : vector<4xf32>
    %170 = vector.multi_reduction <add>, %168, %cst_70 [0] : vector<128x4xf32> to vector<4xf32>
    %171 = vector.shape_cast %170 : vector<4xf32> to vector<1x4xf32>
    %172 = arith.addf %169, %171 : vector<1x4xf32>
    %c0_71 = arith.constant 0 : index
    %c0_72 = arith.constant 0 : index
    %173 = vector.load %arg24[%c0_71, %c0_72] : memref<1x4xf32, #tpu.memory_space<vmem>>, vector<1x4xf32>
    tpu.vector_store %arg24[%c0_71, %c0_72], %172 {strides = array<i32>} : memref<1x4xf32, #tpu.memory_space<vmem>>, vector<1x4xf32>,
    %c1_i32 = arith.constant 1 : i32
    %174 = arith.cmpi eq, %arg1, %c1_i32 : i32
    %175 = arith.extui %174 : i1 to i32
    %c0_i32_73 = arith.constant 0 : i32
    %176 = arith.cmpi ne, %175, %c0_i32_73 : i32
    scf.if %176 {
      %c0_74 = arith.constant 0 : index
      %c0_75 = arith.constant 0 : index
      %177 = vector.load %arg24[%c0_74, %c0_75] : memref<1x4xf32, #tpu.memory_space<vmem>>, vector<1x4xf32>
      %cst_76 = arith.constant 3.906250e-03 : f32
      %178 = vector.broadcast %cst_76 : f32 to vector<1x4xf32>
      %179 = arith.mulf %177, %178 : vector<1x4xf32>
      %180 = vector.shape_cast %179 : vector<1x4xf32> to vector<1x1x4xf32>
      %c0_77 = arith.constant 0 : index
      %c0_78 = arith.constant 0 : index
      %c0_79 = arith.constant 0 : index
      %181 = vector.load %arg20[%c0_77, %c0_78, %c0_79] : memref<1x1x4xf32, #tpu.memory_space<vmem>>, vector<1x1x4xf32>
      tpu.vector_store %arg20[%c0_77, %c0_78, %c0_79], %180 {strides = array<i32>} : memref<1x1x4xf32, #tpu.memory_space<vmem>>, vector<1x1x4xf32>,
    } else {
    }
    return
  }
  func.func @transform_0(%arg0: i32, %arg1: i32) -> (i32, i32, i32) {
    %c0_i32 = arith.constant 0 : i32
    %c0_i32_0 = arith.constant 0 : i32
    %c0_i32_1 = arith.constant 0 : i32
    return %arg0, %c0_i32, %c0_i32_0 : i32, i32, i32
  }
  func.func @transform_1(%arg0: i32, %arg1: i32) -> (i32, i32) {
    %c0_i32 = arith.constant 0 : i32
    %c0_i32_0 = arith.constant 0 : i32
    %c0_i32_1 = arith.constant 0 : i32
    return %c0_i32, %c0_i32_0 : i32, i32
  }
  func.func @transform_2(%arg0: i32, %arg1: i32) -> (i32, i32) {
    %c0_i32 = arith.constant 0 : i32
    %c0_i32_0 = arith.constant 0 : i32
    %c0_i32_1 = arith.constant 0 : i32
    return %c0_i32, %c0_i32_0 : i32, i32
  }
  func.func @transform_3(%arg0: i32, %arg1: i32) -> (i32, i32) {
    %c0_i32 = arith.constant 0 : i32
    %c0_i32_0 = arith.constant 0 : i32
    %c0_i32_1 = arith.constant 0 : i32
    return %c0_i32, %c0_i32_0 : i32, i32
  }
  func.func @transform_4(%arg0: i32, %arg1: i32) -> (i32, i32) {
    %c0_i32 = arith.constant 0 : i32
    %c0_i32_0 = arith.constant 0 : i32
    %c0_i32_1 = arith.constant 0 : i32
    return %c0_i32, %c0_i32_0 : i32, i32
  }
  func.func @transform_5(%arg0: i32, %arg1: i32) -> (i32, i32) {
    %c0_i32 = arith.constant 0 : i32
    %c0_i32_0 = arith.constant 0 : i32
    %c0_i32_1 = arith.constant 0 : i32
    return %c0_i32, %c0_i32_0 : i32, i32
  }
  func.func @transform_6(%arg0: i32, %arg1: i32) -> (i32, i32) {
    %c0_i32 = arith.constant 0 : i32
    %c0_i32_0 = arith.constant 0 : i32
    %c0_i32_1 = arith.constant 0 : i32
    return %c0_i32, %c0_i32_0 : i32, i32
  }
  func.func @transform_7(%arg0: i32, %arg1: i32) -> (i32, i32) {
    %c0_i32 = arith.constant 0 : i32
    %c0_i32_0 = arith.constant 0 : i32
    %c0_i32_1 = arith.constant 0 : i32
    return %c0_i32, %c0_i32_0 : i32, i32
  }
  func.func @transform_8(%arg0: i32, %arg1: i32) -> (i32, i32) {
    %c0_i32 = arith.constant 0 : i32
    %c0_i32_0 = arith.constant 0 : i32
    %c0_i32_1 = arith.constant 0 : i32
    return %c0_i32, %c0_i32_0 : i32, i32
  }
  func.func @transform_9(%arg0: i32, %arg1: i32) -> (i32, i32) {
    %c0_i32 = arith.constant 0 : i32
    %c0_i32_0 = arith.constant 0 : i32
    %c0_i32_1 = arith.constant 0 : i32
    return %c0_i32, %c0_i32_0 : i32, i32
  }
  func.func @transform_10(%arg0: i32, %arg1: i32) -> (i32, i32) {
    %c0_i32 = arith.constant 0 : i32
    %c0_i32_0 = arith.constant 0 : i32
    %c0_i32_1 = arith.constant 0 : i32
    return %c0_i32, %c0_i32_0 : i32, i32
  }
  func.func @transform_11(%arg0: i32, %arg1: i32) -> (i32, i32) {
    %c0_i32 = arith.constant 0 : i32
    %c0_i32_0 = arith.constant 0 : i32
    %c0_i32_1 = arith.constant 0 : i32
    return %c0_i32, %c0_i32_0 : i32, i32
  }
  func.func @transform_12(%arg0: i32, %arg1: i32) -> (i32, i32) {
    %c0_i32 = arith.constant 0 : i32
    %c0_i32_0 = arith.constant 0 : i32
    %c0_i32_1 = arith.constant 0 : i32
    return %c0_i32, %c0_i32_0 : i32, i32
  }
  func.func @transform_13(%arg0: i32, %arg1: i32) -> (i32, i32) {
    %c0_i32 = arith.constant 0 : i32
    %c0_i32_0 = arith.constant 0 : i32
    %c0_i32_1 = arith.constant 0 : i32
    return %c0_i32, %c0_i32_0 : i32, i32
  }
  func.func @transform_14(%arg0: i32, %arg1: i32) -> (i32, i32) {
    %c0_i32 = arith.constant 0 : i32
    %c0_i32_0 = arith.constant 0 : i32
    %c0_i32_1 = arith.constant 0 : i32
    return %c0_i32, %c0_i32_0 : i32, i32
  }
  func.func @transform_15(%arg0: i32, %arg1: i32) -> (i32, i32) {
    %c0_i32 = arith.constant 0 : i32
    %c0_i32_0 = arith.constant 0 : i32
    %c0_i32_1 = arith.constant 0 : i32
    return %c0_i32, %c0_i32_0 : i32, i32
  }
  func.func @transform_16(%arg0: i32, %arg1: i32) -> (i32, i32) {
    %c0_i32 = arith.constant 0 : i32
    %c0_i32_0 = arith.constant 0 : i32
    %c0_i32_1 = arith.constant 0 : i32
    return %c0_i32, %c0_i32_0 : i32, i32
  }
  func.func @transform_17(%arg0: i32, %arg1: i32) -> (i32, i32) {
    %c0_i32 = arith.constant 0 : i32
    %c0_i32_0 = arith.constant 0 : i32
    %c0_i32_1 = arith.constant 0 : i32
    return %c0_i32, %c0_i32_0 : i32, i32
  }
  func.func @transform_18(%arg0: i32, %arg1: i32) -> (i32, i32, i32) {
    %c0_i32 = arith.constant 0 : i32
    %c0_i32_0 = arith.constant 0 : i32
    %c0_i32_1 = arith.constant 0 : i32
    return %arg0, %c0_i32, %c0_i32_0 : i32, i32, i32
  }
}

</mosaic_0001>

<bundles_post_ra>
// kernel: tpu_custom_call.1
= control target key start
LH: loop header
LB: loop body
LE: loop exit
PB: predicated region body
PF: predicated region fallthrough
CT: control target
= control target key end

     0   :  { %s10412_s0 = inlined_call_operand.vmem [shape: f32[2,256,4], index: 0, kind: input, shape index: {}]   ;;  %s10413_s1 = inlined_call_operand.vmem [shape: f32[256,4], index: 1, kind: input, shape index: {}]   ;;  %s10414_s2 = inlined_call_operand.vmem [shape: bf16[8,8], index: 2, kind: input, shape index: {}]   ;;  %s10415_s3 = inlined_call_operand.vmem [shape: f32[1,8], index: 3, kind: input, shape index: {}]   ;;  %s10416_s4 = inlined_call_operand.vmem [shape: bf16[8,16], index: 4, kind: input, shape index: {}]   ;;  %s10417_s5 = inlined_call_operand.vmem [shape: f32[1,16], index: 5, kind: input, shape index: {}]   ;;  %s10418_s6 = inlined_call_operand.vmem [shape: bf16[8,8], index: 6, kind: input, shape index: {}]   ;;  %s10419_s7 = inlined_call_operand.vmem [shape: f32[1,8], index: 7, kind: input, shape index: {}]   ;;  %s10420_s8 = inlined_call_operand.vmem [shape: f32[1,8], index: 8, kind: input, shape index: {}]   ;;  %s10421_s9 = inlined_call_operand.vmem [shape: f32[1,8], index: 9, kind: input, shape index: {}]   ;;  %s10422_s10 = inlined_call_operand.vmem [shape: bf16[8,8], index: 10, kind: input, shape index: {}]   ;;  %s10423_s11 = inlined_call_operand.vmem [shape: f32[1,8], index: 11, kind: input, shape index: {}]   ;;  %s10424_s12 = inlined_call_operand.vmem [shape: bf16[8,8], index: 12, kind: input, shape index: {}]   ;;  %s10425_s13 = inlined_call_operand.vmem [shape: f32[1,8], index: 13, kind: input, shape index: {}]   ;;  %s10426_s14 = inlined_call_operand.vmem [shape: f32[1,8], index: 14, kind: input, shape index: {}]   ;;  %s10427_s15 = inlined_call_operand.vmem [shape: f32[1,8], index: 15, kind: input, shape index: {}]   ;;  %s10428_s16 = inlined_call_operand.vmem [shape: bf16[8,4], index: 16, kind: input, shape index: {}]   ;;  %s10429_s17 = inlined_call_operand.vmem [shape: f32[1,4], index: 17, kind: input, shape index: {}]   ;;  %s10430_s18 = inlined_call_operand.hbm [shape: f32[2,1,4], index: 18, kind: output, shape index: {}]  }
   0x1   :  { %10503 = sst [smem:[#allocation48_spill]] %s10412_s0 }
   0x2   :  { %10504 = sst [smem:[#allocation49_spill]] %s10413_s1 }
   0x3   :  { %10505 = sst [smem:[#allocation50_spill]] %s10414_s2 }
   0x4   :  { %10506 = sst [smem:[#allocation51_spill]] %s10429_s17 }
   0x5   :  { %10507 = sst [smem:[#allocation52_spill]] %s10430_s18 }
   0x6   :  { %23 = vsyncpa [#allocation7], 0 }
   0x7   :  { %25 = vsyncpa [#allocation7 + $0x1], 0  ;;  %s7521_s27 = smov 0   ;;  %s7523_s28 = smov 0  }
   0x8   :  { %s7525_s29 = smov 0   ;;  %s7527_s30 = smov 0  }
   0x9   :  { %s7529_s0 = smov 0   ;;  %s7531_s19 = smov 0  }
   0xa   :  { %s7533_s1 = smov 0   ;;  %s7535_s20 = smov 0  }
   0xb LB: > { %10508 = sst [smem:[#allocation9_spill]] %s7389_s27  ;;  %s5803_s21 = sadd.s32 4294967295, %s7417_s20   ;;  %s7417_s20 = sphi %s7535_s20, %s31_s20   ;;  %s7413_s1 = sphi %s7533_s1, %s10685_s1   ;;  %s7409_s19 = sphi %s7531_s19, %s10684_s19   ;;  %s7405_s0 = sphi %s7529_s0, %s10688_s0   ;;  %s7401_s30 = sphi %s7527_s30, %s10682_s30   ;;  %s7397_s29 = sphi %s7525_s29, %s10681_s29   ;;  %s7393_s28 = sphi %s7523_s28, %s10687_s28   ;;  %s7389_s27 = sphi %s7521_s27, %s10686_s27  }
   0xc   : > { %10509 = sst [smem:[#allocation10_spill]] %s7397_s29  ;;  %s5804_s22 = sadd.s32 4294967294, %s7417_s20  }
   0xd   : > { %10510 = sst [smem:[#allocation11_spill]] %s7409_s19  ;;  %s40_s2 = sadd.s32 1, %s7409_s19 }
   0xe   : > { %10511 = sst [smem:[#allocation12_spill]] %s7413_s1  ;;  %p41_p0 = scmp.ge.s32.totalorder %s40_s2, 2 }
   0xf   : > { %10512 = sst [smem:[#allocation13_spill]] %s7417_s20  ;;  %s43_s23 = sadd.s32 1, %s7413_s1 }
  0x10   : > { %p443_p1 = scmp.ne.s32.totalorder %s7397_s29, %s7393_s28  ;;  %p444_p2 = scmp.eq.s32.totalorder %s5803_s21, 3 }
  0x11   : > { %s10690_s2 = smov (%p41_p0, %s40_s2), 0  ;;  %s10692_s23 = smov (!%p41_p0, %s43_s23), %s7413_s1 }
  0x12   : > { %10513 = sst [smem:[#allocation14_spill]] %s10690_s2  ;;  %p7570_p3 = por %p444_p2, %p443_p1 }
  0x13   : > { %p449_p4 = scmp.ne.s32.totalorder %s7393_s28, %s7389_s27  ;;  %p45_p5 = scmp.ge.s32.totalorder %s10692_s23, 2 }
  0x14   : > { %s10514_s24 = scalar_select %p7570_p3, 1, 0 }
  0x15   : > { %p450_p6 = scmp.eq.s32.totalorder %s5804_s22, 3  ;;  %p5807_p7 = scmp.ge.s32.totalorder %s7417_s20, 1 }
  0x16   : > { %10515 = sst [smem:[#allocation15_spill]] %s10514_s24  ;;  %p527_p8 = scmp.lt.s32.totalorder %s7417_s20, 5 }
  0x17   : > { %s10694_s23 = smov (%p45_p5, %s10692_s23), 0  ;;  %p7580_p9 = por %p450_p6, %p449_p4 }
  0x18   : > { %10516 = sst [smem:[#allocation16_spill]] %s10694_s23  ;;  %p528_p10 = pnand %p5807_p7, %p527_p8 }
  0x19   : > { %s10517_s25 = scalar_select %p7580_p9, 1, 0 }
  0x1a   : > { %s430_s26 = ssub.s32 %s7413_s1, %s10694_s23  ;;  %s433_s21 = sadd.s32 1, %s7397_s29 }
  0x1b   : > { %10518 = sst [smem:[#allocation17_spill]] %s10517_s25  ;;  %p431_p11 = scmp.eq.s32.totalorder %s430_s26, 0 }
  0x1c   : > { %531 = sbr.rel (%p528_p10) target bundleno = 4648 (0x1228), region = 92 }
  0x1d   : > { %s7588_s2 = scalar_select %p431_p11, %s7397_s29, %s433_s21  }
  0x1f   : > { %10519 = sst [smem:[#allocation18_spill]] %s7588_s2 }
  0x23   : > { %s578_s22 = sand.u32 1, %s7393_s28   ;;  %p580_p12 = scmp.lt.s32.totalorder %s7405_s0, 1 }
  0x24   : > { %s10520_s24 = sld [smem:[#allocation48_spill]]  ;;  %s7600_s23 = scalar_lea.vmem [#allocation6], %s578_s22 }
  0x25   : > { %s581_s19 = scalar_select %p580_p12, %s7405_s0, 1 }
  0x26   : > { %p5810_p13 = scmp.ne.s32.totalorder %s7401_s30, 0 }
  0x27   : > { %s5939_s27 = sshll.u32 %s581_s19, 8  ;;  %s10521_s1 = sld [smem:[#allocation49_spill]] (!%p5810_p13)  ;;  %vm920_vm0 = vcmask (!%p5810_p13), 1043456   ;;  %v864_v8 = vld [vmem:[%s10416_s4] sm:$0xf] (!%p5810_p13)  ;;  %vm782_vm1 = vcmask (!%p5810_p13), 31744  }
  0x28   : > { %589 = sbr.rel (%p5810_p13) target bundleno = 560 (0x230), region = 96  ;;  %s7419_s19 = smov (!%p5810_p13), 4   ;;  %6641 = vmatprep.subr.msk.bf16.mxu0 (!%p5810_p13), %vm920_vm0, %v864_v8  ;;  %v922_v11 = vsel (!%p5810_p13), %vm920_vm0, %v864_v8, 0  ;;  %6642 = vmatprep.subr.msk.bf16.mxu1 (!%p5810_p13), %vm920_vm0, %v864_v8  ;;  %vm815_vm2 = vcmask (!%p5810_p13), 64512   ;;  %vm1197_vm3 = vcmask (!%p5810_p13), 24576  }
  0x29   : > { %6414 = vmatpush3.bf16.msra.mxu0 (!%p5810_p13), %v922_v11  ;;  %6592 = vmatpush3.bf16.msra.mxu1 (!%p5810_p13), %v922_v11 }
  0x2a   : > { %s7596_s17 = scalar_lea.vmem %s10520_s24, %s5939_s27 }
  0x2b   : > { %v606_v34 = vld [vmem:[%s7596_s17 + $0x80] sm:$0xff] (!%p5810_p13)  ;;  %v607_v40 = vld [vmem:[%s7596_s17 + $0x88] sm:$0xff] (!%p5810_p13)  ;;  %v593_v46 = vld [vmem:[%s7596_s17 + $0x18] sm:$0xff] (!%p5810_p13) }
  0x2c   : > { %v590_v35 = vld [vmem:[%s7596_s17] sm:$0xff] (!%p5810_p13)  ;;  %v591_v41 = vld [vmem:[%s7596_s17 + $0x8] sm:$0xff] (!%p5810_p13)  ;;  %v592_v47 = vld [vmem:[%s7596_s17 + $0x10] sm:$0xff] (!%p5810_p13) }
  0x2d   : > { %s10522_s2 = smov (!%p5810_p13), %s10521_s1  ;;  %v638_v0 = vld [vmem:[%s10521_s1 + $0x80] sm:$0xff] (!%p5810_p13)  ;;  %v609_v55 = vld [vmem:[%s7596_s17 + $0x98] sm:$0xff] (!%p5810_p13)  ;;  %v608_v56 = vld [vmem:[%s7596_s17 + $0x90] sm:$0xff] (!%p5810_p13) }
  0x2e   : > { %v622_v1 = vld [vmem:[%s10522_s2] sm:$0xff] (!%p5810_p13)  ;;  %718 = vrot.lane.b32.xlu1 (!%p5810_p13), %v638_v0, %s7419_s19  ;;  %v639_v2 = vld [vmem:[%s10522_s2 + $0x88] sm:$0xff] (!%p5810_p13)  ;;  %v625_v4 = vld [vmem:[%s10522_s2 + $0x18] sm:$0xff] (!%p5810_p13) }
  0x2f   : > { %686 = vrot.lane.b32.xlu0 %v622_v1, %s7419_s19  ;;  %v623_v3 = vld [vmem:[%s10522_s2 + $0x8] sm:$0xff]  ;;  %v624_v5 = vld [vmem:[%s10522_s2 + $0x10] sm:$0xff]  ;;  %v641_v6 = vld [vmem:[%s10522_s2 + $0x98] sm:$0xff] }
  0x30   : > { %v640_v7 = vld [vmem:[%s10522_s2 + $0x90] sm:$0xff]  ;;  %v627_v9 = vld [vmem:[%s10522_s2 + $0x28] sm:$0xff]  ;;  %v626_v10 = vld [vmem:[%s10522_s2 + $0x20] sm:$0xff] }
  0x31   : > { %v643_v12 = vld [vmem:[%s10522_s2 + $0xa8] sm:$0xff]  ;;  %v642_v13 = vld [vmem:[%s10522_s2 + $0xa0] sm:$0xff]  ;;  %v629_v14 = vld [vmem:[%s10522_s2 + $0x38] sm:$0xff] }
  0x32   : > { %720 = vrot.lane.b32.xlu1 %v639_v2, %s7419_s19  ;;  %v628_v15 = vld [vmem:[%s10522_s2 + $0x30] sm:$0xff]  ;;  %v645_v16 = vld [vmem:[%s10522_s2 + $0xb8] sm:$0xff]  ;;  %v631_v18 = vld [vmem:[%s10522_s2 + $0x48] sm:$0xff] }
  0x33   : > { %688 = vrot.lane.b32.xlu0 %v623_v3, %s7419_s19  ;;  %v644_v17 = vld [vmem:[%s10522_s2 + $0xb0] sm:$0xff]  ;;  %v630_v19 = vld [vmem:[%s10522_s2 + $0x40] sm:$0xff]  ;;  %v647_v20 = vld [vmem:[%s10522_s2 + $0xc8] sm:$0xff] }
  0x34   : > { %v646_v21 = vld [vmem:[%s10522_s2 + $0xc0] sm:$0xff]  ;;  %v633_v22 = vld [vmem:[%s10522_s2 + $0x58] sm:$0xff]  ;;  %v632_v23 = vld [vmem:[%s10522_s2 + $0x50] sm:$0xff] }
  0x35   : > { %v649_v24 = vld [vmem:[%s10522_s2 + $0xd8] sm:$0xff]  ;;  %v648_v25 = vld [vmem:[%s10522_s2 + $0xd0] sm:$0xff]  ;;  %v635_v26 = vld [vmem:[%s10522_s2 + $0x68] sm:$0xff] }
  0x36   : > { %692 = vrot.lane.b32.xlu1 %v625_v4, %s7419_s19  ;;  %v634_v27 = vld [vmem:[%s10522_s2 + $0x60] sm:$0xff]  ;;  %v651_v28 = vld [vmem:[%s10522_s2 + $0xe8] sm:$0xff]  ;;  %v637_v30 = vld [vmem:[%s10522_s2 + $0x78] sm:$0xff] }
  0x37   : > { %690 = vrot.lane.b32.xlu0 %v624_v5, %s7419_s19  ;;  %v650_v29 = vld [vmem:[%s10522_s2 + $0xe0] sm:$0xff]  ;;  %v636_v31 = vld [vmem:[%s10522_s2 + $0x70] sm:$0xff]  ;;  %v653_v32 = vld [vmem:[%s10522_s2 + $0xf8] sm:$0xff] }
  0x38   : > { %v652_v33 = vld [vmem:[%s10522_s2 + $0xf0] sm:$0xff]  ;;  %v595_v62 = vld [vmem:[%s7596_s17 + $0x28] sm:$0xff]  ;;  %v594_v63 = vld [vmem:[%s7596_s17 + $0x20] sm:$0xff] }
  0x39   : > { %v611_v5 = vld [vmem:[%s7596_s17 + $0xa8] sm:$0xff] }
  0x3a   : > { %724 = vrot.lane.b32.xlu1 %v641_v6, %s7419_s19  ;;  %v610_v6 = vld [vmem:[%s7596_s17 + $0xa0] sm:$0xff] }
  0x3b   : > { %722 = vrot.lane.b32.xlu0 %v640_v7, %s7419_s19 }
  0x3e   : > { %696 = vrot.lane.b32.xlu1 %v627_v9, %s7419_s19 }
  0x3f   : > { %694 = vrot.lane.b32.xlu0 %v626_v10, %s7419_s19 }
  0x42   : > { %728 = vrot.lane.b32.xlu1 %v643_v12, %s7419_s19  ;;  %v597_v12 = vld [vmem:[%s7596_s17 + $0x38] sm:$0xff] }
  0x43   : > { %726 = vrot.lane.b32.xlu0 %v642_v13, %s7419_s19  ;;  %v596_v13 = vld [vmem:[%s7596_s17 + $0x30] sm:$0xff] }
  0x46   : > { %700 = vrot.lane.b32.xlu1 %v629_v14, %s7419_s19 }
  0x47   : > { %698 = vrot.lane.b32.xlu0 %v628_v15, %s7419_s19 }
  0x4a   : > { %732 = vrot.lane.b32.xlu1 %v645_v16, %s7419_s19 }
  0x4b   : > { %730 = vrot.lane.b32.xlu0 %v644_v17, %s7419_s19 }
  0x4e   : > { %704 = vrot.lane.b32.xlu1 %v631_v18, %s7419_s19 }
  0x4f   : > { %702 = vrot.lane.b32.xlu0 %v630_v19, %s7419_s19  ;;  %v613_v19 = vld [vmem:[%s7596_s17 + $0xb8] sm:$0xff] }
  0x52   : > { %736 = vrot.lane.b32.xlu1 %v647_v20, %s7419_s19  ;;  %v612_v20 = vld [vmem:[%s7596_s17 + $0xb0] sm:$0xff] }
  0x53   : > { %734 = vrot.lane.b32.xlu0 %v646_v21, %s7419_s19 }
  0x56   : > { %708 = vrot.lane.b32.xlu1 %v633_v22, %s7419_s19 }
  0x57   : > { %706 = vrot.lane.b32.xlu0 %v632_v23, %s7419_s19 }
  0x5a   : > { %740 = vrot.lane.b32.xlu1 %v649_v24, %s7419_s19 }
  0x5b   : > { %738 = vrot.lane.b32.xlu0 %v648_v25, %s7419_s19 }
  0x5e   : > { %712 = vrot.lane.b32.xlu1 %v635_v26, %s7419_s19  ;;  %v599_v26 = vld [vmem:[%s7596_s17 + $0x48] sm:$0xff] }
  0x5f   : > { %710 = vrot.lane.b32.xlu0 %v634_v27, %s7419_s19  ;;  %v598_v27 = vld [vmem:[%s7596_s17 + $0x40] sm:$0xff] }
  0x62   : > { %744 = vrot.lane.b32.xlu1 %v651_v28, %s7419_s19 }
  0x63   : > { %742 = vrot.lane.b32.xlu0 %v650_v29, %s7419_s19 }
  0x66   : > { %716 = vrot.lane.b32.xlu1 %v637_v30, %s7419_s19 }
  0x67   : > { %714 = vrot.lane.b32.xlu0 %v636_v31, %s7419_s19 }
  0x6a   : > { %748 = vrot.lane.b32.xlu1 %v653_v32, %s7419_s19 }
  0x6b   : > { %746 = vrot.lane.b32.xlu0 %v652_v33, %s7419_s19  ;;  %v615_v33 = vld [vmem:[%s7596_s17 + $0xc8] sm:$0xff] }
  0xa0   : > { %v719_v36 = vpop.permute.xlu1 %718 }
  0xa1   : > { %v687_v37 = vpop.permute.xlu0 %686  ;;  %v799_v38 = vsel %vm782_vm1, %v606_v34, %v719_v36  ;;  %v614_v34 = vld [vmem:[%s7596_s17 + $0xc0] sm:$0xff] }
  0xa2   : > { %v783_v39 = vsel %vm782_vm1, %v590_v35, %v687_v37  ;;  %832 = vst.msk [vmem:[#allocation2 + $0x80] sm:$0xff] %vm815_vm2, %v799_v38 }
  0xa3   : > { %816 = vst.msk [vmem:[#allocation2] sm:$0xff] %vm815_vm2, %v783_v39 }
  0xa4   : > { %v721_v42 = vpop.permute.xlu1 %720 }
  0xa5   : > { %v689_v43 = vpop.permute.xlu0 %688  ;;  %v800_v44 = vsel %vm782_vm1, %v607_v40, %v721_v42  ;;  %v601_v40 = vld [vmem:[%s7596_s17 + $0x58] sm:$0xff] }
  0xa6   : > { %v784_v45 = vsel %vm782_vm1, %v591_v41, %v689_v43  ;;  %833 = vst.msk [vmem:[#allocation2 + $0x88] sm:$0xff] %vm815_vm2, %v800_v44  ;;  %v856_v49 = vpack.c.bf16 %v800_v44, %v799_v38  ;;  %v600_v41 = vld [vmem:[%s7596_s17 + $0x50] sm:$0xff] }
  0xa7   : > { %817 = vst.msk [vmem:[#allocation2 + $0x8] sm:$0xff] %vm815_vm2, %v784_v45  ;;  %v848_v48 = vpack.c.bf16 %v784_v45, %v783_v39 }
  0xa8   : > { %v693_v50 = vpop.permute.xlu1 %692  ;;  %6431 = vmatprep.mubr.msk.bf16.mxu1 %vm815_vm2, %v856_v49 }
  0xa9   : > { %v691_v51 = vpop.permute.xlu0 %690  ;;  %6415 = vmatprep.mubr.msk.bf16.mxu0 %vm815_vm2, %v848_v48  ;;  %v786_v52 = vsel %vm782_vm1, %v593_v46, %v693_v50  ;;  %v616_v48 = vld [vmem:[%s7596_s17 + $0xd0] sm:$0xff] }
  0xaa   : > { %v785_v53 = vsel %vm782_vm1, %v592_v47, %v691_v51  ;;  %819 = vst.msk [vmem:[#allocation2 + $0x18] sm:$0xff] %vm815_vm2, %v786_v52  ;;  %v617_v47 = vld [vmem:[%s7596_s17 + $0xd8] sm:$0xff] }
  0xab   : > { %818 = vst.msk [vmem:[#allocation2 + $0x10] sm:$0xff] %vm815_vm2, %v785_v53  ;;  %v849_v54 = vpack.c.bf16 %v786_v52, %v785_v53 }
  0xac   : > { %v725_v57 = vpop.permute.xlu1 %724 }
  0xad   : > { %v723_v58 = vpop.permute.xlu0 %722  ;;  %6416 = vmatmul.mubr.msk.bf16.vlgmr.msra.gmra.mrb[0].mxu0 %vm815_vm2, %v849_v54  ;;  %v802_v59 = vsel %vm782_vm1, %v609_v55, %v725_v57  ;;  %v603_v54 = vld [vmem:[%s7596_s17 + $0x68] sm:$0xff]  ;;  %v602_v55 = vld [vmem:[%s7596_s17 + $0x60] sm:$0xff] }
  0xae   : > { %v801_v60 = vsel %vm782_vm1, %v608_v56, %v723_v58  ;;  %835 = vst.msk [vmem:[#allocation2 + $0x98] sm:$0xff] %vm815_vm2, %v802_v59 }
  0xaf   : > { %834 = vst.msk [vmem:[#allocation2 + $0x90] sm:$0xff] %vm815_vm2, %v801_v60  ;;  %v857_v61 = vpack.c.bf16 %v802_v59, %v801_v60 }
  0xb0   : > { %v697_v0 = vpop.permute.xlu1 %696 }
  0xb1   : > { %v695_v1 = vpop.permute.xlu0 %694  ;;  %6432 = vmatmul.mubr.msk.bf16.vlgmr.msra.gmra.mrb[0].mxu1 %vm815_vm2, %v857_v61  ;;  %v788_v2 = vsel %vm782_vm1, %v595_v62, %v697_v0  ;;  %v619_v61 = vld [vmem:[%s7596_s17 + $0xe8] sm:$0xff]  ;;  %v618_v62 = vld [vmem:[%s7596_s17 + $0xe0] sm:$0xff] }
  0xb2   : > { %v787_v3 = vsel %vm782_vm1, %v594_v63, %v695_v1  ;;  %821 = vst.msk [vmem:[#allocation2 + $0x28] sm:$0xff] %vm815_vm2, %v788_v2 }
  0xb3   : > { %820 = vst.msk [vmem:[#allocation2 + $0x20] sm:$0xff] %vm815_vm2, %v787_v3  ;;  %v850_v4 = vpack.c.bf16 %v788_v2, %v787_v3 }
  0xb4   : > { %v729_v7 = vpop.permute.xlu1 %728 }
  0xb5   : > { %v727_v8 = vpop.permute.xlu0 %726  ;;  %6419 = vmatprep.mubr.msk.bf16.mxu0 %vm815_vm2, %v850_v4  ;;  %v804_v9 = vsel %vm782_vm1, %v611_v5, %v729_v7  ;;  %v605_v4 = vld [vmem:[%s7596_s17 + $0x78] sm:$0xff]  ;;  %v604_v5 = vld [vmem:[%s7596_s17 + $0x70] sm:$0xff] }
  0xb6   : > { %v803_v10 = vsel %vm782_vm1, %v610_v6, %v727_v8  ;;  %837 = vst.msk [vmem:[#allocation2 + $0xa8] sm:$0xff] %vm815_vm2, %v804_v9 }
  0xb7   : > { %836 = vst.msk [vmem:[#allocation2 + $0xa0] sm:$0xff] %vm815_vm2, %v803_v10  ;;  %v858_v11 = vpack.c.bf16 %v804_v9, %v803_v10 }
  0xb8   : > { %v701_v14 = vpop.permute.xlu1 %700 }
  0xb9   : > { %v699_v15 = vpop.permute.xlu0 %698  ;;  %6435 = vmatprep.mubr.msk.bf16.mxu1 %vm815_vm2, %v858_v11  ;;  %v790_v16 = vsel %vm782_vm1, %v597_v12, %v701_v14  ;;  %v621_v11 = vld [vmem:[%s7596_s17 + $0xf8] sm:$0xff]  ;;  %v620_v12 = vld [vmem:[%s7596_s17 + $0xf0] sm:$0xff]  ;;  %s7420_s17 = smov 120  }
  0xba   : > { %v789_v17 = vsel %vm782_vm1, %v596_v13, %v699_v15  ;;  %823 = vst.msk [vmem:[#allocation2 + $0x38] sm:$0xff] %vm815_vm2, %v790_v16 }
  0xbb   : > { %822 = vst.msk [vmem:[#allocation2 + $0x30] sm:$0xff] %vm815_vm2, %v789_v17  ;;  %v851_v18 = vpack.c.bf16 %v790_v16, %v789_v17 }
  0xbc   : > { %v733_v21 = vpop.permute.xlu1 %732 }
  0xbd   : > { %v731_v22 = vpop.permute.xlu0 %730  ;;  %6420 = vmatmul.mubr.msk.bf16.gmra.mrb[4].mxu0 %vm815_vm2, %v851_v18  ;;  %v806_v23 = vsel %vm782_vm1, %v613_v19, %v733_v21  ;;  %v7849_v19 = vld [vmem:[%s10417_s5] ss:$0 sm:$0xff] }
  0xbe   : > { %v805_v24 = vsel %vm782_vm1, %v612_v20, %v731_v22  ;;  %839 = vst.msk [vmem:[#allocation2 + $0xb8] sm:$0xff] %vm815_vm2, %v806_v23 }
  0xbf   : > { %838 = vst.msk [vmem:[#allocation2 + $0xb0] sm:$0xff] %vm815_vm2, %v805_v24  ;;  %v859_v25 = vpack.c.bf16 %v806_v23, %v805_v24 }
  0xc0   : > { %v705_v28 = vpop.permute.xlu1 %704 }
  0xc1   : > { %v703_v29 = vpop.permute.xlu0 %702  ;;  %6436 = vmatmul.mubr.msk.bf16.gmra.mrb[4].mxu1 %vm815_vm2, %v859_v25  ;;  %v792_v30 = vsel %vm782_vm1, %v599_v26, %v705_v28 }
  0xc2   : > { %v791_v31 = vsel %vm782_vm1, %v598_v27, %v703_v29  ;;  %825 = vst.msk [vmem:[#allocation2 + $0x48] sm:$0xff] %vm815_vm2, %v792_v30 }
  0xc3   : > { %824 = vst.msk [vmem:[#allocation2 + $0x40] sm:$0xff] %vm815_vm2, %v791_v31  ;;  %v852_v32 = vpack.c.bf16 %v792_v30, %v791_v31 }
  0xc4   : > { %v737_v35 = vpop.permute.xlu1 %736 }
  0xc5   : > { %v735_v36 = vpop.permute.xlu0 %734  ;;  %6423 = vmatprep.mubr.msk.bf16.mxu0 %vm815_vm2, %v852_v32  ;;  %v808_v37 = vsel %vm782_vm1, %v615_v33, %v737_v35 }
  0xc6   : > { %v807_v38 = vsel %vm782_vm1, %v614_v34, %v735_v36  ;;  %841 = vst.msk [vmem:[#allocation2 + $0xc8] sm:$0xff] %vm815_vm2, %v808_v37 }
  0xc7   : > { %840 = vst.msk [vmem:[#allocation2 + $0xc0] sm:$0xff] %vm815_vm2, %v807_v38  ;;  %v860_v39 = vpack.c.bf16 %v808_v37, %v807_v38 }
  0xc8   : > { %v709_v42 = vpop.permute.xlu1 %708 }
  0xc9   : > { %v707_v43 = vpop.permute.xlu0 %706  ;;  %6439 = vmatprep.mubr.msk.bf16.mxu1 %vm815_vm2, %v860_v39  ;;  %v794_v44 = vsel %vm782_vm1, %v601_v40, %v709_v42 }
  0xca   : > { %v793_v45 = vsel %vm782_vm1, %v600_v41, %v707_v43  ;;  %827 = vst.msk [vmem:[#allocation2 + $0x58] sm:$0xff] %vm815_vm2, %v794_v44 }
  0xcb   : > { %826 = vst.msk [vmem:[#allocation2 + $0x50] sm:$0xff] %vm815_vm2, %v793_v45  ;;  %v853_v46 = vpack.c.bf16 %v794_v44, %v793_v45 }
  0xcc   : > { %v741_v49 = vpop.permute.xlu1 %740 }
  0xcd   : > { %v739_v50 = vpop.permute.xlu0 %738  ;;  %6424 = vmatmul.mubr.msk.bf16.gmra.mrb[8].mxu0 %vm815_vm2, %v853_v46  ;;  %v810_v51 = vsel %vm782_vm1, %v617_v47, %v741_v49 }
  0xce   : > { %v809_v52 = vsel %vm782_vm1, %v616_v48, %v739_v50  ;;  %843 = vst.msk [vmem:[#allocation2 + $0xd8] sm:$0xff] %vm815_vm2, %v810_v51 }
  0xcf   : > { %842 = vst.msk [vmem:[#allocation2 + $0xd0] sm:$0xff] %vm815_vm2, %v809_v52  ;;  %v861_v53 = vpack.c.bf16 %v810_v51, %v809_v52 }
  0xd0   : > { %v713_v56 = vpop.permute.xlu1 %712 }
  0xd1   : > { %v711_v57 = vpop.permute.xlu0 %710  ;;  %6440 = vmatmul.mubr.msk.bf16.gmra.mrb[8].mxu1 %vm815_vm2, %v861_v53  ;;  %v796_v58 = vsel %vm782_vm1, %v603_v54, %v713_v56 }
  0xd2   : > { %v795_v59 = vsel %vm782_vm1, %v602_v55, %v711_v57  ;;  %829 = vst.msk [vmem:[#allocation2 + $0x68] sm:$0xff] %vm815_vm2, %v796_v58 }
  0xd3   : > { %828 = vst.msk [vmem:[#allocation2 + $0x60] sm:$0xff] %vm815_vm2, %v795_v59  ;;  %v854_v60 = vpack.c.bf16 %v796_v58, %v795_v59 }
  0xd4   : > { %v745_v63 = vpop.permute.xlu1 %744 }
  0xd5   : > { %v743_v0 = vpop.permute.xlu0 %742  ;;  %6427 = vmatprep.mubr.msk.bf16.mxu0 %vm815_vm2, %v854_v60  ;;  %v812_v1 = vsel %vm782_vm1, %v619_v61, %v745_v63 }
  0xd6   : > { %v811_v2 = vsel %vm782_vm1, %v618_v62, %v743_v0  ;;  %845 = vst.msk [vmem:[#allocation2 + $0xe8] sm:$0xff] %vm815_vm2, %v812_v1 }
  0xd7   : > { %844 = vst.msk [vmem:[#allocation2 + $0xe0] sm:$0xff] %vm815_vm2, %v811_v2  ;;  %v862_v3 = vpack.c.bf16 %v812_v1, %v811_v2 }
  0xd8   : > { %v717_v6 = vpop.permute.xlu1 %716 }
  0xd9   : > { %v715_v7 = vpop.permute.xlu0 %714  ;;  %6443 = vmatprep.mubr.msk.bf16.mxu1 %vm815_vm2, %v862_v3  ;;  %v798_v8 = vsel %vm782_vm1, %v605_v4, %v717_v6 }
  0xda   : > { %v797_v9 = vsel %vm782_vm1, %v604_v5, %v715_v7  ;;  %831 = vst.msk [vmem:[#allocation2 + $0x78] sm:$0xff] %vm815_vm2, %v798_v8 }
  0xdb   : > { %830 = vst.msk [vmem:[#allocation2 + $0x70] sm:$0xff] %vm815_vm2, %v797_v9  ;;  %v855_v10 = vpack.c.bf16 %v798_v8, %v797_v9 }
  0xdc   : > { %v749_v13 = vpop.permute.xlu1 %748 }
  0xdd   : > { %v747_v14 = vpop.permute.xlu0 %746  ;;  %6428 = vmatmul.mubr.msk.bf16.gmra.mrb[12].mxu0 %vm815_vm2, %v855_v10  ;;  %v814_v15 = vsel %vm782_vm1, %v621_v11, %v749_v13 }
  0xde   : > { %v813_v16 = vsel %vm782_vm1, %v620_v12, %v747_v14  ;;  %847 = vst.msk [vmem:[#allocation2 + $0xf8] sm:$0xff] %vm815_vm2, %v814_v15 }
  0xdf   : > { %846 = vst.msk [vmem:[#allocation2 + $0xf0] sm:$0xff] %vm815_vm2, %v813_v16  ;;  %v863_v17 = vpack.c.bf16 %v814_v15, %v813_v16  ;;  %v7421_v15 = vmov 0.0  }
  0xe0   : > { %1198 = vst.msk [vmem:[#allocation5] sm:$0x1] %vm1197_vm3, %v7421_v15 }
  0xe1   : > { %6444 = vmatmul.mubr.msk.bf16.gmra.mrb[12].mxu1 %vm815_vm2, %v863_v17 }
 0x180   : > { %v6417_v18 = vpop.f32.mrb[0].mxu0 }
 0x181   : > { %v958_v20 = vpop.f32.mrb[1].mxu0  ;;  %v967_v22 = vadd.f32 %v6417_v18, %v7849_v19 }
 0x182   : > { %v6418_v21 = vpop.f32.mrb[2].mxu0  ;;  %v959_v25 = vadd.f32 %v7849_v19, %v958_v20 }
 0x183   : > { %v970_v23 = vadd.f32 %v6418_v21, %v7849_v19  ;;  %v961_v24 = vpop.f32.mrb[3].mxu0 }
 0x184   : > { %v962_v26 = vadd.f32 %v7849_v19, %v961_v24  ;;  %v6433_v27 = vpop.f32.mrb[0].mxu1 }
 0x185   : > { %v1086_v28 = vpack.c.bf16 %v970_v23, %v967_v22  ;;  %v1022_v29 = vpop.f32.mrb[1].mxu1  ;;  %v1031_v32 = vadd.f32 %v6433_v27, %v7849_v19 }
 0x186   : > { %v1085_v30 = vpack.c.bf16 %v962_v26, %v959_v25  ;;  %v6434_v31 = vpop.f32.mrb[2].mxu1  ;;  %v1023_v35 = vadd.f32 %v7849_v19, %v1022_v29 }
 0x187   : > { %1102 = vst.msk [vmem:[#allocation3 + $0x8] sm:$0xff] %vm815_vm2, %v1086_v28  ;;  %v1034_v33 = vadd.f32 %v6434_v31, %v7849_v19  ;;  %v1025_v34 = vpop.f32.mrb[3].mxu1  ;;  %1135 = vrot.lane.b32.xlu1 %v1086_v28, %s7420_s17 }
 0x188   : > { %1101 = vst.msk [vmem:[#allocation3] sm:$0xff] %vm815_vm2, %v1085_v30  ;;  %v1026_v36 = vadd.f32 %v7849_v19, %v1025_v34  ;;  %1133 = vrot.lane.b32.xlu0 %v1085_v30, %s7420_s17 }
 0x189   : > { %v1094_v37 = vpack.c.bf16 %v1034_v33, %v1031_v32 }
 0x18a   : > { %v1093_v38 = vpack.c.bf16 %v1026_v36, %v1023_v35 }
 0x18b   : > { %1110 = vst.msk [vmem:[#allocation3 + $0x48] sm:$0xff] %vm815_vm2, %v1094_v37  ;;  %1151 = vrot.lane.b32.xlu1 %v1094_v37, %s7420_s17 }
 0x18c   : > { %1109 = vst.msk [vmem:[#allocation3 + $0x40] sm:$0xff] %vm815_vm2, %v1093_v38  ;;  %1149 = vrot.lane.b32.xlu0 %v1093_v38, %s7420_s17 }
 0x190   : > { %v6421_v39 = vpop.f32.mrb[4].mxu0 }
 0x191   : > { %v974_v40 = vpop.f32.mrb[5].mxu0  ;;  %v983_v42 = vadd.f32 %v6421_v39, %v7849_v19 }
 0x192   : > { %v6422_v41 = vpop.f32.mrb[6].mxu0  ;;  %v975_v45 = vadd.f32 %v7849_v19, %v974_v40 }
 0x193   : > { %v986_v43 = vadd.f32 %v6422_v41, %v7849_v19  ;;  %v977_v44 = vpop.f32.mrb[7].mxu0 }
 0x194   : > { %v978_v46 = vadd.f32 %v7849_v19, %v977_v44  ;;  %v6437_v47 = vpop.f32.mrb[4].mxu1 }
 0x195   : > { %v1088_v48 = vpack.c.bf16 %v986_v43, %v983_v42  ;;  %v1038_v49 = vpop.f32.mrb[5].mxu1  ;;  %v1047_v52 = vadd.f32 %v6437_v47, %v7849_v19 }
 0x196   : > { %v1087_v50 = vpack.c.bf16 %v978_v46, %v975_v45  ;;  %v6438_v51 = vpop.f32.mrb[6].mxu1  ;;  %v1039_v55 = vadd.f32 %v7849_v19, %v1038_v49 }
 0x197   : > { %1104 = vst.msk [vmem:[#allocation3 + $0x18] sm:$0xff] %vm815_vm2, %v1088_v48  ;;  %v1050_v53 = vadd.f32 %v6438_v51, %v7849_v19  ;;  %v1041_v54 = vpop.f32.mrb[7].mxu1  ;;  %1139 = vrot.lane.b32.xlu1 %v1088_v48, %s7420_s17 }
 0x198   : > { %1103 = vst.msk [vmem:[#allocation3 + $0x10] sm:$0xff] %vm815_vm2, %v1087_v50  ;;  %v1042_v56 = vadd.f32 %v7849_v19, %v1041_v54  ;;  %1137 = vrot.lane.b32.xlu0 %v1087_v50, %s7420_s17 }
 0x199   : > { %v1096_v57 = vpack.c.bf16 %v1050_v53, %v1047_v52 }
 0x19a   : > { %v1095_v58 = vpack.c.bf16 %v1042_v56, %v1039_v55 }
 0x19b   : > { %1112 = vst.msk [vmem:[#allocation3 + $0x58] sm:$0xff] %vm815_vm2, %v1096_v57  ;;  %1155 = vrot.lane.b32.xlu1 %v1096_v57, %s7420_s17 }
 0x19c   : > { %1111 = vst.msk [vmem:[#allocation3 + $0x50] sm:$0xff] %vm815_vm2, %v1095_v58  ;;  %1153 = vrot.lane.b32.xlu0 %v1095_v58, %s7420_s17 }
 0x1a0   : > { %v6425_v59 = vpop.f32.mrb[8].mxu0 }
 0x1a1   : > { %v990_v60 = vpop.f32.mrb[9].mxu0  ;;  %v999_v62 = vadd.f32 %v6425_v59, %v7849_v19 }
 0x1a2   : > { %v6426_v61 = vpop.f32.mrb[10].mxu0  ;;  %v991_v1 = vadd.f32 %v7849_v19, %v990_v60 }
 0x1a3   : > { %v1002_v63 = vadd.f32 %v6426_v61, %v7849_v19  ;;  %v993_v0 = vpop.f32.mrb[11].mxu0 }
 0x1a4   : > { %v994_v2 = vadd.f32 %v7849_v19, %v993_v0  ;;  %v6441_v3 = vpop.f32.mrb[8].mxu1 }
 0x1a5   : > { %v1090_v4 = vpack.c.bf16 %v1002_v63, %v999_v62  ;;  %v1054_v5 = vpop.f32.mrb[9].mxu1  ;;  %v1063_v8 = vadd.f32 %v6441_v3, %v7849_v19 }
 0x1a6   : > { %v1089_v6 = vpack.c.bf16 %v994_v2, %v991_v1  ;;  %v6442_v7 = vpop.f32.mrb[10].mxu1  ;;  %v1055_v11 = vadd.f32 %v7849_v19, %v1054_v5 }
 0x1a7   : > { %1106 = vst.msk [vmem:[#allocation3 + $0x28] sm:$0xff] %vm815_vm2, %v1090_v4  ;;  %v1066_v9 = vadd.f32 %v6442_v7, %v7849_v19  ;;  %v1057_v10 = vpop.f32.mrb[11].mxu1  ;;  %1143 = vrot.lane.b32.xlu1 %v1090_v4, %s7420_s17 }
 0x1a8   : > { %1105 = vst.msk [vmem:[#allocation3 + $0x20] sm:$0xff] %vm815_vm2, %v1089_v6  ;;  %v1058_v12 = vadd.f32 %v7849_v19, %v1057_v10  ;;  %1141 = vrot.lane.b32.xlu0 %v1089_v6, %s7420_s17 }
 0x1a9   : > { %v1098_v13 = vpack.c.bf16 %v1066_v9, %v1063_v8 }
 0x1aa   : > { %v1097_v14 = vpack.c.bf16 %v1058_v12, %v1055_v11 }
 0x1ab   : > { %1114 = vst.msk [vmem:[#allocation3 + $0x68] sm:$0xff] %vm815_vm2, %v1098_v13  ;;  %1159 = vrot.lane.b32.xlu1 %v1098_v13, %s7420_s17 }
 0x1ac   : > { %1113 = vst.msk [vmem:[#allocation3 + $0x60] sm:$0xff] %vm815_vm2, %v1097_v14  ;;  %1157 = vrot.lane.b32.xlu0 %v1097_v14, %s7420_s17 }
 0x1b0   : > { %v6429_v16 = vpop.f32.mrb[12].mxu0 }
 0x1b1   : > { %v1006_v17 = vpop.f32.mrb[13].mxu0  ;;  %v1015_v20 = vadd.f32 %v6429_v16, %v7849_v19 }
 0x1b2   : > { %v6430_v18 = vpop.f32.mrb[14].mxu0  ;;  %v1007_v23 = vadd.f32 %v7849_v19, %v1006_v17 }
 0x1b3   : > { %v1018_v21 = vadd.f32 %v6430_v18, %v7849_v19  ;;  %v1009_v22 = vpop.f32.mrb[15].mxu0 }
 0x1b4   : > { %v1010_v24 = vadd.f32 %v7849_v19, %v1009_v22  ;;  %v6445_v25 = vpop.f32.mrb[12].mxu1 }
 0x1b5   : > { %v1092_v26 = vpack.c.bf16 %v1018_v21, %v1015_v20  ;;  %v1070_v27 = vpop.f32.mrb[13].mxu1  ;;  %v1079_v30 = vadd.f32 %v6445_v25, %v7849_v19 }
 0x1b6   : > { %v1091_v28 = vpack.c.bf16 %v1010_v24, %v1007_v23  ;;  %v6446_v29 = vpop.f32.mrb[14].mxu1  ;;  %v1071_v33 = vadd.f32 %v7849_v19, %v1070_v27 }
 0x1b7   : > { %1108 = vst.msk [vmem:[#allocation3 + $0x38] sm:$0xff] %vm815_vm2, %v1092_v26  ;;  %v1082_v31 = vadd.f32 %v6446_v29, %v7849_v19  ;;  %v1073_v32 = vpop.f32.mrb[15].mxu1  ;;  %1147 = vrot.lane.b32.xlu1 %v1092_v26, %s7420_s17 }
 0x1b8   : > { %1107 = vst.msk [vmem:[#allocation3 + $0x30] sm:$0xff] %vm815_vm2, %v1091_v28  ;;  %v1074_v34 = vadd.f32 %v7849_v19, %v1073_v32  ;;  %1145 = vrot.lane.b32.xlu0 %v1091_v28, %s7420_s17 }
 0x1b9   : > { %v1100_v35 = vpack.c.bf16 %v1082_v31, %v1079_v30 }
 0x1ba   : > { %v1099_v36 = vpack.c.bf16 %v1074_v34, %v1071_v33 }
 0x1bb   : > { %1116 = vst.msk [vmem:[#allocation3 + $0x78] sm:$0xff] %vm815_vm2, %v1100_v35  ;;  %1163 = vrot.lane.b32.xlu1 %v1100_v35, %s7420_s17 }
 0x1bc   : > { %1115 = vst.msk [vmem:[#allocation3 + $0x70] sm:$0xff] %vm815_vm2, %v1099_v36  ;;  %1161 = vrot.lane.b32.xlu0 %v1099_v36, %s7420_s17 }
 0x1f9   : > { %v1136_v37 = vpop.permute.xlu1 %1135 }
 0x1fa   : > { %1182 = vst.msk [vmem:[#allocation4 + $0x8] sm:$0xff] %vm815_vm2, %v1136_v37  ;;  %v1134_v38 = vpop.permute.xlu0 %1133 }
 0x1fb   : > { %1181 = vst.msk [vmem:[#allocation4] sm:$0xff] %vm815_vm2, %v1134_v38 }
 0x1fd   : > { %v1152_v39 = vpop.permute.xlu1 %1151 }
 0x1fe   : > { %1190 = vst.msk [vmem:[#allocation4 + $0x48] sm:$0xff] %vm815_vm2, %v1152_v39  ;;  %v1150_v19 = vpop.permute.xlu0 %1149 }
 0x1ff   : > { %1189 = vst.msk [vmem:[#allocation4 + $0x40] sm:$0xff] %vm815_vm2, %v1150_v19 }
 0x209   : > { %v1140_v40 = vpop.permute.xlu1 %1139 }
 0x20a   : > { %1184 = vst.msk [vmem:[#allocation4 + $0x18] sm:$0xff] %vm815_vm2, %v1140_v40  ;;  %v1138_v41 = vpop.permute.xlu0 %1137 }
 0x20b   : > { %1183 = vst.msk [vmem:[#allocation4 + $0x10] sm:$0xff] %vm815_vm2, %v1138_v41 }
 0x20d   : > { %v1156_v42 = vpop.permute.xlu1 %1155 }
 0x20e   : > { %1192 = vst.msk [vmem:[#allocation4 + $0x58] sm:$0xff] %vm815_vm2, %v1156_v42  ;;  %v1154_v43 = vpop.permute.xlu0 %1153 }
 0x20f   : > { %1191 = vst.msk [vmem:[#allocation4 + $0x50] sm:$0xff] %vm815_vm2, %v1154_v43 }
 0x219   : > { %v1144_v44 = vpop.permute.xlu1 %1143 }
 0x21a   : > { %1186 = vst.msk [vmem:[#allocation4 + $0x28] sm:$0xff] %vm815_vm2, %v1144_v44  ;;  %v1142_v45 = vpop.permute.xlu0 %1141 }
 0x21b   : > { %1185 = vst.msk [vmem:[#allocation4 + $0x20] sm:$0xff] %vm815_vm2, %v1142_v45 }
 0x21d   : > { %v1160_v46 = vpop.permute.xlu1 %1159 }
 0x21e   : > { %1194 = vst.msk [vmem:[#allocation4 + $0x68] sm:$0xff] %vm815_vm2, %v1160_v46  ;;  %v1158_v47 = vpop.permute.xlu0 %1157 }
 0x21f   : > { %1193 = vst.msk [vmem:[#allocation4 + $0x60] sm:$0xff] %vm815_vm2, %v1158_v47 }
 0x229   : > { %v1148_v48 = vpop.permute.xlu1 %1147 }
 0x22a   : > { %1188 = vst.msk [vmem:[#allocation4 + $0x38] sm:$0xff] %vm815_vm2, %v1148_v48  ;;  %v1146_v49 = vpop.permute.xlu0 %1145 }
 0x22b   : > { %1187 = vst.msk [vmem:[#allocation4 + $0x30] sm:$0xff] %vm815_vm2, %v1146_v49 }
 0x22d   : > { %v1164_v50 = vpop.permute.xlu1 %1163 }
 0x22e   : > { %1196 = vst.msk [vmem:[#allocation4 + $0x78] sm:$0xff] %vm815_vm2, %v1164_v50  ;;  %v1162_v51 = vpop.permute.xlu0 %1161 }
 0x22f   : > { %1195 = vst.msk [vmem:[#allocation4 + $0x70] sm:$0xff] %vm815_vm2, %v1162_v51 }
 0x230 PF: > { %s10523_s20 = sld [smem:[#allocation50_spill]]  ;;  %vm1258_vm4 = vcmask 1043456   ;;  %s5828_s24 = sshll.u32 %s7401_s30, 7  ;;  %v7935_v53 = vld [vmem:[#allocation3 + $0x40] sm:$0xff]  ;;  %vm1400_vm5 = vcmask 15360   ;;  %v7941_v56 = vld [vmem:[#allocation3 + $0x48] sm:$0xff] }
 0x231   : > { %v7939_v55 = vld [vmem:[#allocation3] sm:$0xff]  ;;  %s7943_s1 = scalar_lea.vmem [#allocation2], %s5828_s24  ;;  %vm1233_vm6 = vcmask 64512   ;;  %6644 = vmatprep.subr.msk.bf16.mxu1 %vm1400_vm5, %v7935_v53  ;;  %v1368_v3 = vld [vmem:[#allocation3 + $0x8] sm:$0xff]  ;;  %v1377_v9 = vld [vmem:[#allocation3 + $0x50] sm:$0xff]  ;;  %s7422_s29 = smov 126  }
 0x232   : > { %v1201_v57 = vld [vmem:[%s7943_s1] sm:$0xff]  ;;  %v1202_v58 = vld [vmem:[%s7943_s1 + $0x8] sm:$0xff]  ;;  %v1203_v59 = vld [vmem:[%s7943_s1 + $0x10] sm:$0xff]  ;;  %v1426_v60 = vsel %vm1400_vm5, %v7939_v55, 0  ;;  %v1429_v8 = vsel %vm1400_vm5, %v1368_v3, 0  ;;  %1987 = vrot.lane.b32.xlu0 %v7939_v55, %s7422_s29  ;;  %s7423_s19 = smov 124  }
 0x233   : > { %v1217_v61 = vpack.c.bf16 %v1202_v58, %v1201_v57  ;;  %v1204_v62 = vld [vmem:[%s7943_s1 + $0x18] sm:$0xff]  ;;  %v1205_v63 = vld [vmem:[%s7943_s1 + $0x20] sm:$0xff]  ;;  %v1206_v0 = vld [vmem:[%s7943_s1 + $0x28] sm:$0xff]  ;;  %5967 = vmatpush3.bf16.xpose.msra.mxu1 %v1426_v60  ;;  %2003 = vrot.lane.b32.xlu1 %v7935_v53, %s7422_s29  ;;  %s7424_s21 = smov 122   ;;  %vm2657_vm7 = vcmask 1040384   ;;  %s10674_s27 = sld [smem:[#allocation51_spill]] }
 0x234   : > { %v1218_v1 = vpack.c.bf16 %v1204_v62, %v1203_v59  ;;  %v1219_v2 = vpack.c.bf16 %v1206_v0, %v1205_v63  ;;  %6645 = vmatprep.subr.msk.bf16.mxu1 %vm1400_vm5, %v7941_v56  ;;  %v1207_v4 = vld [vmem:[%s7943_s1 + $0x30] sm:$0xff]  ;;  %v1208_v5 = vld [vmem:[%s7943_s1 + $0x38] sm:$0xff]  ;;  %v1209_v6 = vld [vmem:[%s7943_s1 + $0x40] sm:$0xff]  ;;  %p5935_p0 = scmp.ne.s32.totalorder %s7401_s30, 1 }
 0x235   : > { %6449 = vmatprep.mubr.msk.bf16.mxu0 %vm1233_vm6, %v1217_v61  ;;  %v1210_v7 = vld [vmem:[%s7943_s1 + $0x48] sm:$0xff]  ;;  %v1220_v10 = vpack.c.bf16 %v1208_v5, %v1207_v4  ;;  %v1369_v12 = vld [vmem:[#allocation3 + $0x10] sm:$0xff]  ;;  %v1212_v14 = vld [vmem:[%s7943_s1 + $0x58] sm:$0xff] }
 0x236   : > { %v1225_v52 = vld [vmem:[%s10523_s20] sm:$0xf]  ;;  %v1221_v11 = vpack.c.bf16 %v1210_v7, %v1209_v6  ;;  %v1211_v13 = vld [vmem:[%s7943_s1 + $0x50] sm:$0xff]  ;;  %v1214_v16 = vld [vmem:[%s7943_s1 + $0x68] sm:$0xff]  ;;  %v1432_v17 = vsel %vm1400_vm5, %v1369_v12, 0  ;;  %1989 = vrot.lane.b32.xlu0 %v1368_v3, %s7422_s29 }
 0x237   : > { %6643 = vmatprep.subr.msk.bf16.mxu0 %vm1258_vm4, %v1225_v52  ;;  %v1260_v54 = vsel %vm1258_vm4, %v1225_v52, 0  ;;  %v1213_v15 = vld [vmem:[%s7943_s1 + $0x60] sm:$0xff]  ;;  %v1378_v18 = vld [vmem:[#allocation3 + $0x58] sm:$0xff]  ;;  %v1222_v20 = vpack.c.bf16 %v1212_v14, %v1211_v13  ;;  %v1215_v23 = vld [vmem:[%s7943_s1 + $0x70] sm:$0xff]  ;;  %2005 = vrot.lane.b32.xlu1 %v7941_v56, %s7422_s29 }
 0x238   : > { %6448 = vmatpush3.bf16.msra.mxu0 %v1260_v54  ;;  %v1223_v21 = vpack.c.bf16 %v1214_v16, %v1213_v15  ;;  %v1370_v22 = vld [vmem:[#allocation3 + $0x18] sm:$0xff]  ;;  %v7979_v26 = vld [vmem:[#allocation3 + $0x60] sm:$0xff]  ;;  %v7988_v30 = vld [vmem:[#allocation3 + $0x68] sm:$0xff] }
 0x239   : > { %v1216_v24 = vld [vmem:[%s7943_s1 + $0x78] sm:$0xff]  ;;  %v1435_v25 = vsel %vm1400_vm5, %v1370_v22, 0  ;;  %v7983_v28 = vld [vmem:[#allocation3 + $0x20] sm:$0xff]  ;;  %v7992_v31 = vld [vmem:[#allocation3 + $0x28] sm:$0xff] }
 0x23a   : > { %v1224_v27 = vpack.c.bf16 %v1216_v24, %v1215_v23  ;;  %v1438_v29 = vsel %vm1400_vm5, %v7983_v28, 0  ;;  %v1441_v32 = vsel %vm1400_vm5, %v7992_v31, 0  ;;  %v7996_v33 = vld [vmem:[#allocation3 + $0x70] sm:$0xff]  ;;  %v8004_v36 = vld [vmem:[#allocation3 + $0x78] sm:$0xff]  ;;  %1991 = vrot.lane.b32.xlu0 %v1369_v12, %s7422_s29  ;;  %v5829_v19 = vld [vmem:[%s10415_s3] ss:$0 sm:$0xff] }
 0x23b   : > { %6450 = vmatmul.mubr.msk.bf16.vlgmr.msra.gmra.mrb[0].mxu0 %vm1233_vm6, %v1218_v1  ;;  %5969 = vmatpush3.bf16.xpose.msra.mxu1 %v1429_v8  ;;  %v8000_v34 = vld [vmem:[#allocation3 + $0x30] sm:$0xff]  ;;  %v8006_v37 = vld [vmem:[#allocation3 + $0x38] sm:$0xff]  ;;  %v8074_v15 = vld [vmem:[#allocation4 + $0x40] sm:$0xff] }
 0x23c   : > { %6453 = vmatprep.mubr.msk.bf16.mxu0 %vm1233_vm6, %v1219_v2  ;;  %6646 = vmatprep.subr.msk.bf16.mxu1 %vm1400_vm5, %v1377_v9  ;;  %v1444_v35 = vsel %vm1400_vm5, %v8000_v34, 0  ;;  %v1447_v38 = vsel %vm1400_vm5, %v8006_v37, 0  ;;  %v8076_v16 = vld [vmem:[#allocation4] sm:$0xff]  ;;  %v8095_v23 = vld [vmem:[#allocation4 + $0x18] sm:$0xff] }
 0x23d   : > { %2007 = vrot.lane.b32.xlu1 %v1377_v9, %s7422_s29  ;;  %5998 = vmatprep.subr.bf16.mxu0 %v8074_v15  ;;  %v8097_v24 = vld [vmem:[#allocation4 + $0x60] sm:$0xff] }
 0x23e   : > { %1993 = vrot.lane.b32.xlu0 %v1370_v22, %s7422_s29  ;;  %5999 = vmatpush3.bf16.msra.mxu0 %v8076_v16  ;;  %v8091_v22 = vld [vmem:[#allocation4 + $0x58] sm:$0xff]  ;;  %10527 = vst [vmem:[#allocation22_spill] sm:$0xff] %v8097_v24 }
 0x23f   : > { %10526 = vst [vmem:[#allocation21_spill] sm:$0xff] %v8091_v22 }
 0x241   : > { %2009 = vrot.lane.b32.xlu1 %v1378_v18, %s7422_s29 }
 0x243   : > { %6454 = vmatmul.mubr.msk.bf16.gmra.mrb[4].mxu0 %vm1233_vm6, %v1220_v10  ;;  %5971 = vmatpush3.bf16.xpose.msra.mxu1 %v1432_v17  ;;  %v8078_v17 = vld [vmem:[#allocation4 + $0x48] sm:$0xff] }
 0x244   : > { %6457 = vmatprep.mubr.msk.bf16.mxu0 %vm1233_vm6, %v1221_v11  ;;  %6647 = vmatprep.subr.msk.bf16.mxu1 %vm1400_vm5, %v1378_v18  ;;  %v8083_v18 = vld [vmem:[#allocation4 + $0x8] sm:$0xff] }
 0x245   : > { %6000 = vmatprep.subr.bf16.mxu0 %v8078_v17 }
 0x246   : > { %6001 = vmatpush3.bf16.msra.mxu0 %v8083_v18 }
 0x24b   : > { %6458 = vmatmul.mubr.msk.bf16.gmra.mrb[8].mxu0 %vm1233_vm6, %v1222_v20  ;;  %5973 = vmatpush3.bf16.xpose.msra.mxu1 %v1435_v25  ;;  %v8085_v20 = vld [vmem:[#allocation4 + $0x50] sm:$0xff]  ;;  %v8101_v25 = vld [vmem:[#allocation4 + $0x20] sm:$0xff] }
 0x24c   : > { %6461 = vmatprep.mubr.msk.bf16.mxu0 %vm1233_vm6, %v1223_v21  ;;  %6648 = vmatprep.subr.msk.bf16.mxu1 %vm1400_vm5, %v7979_v26  ;;  %v8089_v21 = vld [vmem:[#allocation4 + $0x10] sm:$0xff]  ;;  %10528 = vst [vmem:[#allocation23_spill] sm:$0xff] %v8101_v25 }
 0x24d   : > { %6002 = vmatprep.subr.bf16.mxu0 %v8085_v20 }
 0x24e   : > { %6003 = vmatpush3.bf16.msra.mxu0 %v8089_v21 }
 0x24f   : > { %6004 = vmatprep.subr.bf16.mxu0 %v8091_v22 }
 0x252   : > { %6005 = vmatpush3.bf16.msra.mxu0 %v8095_v23 }
 0x253   : > { %6462 = vmatmul.mubr.msk.bf16.gmra.mrb[12].mxu0 %vm1233_vm6, %v1224_v27  ;;  %5975 = vmatpush3.bf16.xpose.msra.mxu1 %v1438_v29  ;;  %v8103_v27 = vld [vmem:[#allocation4 + $0x68] sm:$0xff] }
 0x254   : > { %6649 = vmatprep.subr.msk.bf16.mxu1 %vm1400_vm5, %v7988_v30  ;;  %6006 = vmatprep.subr.bf16.mxu0 %v8097_v24  ;;  %10529 = vst [vmem:[#allocation24_spill] sm:$0xff] %v8103_v27  ;;  %v8107_v29 = vld [vmem:[#allocation4 + $0x28] sm:$0xff] }
 0x255   : > { %10530 = vst [vmem:[#allocation25_spill] sm:$0xff] %v8107_v29 }
 0x256   : > { %6007 = vmatpush3.bf16.msra.mxu0 %v8101_v25 }
 0x257   : > { %6008 = vmatprep.subr.bf16.mxu0 %v8103_v27 }
 0x25a   : > { %6009 = vmatpush3.bf16.msra.mxu0 %v8107_v29 }
 0x25b   : > { %5977 = vmatpush3.bf16.xpose.msra.mxu1 %v1441_v32  ;;  %v8109_v32 = vld [vmem:[#allocation4 + $0x70] sm:$0xff] }
 0x25c   : > { %6650 = vmatprep.subr.msk.bf16.mxu1 %vm1400_vm5, %v7996_v33  ;;  %10531 = vst [vmem:[#allocation26_spill] sm:$0xff] %v8109_v32  ;;  %6010 = vmatprep.subr.bf16.mxu0 %v8109_v32 }
 0x263   : > { %5979 = vmatpush3.bf16.xpose.msra.mxu1 %v1444_v35  ;;  %v8113_v35 = vld [vmem:[#allocation4 + $0x30] sm:$0xff] }
 0x264   : > { %6651 = vmatprep.subr.msk.bf16.mxu1 %vm1400_vm5, %v8004_v36  ;;  %10532 = vst [vmem:[#allocation27_spill] sm:$0xff] %v8113_v35  ;;  %6011 = vmatpush3.bf16.msra.mxu0 %v8113_v35 }
 0x26b   : > { %5981 = vmatpush3.bf16.xpose.msra.mxu1 %v1447_v38  ;;  %v8115_v38 = vld [vmem:[#allocation4 + $0x78] sm:$0xff] }
 0x26c   : > { %10533 = vst [vmem:[#allocation28_spill] sm:$0xff] %v8115_v38  ;;  %6012 = vmatprep.subr.bf16.mxu0 %v8115_v38 }
 0x30e   : > { %v6451_v39 = vpop.f32.mrb[0].mxu0 }
 0x30f   : > { %v1296_v40 = vpop.f32.mrb[1].mxu0  ;;  %v1305_v42 = vadd.f32 %v6451_v39, %v5829_v19  ;;  %v8119_v39 = vld [vmem:[#allocation4 + $0x38] sm:$0xff] }
 0x310   : > { %v6452_v41 = vpop.f32.mrb[2].mxu0  ;;  %v1297_v45 = vadd.f32 %v5829_v19, %v1296_v40  ;;  %10534 = vst [vmem:[#allocation29_spill] sm:$0xff] %v8119_v39  ;;  %6013 = vmatpush3.bf16.msra.mxu0 %v8119_v39 }
 0x311   : > { %v1308_v43 = vadd.f32 %v6452_v41, %v5829_v19  ;;  %v1299_v44 = vpop.f32.mrb[3].mxu0 }
 0x312   : > { %v1300_v46 = vadd.f32 %v5829_v19, %v1299_v44 }
 0x313   : > { %v8026_v47 = vpack.c.bf16 %v1308_v43, %v1305_v42 }
 0x314   : > { %v8028_v48 = vpack.c.bf16 %v1300_v46, %v1297_v45 }
 0x316   : > { %5982 = vmatprep.mubr.msk.bf16.mxu1 %vm1400_vm5, %v8028_v48  ;;  %v6455_v49 = vpop.f32.mrb[4].mxu0 }
 0x317   : > { %5983 = vmatmul.mubr.msk.bf16.vlgmr.msra.gmra.mrb[0].mxu1 %vm1400_vm5, %v8028_v48  ;;  %v1321_v50 = vadd.f32 %v6455_v49, %v5829_v19  ;;  %v1312_v51 = vpop.f32.mrb[5].mxu0 }
 0x318   : > { %5984 = vmatprep.mubr.msk.bf16.mxu1 %vm1400_vm5, %v8026_v47  ;;  %v1313_v52 = vadd.f32 %v5829_v19, %v1312_v51  ;;  %v6456_v53 = vpop.f32.mrb[6].mxu0 }
 0x319   : > { %v1324_v54 = vadd.f32 %v6456_v53, %v5829_v19  ;;  %v1315_v55 = vpop.f32.mrb[7].mxu0 }
 0x31a   : > { %v1316_v56 = vadd.f32 %v5829_v19, %v1315_v55 }
 0x31b   : > { %v8036_v57 = vpack.c.bf16 %v1324_v54, %v1321_v50 }
 0x31c   : > { %v8038_v58 = vpack.c.bf16 %v1316_v56, %v1313_v52 }
 0x31e   : > { %v6459_v59 = vpop.f32.mrb[8].mxu0 }
 0x31f   : > { %5985 = vmatmul.mubr.msk.bf16.gmra.mrb[4].mxu1 %vm1400_vm5, %v8026_v47  ;;  %v1337_v60 = vadd.f32 %v6459_v59, %v5829_v19  ;;  %v1328_v61 = vpop.f32.mrb[9].mxu0 }
 0x320   : > { %5986 = vmatprep.mubr.msk.bf16.mxu1 %vm1400_vm5, %v8038_v58  ;;  %v1329_v62 = vadd.f32 %v5829_v19, %v1328_v61  ;;  %v6460_v63 = vpop.f32.mrb[10].mxu0 }
 0x321   : > { %v1340_v0 = vadd.f32 %v6460_v63, %v5829_v19  ;;  %v1331_v1 = vpop.f32.mrb[11].mxu0 }
 0x322   : > { %v1332_v2 = vadd.f32 %v5829_v19, %v1331_v1 }
 0x323   : > { %v8044_v3 = vpack.c.bf16 %v1340_v0, %v1337_v60 }
 0x324   : > { %v8046_v4 = vpack.c.bf16 %v1332_v2, %v1329_v62 }
 0x326   : > { %v6463_v5 = vpop.f32.mrb[12].mxu0 }
 0x327   : > { %5987 = vmatmul.mubr.msk.bf16.gmra.mrb[8].mxu1 %vm1400_vm5, %v8038_v58  ;;  %v1353_v6 = vadd.f32 %v6463_v5, %v5829_v19  ;;  %v1344_v7 = vpop.f32.mrb[13].mxu0 }
 0x328   : > { %5988 = vmatprep.mubr.msk.bf16.mxu1 %vm1400_vm5, %v8036_v57  ;;  %v1345_v8 = vadd.f32 %v5829_v19, %v1344_v7  ;;  %v6464_v9 = vpop.f32.mrb[14].mxu0 }
 0x329   : > { %v1356_v10 = vadd.f32 %v6464_v9, %v5829_v19  ;;  %v1347_v11 = vpop.f32.mrb[15].mxu0 }
 0x32a   : > { %v1348_v12 = vadd.f32 %v5829_v19, %v1347_v11  ;;  %v2004_v19 = vpop.permute.xlu1 %2003 }
 0x32b   : > { %v8052_v13 = vpack.c.bf16 %v1356_v10, %v1353_v6  ;;  %6652 = vmatprep.subr.msk.bf16.mxu0 %vm1400_vm5, %v2004_v19 }
 0x32c   : > { %v8054_v14 = vpack.c.bf16 %v1348_v12, %v1345_v8 }
 0x32d   : > { %10524 = vst [vmem:[#allocation19_spill] sm:$0xff] %v8052_v13 }
 0x32e   : > { %10525 = vst [vmem:[#allocation20_spill] sm:$0xff] %v8054_v14  ;;  %v8233_v27 = vpop.permute.xlu1 %2005 }
 0x32f   : > { %5989 = vmatmul.mubr.msk.bf16.gmra.mrb[12].mxu1 %vm1400_vm5, %v8036_v57  ;;  %10538 = vst [vmem:[#allocation33_spill] sm:$0xff] %v8233_v27 }
 0x330   : > { %5990 = vmatprep.mubr.msk.bf16.mxu1 %vm1400_vm5, %v8046_v4 }
 0x337   : > { %5991 = vmatmul.mubr.msk.bf16.gmra.mrb[16].mxu1 %vm1400_vm5, %v8046_v4 }
 0x338   : > { %5992 = vmatprep.mubr.msk.bf16.mxu1 %vm1400_vm5, %v8044_v3 }
 0x33f   : > { %5993 = vmatmul.mubr.msk.bf16.gmra.mrb[20].mxu1 %vm1400_vm5, %v8044_v3 }
 0x340   : > { %5994 = vmatprep.mubr.msk.bf16.mxu1 %vm1400_vm5, %v8054_v14 }
 0x347   : > { %5995 = vmatmul.mubr.msk.bf16.gmra.mrb[24].mxu1 %vm1400_vm5, %v8054_v14 }
 0x348   : > { %5996 = vmatprep.mubr.msk.bf16.mxu1 %vm1400_vm5, %v8052_v13 }
 0x34f   : > { %5997 = vmatmul.mubr.msk.bf16.gmra.mrb[28].mxu1 %vm1400_vm5, %v8052_v13 }
 0x3ea   : > { %v8123_v40 = vpop.f32.mrb[0].mxu1 }
 0x3eb   : > { %v8125_v41 = vpop.f32.mrb[1].mxu1 }
 0x3ec   : > { %v8127_v42 = vpop.f32.mrb[2].mxu1  ;;  %v1586_v43 = vmax.f32 %v8123_v40, %v8125_v41 }
 0x3ed   : > { %v8131_v44 = vpop.f32.mrb[3].mxu1 }
 0x3ee   : > { %1587 = vmax.xlane.f32.xlu0 %v1586_v43  ;;  %v1589_v45 = vmax.f32 %v8127_v42, %v8131_v44 }
 0x3f2   : > { %1590 = vmax.xlane.f32.xlu0 %v1589_v45  ;;  %v8135_v46 = vpop.f32.mrb[4].mxu1 }
 0x3f3   : > { %v8137_v49 = vpop.f32.mrb[5].mxu1 }
 0x3f4   : > { %v8139_v50 = vpop.f32.mrb[6].mxu1  ;;  %v1592_v51 = vmax.f32 %v8135_v46, %v8137_v49 }
 0x3f5   : > { %v8143_v52 = vpop.f32.mrb[7].mxu1 }
 0x3f6   : > { %1593 = vmax.xlane.f32.xlu1 %v1592_v51  ;;  %v1595_v53 = vmax.f32 %v8139_v50, %v8143_v52 }
 0x3fa   : > { %1596 = vmax.xlane.f32.xlu1 %v1595_v53  ;;  %v8147_v54 = vpop.f32.mrb[8].mxu1 }
 0x3fb   : > { %v8149_v55 = vpop.f32.mrb[9].mxu1 }
 0x3fc   : > { %v8151_v56 = vpop.f32.mrb[10].mxu1  ;;  %v1598_v59 = vmax.f32 %v8147_v54, %v8149_v55 }
 0x3fd   : > { %v8155_v60 = vpop.f32.mrb[11].mxu1 }
 0x3fe   : > { %1599 = vmax.xlane.f32.xlu0 %v1598_v59  ;;  %v1601_v61 = vmax.f32 %v8151_v56, %v8155_v60 }
 0x400   : > { %1602 = vmax.xlane.f32.xlu1 %v1601_v61 }
 0x402   : > { %v8159_v62 = vpop.f32.mrb[12].mxu1 }
 0x403   : > { %v8161_v63 = vpop.f32.mrb[13].mxu1 }
 0x404   : > { %v8163_v0 = vpop.f32.mrb[14].mxu1  ;;  %v1604_v1 = vmax.f32 %v8159_v62, %v8161_v63 }
 0x405   : > { %v8167_v2 = vpop.f32.mrb[15].mxu1 }
 0x406   : > { %1605 = vmax.xlane.f32.xlu0 %v1604_v1  ;;  %v1607_v5 = vmax.f32 %v8163_v0, %v8167_v2 }
 0x408   : > { %1608 = vmax.xlane.f32.xlu1 %v1607_v5 }
 0x40a   : > { %v8171_v6 = vpop.f32.mrb[16].mxu1 }
 0x40b   : > { %v8173_v7 = vpop.f32.mrb[17].mxu1 }
 0x40c   : > { %v8175_v8 = vpop.f32.mrb[18].mxu1  ;;  %v1610_v9 = vmax.f32 %v8171_v6, %v8173_v7 }
 0x40d   : > { %v8179_v10 = vpop.f32.mrb[19].mxu1 }
 0x40e   : > { %1611 = vmax.xlane.f32.xlu0 %v1610_v9  ;;  %v1613_v11 = vmax.f32 %v8175_v8, %v8179_v10 }
 0x410   : > { %1614 = vmax.xlane.f32.xlu1 %v1613_v11 }
 0x412   : > { %v8183_v12 = vpop.f32.mrb[20].mxu1 }
 0x413   : > { %v8185_v19 = vpop.f32.mrb[21].mxu1 }
 0x414   : > { %v8187_v43 = vpop.f32.mrb[22].mxu1  ;;  %v1616_v45 = vmax.f32 %v8183_v12, %v8185_v19 }
 0x415   : > { %v8191_v51 = vpop.f32.mrb[23].mxu1 }
 0x416   : > { %1617 = vmax.xlane.f32.xlu0 %v1616_v45  ;;  %v1619_v53 = vmax.f32 %v8187_v43, %v8191_v51 }
 0x418   : > { %1620 = vmax.xlane.f32.xlu1 %v1619_v53 }
 0x41a   : > { %v8195_v59 = vpop.f32.mrb[24].mxu1 }
 0x41b   : > { %v8197_v61 = vpop.f32.mrb[25].mxu1 }
 0x41c   : > { %v8199_v1 = vpop.f32.mrb[26].mxu1  ;;  %v1622_v5 = vmax.f32 %v8195_v59, %v8197_v61 }
 0x41d   : > { %v8203_v9 = vpop.f32.mrb[27].mxu1 }
 0x41e   : > { %1623 = vmax.xlane.f32.xlu0 %v1622_v5  ;;  %v1625_v11 = vmax.f32 %v8199_v1, %v8203_v9  ;;  %v8225_v5 = vpop.permute.xlu0 %1987 }
 0x41f   : > { %10535 = vst [vmem:[#allocation30_spill] sm:$0xff] %v8225_v5 }
 0x420   : > { %1626 = vmax.xlane.f32.xlu1 %v1625_v11 }
 0x422   : > { %v8207_v45 = vpop.f32.mrb[28].mxu1  ;;  %v8229_v11 = vpop.permute.xlu0 %1989 }
 0x423   : > { %v8209_v38 = vpop.f32.mrb[29].mxu1  ;;  %10536 = vst [vmem:[#allocation31_spill] sm:$0xff] %v8229_v11 }
 0x424   : > { %v8211_v53 = vpop.f32.mrb[30].mxu1  ;;  %v1628_v39 = vmax.f32 %v8207_v45, %v8209_v38 }
 0x425   : > { %v8215_v32 = vpop.f32.mrb[31].mxu1 }
 0x426   : > { %1629 = vmax.xlane.f32.xlu0 %v1628_v39  ;;  %v1631_v35 = vmax.f32 %v8211_v53, %v8215_v32  ;;  %v8231_v39 = vpop.permute.xlu0 %1991 }
 0x427   : > { %10537 = vst [vmem:[#allocation32_spill] sm:$0xff] %v8231_v39 }
 0x42a   : > { %v8235_v29 = vpop.permute.xlu0 %1993 }
 0x42b   : > { %10539 = vst [vmem:[#allocation34_spill] sm:$0xff] %v8235_v29 }
 0x431   : > { %2011 = vrot.lane.b32.xlu1 %v7979_v26, %s7422_s29  ;;  %v8237_v26 = vpop.permute.xlu1 %2007 }
 0x432   : > { %10540 = vst [vmem:[#allocation35_spill] sm:$0xff] %v8237_v26 }
 0x435   : > { %1997 = vrot.lane.b32.xlu1 %v7992_v31, %s7422_s29  ;;  %v8241_v25 = vpop.permute.xlu1 %2009 }
 0x43c   : > { %1995 = vrot.lane.b32.xlu0 %v7983_v28, %s7422_s29 }
 0x459   : > { %1632 = vmax.xlane.f32.xlu1 %v1631_v35 }
 0x46a   : > { %2013 = vrot.lane.b32.xlu1 %v7988_v30, %s7422_s29 }
 0x47b   : > { %v1588_v31 = vpop.xlane.xlu0 %1587 }
 0x47c   : > { %v1634_v24 = vsub.f32 %v8123_v40, %v1588_v31  ;;  %v1635_v28 = vsub.f32 %v8125_v41, %v1588_v31 }
 0x47e   : > { %v1666_v35 = vmul.f32 1.442695, %v1634_v24  ;;  %v1668_v5 = vmul.f32 1.442695, %v1635_v28 }
 0x47f   : > { %v1591_v30 = vpop.xlane.xlu0 %1590 }
 0x480   : > { %6761 = vpow2.f32 %v1666_v35  ;;  %v1636_v11 = vsub.f32 %v8127_v42, %v1591_v30  ;;  %v1637_v39 = vsub.f32 %v8131_v44, %v1591_v30 }
 0x481   : > { %6763 = vpow2.f32 %v1668_v5 }
 0x482   : > { %v1670_v27 = vmul.f32 1.442695, %v1636_v11  ;;  %v1672_v29 = vmul.f32 1.442695, %v1637_v39 }
 0x483   : > { %v1594_v22 = vpop.xlane.xlu1 %1593 }
 0x484   : > { %6765 = vpow2.f32 %v1670_v27  ;;  %v1638_v26 = vsub.f32 %v8135_v46, %v1594_v22  ;;  %v1639_v40 = vsub.f32 %v8137_v49, %v1594_v22 }
 0x485   : > { %6767 = vpow2.f32 %v1672_v29 }
 0x486   : > { %v1674_v24 = vmul.f32 1.442695, %v1638_v26  ;;  %v1676_v41 = vmul.f32 1.442695, %v1639_v40 }
 0x487   : > { %v1597_v31 = vpop.xlane.xlu1 %1596 }
 0x488   : > { %6769 = vpow2.f32 %v1674_v24  ;;  %v1640_v28 = vsub.f32 %v8139_v50, %v1597_v31  ;;  %v1641_v42 = vsub.f32 %v8143_v52, %v1597_v31 }
 0x489   : > { %6771 = vpow2.f32 %v1676_v41 }
 0x48a   : > { %v8249_v44 = vpop.eup %6761  ;;  %v1678_v5 = vmul.f32 1.442695, %v1640_v28  ;;  %v1680_v11 = vmul.f32 1.442695, %v1641_v42 }
 0x48b   : > { %v8251_v39 = vpop.eup %6763  ;;  %v1600_v27 = vpop.xlane.xlu0 %1599 }
 0x48c   : > { %6773 = vpow2.f32 %v1678_v5  ;;  %v1642_v22 = vsub.f32 %v8147_v54, %v1600_v27  ;;  %v1643_v29 = vsub.f32 %v8149_v55, %v1600_v27  ;;  %v1730_v46 = vadd.f32 %v8251_v39, %v8249_v44 }
 0x48d   : > { %6775 = vpow2.f32 %v1680_v11  ;;  %v1603_v49 = vpop.xlane.xlu1 %1602 }
 0x48e   : > { %v8257_v50 = vpop.eup %6765  ;;  %v1682_v52 = vmul.f32 1.442695, %v1642_v22  ;;  %v1684_v26 = vmul.f32 1.442695, %v1643_v29  ;;  %v1644_v35 = vsub.f32 %v8151_v56, %v1603_v49  ;;  %v1645_v30 = vsub.f32 %v8155_v60, %v1603_v49  ;;  %1731 = vadd.xlane.f32.xlu0 %v1730_v46 }
 0x48f   : > { %v8261_v40 = vpop.eup %6767 }
 0x490   : > { %6777 = vpow2.f32 %v1682_v52  ;;  %v1686_v54 = vmul.f32 1.442695, %v1644_v35  ;;  %v1688_v24 = vmul.f32 1.442695, %v1645_v30  ;;  %v1733_v55 = vadd.f32 %v8261_v40, %v8257_v50 }
 0x491   : > { %6779 = vpow2.f32 %v1684_v26 }
 0x492   : > { %v8265_v41 = vpop.eup %6769  ;;  %6781 = vpow2.f32 %v1686_v54  ;;  %1734 = vadd.xlane.f32.xlu1 %v1733_v55 }
 0x493   : > { %v8267_v31 = vpop.eup %6771  ;;  %6783 = vpow2.f32 %v1688_v24  ;;  %v1606_v56 = vpop.xlane.xlu0 %1605 }
 0x494   : > { %v1646_v60 = vsub.f32 %v8159_v62, %v1606_v56  ;;  %v1647_v28 = vsub.f32 %v8161_v63, %v1606_v56  ;;  %v1736_v42 = vadd.f32 %v8267_v31, %v8265_v41 }
 0x495   : > { %v1609_v5 = vpop.xlane.xlu1 %1608 }
 0x496   : > { %v8273_v11 = vpop.eup %6773  ;;  %v1690_v27 = vmul.f32 1.442695, %v1646_v60  ;;  %v1692_v22 = vmul.f32 1.442695, %v1647_v28  ;;  %v1648_v29 = vsub.f32 %v8163_v0, %v1609_v5  ;;  %v1649_v46 = vsub.f32 %v8167_v2, %v1609_v5  ;;  %1737 = vadd.xlane.f32.xlu0 %v1736_v42 }
 0x497   : > { %v8277_v49 = vpop.eup %6775 }
 0x498   : > { %6785 = vpow2.f32 %v1690_v27  ;;  %v1694_v52 = vmul.f32 1.442695, %v1648_v29  ;;  %v1696_v62 = vmul.f32 1.442695, %v1649_v46  ;;  %v1739_v63 = vadd.f32 %v8277_v49, %v8273_v11 }
 0x499   : > { %6787 = vpow2.f32 %v1692_v22 }
 0x49a   : > { %v8281_v26 = vpop.eup %6777  ;;  %6789 = vpow2.f32 %v1694_v52  ;;  %1740 = vadd.xlane.f32.xlu1 %v1739_v63 }
 0x49b   : > { %v8283_v35 = vpop.eup %6779  ;;  %6791 = vpow2.f32 %v1696_v62  ;;  %v1612_v0 = vpop.xlane.xlu0 %1611 }
 0x49c   : > { %v8285_v30 = vpop.eup %6781  ;;  %v1650_v2 = vsub.f32 %v8171_v6, %v1612_v0  ;;  %v1651_v54 = vsub.f32 %v8173_v7, %v1612_v0  ;;  %v1742_v24 = vadd.f32 %v8283_v35, %v8281_v26 }
 0x49d   : > { %v8291_v55 = vpop.eup %6783  ;;  %v1615_v56 = vpop.xlane.xlu1 %1614 }
 0x49e   : > { %v1698_v60 = vmul.f32 1.442695, %v1650_v2  ;;  %v1700_v28 = vmul.f32 1.442695, %v1651_v54  ;;  %v1652_v42 = vsub.f32 %v8175_v8, %v1615_v56  ;;  %v1653_v5 = vsub.f32 %v8179_v10, %v1615_v56  ;;  %1743 = vadd.xlane.f32.xlu0 %v1742_v24 }
 0x49f   : > { %v1745_v27 = vadd.f32 %v8291_v55, %v8285_v30 }
 0x4a0   : > { %6793 = vpow2.f32 %v1698_v60  ;;  %v1702_v6 = vmul.f32 1.442695, %v1652_v42  ;;  %v1704_v22 = vmul.f32 1.442695, %v1653_v5 }
 0x4a1   : > { %6795 = vpow2.f32 %v1700_v28  ;;  %1746 = vadd.xlane.f32.xlu1 %v1745_v27 }
 0x4a2   : > { %v8297_v7 = vpop.eup %6785  ;;  %6797 = vpow2.f32 %v1702_v6 }
 0x4a3   : > { %v8299_v29 = vpop.eup %6787  ;;  %6799 = vpow2.f32 %v1704_v22  ;;  %v1618_v46 = vpop.xlane.xlu0 %1617 }
 0x4a4   : > { %v8301_v52 = vpop.eup %6789  ;;  %v1654_v8 = vsub.f32 %v8183_v12, %v1618_v46  ;;  %v1655_v10 = vsub.f32 %v8185_v19, %v1618_v46  ;;  %v1748_v62 = vadd.f32 %v8299_v29, %v8297_v7 }
 0x4a5   : > { %v8307_v63 = vpop.eup %6791  ;;  %v1621_v0 = vpop.xlane.xlu1 %1620 }
 0x4a6   : > { %v1706_v2 = vmul.f32 1.442695, %v1654_v8  ;;  %v1708_v54 = vmul.f32 1.442695, %v1655_v10  ;;  %v1656_v24 = vsub.f32 %v8187_v43, %v1621_v0  ;;  %v1657_v56 = vsub.f32 %v8191_v51, %v1621_v0  ;;  %1749 = vadd.xlane.f32.xlu0 %v1748_v62 }
 0x4a7   : > { %v1751_v60 = vadd.f32 %v8307_v63, %v8301_v52 }
 0x4a8   : > { %6801 = vpow2.f32 %v1706_v2  ;;  %v1710_v12 = vmul.f32 1.442695, %v1656_v24  ;;  %v1712_v28 = vmul.f32 1.442695, %v1657_v56 }
 0x4a9   : > { %6803 = vpow2.f32 %v1708_v54  ;;  %1752 = vadd.xlane.f32.xlu1 %v1751_v60 }
 0x4aa   : > { %v8313_v19 = vpop.eup %6793  ;;  %6805 = vpow2.f32 %v1710_v12 }
 0x4ab   : > { %v8315_v42 = vpop.eup %6795  ;;  %6807 = vpow2.f32 %v1712_v28  ;;  %v1624_v5 = vpop.xlane.xlu0 %1623 }
 0x4ac   : > { %v8317_v27 = vpop.eup %6797  ;;  %v1658_v43 = vsub.f32 %v8195_v59, %v1624_v5  ;;  %v1659_v51 = vsub.f32 %v8197_v61, %v1624_v5  ;;  %v1754_v6 = vadd.f32 %v8315_v42, %v8313_v19 }
 0x4ad   : > { %v8323_v22 = vpop.eup %6799  ;;  %v1627_v46 = vpop.xlane.xlu1 %1626 }
 0x4ae   : > { %v1714_v8 = vmul.f32 1.442695, %v1658_v43  ;;  %v1716_v10 = vmul.f32 1.442695, %v1659_v51  ;;  %v1660_v62 = vsub.f32 %v8199_v1, %v1627_v46  ;;  %v1661_v0 = vsub.f32 %v8203_v9, %v1627_v46  ;;  %1755 = vadd.xlane.f32.xlu1 %v1754_v6 }
 0x4af   : > { %v1757_v2 = vadd.f32 %v8323_v22, %v8317_v27 }
 0x4b0   : > { %6809 = vpow2.f32 %v1714_v8  ;;  %v1718_v59 = vmul.f32 1.442695, %v1660_v62  ;;  %v1720_v54 = vmul.f32 1.442695, %v1661_v0 }
 0x4b1   : > { %6811 = vpow2.f32 %v1716_v10  ;;  %1758 = vadd.xlane.f32.xlu0 %v1757_v2  ;;  %v8358_v10 = vpop.permute.xlu1 %2011 }
 0x4b2   : > { %v8329_v61 = vpop.eup %6801  ;;  %6813 = vpow2.f32 %v1718_v59 }
 0x4b3   : > { %v8331_v24 = vpop.eup %6803  ;;  %6815 = vpow2.f32 %v1720_v54  ;;  %v1630_v46 = vpop.xlane.xlu0 %1629 }
 0x4b4   : > { %v8333_v56 = vpop.eup %6805  ;;  %v1760_v1 = vadd.f32 %v8331_v24, %v8329_v61  ;;  %v1662_v8 = vsub.f32 %v8207_v45, %v1630_v46  ;;  %v1663_v62 = vsub.f32 %v8209_v38, %v1630_v46 }
 0x4b5   : > { %v8337_v9 = vpop.eup %6807  ;;  %v8361_v59 = vpop.permute.xlu1 %1997 }
 0x4b6   : > { %1761 = vadd.xlane.f32.xlu1 %v1760_v1  ;;  %v1763_v60 = vadd.f32 %v8337_v9, %v8333_v56  ;;  %v1722_v0 = vmul.f32 1.442695, %v1662_v8  ;;  %v1724_v2 = vmul.f32 1.442695, %v1663_v62 }
 0x4b8   : > { %1764 = vadd.xlane.f32.xlu0 %v1763_v60  ;;  %6817 = vpow2.f32 %v1722_v0 }
 0x4b9   : > { %6819 = vpow2.f32 %v1724_v2 }
 0x4ba   : > { %v8341_v12 = vpop.eup %6809 }
 0x4bb   : > { %v8343_v28 = vpop.eup %6811 }
 0x4bc   : > { %v8345_v5 = vpop.eup %6813  ;;  %v1766_v43 = vadd.f32 %v8343_v28, %v8341_v12 }
 0x4bd   : > { %v8349_v51 = vpop.eup %6815 }
 0x4be   : > { %1767 = vadd.xlane.f32.xlu1 %v1766_v43  ;;  %v1769_v6 = vadd.f32 %v8349_v51, %v8345_v5 }
 0x4c0   : > { %1770 = vadd.xlane.f32.xlu0 %v1769_v6 }
 0x4c2   : > { %v8365_v45 = vpop.eup %6817 }
 0x4c3   : > { %v8367_v43 = vpop.eup %6819 }
 0x4c4   : > { %v1772_v38 = vadd.f32 %v8367_v43, %v8365_v45 }
 0x4cf   : > { %2015 = vrot.lane.b32.xlu1 %v7996_v33, %s7422_s29 }
 0x4d6   : > { %1999 = vrot.lane.b32.xlu0 %v8000_v34, %s7422_s29 }
 0x4e6   : > { %v1633_v54 = vpop.xlane.xlu1 %1632 }
 0x4e7   : > { %v1664_v1 = vsub.f32 %v8211_v53, %v1633_v54  ;;  %v1665_v33 = vsub.f32 %v8215_v32, %v1633_v54  ;;  %v8391_v32 = vpop.permute.xlu0 %1995 }
 0x4e9   : > { %v1726_v60 = vmul.f32 1.442695, %v1664_v1  ;;  %v1728_v34 = vmul.f32 1.442695, %v1665_v33  ;;  %v10541_v1 = vld [vmem:[#allocation21_spill] sm:$0xff] }
 0x4eb   : > { %6821 = vpow2.f32 %v1726_v60 }
 0x4ec   : > { %6823 = vpow2.f32 %v1728_v34  ;;  %v10544_v34 = vld [vmem:[#allocation30_spill] sm:$0xff] }
 0x4f3   : > { %1773 = vadd.xlane.f32.xlu1 %v1772_v38 }
 0x4f5   : > { %v8371_v6 = vpop.eup %6821 }
 0x4f6   : > { %v8373_v46 = vpop.eup %6823 }
 0x4f7   : > { %v1775_v53 = vadd.f32 %v8373_v46, %v8371_v6 }
 0x4f9   : > { %1776 = vadd.xlane.f32.xlu0 %v1775_v53  ;;  %v10546_v53 = vld [vmem:[#allocation33_spill] sm:$0xff] }
 0x504   : > { %2017 = vrot.lane.b32.xlu1 %v8004_v36, %s7422_s29  ;;  %v8397_v36 = vpop.permute.xlu1 %2013 }
 0x508   : > { %1957 = vrot.lane.b32.xlu1 %v8026_v47, %s7422_s29 }
 0x50c   : > { %1961 = vrot.lane.b32.xlu1 %v8036_v57, %s7422_s29 }
 0x50f   : > { %2001 = vrot.lane.b32.xlu0 %v8006_v37, %s7422_s29 }
 0x510   : > { %1965 = vrot.lane.b32.xlu1 %v8044_v3, %s7422_s29 }
 0x513   : > { %1955 = vrot.lane.b32.xlu0 %v8028_v48, %s7422_s29 }
 0x514   : > { %1969 = vrot.lane.b32.xlu1 %v8052_v13, %s7422_s29 }
 0x517   : > { %1959 = vrot.lane.b32.xlu0 %v8038_v58, %s7422_s29 }
 0x518   : > { %2476 = vrot.lane.b32.xlu1 %v8076_v16, %s7422_s29 }
 0x51b   : > { %v1732_v37 = vpop.xlane.xlu0 %1731  ;;  %1963 = vrot.lane.b32.xlu0 %v8046_v4, %s7422_s29 }
 0x51c   : > { %2494 = vrot.lane.b32.xlu1 %v8078_v17, %s7422_s29  ;;  %6825 = vrcp.f32 %v1732_v37 }
 0x51f   : > { %1967 = vrot.lane.b32.xlu0 %v8054_v14, %s7422_s29  ;;  %v1735_v8 = vpop.xlane.xlu1 %1734 }
 0x520   : > { %6827 = vrcp.f32 %v1735_v8  ;;  %2478 = vrot.lane.b32.xlu1 %v8083_v18, %s7422_s29 }
 0x523   : > { %v1738_v62 = vpop.xlane.xlu0 %1737  ;;  %2492 = vrot.lane.b32.xlu0 %v8074_v15, %s7422_s29 }
 0x524   : > { %2480 = vrot.lane.b32.xlu1 %v8089_v21, %s7422_s29  ;;  %6829 = vrcp.f32 %v1738_v62 }
 0x526   : > { %v6826_v17 = vpop.eup %6825 }
 0x527   : > { %v1741_v16 = vpop.xlane.xlu1 %1740  ;;  %2496 = vrot.lane.b32.xlu0 %v8085_v20, %s7422_s29  ;;  %v1794_v18 = vmul.f32 %v6826_v17, %v8249_v44  ;;  %v1795_v15 = vmul.f32 %v6826_v17, %v8251_v39  ;;  %v10542_v20 = vld [vmem:[#allocation23_spill] sm:$0xff]  ;;  %v10543_v44 = vld [vmem:[#allocation22_spill] sm:$0xff]  ;;  %v2044_v39 = vsel %vm1400_vm5, %v10544_v34, 0 }
 0x528   : > { %6831 = vrcp.f32 %v1741_v16  ;;  %2482 = vrot.lane.b32.xlu1 %v8095_v23, %s7422_s29 }
 0x52a   : > { %v6828_v0 = vpop.eup %6827 }
 0x52b   : > { %v1796_v2 = vmul.f32 %v6828_v0, %v8257_v50  ;;  %v1744_v54 = vpop.xlane.xlu0 %1743  ;;  %v1797_v21 = vmul.f32 %v6828_v0, %v8261_v40  ;;  %2498 = vrot.lane.b32.xlu0 %v10541_v1, %s7422_s29  ;;  %v10545_v40 = vld [vmem:[#allocation25_spill] sm:$0xff]  ;;  %v10547_v0 = vld [vmem:[#allocation24_spill] sm:$0xff] }
 0x52c   : > { %2484 = vrot.lane.b32.xlu1 %v10542_v20, %s7422_s29  ;;  %6833 = vrcp.f32 %v1744_v54  ;;  %v10552_v20 = vld [vmem:[#allocation35_spill] sm:$0xff] }
 0x52d   : > { %v1827_v33 = vpack.c.bf16 %v1797_v21, %v1795_v15  ;;  %v1826_v60 = vpack.c.bf16 %v1796_v2, %v1794_v18  ;;  %v10548_v18 = vld [vmem:[#allocation27_spill] sm:$0xff] }
 0x52e   : > { %v1747_v23 = vpop.xlane.xlu1 %1746  ;;  %v6830_v50 = vpop.eup %6829 }
 0x52f   : > { %6835 = vrcp.f32 %v1747_v23  ;;  %1874 = vmatprep.mubr.bf16.mxu0 %v1827_v33  ;;  %2500 = vrot.lane.b32.xlu0 %v10543_v44, %s7422_s29  ;;  %v1799_v8 = vmul.f32 %v6830_v50, %v8267_v31  ;;  %v1798_v16 = vmul.f32 %v6830_v50, %v8265_v41  ;;  %v10549_v31 = vld [vmem:[#allocation26_spill] sm:$0xff]  ;;  %v10553_v50 = vld [vmem:[#allocation28_spill] sm:$0xff] }
 0x530   : > { %1875 = vmatmul.mubr.bf16.vlgmr.msra.gmra.mrb[16].mxu0 %v1826_v60  ;;  %2486 = vrot.lane.b32.xlu1 %v10545_v40, %s7422_s29 }
 0x531   : > { %6063 = vmatpush3.bf16.xpose.msra.mxu0 %v2044_v39 }
 0x532   : > { %v6832_v38 = vpop.eup %6831  ;;  %6653 = vmatprep.subr.msk.bf16.mxu0 %vm1400_vm5, %v10546_v53 }
 0x533   : > { %v1750_v37 = vpop.xlane.xlu0 %1749  ;;  %v1801_v62 = vmul.f32 %v6832_v38, %v8277_v49  ;;  %v1800_v17 = vmul.f32 %v6832_v38, %v8273_v11  ;;  %2502 = vrot.lane.b32.xlu0 %v10547_v0, %s7422_s29  ;;  %v10550_v49 = vld [vmem:[#allocation31_spill] sm:$0xff]  ;;  %v10551_v11 = vld [vmem:[#allocation29_spill] sm:$0xff] }
 0x534   : > { %2488 = vrot.lane.b32.xlu1 %v10548_v18, %s7422_s29  ;;  %6837 = vrcp.f32 %v1750_v37  ;;  %v2047_v41 = vsel %vm1400_vm5, %v10550_v49, 0  ;;  %v10554_v37 = vld [vmem:[#allocation32_spill] sm:$0xff] }
 0x535   : > { %v1829_v2 = vpack.c.bf16 %v1801_v62, %v1799_v8  ;;  %v1828_v54 = vpack.c.bf16 %v1800_v17, %v1798_v16 }
 0x536   : > { %v1753_v15 = vpop.xlane.xlu1 %1752  ;;  %v6834_v21 = vpop.eup %6833 }
 0x537   : > { %6839 = vrcp.f32 %v1753_v15  ;;  %1882 = vmatprep.mubr.bf16.mxu0 %v1829_v2  ;;  %2504 = vrot.lane.b32.xlu0 %v10549_v31, %s7422_s29  ;;  %v1803_v33 = vmul.f32 %v6834_v21, %v8283_v35  ;;  %v1802_v39 = vmul.f32 %v6834_v21, %v8281_v26  ;;  %v2050_v35 = vsel %vm1400_vm5, %v10554_v37, 0 }
 0x538   : > { %1883 = vmatmul.mubr.bf16.gmra.mrb[20].mxu0 %v1828_v54  ;;  %2490 = vrot.lane.b32.xlu1 %v10551_v11, %s7422_s29  ;;  %v10555_v54 = vld [vmem:[#allocation34_spill] sm:$0xff] }
 0x539   : > { %v6836_v1 = vpop.eup %6835  ;;  %6065 = vmatpush3.bf16.xpose.msra.mxu0 %v2047_v41  ;;  %v2053_v15 = vsel %vm1400_vm5, %v10555_v54, 0  ;;  %v8522_v54 = vld [vmem:[#allocation3 + $0x10] sm:$0xff] }
 0x53a   : > { %6654 = vmatprep.subr.msk.bf16.mxu0 %vm1400_vm5, %v10552_v20  ;;  %v1805_v60 = vmul.f32 %v6836_v1, %v8291_v55  ;;  %v1804_v23 = vmul.f32 %v6836_v1, %v8285_v30 }
 0x53b   : > { %v1756_v44 = vpop.xlane.xlu1 %1755  ;;  %2506 = vrot.lane.b32.xlu0 %v10553_v50, %s7422_s29 }
 0x53c   : > { %v1831_v34 = vpack.c.bf16 %v1805_v60, %v1803_v33  ;;  %6841 = vrcp.f32 %v1756_v44  ;;  %v1830_v38 = vpack.c.bf16 %v1804_v23, %v1802_v39 }
 0x53e   : > { %v1759_v40 = vpop.xlane.xlu0 %1758  ;;  %1890 = vmatprep.mubr.bf16.mxu0 %v1831_v34  ;;  %v6838_v53 = vpop.eup %6837 }
 0x53f   : > { %6843 = vrcp.f32 %v1759_v40  ;;  %v1807_v30 = vmul.f32 %v6838_v53, %v8299_v29  ;;  %v1806_v17 = vmul.f32 %v6838_v53, %v8297_v7 }
 0x540   : > { %1891 = vmatmul.mubr.bf16.gmra.mrb[24].mxu0 %v1830_v38 }
 0x541   : > { %v6840_v55 = vpop.eup %6839  ;;  %6067 = vmatpush3.bf16.xpose.msra.mxu0 %v2050_v35 }
 0x542   : > { %6655 = vmatprep.subr.msk.bf16.mxu0 %vm1400_vm5, %v8241_v25  ;;  %v1809_v8 = vmul.f32 %v6840_v55, %v8307_v63  ;;  %v1808_v26 = vmul.f32 %v6840_v55, %v8301_v52 }
 0x543   : > { %v1762_v62 = vpop.xlane.xlu1 %1761 }
 0x544   : > { %6845 = vrcp.f32 %v1762_v62  ;;  %v1833_v16 = vpack.c.bf16 %v1809_v8, %v1807_v30  ;;  %v1832_v18 = vpack.c.bf16 %v1808_v26, %v1806_v17  ;;  %v8508_v17 = vld [vmem:[#allocation3 + $0x48] sm:$0xff] }
 0x545   : > { %v1765_v0 = vpop.xlane.xlu0 %1764 }
 0x546   : > { %6847 = vrcp.f32 %v1765_v0  ;;  %1898 = vmatprep.mubr.bf16.mxu0 %v1833_v16  ;;  %v6842_v2 = vpop.eup %6841  ;;  %v8512_v0 = vld [vmem:[#allocation3 + $0x8] sm:$0xff] }
 0x547   : > { %v1811_v29 = vmul.f32 %v6842_v2, %v8315_v42  ;;  %v1810_v31 = vmul.f32 %v6842_v2, %v8313_v19  ;;  %v8518_v2 = vld [vmem:[#allocation3 + $0x50] sm:$0xff] }
 0x548   : > { %1899 = vmatmul.mubr.bf16.gmra.mrb[28].mxu0 %v1832_v18 }
 0x549   : > { %v6844_v25 = vpop.eup %6843  ;;  %6069 = vmatpush3.bf16.xpose.msra.mxu0 %v2053_v15  ;;  %v8526_v15 = vld [vmem:[#allocation3 + $0x58] sm:$0xff] }
 0x54a   : > { %6656 = vmatprep.subr.msk.bf16.mxu0 %vm1400_vm5, %v8358_v10  ;;  %v1813_v52 = vmul.f32 %v6844_v25, %v8323_v22  ;;  %v1812_v7 = vmul.f32 %v6844_v25, %v8317_v27  ;;  %v2056_v10 = vsel %vm1400_vm5, %v8391_v32, 0  ;;  %v2059_v32 = vsel %vm1400_vm5, %v8361_v59, 0  ;;  %v8530_v25 = vld [vmem:[#allocation3 + $0x18] sm:$0xff] }
 0x54b   : > { %v1768_v63 = vpop.xlane.xlu1 %1767 }
 0x54c   : > { %6849 = vrcp.f32 %v1768_v63  ;;  %v1835_v21 = vpack.c.bf16 %v1813_v52, %v1811_v29  ;;  %v1834_v11 = vpack.c.bf16 %v1812_v7, %v1810_v31  ;;  %v8536_v52 = vld [vmem:[#allocation3 + $0x60] sm:$0xff] }
 0x54d   : > { %v1771_v49 = vpop.xlane.xlu0 %1770  ;;  %v8540_v7 = vld [vmem:[#allocation3 + $0x20] sm:$0xff] }
 0x54e   : > { %v6846_v41 = vpop.eup %6845  ;;  %6851 = vrcp.f32 %v1771_v49  ;;  %1906 = vmatprep.mubr.bf16.mxu0 %v1835_v21 }
 0x54f   : > { %v1815_v42 = vmul.f32 %v6846_v41, %v8331_v24  ;;  %v1814_v20 = vmul.f32 %v6846_v41, %v8329_v61  ;;  %v2016_v44 = vpop.permute.xlu1 %2015 }
 0x550   : > { %v6848_v1 = vpop.eup %6847  ;;  %1907 = vmatmul.mubr.bf16.gmra.mrb[32].mxu0 %v1834_v11 }
 0x551   : > { %6071 = vmatpush3.bf16.xpose.msra.mxu0 %v2056_v10  ;;  %v1817_v27 = vmul.f32 %v6848_v1, %v8337_v9  ;;  %v1816_v19 = vmul.f32 %v6848_v1, %v8333_v56  ;;  %v2000_v50 = vpop.permute.xlu0 %1999 }
 0x552   : > { %6657 = vmatprep.subr.msk.bf16.mxu0 %vm1400_vm5, %v8397_v36  ;;  %v2062_v39 = vsel %vm1400_vm5, %v2000_v50, 0 }
 0x553   : > { %v1837_v22 = vpack.c.bf16 %v1817_v27, %v1815_v42  ;;  %v1836_v60 = vpack.c.bf16 %v1816_v19, %v1814_v20 }
 0x555   : > { %1914 = vmatprep.mubr.bf16.mxu0 %v1837_v22 }
 0x556   : > { %v6850_v33 = vpop.eup %6849 }
 0x557   : > { %v1819_v24 = vmul.f32 %v6850_v33, %v8343_v28  ;;  %v1818_v61 = vmul.f32 %v6850_v33, %v8341_v12 }
 0x558   : > { %v6852_v23 = vpop.eup %6851  ;;  %1915 = vmatmul.mubr.bf16.gmra.mrb[36].mxu0 %v1836_v60 }
 0x559   : > { %6073 = vmatpush3.bf16.xpose.msra.mxu0 %v2059_v32  ;;  %v1821_v9 = vmul.f32 %v6852_v23, %v8349_v51  ;;  %v1820_v56 = vmul.f32 %v6852_v23, %v8345_v5 }
 0x55a   : > { %6658 = vmatprep.subr.msk.bf16.mxu0 %vm1400_vm5, %v2016_v44 }
 0x55b   : > { %v1839_v36 = vpack.c.bf16 %v1821_v9, %v1819_v24  ;;  %v1838_v34 = vpack.c.bf16 %v1820_v56, %v1818_v61 }
 0x55d   : > { %1922 = vmatprep.mubr.bf16.mxu0 %v1839_v36 }
 0x560   : > { %1923 = vmatmul.mubr.bf16.gmra.mrb[40].mxu0 %v1838_v34 }
 0x561   : > { %6075 = vmatpush3.bf16.xpose.msra.mxu0 %v2062_v39 }
 0x580   : > { %v1774_v59 = vpop.xlane.xlu1 %1773 }
 0x581   : > { %6853 = vrcp.f32 %v1774_v59 }
 0x584   : > { %v2018_v40 = vpop.permute.xlu1 %2017 }
 0x585   : > { %6659 = vmatprep.subr.msk.bf16.mxu0 %vm1400_vm5, %v2018_v40 }
 0x586   : > { %v1777_v28 = vpop.xlane.xlu0 %1776 }
 0x587   : > { %6855 = vrcp.f32 %v1777_v28 }
 0x588   : > { %v1958_v62 = vpop.permute.xlu1 %1957 }
 0x58a   : > { %v2002_v51 = vpop.permute.xlu0 %2001 }
 0x58b   : > { %v2065_v5 = vsel %vm1400_vm5, %v2002_v51, 0  ;;  %v6854_v38 = vpop.eup %6853 }
 0x58c   : > { %6077 = vmatpush3.bf16.xpose.msra.mxu0 %v2065_v5  ;;  %v1823_v53 = vmul.f32 %v6854_v38, %v8367_v43  ;;  %v1822_v35 = vmul.f32 %v6854_v38, %v8365_v45  ;;  %v1962_v45 = vpop.permute.xlu1 %1961 }
 0x58e   : > { %v1956_v26 = vpop.permute.xlu0 %1955 }
 0x590   : > { %v1966_v18 = vpop.permute.xlu1 %1965 }
 0x591   : > { %v6856_v12 = vpop.eup %6855 }
 0x592   : > { %v1825_v37 = vmul.f32 %v6856_v12, %v8373_v46  ;;  %v1824_v55 = vmul.f32 %v6856_v12, %v8371_v6  ;;  %v1960_v16 = vpop.permute.xlu0 %1959  ;;  %v8500_v6 = vld [vmem:[#allocation3 + $0x40] sm:$0xff] }
 0x593   : > { %2914 = vrot.lane.b32.xlu1 %v8500_v6, %s7423_s19  ;;  %v8504_v46 = vld [vmem:[#allocation3] sm:$0xff] }
 0x594   : > { %v1841_v30 = vpack.c.bf16 %v1825_v37, %v1823_v53  ;;  %v1840_v8 = vpack.c.bf16 %v1824_v55, %v1822_v35  ;;  %2898 = vrot.lane.b32.xlu0 %v8504_v46, %s7423_s19  ;;  %v1970_v63 = vpop.permute.xlu1 %1969 }
 0x596   : > { %1930 = vmatprep.mubr.bf16.mxu0 %v1841_v30  ;;  %v1964_v43 = vpop.permute.xlu0 %1963 }
 0x597   : > { %1931 = vmatmul.mubr.bf16.gmra.mrb[44].mxu0 %v1840_v8  ;;  %2916 = vrot.lane.b32.xlu1 %v8508_v17, %s7423_s19 }
 0x598   : > { %6078 = vmatprep.mubr.msk.bf16.mxu0 %vm1400_vm5, %v1956_v26  ;;  %2900 = vrot.lane.b32.xlu0 %v8512_v0, %s7423_s19  ;;  %v2477_v35 = vpop.permute.xlu1 %2476 }
 0x59a   : > { %v1968_v29 = vpop.permute.xlu0 %1967 }
 0x59b   : > { %2918 = vrot.lane.b32.xlu1 %v8518_v2, %s7423_s19 }
 0x59c   : > { %2902 = vrot.lane.b32.xlu0 %v8522_v54, %s7423_s19  ;;  %v2495_v8 = vpop.permute.xlu1 %2494 }
 0x59e   : > { %v2493_v38 = vpop.permute.xlu0 %2492 }
 0x59f   : > { %6079 = vmatmul.mubr.msk.bf16.vlgmr.msra.gmra.mrb[48].mxu0 %vm1400_vm5, %v1956_v26  ;;  %2920 = vrot.lane.b32.xlu1 %v8526_v15, %s7423_s19 }
 0x5a0   : > { %6080 = vmatprep.mubr.msk.bf16.mxu0 %vm1400_vm5, %v1958_v62  ;;  %2904 = vrot.lane.b32.xlu0 %v8530_v25, %s7423_s19 }
 0x5a1   : > { %6094 = vmatprep.subr.bf16.mxu1 %v2493_v38 }
 0x5a2   : > { %6095 = vmatpush3.bf16.msra.mxu1 %v2477_v35 }
 0x5a3   : > { %2922 = vrot.lane.b32.xlu1 %v8536_v52, %s7423_s19  ;;  %6096 = vmatprep.subr.bf16.mxu1 %v2495_v8 }
 0x5a4   : > { %2906 = vrot.lane.b32.xlu0 %v8540_v7, %s7423_s19 }
 0x5a7   : > { %6081 = vmatmul.mubr.msk.bf16.gmra.mrb[52].mxu0 %vm1400_vm5, %v1958_v62 }
 0x5a8   : > { %6082 = vmatprep.mubr.msk.bf16.mxu0 %vm1400_vm5, %v1960_v16 }
 0x5af   : > { %6083 = vmatmul.mubr.msk.bf16.gmra.mrb[56].mxu0 %vm1400_vm5, %v1960_v16 }
 0x5b0   : > { %6084 = vmatprep.mubr.msk.bf16.mxu0 %vm1400_vm5, %v1962_v45 }
 0x5b7   : > { %6085 = vmatmul.mubr.msk.bf16.gmra.mrb[60].mxu0 %vm1400_vm5, %v1962_v45 }
 0x5b8   : > { %6086 = vmatprep.mubr.msk.bf16.mxu0 %vm1400_vm5, %v1964_v43 }
 0x5bf   : > { %6087 = vmatmul.mubr.msk.bf16.gmra.mrb[64].mxu0 %vm1400_vm5, %v1964_v43 }
 0x5c0   : > { %6088 = vmatprep.mubr.msk.bf16.mxu0 %vm1400_vm5, %v1966_v18 }
 0x5c7   : > { %6089 = vmatmul.mubr.msk.bf16.gmra.mrb[68].mxu0 %vm1400_vm5, %v1966_v18  ;;  %v2479_v18 = vpop.permute.xlu1 %2478 }
 0x5c8   : > { %6090 = vmatprep.mubr.msk.bf16.mxu0 %vm1400_vm5, %v1968_v29  ;;  %6097 = vmatpush3.bf16.msra.mxu1 %v2479_v18 }
 0x5cf   : > { %6091 = vmatmul.mubr.msk.bf16.gmra.mrb[72].mxu0 %vm1400_vm5, %v1968_v29 }
 0x5d0   : > { %6092 = vmatprep.mubr.msk.bf16.mxu0 %vm1400_vm5, %v1970_v63 }
 0x5d7   : > { %6093 = vmatmul.mubr.msk.bf16.gmra.mrb[76].mxu0 %vm1400_vm5, %v1970_v63  ;;  %v2497_v63 = vpop.permute.xlu0 %2496 }
 0x5d8   : > { %6098 = vmatprep.subr.bf16.mxu1 %v2497_v63 }
 0x603   : > { %v6014_v21 = vpop.f32.mrb[16].mxu0 }
 0x604   : > { %v6015_v31 = vpop.f32.mrb[17].mxu0 }
 0x605   : > { %v8547_v49 = vadd.f32 %v6015_v31, %v6014_v21  ;;  %v6017_v41 = vpop.f32.mrb[18].mxu0  ;;  %v2481_v31 = vpop.permute.xlu1 %2480 }
 0x606   : > { %v6018_v11 = vpop.f32.mrb[19].mxu0  ;;  %6099 = vmatpush3.bf16.msra.mxu1 %v2481_v31 }
 0x607   : > { %10556 = vst [vmem:[#allocation21_spill] sm:$0xff] %v8547_v49  ;;  %v8549_v1 = vadd.f32 %v6018_v11, %v6017_v41 }
 0x609   : > { %10557 = vst [vmem:[#allocation23_spill] sm:$0xff] %v8549_v1 }
 0x60b   : > { %v6020_v42 = vpop.f32.mrb[20].mxu0 }
 0x60c   : > { %v6021_v27 = vpop.f32.mrb[21].mxu0 }
 0x60d   : > { %v8553_v19 = vadd.f32 %v6021_v27, %v6020_v42  ;;  %v6023_v22 = vpop.f32.mrb[22].mxu0  ;;  %v2499_v42 = vpop.permute.xlu0 %2498 }
 0x60e   : > { %v6024_v20 = vpop.f32.mrb[23].mxu0  ;;  %6100 = vmatprep.subr.bf16.mxu1 %v2499_v42 }
 0x60f   : > { %10558 = vst [vmem:[#allocation22_spill] sm:$0xff] %v8553_v19  ;;  %v8555_v33 = vadd.f32 %v6024_v20, %v6023_v22 }
 0x611   : > { %10559 = vst [vmem:[#allocation30_spill] sm:$0xff] %v8555_v33 }
 0x613   : > { %v6026_v23 = vpop.f32.mrb[24].mxu0 }
 0x614   : > { %v6027_v32 = vpop.f32.mrb[25].mxu0 }
 0x615   : > { %v8559_v44 = vadd.f32 %v6027_v32, %v6026_v23  ;;  %v6029_v24 = vpop.f32.mrb[26].mxu0  ;;  %v2483_v23 = vpop.permute.xlu1 %2482 }
 0x616   : > { %v6030_v9 = vpop.f32.mrb[27].mxu0  ;;  %6101 = vmatpush3.bf16.msra.mxu1 %v2483_v23 }
 0x617   : > { %10560 = vst [vmem:[#allocation25_spill] sm:$0xff] %v8559_v44  ;;  %v8561_v56 = vadd.f32 %v6030_v9, %v6029_v24  ;;  %v2501_v24 = vpop.permute.xlu0 %2500 }
 0x618   : > { %6102 = vmatprep.subr.bf16.mxu1 %v2501_v24 }
 0x619   : > { %10561 = vst [vmem:[#allocation33_spill] sm:$0xff] %v8561_v56 }
 0x61b   : > { %v6032_v61 = vpop.f32.mrb[28].mxu0 }
 0x61c   : > { %v6033_v50 = vpop.f32.mrb[29].mxu0 }
 0x61d   : > { %v8565_v34 = vadd.f32 %v6033_v50, %v6032_v61  ;;  %v6035_v39 = vpop.f32.mrb[30].mxu0  ;;  %v2485_v61 = vpop.permute.xlu1 %2484 }
 0x61e   : > { %v6036_v59 = vpop.f32.mrb[31].mxu0  ;;  %6103 = vmatpush3.bf16.msra.mxu1 %v2485_v61  ;;  %v2503_v50 = vpop.permute.xlu0 %2502 }
 0x61f   : > { %10562 = vst [vmem:[#allocation24_spill] sm:$0xff] %v8565_v34  ;;  %v8567_v40 = vadd.f32 %v6036_v59, %v6035_v39  ;;  %6104 = vmatprep.subr.bf16.mxu1 %v2503_v50 }
 0x621   : > { %10563 = vst [vmem:[#allocation27_spill] sm:$0xff] %v8567_v40  ;;  %v2487_v39 = vpop.permute.xlu1 %2486 }
 0x622   : > { %6105 = vmatpush3.bf16.msra.mxu1 %v2487_v39  ;;  %v2505_v59 = vpop.permute.xlu0 %2504 }
 0x623   : > { %v6038_v51 = vpop.f32.mrb[32].mxu0  ;;  %6106 = vmatprep.subr.bf16.mxu1 %v2505_v59 }
 0x624   : > { %v6039_v5 = vpop.f32.mrb[33].mxu0 }
 0x625   : > { %v8571_v12 = vadd.f32 %v6039_v5, %v6038_v51  ;;  %v6041_v53 = vpop.f32.mrb[34].mxu0  ;;  %v2489_v51 = vpop.permute.xlu1 %2488 }
 0x626   : > { %v6042_v37 = vpop.f32.mrb[35].mxu0  ;;  %6107 = vmatpush3.bf16.msra.mxu1 %v2489_v51  ;;  %v2507_v5 = vpop.permute.xlu0 %2506 }
 0x627   : > { %10564 = vst [vmem:[#allocation26_spill] sm:$0xff] %v8571_v12  ;;  %v8573_v55 = vadd.f32 %v6042_v37, %v6041_v53  ;;  %6108 = vmatprep.subr.bf16.mxu1 %v2507_v5 }
 0x629   : > { %10565 = vst [vmem:[#allocation31_spill] sm:$0xff] %v8573_v55  ;;  %v2491_v38 = vpop.permute.xlu1 %2490 }
 0x62a   : > { %6109 = vmatpush3.bf16.msra.mxu1 %v2491_v38  ;;  %v8700_v12 = vpop.permute.xlu0 %2898 }
 0x62b   : > { %v6044_v26 = vpop.f32.mrb[36].mxu0 }
 0x62c   : > { %v6045_v62 = vpop.f32.mrb[37].mxu0 }
 0x62d   : > { %v8577_v16 = vadd.f32 %v6045_v62, %v6044_v26  ;;  %v6047_v45 = vpop.f32.mrb[38].mxu0  ;;  %v2915_v53 = vpop.permute.xlu1 %2914 }
 0x62e   : > { %v6048_v43 = vpop.f32.mrb[39].mxu0  ;;  %6662 = vmatprep.subr.msk.bf16.mxu1 %vm1400_vm5, %v2915_v53  ;;  %v8702_v55 = vpop.permute.xlu0 %2900 }
 0x62f   : > { %10566 = vst [vmem:[#allocation29_spill] sm:$0xff] %v8577_v16  ;;  %v8579_v29 = vadd.f32 %v6048_v43, %v6047_v45  ;;  %10572 = vst [vmem:[#allocation37_spill] sm:$0xff] %v8702_v55 }
 0x631   : > { %10567 = vst [vmem:[#allocation35_spill] sm:$0xff] %v8579_v29  ;;  %v8704_v34 = vpop.permute.xlu1 %2916 }
 0x632   : > { %10573 = vst [vmem:[#allocation38_spill] sm:$0xff] %v8704_v34  ;;  %v8706_v40 = vpop.permute.xlu0 %2902 }
 0x633   : > { %v6050_v41 = vpop.f32.mrb[40].mxu0  ;;  %10574 = vst [vmem:[#allocation39_spill] sm:$0xff] %v8706_v40 }
 0x634   : > { %v6051_v11 = vpop.f32.mrb[41].mxu0 }
 0x635   : > { %v8583_v27 = vadd.f32 %v6051_v11, %v6050_v41  ;;  %v6053_v22 = vpop.f32.mrb[42].mxu0 }
 0x636   : > { %v6054_v20 = vpop.f32.mrb[43].mxu0 }
 0x637   : > { %10568 = vst [vmem:[#allocation28_spill] sm:$0xff] %v8583_v27  ;;  %v8585_v32 = vadd.f32 %v6054_v20, %v6053_v22 }
 0x639   : > { %10569 = vst [vmem:[#allocation32_spill] sm:$0xff] %v8585_v32 }
 0x66a   : > { %v6056_v37 = vpop.f32.mrb[44].mxu0 }
 0x66b   : > { %v6057_v35 = vpop.f32.mrb[45].mxu0 }
 0x66c   : > { %v8590_v8 = vadd.f32 %v6057_v35, %v6056_v37  ;;  %v6059_v26 = vpop.f32.mrb[46].mxu0 }
 0x66d   : > { %v6060_v62 = vpop.f32.mrb[47].mxu0 }
 0x66e   : > { %10570 = vst [vmem:[#allocation34_spill] sm:$0xff] %v8590_v8  ;;  %v8592_v45 = vadd.f32 %v6060_v62, %v6059_v26 }
 0x670   : > { %10571 = vst [vmem:[#allocation36_spill] sm:$0xff] %v8592_v45 }
 0x672   : > { %v8596_v18 = vpop.f32.mrb[48].mxu0 }
 0x673   : > { %v8598_v63 = vpop.f32.mrb[49].mxu0 }
 0x674   : > { %v8600_v31 = vpop.f32.mrb[50].mxu0  ;;  %v2204_v41 = vmax.f32 %v8596_v18, %v8598_v63 }
 0x675   : > { %v8604_v11 = vpop.f32.mrb[51].mxu0 }
 0x676   : > { %2205 = vmax.xlane.f32.xlu0 %v2204_v41  ;;  %v2207_v42 = vmax.f32 %v8600_v31, %v8604_v11 }
 0x678   : > { %2208 = vmax.xlane.f32.xlu1 %v2207_v42 }
 0x67a   : > { %v8608_v22 = vpop.f32.mrb[52].mxu0 }
 0x67b   : > { %v8610_v20 = vpop.f32.mrb[53].mxu0 }
 0x67c   : > { %v8612_v23 = vpop.f32.mrb[54].mxu0  ;;  %v2210_v24 = vmax.f32 %v8608_v22, %v8610_v20 }
 0x67d   : > { %v8616_v61 = vpop.f32.mrb[55].mxu0 }
 0x67e   : > { %2211 = vmax.xlane.f32.xlu0 %v2210_v24  ;;  %v2213_v50 = vmax.f32 %v8612_v23, %v8616_v61 }
 0x682   : > { %2214 = vmax.xlane.f32.xlu0 %v2213_v50  ;;  %v8620_v39 = vpop.f32.mrb[56].mxu0 }
 0x683   : > { %v8622_v59 = vpop.f32.mrb[57].mxu0 }
 0x684   : > { %v8624_v51 = vpop.f32.mrb[58].mxu0  ;;  %v2216_v5 = vmax.f32 %v8620_v39, %v8622_v59 }
 0x685   : > { %v8628_v38 = vpop.f32.mrb[59].mxu0 }
 0x686   : > { %2217 = vmax.xlane.f32.xlu0 %v2216_v5  ;;  %v2219_v53 = vmax.f32 %v8624_v51, %v8628_v38 }
 0x688   : > { %2220 = vmax.xlane.f32.xlu1 %v2219_v53 }
 0x68a   : > { %v8632_v37 = vpop.f32.mrb[60].mxu0 }
 0x68b   : > { %v8634_v35 = vpop.f32.mrb[61].mxu0 }
 0x68c   : > { %v8636_v26 = vpop.f32.mrb[62].mxu0  ;;  %v2222_v62 = vmax.f32 %v8632_v37, %v8634_v35 }
 0x68d   : > { %v8640_v41 = vpop.f32.mrb[63].mxu0 }
 0x68e   : > { %2223 = vmax.xlane.f32.xlu0 %v2222_v62  ;;  %v2225_v42 = vmax.f32 %v8636_v26, %v8640_v41 }
 0x690   : > { %2226 = vmax.xlane.f32.xlu1 %v2225_v42 }
 0x692   : > { %v8644_v24 = vpop.f32.mrb[64].mxu0 }
 0x693   : > { %v8646_v50 = vpop.f32.mrb[65].mxu0 }
 0x694   : > { %v8648_v5 = vpop.f32.mrb[66].mxu0  ;;  %v2228_v53 = vmax.f32 %v8644_v24, %v8646_v50 }
 0x695   : > { %v8652_v43 = vpop.f32.mrb[67].mxu0 }
 0x696   : > { %2229 = vmax.xlane.f32.xlu0 %v2228_v53  ;;  %v2231_v9 = vmax.f32 %v8648_v5, %v8652_v43 }
 0x698   : > { %2232 = vmax.xlane.f32.xlu1 %v2231_v9 }
 0x69a   : > { %v8656_v62 = vpop.f32.mrb[68].mxu0 }
 0x69b   : > { %v8658_v21 = vpop.f32.mrb[69].mxu0 }
 0x69c   : > { %v8660_v42 = vpop.f32.mrb[70].mxu0  ;;  %v2234_v30 = vmax.f32 %v8656_v62, %v8658_v21 }
 0x69d   : > { %v8664_v28 = vpop.f32.mrb[71].mxu0 }
 0x69e   : > { %2235 = vmax.xlane.f32.xlu0 %v2234_v30  ;;  %v2237_v36 = vmax.f32 %v8660_v42, %v8664_v28 }
 0x6a0   : > { %2238 = vmax.xlane.f32.xlu1 %v2237_v36 }
 0x6a2   : > { %v8668_v53 = vpop.f32.mrb[72].mxu0 }
 0x6a3   : > { %v8670_v60 = vpop.f32.mrb[73].mxu0 }
 0x6a4   : > { %v8672_v9 = vpop.f32.mrb[74].mxu0  ;;  %v2240_v10 = vmax.f32 %v8668_v53, %v8670_v60 }
 0x6a5   : > { %v8676_v8 = vpop.f32.mrb[75].mxu0 }
 0x6a6   : > { %2241 = vmax.xlane.f32.xlu0 %v2240_v10  ;;  %v2243_v45 = vmax.f32 %v8672_v9, %v8676_v8  ;;  %v8692_v10 = vld [vmem:[#allocation3 + $0x68] sm:$0xff] }
 0x6a8   : > { %2244 = vmax.xlane.f32.xlu1 %v2243_v45  ;;  %v8696_v45 = vld [vmem:[#allocation3 + $0x28] sm:$0xff] }
 0x6aa   : > { %v8680_v30 = vpop.f32.mrb[76].mxu0 }
 0x6ab   : > { %v8682_v27 = vpop.f32.mrb[77].mxu0 }
 0x6ac   : > { %v8684_v36 = vpop.f32.mrb[78].mxu0  ;;  %v2246_v32 = vmax.f32 %v8680_v30, %v8682_v27 }
 0x6ad   : > { %v8688_v16 = vpop.f32.mrb[79].mxu0 }
 0x6ae   : > { %v2249_v29 = vmax.f32 %v8684_v36, %v8688_v16  ;;  %2247 = vmax.xlane.f32.xlu0 %v2246_v32  ;;  %v8708_v32 = vpop.permute.xlu1 %2918 }
 0x6af   : > { %10575 = vst [vmem:[#allocation40_spill] sm:$0xff] %v8708_v32 }
 0x6b0   : > { %2250 = vmax.xlane.f32.xlu1 %v2249_v29  ;;  %v8710_v29 = vpop.permute.xlu0 %2904 }
 0x6b1   : > { %10576 = vst [vmem:[#allocation41_spill] sm:$0xff] %v8710_v29 }
 0x6b2   : > { %v8712_v44 = vpop.permute.xlu1 %2920 }
 0x6b3   : > { %10577 = vst [vmem:[#allocation42_spill] sm:$0xff] %v8712_v44 }
 0x6b4   : > { %v8714_v56 = vpop.permute.xlu0 %2906 }
 0x6b5   : > { %10578 = vst [vmem:[#allocation43_spill] sm:$0xff] %v8714_v56 }
 0x6b6   : > { %v8716_v19 = vpop.permute.xlu1 %2922 }
 0x6b7   : > { %10579 = vst [vmem:[#allocation44_spill] sm:$0xff] %v8716_v19 }
 0x6c1   : > { %2924 = vrot.lane.b32.xlu1 %v8692_v10, %s7423_s19 }
 0x6c4   : > { %2908 = vrot.lane.b32.xlu0 %v8696_v45, %s7423_s19 }
 0x703   : > { %v2206_v33 = vpop.xlane.xlu0 %2205 }
 0x704   : > { %v2252_v49 = vsub.f32 %v8596_v18, %v2206_v33  ;;  %v2253_v1 = vsub.f32 %v8598_v63, %v2206_v33 }
 0x705   : > { %v2209_v55 = vpop.xlane.xlu1 %2208 }
 0x706   : > { %v2284_v14 = vmul.f32 1.442695, %v2252_v49  ;;  %v2286_v34 = vmul.f32 1.442695, %v2253_v1  ;;  %v2254_v40 = vsub.f32 %v8600_v31, %v2209_v55  ;;  %v2255_v32 = vsub.f32 %v8604_v11, %v2209_v55 }
 0x708   : > { %6857 = vpow2.f32 %v2284_v14  ;;  %v2288_v29 = vmul.f32 1.442695, %v2254_v40  ;;  %v2290_v13 = vmul.f32 1.442695, %v2255_v32 }
 0x709   : > { %6859 = vpow2.f32 %v2286_v34 }
 0x70a   : > { %6861 = vpow2.f32 %v2288_v29 }
 0x70b   : > { %6863 = vpow2.f32 %v2290_v13  ;;  %v2212_v56 = vpop.xlane.xlu0 %2211 }
 0x70c   : > { %v2256_v19 = vsub.f32 %v8608_v22, %v2212_v56  ;;  %v2257_v18 = vsub.f32 %v8610_v20, %v2212_v56 }
 0x70e   : > { %v2292_v44 = vmul.f32 1.442695, %v2256_v19  ;;  %v2294_v33 = vmul.f32 1.442695, %v2257_v18 }
 0x70f   : > { %v2215_v63 = vpop.xlane.xlu0 %2214 }
 0x710   : > { %6865 = vpow2.f32 %v2292_v44  ;;  %v2258_v49 = vsub.f32 %v8612_v23, %v2215_v63  ;;  %v2259_v1 = vsub.f32 %v8616_v61, %v2215_v63 }
 0x711   : > { %6867 = vpow2.f32 %v2294_v33 }
 0x712   : > { %v8726_v14 = vpop.eup %6857  ;;  %v2296_v40 = vmul.f32 1.442695, %v2258_v49  ;;  %v2298_v34 = vmul.f32 1.442695, %v2259_v1 }
 0x713   : > { %v8728_v55 = vpop.eup %6859  ;;  %v2218_v13 = vpop.xlane.xlu0 %2217 }
 0x714   : > { %v8730_v31 = vpop.eup %6861  ;;  %6869 = vpow2.f32 %v2296_v40  ;;  %v2260_v19 = vsub.f32 %v8620_v39, %v2218_v13  ;;  %v2261_v56 = vsub.f32 %v8622_v59, %v2218_v13  ;;  %v2348_v44 = vadd.f32 %v8728_v55, %v8726_v14 }
 0x715   : > { %v8736_v11 = vpop.eup %6863  ;;  %6871 = vpow2.f32 %v2298_v34  ;;  %v2221_v22 = vpop.xlane.xlu1 %2220 }
 0x716   : > { %v2300_v20 = vmul.f32 1.442695, %v2260_v19  ;;  %v2302_v23 = vmul.f32 1.442695, %v2261_v56  ;;  %2349 = vadd.xlane.f32.xlu0 %v2348_v44  ;;  %v2262_v61 = vsub.f32 %v8624_v51, %v2221_v22  ;;  %v2263_v32 = vsub.f32 %v8628_v38, %v2221_v22 }
 0x717   : > { %v2351_v29 = vadd.f32 %v8736_v11, %v8730_v31 }
 0x718   : > { %6873 = vpow2.f32 %v2300_v20  ;;  %v2304_v39 = vmul.f32 1.442695, %v2262_v61  ;;  %v2306_v59 = vmul.f32 1.442695, %v2263_v32 }
 0x719   : > { %6875 = vpow2.f32 %v2302_v23  ;;  %2352 = vadd.xlane.f32.xlu1 %v2351_v29 }
 0x71a   : > { %v8742_v18 = vpop.eup %6865  ;;  %6877 = vpow2.f32 %v2304_v39 }
 0x71b   : > { %v8744_v33 = vpop.eup %6867  ;;  %6879 = vpow2.f32 %v2306_v59  ;;  %v2224_v63 = vpop.xlane.xlu0 %2223 }
 0x71c   : > { %v2264_v49 = vsub.f32 %v8632_v37, %v2224_v63  ;;  %v2265_v51 = vsub.f32 %v8634_v35, %v2224_v63  ;;  %v2354_v38 = vadd.f32 %v8744_v33, %v8742_v18 }
 0x71d   : > { %v2227_v1 = vpop.xlane.xlu1 %2226 }
 0x71e   : > { %v8750_v40 = vpop.eup %6869  ;;  %v2308_v34 = vmul.f32 1.442695, %v2264_v49  ;;  %v2310_v13 = vmul.f32 1.442695, %v2265_v51  ;;  %2355 = vadd.xlane.f32.xlu0 %v2354_v38  ;;  %v2266_v19 = vsub.f32 %v8636_v26, %v2227_v1  ;;  %v2267_v56 = vsub.f32 %v8640_v41, %v2227_v1 }
 0x71f   : > { %v8754_v44 = vpop.eup %6871 }
 0x720   : > { %6881 = vpow2.f32 %v2308_v34  ;;  %v2312_v22 = vmul.f32 1.442695, %v2266_v19  ;;  %v2314_v37 = vmul.f32 1.442695, %v2267_v56  ;;  %v2357_v35 = vadd.f32 %v8754_v44, %v8750_v40 }
 0x721   : > { %6883 = vpow2.f32 %v2310_v13 }
 0x722   : > { %v8758_v20 = vpop.eup %6873  ;;  %6885 = vpow2.f32 %v2312_v22  ;;  %2358 = vadd.xlane.f32.xlu1 %v2357_v35 }
 0x723   : > { %v8760_v23 = vpop.eup %6875  ;;  %6887 = vpow2.f32 %v2314_v37  ;;  %v2230_v61 = vpop.xlane.xlu0 %2229 }
 0x724   : > { %v8762_v26 = vpop.eup %6877  ;;  %v2268_v41 = vsub.f32 %v8644_v24, %v2230_v61  ;;  %v2269_v32 = vsub.f32 %v8646_v50, %v2230_v61  ;;  %v2360_v29 = vadd.f32 %v8760_v23, %v8758_v20 }
 0x725   : > { %v8768_v39 = vpop.eup %6879  ;;  %v2233_v59 = vpop.xlane.xlu1 %2232 }
 0x726   : > { %v2316_v63 = vmul.f32 1.442695, %v2268_v41  ;;  %v2318_v49 = vmul.f32 1.442695, %v2269_v32  ;;  %2361 = vadd.xlane.f32.xlu0 %v2360_v29  ;;  %v2270_v51 = vsub.f32 %v8648_v5, %v2233_v59  ;;  %v2271_v38 = vsub.f32 %v8652_v43, %v2233_v59 }
 0x727   : > { %v2363_v1 = vadd.f32 %v8768_v39, %v8762_v26 }
 0x728   : > { %6889 = vpow2.f32 %v2316_v63  ;;  %v2320_v24 = vmul.f32 1.442695, %v2270_v51  ;;  %v2322_v34 = vmul.f32 1.442695, %v2271_v38 }
 0x729   : > { %6891 = vpow2.f32 %v2318_v49  ;;  %2364 = vadd.xlane.f32.xlu1 %v2363_v1 }
 0x72a   : > { %v8774_v50 = vpop.eup %6881  ;;  %6893 = vpow2.f32 %v2320_v24 }
 0x72b   : > { %v8776_v13 = vpop.eup %6883  ;;  %6895 = vpow2.f32 %v2322_v34  ;;  %v2236_v19 = vpop.xlane.xlu0 %2235 }
 0x72c   : > { %v8778_v56 = vpop.eup %6885  ;;  %v2272_v5 = vsub.f32 %v8656_v62, %v2236_v19  ;;  %v2273_v43 = vsub.f32 %v8658_v21, %v2236_v19  ;;  %v2366_v22 = vadd.f32 %v8776_v13, %v8774_v50 }
 0x72d   : > { %v8784_v37 = vpop.eup %6887  ;;  %v2239_v35 = vpop.xlane.xlu1 %2238 }
 0x72e   : > { %v2324_v61 = vmul.f32 1.442695, %v2272_v5  ;;  %v2326_v41 = vmul.f32 1.442695, %v2273_v43  ;;  %2367 = vadd.xlane.f32.xlu0 %v2366_v22  ;;  %v2274_v32 = vsub.f32 %v8660_v42, %v2239_v35  ;;  %v2275_v29 = vsub.f32 %v8664_v28, %v2239_v35 }
 0x72f   : > { %v2369_v59 = vadd.f32 %v8784_v37, %v8778_v56 }
 0x730   : > { %6897 = vpow2.f32 %v2324_v61  ;;  %v2328_v62 = vmul.f32 1.442695, %v2274_v32  ;;  %v2330_v63 = vmul.f32 1.442695, %v2275_v29 }
 0x731   : > { %6899 = vpow2.f32 %v2326_v41  ;;  %2370 = vadd.xlane.f32.xlu1 %v2369_v59  ;;  %v8822_v59 = vld [vmem:[#allocation3 + $0x70] sm:$0xff] }
 0x732   : > { %v8790_v21 = vpop.eup %6889  ;;  %6901 = vpow2.f32 %v2328_v62 }
 0x733   : > { %v8792_v49 = vpop.eup %6891  ;;  %6903 = vpow2.f32 %v2330_v63  ;;  %v2242_v51 = vpop.xlane.xlu0 %2241  ;;  %v8826_v63 = vld [vmem:[#allocation3 + $0x30] sm:$0xff] }
 0x734   : > { %v8794_v38 = vpop.eup %6893  ;;  %v2276_v42 = vsub.f32 %v8668_v53, %v2242_v51  ;;  %v2277_v28 = vsub.f32 %v8670_v60, %v2242_v51  ;;  %v2372_v1 = vadd.f32 %v8792_v49, %v8790_v21 }
 0x735   : > { %v8800_v24 = vpop.eup %6895  ;;  %v2245_v62 = vpop.xlane.xlu1 %2244 }
 0x736   : > { %v2332_v34 = vmul.f32 1.442695, %v2276_v42  ;;  %v2334_v19 = vmul.f32 1.442695, %v2277_v28  ;;  %2373 = vadd.xlane.f32.xlu0 %v2372_v1  ;;  %v2375_v5 = vadd.f32 %v8800_v24, %v8794_v38  ;;  %v2278_v51 = vsub.f32 %v8672_v9, %v2245_v62 }
 0x737   : > { %v2279_v28 = vsub.f32 %v8676_v8, %v2245_v62 }
 0x738   : > { %6905 = vpow2.f32 %v2332_v34  ;;  %2376 = vadd.xlane.f32.xlu1 %v2375_v5 }
 0x739   : > { %6907 = vpow2.f32 %v2334_v19  ;;  %v2336_v19 = vmul.f32 1.442695, %v2278_v51 }
 0x73a   : > { %v8804_v43 = vpop.eup %6897 }
 0x73b   : > { %10580 = vst [vmem:[#allocation45_spill] sm:$0xff] %v8804_v43  ;;  %v8806_v22 = vpop.eup %6899  ;;  %v2248_v42 = vpop.xlane.xlu0 %2247  ;;  %6909 = vpow2.f32 %v2336_v19 }
 0x73c   : > { %v8808_v53 = vpop.eup %6901  ;;  %v2378_v60 = vadd.f32 %v8806_v22, %v8804_v43  ;;  %v2280_v34 = vsub.f32 %v8680_v30, %v2248_v42 }
 0x73d   : > { %v8812_v35 = vpop.eup %6903  ;;  %v2251_v1 = vpop.xlane.xlu1 %2250 }
 0x73e   : > { %2379 = vadd.xlane.f32.xlu0 %v2378_v60  ;;  %v2381_v61 = vadd.f32 %v8812_v35, %v8808_v53  ;;  %v2282_v5 = vsub.f32 %v8684_v36, %v2251_v1  ;;  %v2338_v60 = vmul.f32 1.442695, %v2279_v28 }
 0x740   : > { %2382 = vadd.xlane.f32.xlu1 %v2381_v61  ;;  %v2283_v61 = vsub.f32 %v8688_v16, %v2251_v1  ;;  %6911 = vpow2.f32 %v2338_v60 }
 0x741   : > { %v8879_v28 = vpop.permute.xlu1 %2924 }
 0x742   : > { %v8816_v41 = vpop.eup %6905  ;;  %v2346_v43 = vmul.f32 1.442695, %v2283_v61 }
 0x743   : > { %10581 = vst [vmem:[#allocation46_spill] sm:$0xff] %v8816_v41  ;;  %v8818_v32 = vpop.eup %6907 }
 0x744   : > { %10582 = vst [vmem:[#allocation47_spill] sm:$0xff] %v8818_v32  ;;  %v2384_v29 = vadd.f32 %v8818_v32, %v8816_v41  ;;  %v2340_v41 = vmul.f32 1.442695, %v2280_v34  ;;  %v2344_v32 = vmul.f32 1.442695, %v2282_v5 }
 0x745   : > { %v8836_v8 = vpop.eup %6909 }
 0x746   : > { %2385 = vadd.xlane.f32.xlu0 %v2384_v29  ;;  %v2281_v29 = vsub.f32 %v8682_v27, %v2248_v42  ;;  %6913 = vpow2.f32 %v2340_v41  ;;  %v8857_v42 = vld [vmem:[#allocation3 + $0x38] sm:$0xff] }
 0x747   : > { %6915 = vpow2.f32 %v2344_v32  ;;  %v7287_v32 = vld [vmem:[#allocation3 + $0x78] sm:$0xff] }
 0x748   : > { %v2342_v9 = vmul.f32 1.442695, %v2281_v29  ;;  %6917 = vpow2.f32 %v2346_v43 }
 0x74a   : > { %6919 = vpow2.f32 %v2342_v9  ;;  %v8838_v30 = vpop.eup %6911 }
 0x74b   : > { %v2387_v16 = vadd.f32 %v8838_v30, %v8836_v8 }
 0x750   : > { %v8840_v36 = vpop.eup %6913 }
 0x751   : > { %2926 = vrot.lane.b32.xlu1 %v8822_v59, %s7423_s19  ;;  %v8842_v62 = vpop.eup %6915 }
 0x752   : > { %v8846_v27 = vpop.eup %6917 }
 0x753   : > { %v2393_v43 = vadd.f32 %v8846_v27, %v8842_v62 }
 0x754   : > { %v8848_v51 = vpop.eup %6919 }
 0x755   : > { %v2390_v41 = vadd.f32 %v8848_v51, %v8840_v36 }
 0x75c   : > { %2910 = vrot.lane.b32.xlu0 %v8826_v63, %s7423_s19 }
 0x775   : > { %2388 = vadd.xlane.f32.xlu1 %v2387_v16 }
 0x779   : > { %2394 = vadd.xlane.f32.xlu1 %v2393_v43 }
 0x77b   : > { %2391 = vadd.xlane.f32.xlu0 %v2390_v41 }
 0x78a   : > { %2928 = vrot.lane.b32.xlu1 %v7287_v32, %s7423_s19 }
 0x78e   : > { %3681 = vrot.lane.b32.xlu1 %v8504_v46, %s7424_s21  ;;  %v8873_v46 = vpop.permute.xlu0 %2908 }
 0x791   : > { %2912 = vrot.lane.b32.xlu0 %v8857_v42, %s7423_s19 }
 0x792   : > { %2884 = vrot.lane.b32.xlu1 %v8026_v47, %s7423_s19 }
 0x795   : > { %2882 = vrot.lane.b32.xlu0 %v8028_v48, %s7423_s19 }
 0x796   : > { %3699 = vrot.lane.b32.xlu1 %v8508_v17, %s7424_s21 }
 0x799   : > { %3697 = vrot.lane.b32.xlu0 %v8500_v6, %s7424_s21 }
 0x79a   : > { %3685 = vrot.lane.b32.xlu1 %v8522_v54, %s7424_s21 }
 0x79d   : > { %3683 = vrot.lane.b32.xlu0 %v8512_v0, %s7424_s21 }
 0x79e   : > { %2888 = vrot.lane.b32.xlu1 %v8036_v57, %s7423_s19 }
 0x7a1   : > { %2886 = vrot.lane.b32.xlu0 %v8038_v58, %s7423_s19 }
 0x7a2   : > { %3703 = vrot.lane.b32.xlu1 %v8526_v15, %s7424_s21 }
 0x7a3   : > { %v2350_v6 = vpop.xlane.xlu0 %2349 }
 0x7a4   : > { %6921 = vrcp.f32 %v2350_v6 }
 0x7a5   : > { %3701 = vrot.lane.b32.xlu0 %v8518_v2, %s7424_s21 }
 0x7a6   : > { %v2353_v17 = vpop.xlane.xlu1 %2352  ;;  %3689 = vrot.lane.b32.xlu1 %v8540_v7, %s7424_s21 }
 0x7a7   : > { %6923 = vrcp.f32 %v2353_v17  ;;  %v10586_v17 = vld [vmem:[#allocation37_spill] sm:$0xff] }
 0x7a9   : > { %3687 = vrot.lane.b32.xlu0 %v8530_v25, %s7424_s21 }
 0x7aa   : > { %2892 = vrot.lane.b32.xlu1 %v8044_v3, %s7423_s19 }
 0x7ab   : > { %v2356_v0 = vpop.xlane.xlu0 %2355 }
 0x7ac   : > { %6925 = vrcp.f32 %v2356_v0 }
 0x7ad   : > { %2890 = vrot.lane.b32.xlu0 %v8046_v4, %s7423_s19 }
 0x7ae   : > { %v6922_v54 = vpop.eup %6921  ;;  %3707 = vrot.lane.b32.xlu1 %v8692_v10, %s7424_s21 }
 0x7af   : > { %v2359_v2 = vpop.xlane.xlu1 %2358  ;;  %v2412_v25 = vmul.f32 %v6922_v54, %v8726_v14  ;;  %v2413_v1 = vmul.f32 %v6922_v54, %v8728_v55  ;;  %v2955_v14 = vsel %vm1400_vm5, %v8700_v12, 0  ;;  %v10583_v55 = vld [vmem:[#allocation19_spill] sm:$0xff] }
 0x7b0   : > { %6927 = vrcp.f32 %v2359_v2 }
 0x7b1   : > { %v6924_v15 = vpop.eup %6923  ;;  %3705 = vrot.lane.b32.xlu0 %v8536_v52, %s7424_s21 }
 0x7b2   : > { %v2414_v7 = vmul.f32 %v6924_v15, %v8730_v31  ;;  %v2415_v34 = vmul.f32 %v6924_v15, %v8736_v11  ;;  %3693 = vrot.lane.b32.xlu1 %v8826_v63, %s7424_s21  ;;  %v10584_v11 = vld [vmem:[#allocation38_spill] sm:$0xff]  ;;  %v10585_v63 = vld [vmem:[#allocation20_spill] sm:$0xff]  ;;  %v10588_v15 = vld [vmem:[#allocation39_spill] sm:$0xff] }
 0x7b3   : > { %v2362_v19 = vpop.xlane.xlu0 %2361 }
 0x7b4   : > { %v2445_v5 = vpack.c.bf16 %v2415_v34, %v2413_v1  ;;  %v2444_v10 = vpack.c.bf16 %v2414_v7, %v2412_v25  ;;  %6929 = vrcp.f32 %v2362_v19  ;;  %v10590_v19 = vld [vmem:[#allocation41_spill] sm:$0xff] }
 0x7b5   : > { %3691 = vrot.lane.b32.xlu0 %v8696_v45, %s7424_s21 }
 0x7b6   : > { %2556 = vmatprep.mubr.bf16.mxu1 %v2445_v5  ;;  %v2365_v52 = vpop.xlane.xlu1 %2364  ;;  %2896 = vrot.lane.b32.xlu1 %v10583_v55, %s7423_s19  ;;  %v6926_v31 = vpop.eup %6925  ;;  %v8954_v5 = vld [vmem:[#allocation4] sm:$0xff] }
 0x7b7   : > { %6931 = vrcp.f32 %v2365_v52  ;;  %2557 = vmatmul.mubr.bf16.vlgmr.msra.gmra.mrb[32].mxu1 %v2444_v10  ;;  %v2417_v61 = vmul.f32 %v6926_v31, %v8744_v33  ;;  %v2416_v29 = vmul.f32 %v6926_v31, %v8742_v18  ;;  %v10587_v33 = vld [vmem:[#allocation40_spill] sm:$0xff] }
 0x7b8   : > { %6177 = vmatpush3.bf16.xpose.msra.mxu1 %v2955_v14  ;;  %v10591_v10 = vld [vmem:[#allocation44_spill] sm:$0xff] }
 0x7b9   : > { %6663 = vmatprep.subr.msk.bf16.mxu1 %vm1400_vm5, %v10584_v11  ;;  %2894 = vrot.lane.b32.xlu0 %v10585_v63, %s7423_s19  ;;  %v7290_v14 = vld [vmem:[#allocation4 + $0x8] sm:$0xff]  ;;  %v7291_v11 = vld [vmem:[#allocation4 + $0x40] sm:$0xff] }
 0x7ba   : > { %v6928_v60 = vpop.eup %6927  ;;  %3711 = vrot.lane.b32.xlu1 %v7287_v32, %s7424_s21  ;;  %v2958_v32 = vsel %vm1400_vm5, %v10586_v17, 0  ;;  %v7295_v17 = vld [vmem:[#allocation4 + $0x58] sm:$0xff] }
 0x7bb   : > { %v2368_v45 = vpop.xlane.xlu0 %2367  ;;  %v2419_v12 = vmul.f32 %v6928_v60, %v8754_v44  ;;  %v2418_v9 = vmul.f32 %v6928_v60, %v8750_v40 }
 0x7bc   : > { %6933 = vrcp.f32 %v2368_v45  ;;  %v10592_v45 = vld [vmem:[#allocation43_spill] sm:$0xff] }
 0x7bd   : > { %3709 = vrot.lane.b32.xlu0 %v8822_v59, %s7424_s21  ;;  %v2447_v16 = vpack.c.bf16 %v2419_v12, %v2417_v61  ;;  %v2446_v43 = vpack.c.bf16 %v2418_v9, %v2416_v29  ;;  %v7293_v12 = vld [vmem:[#allocation4 + $0x48] sm:$0xff]  ;;  %v7294_v9 = vld [vmem:[#allocation4 + $0x10] sm:$0xff] }
 0x7be   : > { %v2371_v41 = vpop.xlane.xlu1 %2370  ;;  %v6930_v6 = vpop.eup %6929  ;;  %3667 = vrot.lane.b32.xlu1 %v8026_v47, %s7424_s21 }
 0x7bf   : > { %6935 = vrcp.f32 %v2371_v41  ;;  %2564 = vmatprep.mubr.bf16.mxu1 %v2447_v16  ;;  %v2421_v40 = vmul.f32 %v6930_v6, %v8760_v23  ;;  %v2420_v54 = vmul.f32 %v6930_v6, %v8758_v20  ;;  %v2961_v23 = vsel %vm1400_vm5, %v10588_v15, 0 }
 0x7c0   : > { %6179 = vmatpush3.bf16.xpose.msra.mxu1 %v2958_v32 }
 0x7c1   : > { %v6932_v18 = vpop.eup %6931  ;;  %6664 = vmatprep.subr.msk.bf16.mxu1 %vm1400_vm5, %v10587_v33  ;;  %2565 = vmatmul.mubr.bf16.gmra.mrb[36].mxu1 %v2446_v43  ;;  %v10593_v43 = vld [vmem:[#allocation45_spill] sm:$0xff] }
 0x7c2   : > { %3695 = vrot.lane.b32.xlu0 %v8857_v42, %s7424_s21  ;;  %v2423_v44 = vmul.f32 %v6932_v18, %v8768_v39  ;;  %3671 = vrot.lane.b32.xlu1 %v8036_v57, %s7424_s21  ;;  %v2422_v47 = vmul.f32 %v6932_v18, %v8762_v26  ;;  %v10589_v39 = vld [vmem:[#allocation42_spill] sm:$0xff] }
 0x7c3   : > { %v2374_v59 = vpop.xlane.xlu0 %2373  ;;  %v7298_v18 = vld [vmem:[#allocation4 + $0x20] sm:$0xff] }
 0x7c4   : > { %v2449_v0 = vpack.c.bf16 %v2423_v44, %v2421_v40  ;;  %6937 = vrcp.f32 %v2374_v59  ;;  %v2448_v57 = vpack.c.bf16 %v2422_v47, %v2420_v54  ;;  %v7299_v40 = vld [vmem:[#allocation4 + $0x68] sm:$0xff]  ;;  %v7301_v59 = vld [vmem:[#allocation4 + $0x70] sm:$0xff]  ;;  %v7304_v54 = vld [vmem:[#allocation4 + $0x38] sm:$0xff] }
 0x7c5   : > { %v2377_v2 = vpop.xlane.xlu1 %2376  ;;  %v7300_v44 = vld [vmem:[#allocation4 + $0x28] sm:$0xff]  ;;  %v8990_v47 = vld [vmem:[#allocation4 + $0x30] sm:$0xff] }
 0x7c6   : > { %3665 = vrot.lane.b32.xlu0 %v8028_v48, %s7424_s21  ;;  %2572 = vmatprep.mubr.bf16.mxu1 %v2449_v0  ;;  %v6934_v42 = vpop.eup %6933  ;;  %6939 = vrcp.f32 %v2377_v2  ;;  %v7303_v0 = vld [vmem:[#allocation4 + $0x78] sm:$0xff] }
 0x7c7   : > { %3675 = vrot.lane.b32.xlu1 %v8044_v3, %s7424_s21  ;;  %v2425_v48 = vmul.f32 %v6934_v42, %v8776_v13  ;;  %v2424_v1 = vmul.f32 %v6934_v42, %v8774_v50  ;;  %v2964_v13 = vsel %vm1400_vm5, %v10590_v19, 0 }
 0x7c8   : > { %6181 = vmatpush3.bf16.xpose.msra.mxu1 %v2961_v23 }
 0x7c9   : > { %v6936_v26 = vpop.eup %6935  ;;  %6665 = vmatprep.subr.msk.bf16.mxu1 %vm1400_vm5, %v10589_v39  ;;  %2573 = vmatmul.mubr.bf16.gmra.mrb[40].mxu1 %v2448_v57 }
 0x7ca   : > { %3669 = vrot.lane.b32.xlu0 %v8038_v58, %s7424_s21  ;;  %v2427_v20 = vmul.f32 %v6936_v26, %v8784_v37  ;;  %v2426_v3 = vmul.f32 %v6936_v26, %v8778_v56 }
 0x7cb   : > { %3679 = vrot.lane.b32.xlu1 %v10583_v55, %s7424_s21  ;;  %v2380_v25 = vpop.xlane.xlu0 %2379 }
 0x7cc   : > { %v2451_v7 = vpack.c.bf16 %v2427_v20, %v2425_v48  ;;  %6941 = vrcp.f32 %v2380_v25  ;;  %v2450_v37 = vpack.c.bf16 %v2426_v3, %v2424_v1  ;;  %v10594_v20 = vld [vmem:[#allocation47_spill] sm:$0xff] }
 0x7cd   : > { %v2383_v34 = vpop.xlane.xlu1 %2382 }
 0x7ce   : > { %3673 = vrot.lane.b32.xlu0 %v8046_v4, %s7424_s21  ;;  %2580 = vmatprep.mubr.bf16.mxu1 %v2451_v7  ;;  %v6938_v58 = vpop.eup %6937  ;;  %6943 = vrcp.f32 %v2383_v34  ;;  %v10595_v7 = vld [vmem:[#allocation46_spill] sm:$0xff] }
 0x7cf   : > { %3371 = vrot.lane.b32.xlu1 %v8954_v5, %s7423_s19  ;;  %v2429_v4 = vmul.f32 %v6938_v58, %v8792_v49  ;;  %v2428_v31 = vmul.f32 %v6938_v58, %v8790_v21  ;;  %v7292_v49 = vld [vmem:[#allocation4 + $0x50] sm:$0xff] }
 0x7d0   : > { %6183 = vmatpush3.bf16.xpose.msra.mxu1 %v2964_v13  ;;  %v6940_v56 = vpop.eup %6939 }
 0x7d1   : > { %6666 = vmatprep.subr.msk.bf16.mxu1 %vm1400_vm5, %v10591_v10  ;;  %2581 = vmatmul.mubr.bf16.gmra.mrb[44].mxu1 %v2450_v37  ;;  %v2431_v50 = vmul.f32 %v6940_v56, %v8800_v24  ;;  %v2430_v52 = vmul.f32 %v6940_v56, %v8794_v38  ;;  %v2927_v32 = vpop.permute.xlu1 %2926 }
 0x7d2   : > { %3677 = vrot.lane.b32.xlu0 %v10585_v63, %s7424_s21  ;;  %v2967_v63 = vsel %vm1400_vm5, %v10592_v45, 0 }
 0x7d3   : > { %3373 = vrot.lane.b32.xlu1 %v7290_v14, %s7423_s19  ;;  %v2453_v55 = vpack.c.bf16 %v2431_v50, %v2429_v4  ;;  %v2452_v61 = vpack.c.bf16 %v2430_v52, %v2428_v31  ;;  %v2386_v6 = vpop.xlane.xlu0 %2385 }
 0x7d4   : > { %6945 = vrcp.f32 %v2386_v6 }
 0x7d5   : > { %2588 = vmatprep.mubr.bf16.mxu1 %v2453_v55 }
 0x7d6   : > { %3387 = vrot.lane.b32.xlu0 %v7291_v11, %s7423_s19  ;;  %v6942_v60 = vpop.eup %6941 }
 0x7d7   : > { %3391 = vrot.lane.b32.xlu1 %v7292_v49, %s7423_s19  ;;  %v2433_v21 = vmul.f32 %v6942_v60, %v8806_v22  ;;  %v2432_v41 = vmul.f32 %v6942_v60, %v10593_v43  ;;  %v2970_v22 = vsel %vm1400_vm5, %v8873_v46, 0  ;;  %v2911_v33 = vpop.permute.xlu0 %2910 }
 0x7d8   : > { %6185 = vmatpush3.bf16.xpose.msra.mxu1 %v2967_v63  ;;  %v6944_v38 = vpop.eup %6943  ;;  %v2973_v46 = vsel %vm1400_vm5, %v2911_v33, 0 }
 0x7d9   : > { %6667 = vmatprep.subr.msk.bf16.mxu1 %vm1400_vm5, %v8879_v28  ;;  %2589 = vmatmul.mubr.bf16.gmra.mrb[48].mxu1 %v2452_v61  ;;  %v2435_v24 = vmul.f32 %v6944_v38, %v8812_v35  ;;  %v2434_v29 = vmul.f32 %v6944_v38, %v8808_v53  ;;  %v7296_v28 = vld [vmem:[#allocation4 + $0x18] sm:$0xff]  ;;  %v7297_v53 = vld [vmem:[#allocation4 + $0x60] sm:$0xff] }
 0x7da   : > { %3389 = vrot.lane.b32.xlu0 %v7293_v12, %s7423_s19 }
 0x7db   : > { %3375 = vrot.lane.b32.xlu1 %v7294_v9, %s7423_s19  ;;  %v2455_v16 = vpack.c.bf16 %v2435_v24, %v2433_v21  ;;  %v2454_v35 = vpack.c.bf16 %v2434_v29, %v2432_v41 }
 0x7dd   : > { %2596 = vmatprep.mubr.bf16.mxu1 %v2455_v16 }
 0x7de   : > { %3393 = vrot.lane.b32.xlu0 %v7295_v17, %s7423_s19  ;;  %v6946_v57 = vpop.eup %6945 }
 0x7df   : > { %3377 = vrot.lane.b32.xlu1 %v7296_v28, %s7423_s19  ;;  %v2437_v25 = vmul.f32 %v6946_v57, %v10594_v20  ;;  %v2436_v1 = vmul.f32 %v6946_v57, %v10595_v7 }
 0x7e0   : > { %6187 = vmatpush3.bf16.xpose.msra.mxu1 %v2970_v22 }
 0x7e1   : > { %6668 = vmatprep.subr.msk.bf16.mxu1 %vm1400_vm5, %v2927_v32  ;;  %2597 = vmatmul.mubr.bf16.gmra.mrb[52].mxu1 %v2454_v35 }
 0x7e2   : > { %3395 = vrot.lane.b32.xlu0 %v7297_v53, %s7423_s19 }
 0x7e3   : > { %3379 = vrot.lane.b32.xlu1 %v7298_v18, %s7423_s19 }
 0x7e6   : > { %3397 = vrot.lane.b32.xlu0 %v7299_v40, %s7423_s19 }
 0x7e7   : > { %3381 = vrot.lane.b32.xlu1 %v7300_v44, %s7423_s19 }
 0x7e8   : > { %6189 = vmatpush3.bf16.xpose.msra.mxu1 %v2973_v46 }
 0x7ea   : > { %3399 = vrot.lane.b32.xlu0 %v7301_v59, %s7423_s19 }
 0x7eb   : > { %3383 = vrot.lane.b32.xlu1 %v8990_v47, %s7423_s19 }
 0x7ee   : > { %3401 = vrot.lane.b32.xlu0 %v7303_v0, %s7423_s19 }
 0x7ef   : > { %3385 = vrot.lane.b32.xlu1 %v7304_v54, %s7423_s19 }
 0x7f2   : > { %4170 = vrot.lane.b32.xlu0 %v7291_v11, %s7424_s21 }
 0x7f3   : > { %4154 = vrot.lane.b32.xlu1 %v8954_v5, %s7424_s21 }
 0x7f6   : > { %4172 = vrot.lane.b32.xlu0 %v7293_v12, %s7424_s21 }
 0x7f7   : > { %4156 = vrot.lane.b32.xlu1 %v7290_v14, %s7424_s21 }
 0x7fa   : > { %4176 = vrot.lane.b32.xlu0 %v7295_v17, %s7424_s21 }
 0x7fb   : > { %4174 = vrot.lane.b32.xlu1 %v7292_v49, %s7424_s21 }
 0x7fe   : > { %4180 = vrot.lane.b32.xlu0 %v7299_v40, %s7424_s21 }
 0x7ff   : > { %4158 = vrot.lane.b32.xlu1 %v7294_v9, %s7424_s21 }
 0x802   : > { %v2389_v2 = vpop.xlane.xlu1 %2388 }
 0x803   : > { %4160 = vrot.lane.b32.xlu1 %v7296_v28, %s7424_s21  ;;  %6947 = vrcp.f32 %v2389_v2 }
 0x806   : > { %v2395_v42 = vpop.xlane.xlu1 %2394 }
 0x807   : > { %4178 = vrot.lane.b32.xlu1 %v7297_v53, %s7424_s21  ;;  %6949 = vrcp.f32 %v2395_v42 }
 0x808   : > { %v2392_v15 = vpop.xlane.xlu0 %2391 }
 0x809   : > { %6951 = vrcp.f32 %v2392_v15 }
 0x80a   : > { %v2929_v23 = vpop.permute.xlu1 %2928 }
 0x80b   : > { %4162 = vrot.lane.b32.xlu1 %v7298_v18, %s7424_s21  ;;  %6669 = vmatprep.subr.msk.bf16.mxu1 %vm1400_vm5, %v2929_v23 }
 0x80c   : > { %v2913_v26 = vpop.permute.xlu0 %2912 }
 0x80d   : > { %v2976_v39 = vsel %vm1400_vm5, %v2913_v26, 0  ;;  %v6948_v48 = vpop.eup %6947 }
 0x80e   : > { %6191 = vmatpush3.bf16.xpose.msra.mxu1 %v2976_v39  ;;  %v2439_v3 = vmul.f32 %v6948_v48, %v8838_v30  ;;  %v2438_v34 = vmul.f32 %v6948_v48, %v8836_v8  ;;  %v3682_v56 = vpop.permute.xlu1 %3681  ;;  %v9021_v8 = vld [vmem:[%s10418_s6] sm:$0xf] }
 0x80f   : > { %4164 = vrot.lane.b32.xlu1 %v7300_v44, %s7424_s21  ;;  %v9026_v50 = vcombine.low %v9021_v8, %v9021_v8  ;;  %v3738_v45 = vsel %vm1400_vm5, %v3682_v56, 0  ;;  %v2783_v56 = vsel %vm2657_vm7, %v9021_v8, 0 }
 0x810   : > { %v2883_v58 = vpop.permute.xlu0 %2882  ;;  %v2457_v19 = vpack.c.bf16 %v2439_v3, %v2437_v25  ;;  %v2456_v13 = vpack.c.bf16 %v2438_v34, %v2436_v1 }
 0x811   : > { %v6950_v37 = vpop.eup %6949  ;;  %10596 = vst [vmem:[#allocation19_spill] sm:$0xff] %v9026_v50  ;;  %v2632_v55 = vrot.slane %v9026_v50, 1 }
 0x812   : > { %2604 = vmatprep.mubr.bf16.mxu1 %v2457_v19  ;;  %v2443_v30 = vmul.f32 %v6950_v37, %v8846_v27  ;;  %v2885_v27 = vpop.permute.xlu1 %2884 }
 0x813   : > { %v6952_v5 = vpop.eup %6951  ;;  %4182 = vrot.lane.b32.xlu1 %v7301_v59, %s7424_s21  ;;  %2605 = vmatmul.mubr.bf16.gmra.mrb[56].mxu1 %v2456_v13  ;;  %v2659_v31 = vsel %vm2657_vm7, %v2632_v55, 0 }
 0x814   : > { %v3698_v10 = vpop.permute.xlu0 %3697  ;;  %v2441_v4 = vmul.f32 %v6952_v5, %v8848_v51  ;;  %v2440_v14 = vmul.f32 %v6952_v5, %v8840_v36  ;;  %v2442_v51 = vmul.f32 %v6950_v37, %v8842_v62  ;;  %6660 = vmatprep.subr.msk.bf16.mxu0 %vm2657_vm7, %v2632_v55 }
 0x815   : > { %6671 = vmatprep.subr.msk.bf16.mxu1 %vm1400_vm5, %v3698_v10  ;;  %6466 = vmatpush3.bf16.msra.mxu0 %v2659_v31 }
 0x816   : > { %v2459_v52 = vpack.c.bf16 %v2443_v30, %v2441_v4  ;;  %v2458_v11 = vpack.c.bf16 %v2442_v51, %v2440_v14  ;;  %6661 = vmatprep.subr.msk.bf16.mxu0 %vm2657_vm7, %v9021_v8  ;;  %v3700_v36 = vpop.permute.xlu1 %3699 }
 0x818   : > { %2612 = vmatprep.mubr.bf16.mxu1 %v2459_v52  ;;  %v3684_v60 = vpop.permute.xlu0 %3683 }
 0x819   : > { %v3741_v49 = vsel %vm1400_vm5, %v3684_v60, 0 }
 0x81a   : > { %v3686_v62 = vpop.permute.xlu1 %3685 }
 0x81b   : > { %2613 = vmatmul.mubr.bf16.gmra.mrb[60].mxu1 %v2458_v11  ;;  %v3744_v12 = vsel %vm1400_vm5, %v3686_v62, 0 }
 0x81c   : > { %6192 = vmatprep.mubr.msk.bf16.mxu1 %vm1400_vm5, %v2883_v58  ;;  %v2887_v63 = vpop.permute.xlu0 %2886 }
 0x81e   : > { %v2889_v38 = vpop.permute.xlu1 %2888 }
 0x820   : > { %v3702_v61 = vpop.permute.xlu0 %3701 }
 0x822   : > { %v3704_v24 = vpop.permute.xlu1 %3703 }
 0x823   : > { %6193 = vmatmul.mubr.msk.bf16.vlgmr.msra.gmra.mrb[64].mxu1 %vm1400_vm5, %v2883_v58 }
 0x824   : > { %6282 = vmatpush3.bf16.xpose.msra.mxu1 %v3738_v45  ;;  %6194 = vmatprep.mubr.msk.bf16.mxu1 %vm1400_vm5, %v2885_v27  ;;  %v3688_v21 = vpop.permute.xlu0 %3687 }
 0x825   : > { %6672 = vmatprep.subr.msk.bf16.mxu1 %vm1400_vm5, %v3700_v36  ;;  %v3747_v16 = vsel %vm1400_vm5, %v3688_v21, 0 }
 0x826   : > { %v3690_v9 = vpop.permute.xlu1 %3689 }
 0x827   : > { %v3750_v17 = vsel %vm1400_vm5, %v3690_v9, 0 }
 0x828   : > { %v2891_v29 = vpop.permute.xlu0 %2890 }
 0x82a   : > { %v2893_v41 = vpop.permute.xlu1 %2892 }
 0x82b   : > { %6195 = vmatmul.mubr.msk.bf16.gmra.mrb[68].mxu1 %vm1400_vm5, %v2885_v27 }
 0x82c   : > { %6284 = vmatpush3.bf16.xpose.msra.mxu1 %v3741_v49  ;;  %6196 = vmatprep.mubr.msk.bf16.mxu1 %vm1400_vm5, %v2887_v63  ;;  %v3706_v43 = vpop.permute.xlu0 %3705 }
 0x82d   : > { %6673 = vmatprep.subr.msk.bf16.mxu1 %vm1400_vm5, %v3702_v61 }
 0x82e   : > { %v3708_v22 = vpop.permute.xlu1 %3707 }
 0x830   : > { %v3692_v6 = vpop.permute.xlu0 %3691 }
 0x831   : > { %v3753_v32 = vsel %vm1400_vm5, %v3692_v6, 0 }
 0x832   : > { %v3694_v28 = vpop.permute.xlu1 %3693 }
 0x833   : > { %6197 = vmatmul.mubr.msk.bf16.gmra.mrb[72].mxu1 %vm1400_vm5, %v2887_v63  ;;  %v3756_v33 = vsel %vm1400_vm5, %v3694_v28, 0 }
 0x834   : > { %6286 = vmatpush3.bf16.xpose.msra.mxu1 %v3744_v12  ;;  %6198 = vmatprep.mubr.msk.bf16.mxu1 %vm1400_vm5, %v2889_v38  ;;  %v2895_v35 = vpop.permute.xlu0 %2894 }
 0x835   : > { %6674 = vmatprep.subr.msk.bf16.mxu1 %vm1400_vm5, %v3704_v24 }
 0x836   : > { %v2897_v18 = vpop.permute.xlu1 %2896 }
 0x838   : > { %v3710_v53 = vpop.permute.xlu0 %3709 }
 0x83a   : > { %v3712_v40 = vpop.permute.xlu1 %3711 }
 0x83b   : > { %6199 = vmatmul.mubr.msk.bf16.gmra.mrb[76].mxu1 %vm1400_vm5, %v2889_v38 }
 0x83c   : > { %6288 = vmatpush3.bf16.xpose.msra.mxu1 %v3747_v16  ;;  %6200 = vmatprep.mubr.msk.bf16.mxu1 %vm1400_vm5, %v2891_v29  ;;  %v3696_v46 = vpop.permute.xlu0 %3695 }
 0x83d   : > { %6675 = vmatprep.subr.msk.bf16.mxu1 %vm1400_vm5, %v3706_v43  ;;  %v3759_v44 = vsel %vm1400_vm5, %v3696_v46, 0 }
 0x83e   : > { %v3668_v0 = vpop.permute.xlu1 %3667 }
 0x840   : > { %v3666_v59 = vpop.permute.xlu0 %3665 }
 0x842   : > { %v3672_v2 = vpop.permute.xlu1 %3671 }
 0x843   : > { %6201 = vmatmul.mubr.msk.bf16.gmra.mrb[80].mxu1 %vm1400_vm5, %v2891_v29 }
 0x844   : > { %6290 = vmatpush3.bf16.xpose.msra.mxu1 %v3750_v17  ;;  %6202 = vmatprep.mubr.msk.bf16.mxu1 %vm1400_vm5, %v2893_v41  ;;  %v3670_v54 = vpop.permute.xlu0 %3669 }
 0x845   : > { %6676 = vmatprep.subr.msk.bf16.mxu1 %vm1400_vm5, %v3708_v22 }
 0x846   : > { %v3676_v15 = vpop.permute.xlu1 %3675 }
 0x848   : > { %v3674_v42 = vpop.permute.xlu0 %3673 }
 0x84a   : > { %v3680_v7 = vpop.permute.xlu1 %3679 }
 0x84b   : > { %6203 = vmatmul.mubr.msk.bf16.gmra.mrb[84].mxu1 %vm1400_vm5, %v2893_v41 }
 0x84c   : > { %6292 = vmatpush3.bf16.xpose.msra.mxu1 %v3753_v32  ;;  %6204 = vmatprep.mubr.msk.bf16.mxu1 %vm1400_vm5, %v2895_v35  ;;  %v3678_v26 = vpop.permute.xlu0 %3677 }
 0x84d   : > { %6677 = vmatprep.subr.msk.bf16.mxu1 %vm1400_vm5, %v3710_v53 }
 0x84e   : > { %v9088_v24 = vpop.permute.xlu1 %3371 }
 0x850   : > { %v3388_v61 = vpop.permute.xlu0 %3387 }
 0x852   : > { %v9090_v9 = vpop.permute.xlu1 %3373 }
 0x853   : > { %6205 = vmatmul.mubr.msk.bf16.gmra.mrb[88].mxu1 %vm1400_vm5, %v2895_v35 }
 0x854   : > { %6294 = vmatpush3.bf16.xpose.msra.mxu1 %v3756_v33  ;;  %6206 = vmatprep.mubr.msk.bf16.mxu1 %vm1400_vm5, %v2897_v18  ;;  %v9095_v28 = vpop.permute.xlu0 %3389 }
 0x855   : > { %6678 = vmatprep.subr.msk.bf16.mxu1 %vm1400_vm5, %v3712_v40 }
 0x856   : > { %v9093_v22 = vpop.permute.xlu1 %3391 }
 0x85a   : > { %v9097_v53 = vpop.permute.xlu1 %3375 }
 0x85b   : > { %6207 = vmatmul.mubr.msk.bf16.gmra.mrb[92].mxu1 %vm1400_vm5, %v2897_v18  ;;  %v9100_v18 = vpop.permute.xlu0 %3393 }
 0x85c   : > { %6296 = vmatpush3.bf16.xpose.msra.mxu1 %v3759_v44  ;;  %6297 = vmatprep.mubr.msk.bf16.mxu1 %vm1400_vm5, %v3666_v59 }
 0x85e   : > { %v9102_v33 = vpop.permute.xlu1 %3377 }
 0x85f   : > { %v9104_v40 = vpop.permute.xlu0 %3395 }
 0x862   : > { %v9106_v46 = vpop.permute.xlu1 %3379 }
 0x863   : > { %6298 = vmatmul.mubr.msk.bf16.vlgmr.msra.gmra.mrb[96].mxu1 %vm1400_vm5, %v3666_v59  ;;  %v9108_v44 = vpop.permute.xlu0 %3397 }
 0x864   : > { %6299 = vmatprep.mubr.msk.bf16.mxu1 %vm1400_vm5, %v3668_v0 }
 0x866   : > { %v9110_v59 = vpop.permute.xlu1 %3381 }
 0x86b   : > { %6300 = vmatmul.mubr.msk.bf16.gmra.mrb[100].mxu1 %vm1400_vm5, %v3668_v0  ;;  %v9112_v0 = vpop.permute.xlu0 %3399 }
 0x86c   : > { %6301 = vmatprep.mubr.msk.bf16.mxu1 %vm1400_vm5, %v3670_v54 }
 0x873   : > { %6302 = vmatmul.mubr.msk.bf16.gmra.mrb[104].mxu1 %vm1400_vm5, %v3670_v54  ;;  %v9114_v54 = vpop.permute.xlu1 %3383 }
 0x874   : > { %6303 = vmatprep.mubr.msk.bf16.mxu1 %vm1400_vm5, %v3672_v2 }
 0x87b   : > { %6304 = vmatmul.mubr.msk.bf16.gmra.mrb[108].mxu1 %vm1400_vm5, %v3672_v2  ;;  %v9116_v2 = vpop.permute.xlu0 %3401 }
 0x87c   : > { %6305 = vmatprep.mubr.msk.bf16.mxu1 %vm1400_vm5, %v3674_v42 }
 0x883   : > { %6306 = vmatmul.mubr.msk.bf16.gmra.mrb[112].mxu1 %vm1400_vm5, %v3674_v42  ;;  %v9118_v42 = vpop.permute.xlu1 %3385 }
 0x884   : > { %6307 = vmatprep.mubr.msk.bf16.mxu1 %vm1400_vm5, %v3676_v15 }
 0x88a   : > { %v6110_v23 = vpop.f32.mrb[32].mxu1 }
 0x88b   : > { %v6111_v57 = vpop.f32.mrb[33].mxu1  ;;  %6308 = vmatmul.mubr.msk.bf16.gmra.mrb[116].mxu1 %vm1400_vm5, %v3676_v15  ;;  %v4171_v15 = vpop.permute.xlu0 %4170 }
 0x88c   : > { %v6112_v39 = vadd.f32 %v6111_v57, %v6110_v23  ;;  %v6113_v48 = vpop.f32.mrb[34].mxu1  ;;  %6309 = vmatprep.mubr.msk.bf16.mxu1 %vm1400_vm5, %v3678_v26  ;;  %6313 = vmatprep.subr.bf16.mxu1 %v4171_v15  ;;  %v4155_v23 = vpop.permute.xlu1 %4154 }
 0x88d   : > { %v6114_v20 = vpop.f32.mrb[35].mxu1  ;;  %6314 = vmatpush3.bf16.msra.mxu1 %v4155_v23  ;;  %v10606_v23 = vld [vmem:[#allocation27_spill] sm:$0xff] }
 0x88e   : > { %v6115_v25 = vadd.f32 %v6114_v20, %v6113_v48 }
 0x88f   : > { %v4173_v57 = vpop.permute.xlu0 %4172 }
 0x890   : > { %v2621_v3 = vpack.c.bf16 %v6115_v25, %v6112_v39  ;;  %6315 = vmatprep.subr.bf16.mxu1 %v4173_v57  ;;  %v10607_v57 = vld [vmem:[#allocation24_spill] sm:$0xff] }
 0x892   : > { %6467 = vmatprep.mubr.msk.bf16.mxu0 %vm1400_vm5, %v2621_v3 }
 0x893   : > { %6310 = vmatmul.mubr.msk.bf16.gmra.mrb[120].mxu1 %vm1400_vm5, %v3678_v26  ;;  %v4157_v26 = vpop.permute.xlu1 %4156  ;;  %v4177_v20 = vpop.permute.xlu0 %4176 }
 0x894   : > { %v6116_v1 = vpop.f32.mrb[36].mxu1  ;;  %6311 = vmatprep.mubr.msk.bf16.mxu1 %vm1400_vm5, %v3680_v7  ;;  %6316 = vmatpush3.bf16.msra.mxu1 %v4157_v26 }
 0x895   : > { %v6117_v34 = vpop.f32.mrb[37].mxu1 }
 0x896   : > { %v6118_v58 = vadd.f32 %v6117_v34, %v6116_v1  ;;  %v6119_v19 = vpop.f32.mrb[38].mxu1 }
 0x897   : > { %v6120_v13 = vpop.f32.mrb[39].mxu1  ;;  %v4175_v39 = vpop.permute.xlu1 %4174 }
 0x898   : > { %v6121_v37 = vadd.f32 %v6120_v13, %v6119_v19  ;;  %6317 = vmatprep.subr.bf16.mxu1 %v4175_v39  ;;  %v10609_v39 = vld [vmem:[#allocation31_spill] sm:$0xff] }
 0x89a   : > { %v2622_v5 = vpack.c.bf16 %v6121_v37, %v6118_v58 }
 0x89b   : > { %6312 = vmatmul.mubr.msk.bf16.gmra.mrb[124].mxu1 %vm1400_vm5, %v3680_v7  ;;  %v4159_v48 = vpop.permute.xlu1 %4158 }
 0x89c   : > { %v6122_v10 = vpop.f32.mrb[40].mxu1  ;;  %6468 = vmatmul.mubr.msk.bf16.vlgmr.msra.gmra.mrb[80].mxu0 %vm1400_vm5, %v2622_v5  ;;  %6318 = vmatpush3.bf16.msra.mxu1 %v4159_v48  ;;  %v4181_v5 = vpop.permute.xlu0 %4180 }
 0x89d   : > { %v6123_v4 = vpop.f32.mrb[41].mxu1  ;;  %6484 = vmatpush3.bf16.msra.mxu0 %v2783_v56  ;;  %6319 = vmatprep.subr.bf16.mxu1 %v4177_v20 }
 0x89e   : > { %v6124_v30 = vadd.f32 %v6123_v4, %v6122_v10  ;;  %v6125_v52 = vpop.f32.mrb[42].mxu1  ;;  %6208 = vmatprep.subr.bf16.mxu0 %v3388_v61 }
 0x89f   : > { %v6126_v14 = vpop.f32.mrb[43].mxu1  ;;  %v4161_v25 = vpop.permute.xlu1 %4160 }
 0x8a0   : > { %v6127_v55 = vadd.f32 %v6126_v14, %v6125_v52  ;;  %6320 = vmatpush3.bf16.msra.mxu1 %v4161_v25 }
 0x8a2   : > { %v2623_v51 = vpack.c.bf16 %v6127_v55, %v6124_v30 }
 0x8a3   : > { %v4179_v7 = vpop.permute.xlu1 %4178 }
 0x8a4   : > { %v6128_v27 = vpop.f32.mrb[44].mxu1  ;;  %6471 = vmatprep.mubr.msk.bf16.mxu0 %vm1400_vm5, %v2623_v51  ;;  %6321 = vmatprep.subr.bf16.mxu1 %v4179_v7  ;;  %v10612_v7 = vld [vmem:[#allocation35_spill] sm:$0xff] }
 0x8a5   : > { %v6129_v31 = vpop.f32.mrb[45].mxu1 }
 0x8a6   : > { %v6130_v11 = vadd.f32 %v6129_v31, %v6128_v27  ;;  %v6131_v60 = vpop.f32.mrb[46].mxu1 }
 0x8a7   : > { %v6132_v36 = vpop.f32.mrb[47].mxu1  ;;  %v4163_v37 = vpop.permute.xlu1 %4162 }
 0x8a8   : > { %v6133_v8 = vadd.f32 %v6132_v36, %v6131_v60  ;;  %6322 = vmatpush3.bf16.msra.mxu1 %v4163_v37  ;;  %v10597_v60 = vld [vmem:[#allocation23_spill] sm:$0xff]  ;;  %v10598_v36 = vld [vmem:[#allocation21_spill] sm:$0xff] }
 0x8a9   : > { %6323 = vmatprep.subr.bf16.mxu1 %v4181_v5 }
 0x8aa   : > { %v2624_v45 = vpack.c.bf16 %v6133_v8, %v6130_v11  ;;  %v10599_v8 = vpack.c.bf16 %v10597_v60, %v10598_v36 }
 0x8ab   : > { %v4165_v4 = vpop.permute.xlu1 %4164 }
 0x8ac   : > { %v6134_v63 = vpop.f32.mrb[48].mxu1  ;;  %6472 = vmatmul.mubr.msk.bf16.gmra.mrb[84].mxu0 %vm1400_vm5, %v2624_v45  ;;  %6324 = vmatpush3.bf16.msra.mxu1 %v4165_v4 }
 0x8ad   : > { %v6135_v62 = vpop.f32.mrb[49].mxu1 }
 0x8ae   : > { %v6136_v49 = vadd.f32 %v6135_v62, %v6134_v63  ;;  %v6137_v38 = vpop.f32.mrb[50].mxu1 }
 0x8af   : > { %v6138_v21 = vpop.f32.mrb[51].mxu1  ;;  %v4183_v27 = vpop.permute.xlu1 %4182 }
 0x8b0   : > { %v6139_v12 = vadd.f32 %v6138_v21, %v6137_v38  ;;  %6325 = vmatprep.subr.bf16.mxu1 %v4183_v27  ;;  %v10600_v38 = vld [vmem:[#allocation30_spill] sm:$0xff] }
 0x8b1   : > { %v10601_v21 = vld [vmem:[#allocation22_spill] sm:$0xff] }
 0x8b2   : > { %v2625_v29 = vpack.c.bf16 %v6139_v12, %v6136_v49  ;;  %v10602_v12 = vpack.c.bf16 %v10600_v38, %v10601_v21 }
 0x8b4   : > { %v6140_v16 = vpop.f32.mrb[52].mxu1  ;;  %6475 = vmatprep.mubr.msk.bf16.mxu0 %vm1400_vm5, %v2625_v29 }
 0x8b5   : > { %v6141_v43 = vpop.f32.mrb[53].mxu1 }
 0x8b6   : > { %v6142_v41 = vadd.f32 %v6141_v43, %v6140_v16  ;;  %v6143_v6 = vpop.f32.mrb[54].mxu1  ;;  %v10603_v16 = vld [vmem:[#allocation33_spill] sm:$0xff] }
 0x8b7   : > { %v6144_v17 = vpop.f32.mrb[55].mxu1  ;;  %v10604_v43 = vld [vmem:[#allocation25_spill] sm:$0xff] }
 0x8b8   : > { %v6145_v35 = vadd.f32 %v6144_v17, %v6143_v6 }
 0x8ba   : > { %v2626_v32 = vpack.c.bf16 %v6145_v35, %v6142_v41  ;;  %v10605_v41 = vpack.c.bf16 %v10603_v16, %v10604_v43 }
 0x8bc   : > { %6476 = vmatmul.mubr.msk.bf16.gmra.mrb[88].mxu0 %vm1400_vm5, %v2626_v32 }
 0x8e6   : > { %v6146_v3 = vpop.f32.mrb[56].mxu1 }
 0x8e7   : > { %v6147_v1 = vpop.f32.mrb[57].mxu1 }
 0x8e8   : > { %v6148_v34 = vadd.f32 %v6147_v1, %v6146_v3  ;;  %v6149_v58 = vpop.f32.mrb[58].mxu1 }
 0x8e9   : > { %v6150_v19 = vpop.f32.mrb[59].mxu1 }
 0x8ea   : > { %v6151_v13 = vadd.f32 %v6150_v19, %v6149_v58  ;;  %v10615_v58 = vld [vmem:[#allocation32_spill] sm:$0xff] }
 0x8ec   : > { %v2627_v56 = vpack.c.bf16 %v6151_v13, %v6148_v34 }
 0x8ee   : > { %v6152_v10 = vpop.f32.mrb[60].mxu1  ;;  %6479 = vmatprep.mubr.msk.bf16.mxu0 %vm1400_vm5, %v2627_v56  ;;  %v10618_v56 = vld [vmem:[#allocation36_spill] sm:$0xff] }
 0x8ef   : > { %v6153_v30 = vpop.f32.mrb[61].mxu1 }
 0x8f0   : > { %v6154_v52 = vadd.f32 %v6153_v30, %v6152_v10  ;;  %v6155_v14 = vpop.f32.mrb[62].mxu1 }
 0x8f1   : > { %v6156_v55 = vpop.f32.mrb[63].mxu1 }
 0x8f2   : > { %v6157_v51 = vadd.f32 %v6156_v55, %v6155_v14 }
 0x8f4   : > { %v2628_v31 = vpack.c.bf16 %v6157_v51, %v6154_v52 }
 0x8f6   : > { %6480 = vmatmul.mubr.msk.bf16.gmra.mrb[92].mxu0 %vm1400_vm5, %v2628_v31  ;;  %v9122_v11 = vpop.f32.mrb[64].mxu1 }
 0x8f7   : > { %6485 = vmatprep.mubr.msk.bf16.mxu0 %vm1400_vm5, %v10599_v8  ;;  %v9128_v45 = vpop.f32.mrb[65].mxu1 }
 0x8f8   : > { %v3115_v63 = vmax.f32 %v9122_v11, %v9128_v45  ;;  %v9132_v62 = vpop.f32.mrb[66].mxu1 }
 0x8f9   : > { %v9134_v61 = vpop.f32.mrb[67].mxu1 }
 0x8fa   : > { %v3118_v49 = vmax.f32 %v9132_v62, %v9134_v61  ;;  %3116 = vmax.xlane.f32.xlu0 %v3115_v63 }
 0x8fc   : > { %3119 = vmax.xlane.f32.xlu1 %v3118_v49 }
 0x8fe   : > { %6486 = vmatmul.mubr.msk.bf16.vlgmr.msra.gmra.mrb[80].mxu0 %vm1400_vm5, %v10602_v12  ;;  %v9142_v29 = vpop.f32.mrb[68].mxu1 }
 0x8ff   : > { %6489 = vmatprep.mubr.msk.bf16.mxu0 %vm1400_vm5, %v10605_v41  ;;  %v9148_v6 = vpop.f32.mrb[69].mxu1  ;;  %6209 = vmatpush3.bf16.msra.mxu0 %v9088_v24  ;;  %v10608_v24 = vpack.c.bf16 %v10606_v23, %v10607_v57 }
 0x900   : > { %v3121_v17 = vmax.f32 %v9142_v29, %v9148_v6  ;;  %v9153_v35 = vpop.f32.mrb[70].mxu1  ;;  %6210 = vmatprep.subr.bf16.mxu0 %v9095_v28  ;;  %v10610_v28 = vld [vmem:[#allocation26_spill] sm:$0xff] }
 0x901   : > { %v9156_v32 = vpop.f32.mrb[71].mxu1  ;;  %v10611_v48 = vpack.c.bf16 %v10609_v39, %v10610_v28 }
 0x902   : > { %v3124_v15 = vmax.f32 %v9153_v35, %v9156_v32  ;;  %3122 = vmax.xlane.f32.xlu0 %v3121_v17 }
 0x903   : > { %6211 = vmatpush3.bf16.msra.mxu0 %v9090_v9 }
 0x904   : > { %6212 = vmatprep.subr.bf16.mxu0 %v9093_v22 }
 0x906   : > { %6490 = vmatmul.mubr.msk.bf16.gmra.mrb[84].mxu0 %vm1400_vm5, %v10608_v24  ;;  %3125 = vmax.xlane.f32.xlu0 %v3124_v15  ;;  %v9166_v26 = vpop.f32.mrb[72].mxu1 }
 0x907   : > { %6493 = vmatprep.mubr.msk.bf16.mxu0 %vm1400_vm5, %v10611_v48  ;;  %v9172_v20 = vpop.f32.mrb[73].mxu1  ;;  %6213 = vmatpush3.bf16.msra.mxu0 %v9097_v53  ;;  %v10613_v53 = vld [vmem:[#allocation29_spill] sm:$0xff] }
 0x908   : > { %v3127_v9 = vmax.f32 %v9166_v26, %v9172_v20  ;;  %v9177_v22 = vpop.f32.mrb[74].mxu1  ;;  %6214 = vmatprep.subr.bf16.mxu0 %v9100_v18  ;;  %v10614_v1 = vpack.c.bf16 %v10612_v7, %v10613_v53  ;;  %v10616_v18 = vld [vmem:[#allocation28_spill] sm:$0xff] }
 0x909   : > { %v9180_v25 = vpop.f32.mrb[75].mxu1  ;;  %v10617_v19 = vpack.c.bf16 %v10615_v58, %v10616_v18 }
 0x90a   : > { %v3130_v3 = vmax.f32 %v9177_v22, %v9180_v25  ;;  %3128 = vmax.xlane.f32.xlu0 %v3127_v9 }
 0x90b   : > { %6215 = vmatpush3.bf16.msra.mxu0 %v9102_v33 }
 0x90c   : > { %3131 = vmax.xlane.f32.xlu1 %v3130_v3  ;;  %6216 = vmatprep.subr.bf16.mxu0 %v9104_v40 }
 0x90e   : > { %6494 = vmatmul.mubr.msk.bf16.gmra.mrb[88].mxu0 %vm1400_vm5, %v10614_v1  ;;  %v9190_v34 = vpop.f32.mrb[76].mxu1 }
 0x90f   : > { %6497 = vmatprep.mubr.msk.bf16.mxu0 %vm1400_vm5, %v10617_v19  ;;  %v9196_v13 = vpop.f32.mrb[77].mxu1  ;;  %6217 = vmatpush3.bf16.msra.mxu0 %v9106_v46  ;;  %v10619_v46 = vld [vmem:[#allocation34_spill] sm:$0xff] }
 0x910   : > { %v3133_v33 = vmax.f32 %v9190_v34, %v9196_v13  ;;  %v9201_v40 = vpop.f32.mrb[78].mxu1  ;;  %6218 = vmatprep.subr.bf16.mxu0 %v9108_v44  ;;  %v10620_v10 = vpack.c.bf16 %v10618_v56, %v10619_v46 }
 0x911   : > { %v9204_v37 = vpop.f32.mrb[79].mxu1 }
 0x912   : > { %v3136_v5 = vmax.f32 %v9201_v40, %v9204_v37  ;;  %3134 = vmax.xlane.f32.xlu0 %v3133_v33 }
 0x913   : > { %6219 = vmatpush3.bf16.msra.mxu0 %v9110_v59 }
 0x914   : > { %3137 = vmax.xlane.f32.xlu1 %v3136_v5  ;;  %6220 = vmatprep.subr.bf16.mxu0 %v9112_v0 }
 0x916   : > { %6498 = vmatmul.mubr.msk.bf16.gmra.mrb[92].mxu0 %vm1400_vm5, %v10620_v10  ;;  %v9214_v4 = vpop.f32.mrb[80].mxu1 }
 0x917   : > { %v9216_v30 = vpop.f32.mrb[81].mxu1  ;;  %6221 = vmatpush3.bf16.msra.mxu0 %v9114_v54 }
 0x918   : > { %v3139_v44 = vmax.f32 %v9214_v4, %v9216_v30  ;;  %v9221_v52 = vpop.f32.mrb[82].mxu1  ;;  %6222 = vmatprep.subr.bf16.mxu0 %v9116_v2 }
 0x919   : > { %v9224_v59 = vpop.f32.mrb[83].mxu1 }
 0x91a   : > { %v3142_v0 = vmax.f32 %v9221_v52, %v9224_v59  ;;  %3140 = vmax.xlane.f32.xlu0 %v3139_v44 }
 0x91b   : > { %6223 = vmatpush3.bf16.msra.mxu0 %v9118_v42 }
 0x91c   : > { %3143 = vmax.xlane.f32.xlu1 %v3142_v0 }
 0x91e   : > { %v9229_v14 = vpop.f32.mrb[84].mxu1 }
 0x91f   : > { %v9231_v55 = vpop.f32.mrb[85].mxu1 }
 0x920   : > { %v3145_v54 = vmax.f32 %v9229_v14, %v9231_v55  ;;  %v9235_v51 = vpop.f32.mrb[86].mxu1 }
 0x921   : > { %v9237_v27 = vpop.f32.mrb[87].mxu1 }
 0x922   : > { %v3148_v2 = vmax.f32 %v9235_v51, %v9237_v27  ;;  %3146 = vmax.xlane.f32.xlu0 %v3145_v54 }
 0x924   : > { %3149 = vmax.xlane.f32.xlu1 %v3148_v2 }
 0x926   : > { %v9241_v31 = vpop.f32.mrb[88].mxu1 }
 0x927   : > { %v9243_v42 = vpop.f32.mrb[89].mxu1 }
 0x928   : > { %v3151_v60 = vmax.f32 %v9241_v31, %v9243_v42  ;;  %v9247_v36 = vpop.f32.mrb[90].mxu1 }
 0x929   : > { %v9249_v8 = vpop.f32.mrb[91].mxu1 }
 0x92a   : > { %v3154_v63 = vmax.f32 %v9247_v36, %v9249_v8  ;;  %3152 = vmax.xlane.f32.xlu0 %v3151_v60 }
 0x92c   : > { %3155 = vmax.xlane.f32.xlu1 %v3154_v63 }
 0x92e   : > { %v9253_v49 = vpop.f32.mrb[92].mxu1 }
 0x92f   : > { %v9255_v38 = vpop.f32.mrb[93].mxu1 }
 0x930   : > { %v3157_v21 = vmax.f32 %v9253_v49, %v9255_v38  ;;  %v9259_v12 = vpop.f32.mrb[94].mxu1 }
 0x931   : > { %v9261_v16 = vpop.f32.mrb[95].mxu1 }
 0x932   : > { %v3160_v43 = vmax.f32 %v9259_v12, %v9261_v16  ;;  %3158 = vmax.xlane.f32.xlu0 %v3157_v21 }
 0x934   : > { %3161 = vmax.xlane.f32.xlu1 %v3160_v43 }
 0x936   : > { %v9265_v41 = vpop.f32.mrb[96].mxu1 }
 0x937   : > { %v9267_v17 = vpop.f32.mrb[97].mxu1 }
 0x938   : > { %v3898_v15 = vmax.f32 %v9265_v41, %v9267_v17  ;;  %v9271_v23 = vpop.f32.mrb[98].mxu1 }
 0x939   : > { %v9273_v57 = vpop.f32.mrb[99].mxu1 }
 0x93a   : > { %v3901_v24 = vmax.f32 %v9271_v23, %v9273_v57  ;;  %3899 = vmax.xlane.f32.xlu0 %v3898_v15 }
 0x93c   : > { %3902 = vmax.xlane.f32.xlu1 %v3901_v24 }
 0x93e   : > { %v9277_v39 = vpop.f32.mrb[100].mxu1 }
 0x93f   : > { %v9279_v28 = vpop.f32.mrb[101].mxu1 }
 0x940   : > { %v3904_v48 = vmax.f32 %v9277_v39, %v9279_v28  ;;  %v9283_v9 = vpop.f32.mrb[102].mxu1 }
 0x941   : > { %v9285_v3 = vpop.f32.mrb[103].mxu1 }
 0x942   : > { %v3907_v7 = vmax.f32 %v9283_v9, %v9285_v3  ;;  %3905 = vmax.xlane.f32.xlu0 %v3904_v48 }
 0x944   : > { %3908 = vmax.xlane.f32.xlu1 %v3907_v7 }
 0x946   : > { %v9289_v53 = vpop.f32.mrb[104].mxu1 }
 0x947   : > { %v9291_v1 = vpop.f32.mrb[105].mxu1 }
 0x948   : > { %v3910_v58 = vmax.f32 %v9289_v53, %v9291_v1  ;;  %v9295_v18 = vpop.f32.mrb[106].mxu1 }
 0x949   : > { %v9297_v19 = vpop.f32.mrb[107].mxu1 }
 0x94a   : > { %10621 = vst [vmem:[#allocation38_spill] sm:$0xff] %v9297_v19  ;;  %v3913_v33 = vmax.f32 %v9295_v18, %v9297_v19  ;;  %3911 = vmax.xlane.f32.xlu0 %v3910_v58 }
 0x94e   : > { %v9301_v5 = vpop.f32.mrb[108].mxu1 }
 0x94f   : > { %v9303_v56 = vpop.f32.mrb[109].mxu1 }
 0x950   : > { %v3916_v46 = vmax.f32 %v9301_v5, %v9303_v56  ;;  %v9307_v10 = vpop.f32.mrb[110].mxu1 }
 0x951   : > { %10622 = vst [vmem:[#allocation20_spill] sm:$0xff] %v9307_v10  ;;  %v9309_v44 = vpop.f32.mrb[111].mxu1 }
 0x952   : > { %10623 = vst [vmem:[#allocation37_spill] sm:$0xff] %v9309_v44  ;;  %v3919_v0 = vmax.f32 %v9307_v10, %v9309_v44  ;;  %3917 = vmax.xlane.f32.xlu0 %v3916_v46 }
 0x955   : > { %4166 = vrot.lane.b32.xlu1 %v8990_v47, %s7424_s21 }
 0x956   : > { %v9315_v54 = vpop.f32.mrb[112].mxu1 }
 0x957   : > { %v9317_v2 = vpop.f32.mrb[113].mxu1 }
 0x958   : > { %v3922_v60 = vmax.f32 %v9315_v54, %v9317_v2  ;;  %v9321_v63 = vpop.f32.mrb[114].mxu1 }
 0x959   : > { %10624 = vst [vmem:[#allocation40_spill] sm:$0xff] %v9321_v63  ;;  %v9323_v21 = vpop.f32.mrb[115].mxu1 }
 0x95a   : > { %10625 = vst [vmem:[#allocation39_spill] sm:$0xff] %v9323_v21  ;;  %v3925_v43 = vmax.f32 %v9321_v63, %v9323_v21  ;;  %3923 = vmax.xlane.f32.xlu0 %v3922_v60 }
 0x95e   : > { %v9327_v15 = vpop.f32.mrb[116].mxu1 }
 0x95f   : > { %10626 = vst [vmem:[#allocation42_spill] sm:$0xff] %v9327_v15  ;;  %v9329_v24 = vpop.f32.mrb[117].mxu1 }
 0x960   : > { %10627 = vst [vmem:[#allocation41_spill] sm:$0xff] %v9329_v24  ;;  %v3928_v47 = vmax.f32 %v9327_v15, %v9329_v24  ;;  %v9333_v48 = vpop.f32.mrb[118].mxu1 }
 0x961   : > { %10628 = vst [vmem:[#allocation44_spill] sm:$0xff] %v9333_v48  ;;  %v9335_v7 = vpop.f32.mrb[119].mxu1 }
 0x962   : > { %10629 = vst [vmem:[#allocation43_spill] sm:$0xff] %v9335_v7  ;;  %v3931_v58 = vmax.f32 %v9333_v48, %v9335_v7  ;;  %3929 = vmax.xlane.f32.xlu0 %v3928_v47 }
 0x966   : > { %v9339_v46 = vpop.f32.mrb[120].mxu1 }
 0x967   : > { %10630 = vst [vmem:[#allocation45_spill] sm:$0xff] %v9339_v46  ;;  %v9341_v50 = vpop.f32.mrb[121].mxu1 }
 0x968   : > { %10631 = vst [vmem:[#allocation47_spill] sm:$0xff] %v9341_v50  ;;  %v3934_v60 = vmax.f32 %v9339_v46, %v9341_v50  ;;  %v9345_v21 = vpop.f32.mrb[122].mxu1 }
 0x969   : > { %10632 = vst [vmem:[#allocation46_spill] sm:$0xff] %v9345_v21  ;;  %v9347_v63 = vpop.f32.mrb[123].mxu1 }
 0x96a   : > { %10633 = vst [vmem:[#allocation23_spill] sm:$0xff] %v9347_v63  ;;  %v3937_v24 = vmax.f32 %v9345_v21, %v9347_v63  ;;  %3935 = vmax.xlane.f32.xlu0 %v3934_v60 }
 0x96e   : > { %v9351_v15 = vpop.f32.mrb[124].mxu1 }
 0x96f   : > { %10634 = vst [vmem:[#allocation21_spill] sm:$0xff] %v9351_v15  ;;  %v9353_v44 = vpop.f32.mrb[125].mxu1 }
 0x970   : > { %10635 = vst [vmem:[#allocation30_spill] sm:$0xff] %v9353_v44  ;;  %v3940_v47 = vmax.f32 %v9351_v15, %v9353_v44  ;;  %v9357_v7 = vpop.f32.mrb[126].mxu1 }
 0x971   : > { %v9359_v48 = vpop.f32.mrb[127].mxu1 }
 0x972   : > { %10636 = vst [vmem:[#allocation22_spill] sm:$0xff] %v9359_v48  ;;  %v3943_v50 = vmax.f32 %v9357_v7, %v9359_v48 }
 0x974   : > { %3944 = vmax.xlane.f32.xlu0 %v3943_v50 }
 0x979   : > { %3914 = vmax.xlane.f32.xlu1 %v3913_v33 }
 0x97d   : > { %3920 = vmax.xlane.f32.xlu1 %v3919_v0 }
 0x981   : > { %3926 = vmax.xlane.f32.xlu1 %v3925_v43 }
 0x985   : > { %3932 = vmax.xlane.f32.xlu1 %v3931_v58 }
 0x987   : > { %v3117_v60 = vpop.xlane.xlu0 %3116 }
 0x988   : > { %v3163_v46 = vsub.f32 %v9122_v11, %v3117_v60  ;;  %v3164_v63 = vsub.f32 %v9128_v45, %v3117_v60 }
 0x989   : > { %3938 = vmax.xlane.f32.xlu1 %v3937_v24  ;;  %v3120_v21 = vpop.xlane.xlu1 %3119 }
 0x98a   : > { %v3195_v44 = vmul.f32 1.442695, %v3163_v46  ;;  %v3197_v15 = vmul.f32 1.442695, %v3164_v63  ;;  %v3165_v10 = vsub.f32 %v9132_v62, %v3120_v21  ;;  %v3166_v19 = vsub.f32 %v9134_v61, %v3120_v21 }
 0x98c   : > { %6953 = vpow2.f32 %v3195_v44  ;;  %v3199_v48 = vmul.f32 1.442695, %v3165_v10  ;;  %v3201_v50 = vmul.f32 1.442695, %v3166_v19 }
 0x98d   : > { %6955 = vpow2.f32 %v3197_v15  ;;  %3941 = vmax.xlane.f32.xlu1 %v3940_v47 }
 0x98e   : > { %6957 = vpow2.f32 %v3199_v48 }
 0x98f   : > { %6959 = vpow2.f32 %v3201_v50  ;;  %v3123_v33 = vpop.xlane.xlu0 %3122 }
 0x990   : > { %v3167_v11 = vsub.f32 %v9142_v29, %v3123_v33  ;;  %v3168_v45 = vsub.f32 %v9148_v6, %v3123_v33 }
 0x992   : > { %v3203_v0 = vmul.f32 1.442695, %v3167_v11  ;;  %v3205_v43 = vmul.f32 1.442695, %v3168_v45 }
 0x993   : > { %v3126_v24 = vpop.xlane.xlu0 %3125 }
 0x994   : > { %6961 = vpow2.f32 %v3203_v0  ;;  %v3169_v62 = vsub.f32 %v9153_v35, %v3126_v24  ;;  %v3170_v61 = vsub.f32 %v9156_v32, %v3126_v24 }
 0x995   : > { %6963 = vpow2.f32 %v3205_v43 }
 0x996   : > { %v9371_v10 = vpop.eup %6953  ;;  %v3207_v19 = vmul.f32 1.442695, %v3169_v62  ;;  %v3209_v44 = vmul.f32 1.442695, %v3170_v61 }
 0x997   : > { %v9373_v63 = vpop.eup %6955  ;;  %v3129_v21 = vpop.xlane.xlu0 %3128 }
 0x998   : > { %v9375_v15 = vpop.eup %6957  ;;  %6965 = vpow2.f32 %v3207_v19  ;;  %v3171_v29 = vsub.f32 %v9166_v26, %v3129_v21  ;;  %v3172_v6 = vsub.f32 %v9172_v20, %v3129_v21  ;;  %v3259_v35 = vadd.f32 %v9373_v63, %v9371_v10 }
 0x999   : > { %v9381_v48 = vpop.eup %6959  ;;  %6967 = vpow2.f32 %v3209_v44  ;;  %v3132_v32 = vpop.xlane.xlu1 %3131 }
 0x99a   : > { %v3211_v58 = vmul.f32 1.442695, %v3171_v29  ;;  %v3213_v46 = vmul.f32 1.442695, %v3172_v6  ;;  %3260 = vadd.xlane.f32.xlu0 %v3259_v35  ;;  %v3173_v47 = vsub.f32 %v9177_v22, %v3132_v32  ;;  %v3174_v60 = vsub.f32 %v9180_v25, %v3132_v32 }
 0x99b   : > { %v3262_v50 = vadd.f32 %v9381_v48, %v9375_v15 }
 0x99c   : > { %6969 = vpow2.f32 %v3211_v58  ;;  %v3215_v26 = vmul.f32 1.442695, %v3173_v47  ;;  %v3217_v20 = vmul.f32 1.442695, %v3174_v60 }
 0x99d   : > { %6971 = vpow2.f32 %v3213_v46  ;;  %3263 = vadd.xlane.f32.xlu1 %v3262_v50 }
 0x99e   : > { %v9387_v33 = vpop.eup %6961  ;;  %6973 = vpow2.f32 %v3215_v26 }
 0x99f   : > { %v9389_v11 = vpop.eup %6963  ;;  %6975 = vpow2.f32 %v3217_v20  ;;  %v3135_v45 = vpop.xlane.xlu0 %3134 }
 0x9a0   : > { %v3175_v0 = vsub.f32 %v9190_v34, %v3135_v45  ;;  %v3176_v22 = vsub.f32 %v9196_v13, %v3135_v45  ;;  %v3265_v25 = vadd.f32 %v9389_v11, %v9387_v33 }
 0x9a1   : > { %v3138_v43 = vpop.xlane.xlu1 %3137 }
 0x9a2   : > { %v9395_v24 = vpop.eup %6965  ;;  %v3219_v62 = vmul.f32 1.442695, %v3175_v0  ;;  %v3221_v61 = vmul.f32 1.442695, %v3176_v22  ;;  %3266 = vadd.xlane.f32.xlu0 %v3265_v25  ;;  %v3177_v19 = vsub.f32 %v9201_v40, %v3138_v43  ;;  %v3178_v44 = vsub.f32 %v9204_v37, %v3138_v43 }
 0x9a3   : > { %v9399_v21 = vpop.eup %6967 }
 0x9a4   : > { %6977 = vpow2.f32 %v3219_v62  ;;  %v3223_v29 = vmul.f32 1.442695, %v3177_v19  ;;  %v3225_v34 = vmul.f32 1.442695, %v3178_v44  ;;  %v3268_v13 = vadd.f32 %v9399_v21, %v9395_v24 }
 0x9a5   : > { %6979 = vpow2.f32 %v3221_v61 }
 0x9a6   : > { %v9403_v6 = vpop.eup %6969  ;;  %6981 = vpow2.f32 %v3223_v29  ;;  %3269 = vadd.xlane.f32.xlu1 %v3268_v13 }
 0x9a7   : > { %v9405_v35 = vpop.eup %6971  ;;  %6983 = vpow2.f32 %v3225_v34  ;;  %v3141_v32 = vpop.xlane.xlu0 %3140 }
 0x9a8   : > { %v9407_v40 = vpop.eup %6973  ;;  %v3179_v37 = vsub.f32 %v9214_v4, %v3141_v32  ;;  %v3180_v58 = vsub.f32 %v9216_v30, %v3141_v32  ;;  %v3271_v46 = vadd.f32 %v9405_v35, %v9403_v6 }
 0x9a9   : > { %v9413_v47 = vpop.eup %6975  ;;  %v3144_v60 = vpop.xlane.xlu1 %3143 }
 0x9aa   : > { %v3227_v50 = vmul.f32 1.442695, %v3179_v37  ;;  %v3229_v26 = vmul.f32 1.442695, %v3180_v58  ;;  %3272 = vadd.xlane.f32.xlu0 %v3271_v46  ;;  %v3181_v20 = vsub.f32 %v9221_v52, %v3144_v60  ;;  %v3182_v45 = vsub.f32 %v9224_v59, %v3144_v60 }
 0x9ab   : > { %v3274_v0 = vadd.f32 %v9413_v47, %v9407_v40 }
 0x9ac   : > { %6985 = vpow2.f32 %v3227_v50  ;;  %v3231_v4 = vmul.f32 1.442695, %v3181_v20  ;;  %v3233_v22 = vmul.f32 1.442695, %v3182_v45 }
 0x9ad   : > { %6987 = vpow2.f32 %v3229_v26  ;;  %3275 = vadd.xlane.f32.xlu1 %v3274_v0 }
 0x9ae   : > { %v9419_v30 = vpop.eup %6977  ;;  %6989 = vpow2.f32 %v3231_v4 }
 0x9af   : > { %v9421_v25 = vpop.eup %6979  ;;  %6991 = vpow2.f32 %v3233_v22  ;;  %v3147_v43 = vpop.xlane.xlu0 %3146 }
 0x9b0   : > { %v9423_v62 = vpop.eup %6981  ;;  %v3183_v52 = vsub.f32 %v9229_v14, %v3147_v43  ;;  %v3184_v59 = vsub.f32 %v9231_v55, %v3147_v43  ;;  %v3277_v61 = vadd.f32 %v9421_v25, %v9419_v30 }
 0x9b1   : > { %v9429_v19 = vpop.eup %6983  ;;  %v3150_v44 = vpop.xlane.xlu1 %3149 }
 0x9b2   : > { %v3235_v29 = vmul.f32 1.442695, %v3183_v52  ;;  %v3237_v34 = vmul.f32 1.442695, %v3184_v59  ;;  %3278 = vadd.xlane.f32.xlu0 %v3277_v61  ;;  %v3185_v13 = vsub.f32 %v9235_v51, %v3150_v44  ;;  %v3186_v32 = vsub.f32 %v9237_v27, %v3150_v44 }
 0x9b3   : > { %v3280_v37 = vadd.f32 %v9429_v19, %v9423_v62 }
 0x9b4   : > { %6993 = vpow2.f32 %v3235_v29  ;;  %v3239_v14 = vmul.f32 1.442695, %v3185_v13  ;;  %v3241_v58 = vmul.f32 1.442695, %v3186_v32 }
 0x9b5   : > { %6995 = vpow2.f32 %v3237_v34  ;;  %3281 = vadd.xlane.f32.xlu1 %v3280_v37 }
 0x9b6   : > { %v9435_v55 = vpop.eup %6985  ;;  %6997 = vpow2.f32 %v3239_v14 }
 0x9b7   : > { %v9437_v46 = vpop.eup %6987  ;;  %6999 = vpow2.f32 %v3241_v58  ;;  %v3153_v60 = vpop.xlane.xlu0 %3152 }
 0x9b8   : > { %v9439_v50 = vpop.eup %6989  ;;  %v3187_v51 = vsub.f32 %v9241_v31, %v3153_v60  ;;  %v3188_v27 = vsub.f32 %v9243_v42, %v3153_v60  ;;  %v3283_v26 = vadd.f32 %v9437_v46, %v9435_v55 }
 0x9b9   : > { %v9445_v20 = vpop.eup %6991  ;;  %v3156_v45 = vpop.xlane.xlu1 %3155 }
 0x9ba   : > { %v3243_v0 = vmul.f32 1.442695, %v3187_v51  ;;  %v3245_v4 = vmul.f32 1.442695, %v3188_v27  ;;  %3284 = vadd.xlane.f32.xlu0 %v3283_v26  ;;  %v3189_v22 = vsub.f32 %v9247_v36, %v3156_v45  ;;  %v3190_v43 = vsub.f32 %v9249_v8, %v3156_v45 }
 0x9bb   : > { %v3286_v52 = vadd.f32 %v9445_v20, %v9439_v50 }
 0x9bc   : > { %7001 = vpow2.f32 %v3243_v0  ;;  %v3247_v31 = vmul.f32 1.442695, %v3189_v22  ;;  %v3249_v59 = vmul.f32 1.442695, %v3190_v43 }
 0x9bd   : > { %7003 = vpow2.f32 %v3245_v4  ;;  %3287 = vadd.xlane.f32.xlu1 %v3286_v52 }
 0x9be   : > { %v9451_v42 = vpop.eup %6993  ;;  %7005 = vpow2.f32 %v3247_v31 }
 0x9bf   : > { %v9453_v61 = vpop.eup %6995  ;;  %7007 = vpow2.f32 %v3249_v59  ;;  %v3159_v44 = vpop.xlane.xlu0 %3158 }
 0x9c0   : > { %v9455_v29 = vpop.eup %6997  ;;  %v3191_v36 = vsub.f32 %v9253_v49, %v3159_v44  ;;  %v3192_v8 = vsub.f32 %v9255_v38, %v3159_v44  ;;  %v3289_v34 = vadd.f32 %v9453_v61, %v9451_v42 }
 0x9c1   : > { %v9461_v13 = vpop.eup %6999  ;;  %v3162_v32 = vpop.xlane.xlu1 %3161 }
 0x9c2   : > { %v3251_v37 = vmul.f32 1.442695, %v3191_v36  ;;  %v3253_v14 = vmul.f32 1.442695, %v3192_v8  ;;  %3290 = vadd.xlane.f32.xlu0 %v3289_v34  ;;  %v3193_v58 = vsub.f32 %v9259_v12, %v3162_v32  ;;  %v3194_v60 = vsub.f32 %v9261_v16, %v3162_v32 }
 0x9c3   : > { %v3292_v51 = vadd.f32 %v9461_v13, %v9455_v29 }
 0x9c4   : > { %7009 = vpow2.f32 %v3251_v37  ;;  %v3255_v49 = vmul.f32 1.442695, %v3193_v58  ;;  %v3257_v27 = vmul.f32 1.442695, %v3194_v60 }
 0x9c5   : > { %7011 = vpow2.f32 %v3253_v14  ;;  %3293 = vadd.xlane.f32.xlu1 %v3292_v51 }
 0x9c6   : > { %v9467_v38 = vpop.eup %7001  ;;  %7013 = vpow2.f32 %v3255_v49 }
 0x9c7   : > { %v9469_v26 = vpop.eup %7003  ;;  %7015 = vpow2.f32 %v3257_v27  ;;  %v3900_v45 = vpop.xlane.xlu0 %3899 }
 0x9c8   : > { %v9471_v0 = vpop.eup %7005  ;;  %v3946_v12 = vsub.f32 %v9265_v41, %v3900_v45  ;;  %v3947_v16 = vsub.f32 %v9267_v17, %v3900_v45  ;;  %v3295_v4 = vadd.f32 %v9469_v26, %v9467_v38 }
 0x9c9   : > { %v9477_v22 = vpop.eup %7007  ;;  %v3903_v43 = vpop.xlane.xlu1 %3902 }
 0x9ca   : > { %v3978_v52 = vmul.f32 1.442695, %v3946_v12  ;;  %v3980_v31 = vmul.f32 1.442695, %v3947_v16  ;;  %3296 = vadd.xlane.f32.xlu0 %v3295_v4  ;;  %v3948_v59 = vsub.f32 %v9271_v23, %v3903_v43  ;;  %v3949_v44 = vsub.f32 %v9273_v57, %v3903_v43 }
 0x9cb   : > { %v3298_v36 = vadd.f32 %v9477_v22, %v9471_v0 }
 0x9cc   : > { %7017 = vpow2.f32 %v3978_v52  ;;  %v3982_v41 = vmul.f32 1.442695, %v3948_v59  ;;  %v3984_v8 = vmul.f32 1.442695, %v3949_v44 }
 0x9cd   : > { %7019 = vpow2.f32 %v3980_v31  ;;  %3299 = vadd.xlane.f32.xlu1 %v3298_v36 }
 0x9ce   : > { %v9483_v17 = vpop.eup %7009  ;;  %7021 = vpow2.f32 %v3982_v41 }
 0x9cf   : > { %v9485_v34 = vpop.eup %7011  ;;  %7023 = vpow2.f32 %v3984_v8  ;;  %v3906_v32 = vpop.xlane.xlu0 %3905 }
 0x9d0   : > { %v9487_v37 = vpop.eup %7013  ;;  %v3950_v23 = vsub.f32 %v9277_v39, %v3906_v32  ;;  %v3951_v57 = vsub.f32 %v9279_v28, %v3906_v32  ;;  %v3301_v14 = vadd.f32 %v9485_v34, %v9483_v17 }
 0x9d1   : > { %v9493_v58 = vpop.eup %7015  ;;  %v3909_v60 = vpop.xlane.xlu1 %3908 }
 0x9d2   : > { %v3986_v51 = vmul.f32 1.442695, %v3950_v23  ;;  %v3988_v49 = vmul.f32 1.442695, %v3951_v57  ;;  %3302 = vadd.xlane.f32.xlu0 %v3301_v14  ;;  %v3952_v27 = vsub.f32 %v9283_v9, %v3909_v60  ;;  %v3953_v45 = vsub.f32 %v9285_v3, %v3909_v60 }
 0x9d3   : > { %v3304_v12 = vadd.f32 %v9493_v58, %v9487_v37 }
 0x9d4   : > { %7025 = vpow2.f32 %v3986_v51  ;;  %v3990_v39 = vmul.f32 1.442695, %v3952_v27  ;;  %v3992_v16 = vmul.f32 1.442695, %v3953_v45  ;;  %v7305_v51 = vld [vmem:[#allocation4 + $0x38] sm:$0xff] }
 0x9d5   : > { %7027 = vpow2.f32 %v3988_v49  ;;  %3305 = vadd.xlane.f32.xlu1 %v3304_v12  ;;  %v4167_v28 = vpop.permute.xlu1 %4166 }
 0x9d6   : > { %v9499_v4 = vpop.eup %7017  ;;  %7029 = vpow2.f32 %v3990_v39  ;;  %6326 = vmatpush3.bf16.msra.mxu1 %v4167_v28 }
 0x9d7   : > { %v9501_v43 = vpop.eup %7019  ;;  %7031 = vpow2.f32 %v3992_v16  ;;  %v3912_v52 = vpop.xlane.xlu0 %3911 }
 0x9d8   : > { %v9503_v9 = vpop.eup %7021  ;;  %v3954_v3 = vsub.f32 %v9289_v53, %v3912_v52  ;;  %v3955_v31 = vsub.f32 %v9291_v1, %v3912_v52  ;;  %v4042_v59 = vadd.f32 %v9501_v43, %v9499_v4 }
 0x9d9   : > { %v9509_v44 = vpop.eup %7023 }
 0x9da   : > { %v3994_v36 = vmul.f32 1.442695, %v3954_v3  ;;  %v3996_v41 = vmul.f32 1.442695, %v3955_v31  ;;  %4043 = vadd.xlane.f32.xlu0 %v4042_v59  ;;  %v4045_v8 = vadd.f32 %v9509_v44, %v9503_v9 }
 0x9dc   : > { %7033 = vpow2.f32 %v3994_v36 }
 0x9dd   : > { %7035 = vpow2.f32 %v3996_v41 }
 0x9de   : > { %v9513_v32 = vpop.eup %7025  ;;  %4046 = vadd.xlane.f32.xlu0 %v4045_v8 }
 0x9df   : > { %v9515_v23 = vpop.eup %7027  ;;  %v3918_v45 = vpop.xlane.xlu0 %3917 }
 0x9e0   : > { %v9517_v53 = vpop.eup %7029  ;;  %v4048_v1 = vadd.f32 %v9515_v23, %v9513_v32  ;;  %v3958_v59 = vsub.f32 %v9301_v5, %v3918_v45  ;;  %v3959_v36 = vsub.f32 %v9303_v56, %v3918_v45  ;;  %v10641_v5 = vld [vmem:[#allocation20_spill] sm:$0xff]  ;;  %v10642_v56 = vld [vmem:[#allocation37_spill] sm:$0xff] }
 0x9e1   : > { %v9521_v57 = vpop.eup %7031 }
 0x9e2   : > { %4049 = vadd.xlane.f32.xlu0 %v4048_v1  ;;  %v4051_v14 = vadd.f32 %v9521_v57, %v9517_v53  ;;  %v10640_v1 = vld [vmem:[#allocation38_spill] sm:$0xff] }
 0x9e6   : > { %v9525_v60 = vpop.eup %7033  ;;  %4168 = vrot.lane.b32.xlu1 %v7305_v51, %s7424_s21  ;;  %4052 = vadd.xlane.f32.xlu0 %v4051_v14 }
 0x9e7   : > { %10637 = vst [vmem:[#allocation33_spill] sm:$0xff] %v9525_v60  ;;  %v9528_v49 = vpop.eup %7035  ;;  %v3924_v12 = vpop.xlane.xlu0 %3923 }
 0x9e8   : > { %v4054_v27 = vadd.f32 %v9528_v49, %v9525_v60  ;;  %v3962_v39 = vsub.f32 %v9315_v54, %v3924_v12  ;;  %v3963_v16 = vsub.f32 %v9317_v2, %v3924_v12  ;;  %v4002_v2 = vmul.f32 1.442695, %v3958_v59 }
 0x9e9   : > { %v4004_v12 = vmul.f32 1.442695, %v3959_v36 }
 0x9ea   : > { %4055 = vadd.xlane.f32.xlu0 %v4054_v27  ;;  %v4010_v28 = vmul.f32 1.442695, %v3962_v39  ;;  %v4012_v52 = vmul.f32 1.442695, %v3963_v16 }
 0x9ec   : > { %7037 = vpow2.f32 %v4010_v28 }
 0x9ed   : > { %7039 = vpow2.f32 %v4012_v52 }
 0x9ef   : > { %v9544_v39 = vpop.xlane.xlu0 %3929 }
 0x9f6   : > { %v9534_v3 = vpop.eup %7037 }
 0x9f7   : > { %10638 = vst [vmem:[#allocation25_spill] sm:$0xff] %v9534_v3  ;;  %v9536_v31 = vpop.eup %7039  ;;  %v9548_v52 = vpop.xlane.xlu0 %3935 }
 0x9f8   : > { %10639 = vst [vmem:[#allocation27_spill] sm:$0xff] %v9536_v31  ;;  %v4066_v54 = vadd.f32 %v9536_v31, %v9534_v3  ;;  %v10648_v31 = vld [vmem:[#allocation23_spill] sm:$0xff] }
 0xa01   : > { %v3945_v36 = vpop.xlane.xlu0 %3944 }
 0xa06   : > { %v3915_v41 = vpop.xlane.xlu1 %3914 }
 0xa07   : > { %v3956_v8 = vsub.f32 %v9295_v18, %v3915_v41  ;;  %v3957_v14 = vsub.f32 %v10640_v1, %v3915_v41  ;;  %v10643_v1 = vld [vmem:[#allocation44_spill] sm:$0xff] }
 0xa09   : > { %v3998_v51 = vmul.f32 1.442695, %v3956_v8  ;;  %v4000_v27 = vmul.f32 1.442695, %v3957_v14 }
 0xa0a   : > { %4067 = vadd.xlane.f32.xlu1 %v4066_v54  ;;  %v3921_v16 = vpop.xlane.xlu1 %3920  ;;  %v10644_v54 = vld [vmem:[#allocation43_spill] sm:$0xff] }
 0xa0b   : > { %7041 = vpow2.f32 %v3998_v51  ;;  %v3960_v28 = vsub.f32 %v10641_v5, %v3921_v16  ;;  %v3961_v45 = vsub.f32 %v10642_v56, %v3921_v16 }
 0xa0c   : > { %7043 = vpow2.f32 %v4000_v27  ;;  %v3976_v27 = vsub.f32 %v9357_v7, %v3945_v36 }
 0xa0d   : > { %7045 = vpow2.f32 %v4002_v2  ;;  %v4006_v18 = vmul.f32 1.442695, %v3960_v28  ;;  %v4008_v41 = vmul.f32 1.442695, %v3961_v45  ;;  %v10645_v28 = vld [vmem:[#allocation22_spill] sm:$0xff] }
 0xa0e   : > { %7047 = vpow2.f32 %v4004_v12  ;;  %v9550_v59 = vpop.xlane.xlu1 %3926  ;;  %v3977_v56 = vsub.f32 %v10645_v28, %v3945_v36  ;;  %v4038_v7 = vmul.f32 1.442695, %v3976_v27 }
 0xa0f   : > { %7049 = vpow2.f32 %v4006_v18  ;;  %v10647_v18 = vld [vmem:[#allocation46_spill] sm:$0xff] }
 0xa10   : > { %7051 = vpow2.f32 %v4008_v41  ;;  %v4040_v60 = vmul.f32 1.442695, %v3977_v56 }
 0xa12   : > { %v3933_v8 = vpop.xlane.xlu1 %3932 }
 0xa13   : > { %v3968_v14 = vsub.f32 %v10643_v1, %v3933_v8  ;;  %v3969_v51 = vsub.f32 %v10644_v54, %v3933_v8 }
 0xa15   : > { %v9554_v5 = vpop.eup %7041  ;;  %v4022_v2 = vmul.f32 1.442695, %v3968_v14  ;;  %v4024_v16 = vmul.f32 1.442695, %v3969_v51 }
 0xa16   : > { %v9557_v12 = vpop.eup %7043  ;;  %v3939_v45 = vpop.xlane.xlu1 %3938 }
 0xa17   : > { %v9560_v3 = vpop.eup %7045  ;;  %7053 = vpow2.f32 %v4022_v2  ;;  %v3972_v41 = vsub.f32 %v10647_v18, %v3939_v45  ;;  %v3973_v1 = vsub.f32 %v10648_v31, %v3939_v45  ;;  %v4057_v8 = vadd.f32 %v9557_v12, %v9554_v5 }
 0xa18   : > { %10646 = vst [vmem:[#allocation24_spill] sm:$0xff] %v9560_v3  ;;  %v9566_v54 = vpop.eup %7047  ;;  %7055 = vpow2.f32 %v4024_v16 }
 0xa19   : > { %v4030_v14 = vmul.f32 1.442695, %v3972_v41  ;;  %v4032_v51 = vmul.f32 1.442695, %v3973_v1  ;;  %4058 = vadd.xlane.f32.xlu0 %v4057_v8  ;;  %v9568_v36 = vpop.eup %7049  ;;  %v4060_v2 = vadd.f32 %v9566_v54, %v9560_v3 }
 0xa1a   : > { %v9572_v28 = vpop.eup %7051  ;;  %v9586_v41 = vpop.xlane.xlu1 %3941 }
 0xa1b   : > { %7057 = vpow2.f32 %v4030_v14  ;;  %v4063_v31 = vadd.f32 %v9572_v28, %v9568_v36 }
 0xa1c   : > { %7059 = vpow2.f32 %v4032_v51 }
 0xa1d   : > { %7061 = vpow2.f32 %v4038_v7  ;;  %4061 = vadd.xlane.f32.xlu0 %v4060_v2 }
 0xa1e   : > { %7063 = vpow2.f32 %v4040_v60 }
 0xa21   : > { %v9576_v27 = vpop.eup %7053  ;;  %4064 = vadd.xlane.f32.xlu0 %v4063_v31 }
 0xa22   : > { %10649 = vst [vmem:[#allocation31_spill] sm:$0xff] %v9576_v27  ;;  %v9578_v16 = vpop.eup %7055 }
 0xa23   : > { %10650 = vst [vmem:[#allocation26_spill] sm:$0xff] %v9578_v16  ;;  %v4075_v56 = vadd.f32 %v9578_v16, %v9576_v27 }
 0xa25   : > { %v9582_v45 = vpop.eup %7057  ;;  %4076 = vadd.xlane.f32.xlu1 %v4075_v56 }
 0xa26   : > { %10651 = vst [vmem:[#allocation35_spill] sm:$0xff] %v9582_v45  ;;  %v9584_v18 = vpop.eup %7059 }
 0xa27   : > { %10652 = vst [vmem:[#allocation29_spill] sm:$0xff] %v9584_v18  ;;  %v9588_v1 = vpop.eup %7061  ;;  %v3261_v60 = vpop.xlane.xlu0 %3260  ;;  %v4081_v8 = vadd.f32 %v9584_v18, %v9582_v45 }
 0xa28   : > { %10653 = vst [vmem:[#allocation32_spill] sm:$0xff] %v9588_v1  ;;  %v9592_v7 = vpop.eup %7063  ;;  %7065 = vrcp.f32 %v3261_v60 }
 0xa29   : > { %10654 = vst [vmem:[#allocation28_spill] sm:$0xff] %v9592_v7  ;;  %4082 = vadd.xlane.f32.xlu1 %v4081_v8  ;;  %v4087_v51 = vadd.f32 %v9592_v7, %v9588_v1 }
 0xa2a   : > { %v3264_v14 = vpop.xlane.xlu1 %3263 }
 0xa2b   : > { %7067 = vrcp.f32 %v3264_v14  ;;  %v7306_v14 = vld [vmem:[#allocation4 + $0x78] sm:$0xff] }
 0xa2d   : > { %4088 = vadd.xlane.f32.xlu1 %v4087_v51 }
 0xa2f   : > { %v3267_v2 = vpop.xlane.xlu0 %3266 }
 0xa30   : > { %7069 = vrcp.f32 %v3267_v2 }
 0xa32   : > { %v7066_v31 = vpop.eup %7065 }
 0xa33   : > { %v3270_v56 = vpop.xlane.xlu1 %3269  ;;  %v3323_v16 = vmul.f32 %v7066_v31, %v9371_v10  ;;  %v3324_v18 = vmul.f32 %v7066_v31, %v9373_v63  ;;  %v10655_v10 = vld [vmem:[#allocation40_spill] sm:$0xff]  ;;  %v10656_v63 = vld [vmem:[#allocation39_spill] sm:$0xff] }
 0xa34   : > { %7071 = vrcp.f32 %v3270_v56  ;;  %v3965_v31 = vsub.f32 %v10656_v63, %v9550_v59 }
 0xa35   : > { %v7068_v27 = vpop.eup %7067 }
 0xa36   : > { %v3325_v45 = vmul.f32 %v7068_v27, %v9375_v15  ;;  %v3326_v60 = vmul.f32 %v7068_v27, %v9381_v48  ;;  %v3964_v15 = vsub.f32 %v10655_v10, %v9550_v59  ;;  %v4016_v3 = vmul.f32 1.442695, %v3965_v31 }
 0xa37   : > { %v3273_v8 = vpop.xlane.xlu0 %3272  ;;  %4184 = vrot.lane.b32.xlu0 %v7306_v14, %s7424_s21 }
 0xa38   : > { %v3356_v1 = vpack.c.bf16 %v3326_v60, %v3324_v18  ;;  %v3355_v51 = vpack.c.bf16 %v3325_v45, %v3323_v16  ;;  %7073 = vrcp.f32 %v3273_v8  ;;  %v10657_v18 = vld [vmem:[#allocation42_spill] sm:$0xff]  ;;  %v10658_v60 = vld [vmem:[#allocation41_spill] sm:$0xff]  ;;  %v4014_v10 = vmul.f32 1.442695, %v3964_v15  ;;  %v10660_v15 = vld [vmem:[#allocation47_spill] sm:$0xff] }
 0xa39   : > { %v3967_v8 = vsub.f32 %v10658_v60, %v9544_v39 }
 0xa3a   : > { %3451 = vmatprep.mubr.bf16.mxu0 %v3356_v1  ;;  %v3276_v2 = vpop.xlane.xlu1 %3275  ;;  %v7070_v56 = vpop.eup %7069  ;;  %v3966_v1 = vsub.f32 %v10657_v18, %v9544_v39 }
 0xa3b   : > { %7075 = vrcp.f32 %v3276_v2  ;;  %3452 = vmatmul.mubr.bf16.vlgmr.msra.gmra.mrb[96].mxu0 %v3355_v51  ;;  %v3328_v27 = vmul.f32 %v7070_v56, %v9389_v11  ;;  %v3327_v16 = vmul.f32 %v7070_v56, %v9387_v33 }
 0xa3c   : > { %v4018_v11 = vmul.f32 1.442695, %v3966_v1 }
 0xa3e   : > { %v7072_v7 = vpop.eup %7071 }
 0xa3f   : > { %v3279_v48 = vpop.xlane.xlu0 %3278  ;;  %v3330_v14 = vmul.f32 %v7072_v7, %v9399_v21  ;;  %v3329_v45 = vmul.f32 %v7072_v7, %v9395_v24  ;;  %v4020_v21 = vmul.f32 1.442695, %v3967_v8  ;;  %v10659_v24 = vld [vmem:[#allocation45_spill] sm:$0xff] }
 0xa40   : > { %7077 = vrcp.f32 %v3279_v48  ;;  %v3970_v7 = vsub.f32 %v10659_v24, %v9548_v52 }
 0xa41   : > { %v3358_v51 = vpack.c.bf16 %v3330_v14, %v3328_v27  ;;  %v3357_v2 = vpack.c.bf16 %v3329_v45, %v3327_v16  ;;  %v3971_v27 = vsub.f32 %v10660_v15, %v9548_v52  ;;  %v10661_v14 = vld [vmem:[#allocation21_spill] sm:$0xff] }
 0xa42   : > { %v3282_v59 = vpop.xlane.xlu1 %3281  ;;  %v7074_v63 = vpop.eup %7073  ;;  %v3974_v16 = vsub.f32 %v10661_v14, %v9586_v41  ;;  %v4026_v1 = vmul.f32 1.442695, %v3970_v7 }
 0xa43   : > { %7079 = vrcp.f32 %v3282_v59  ;;  %3459 = vmatprep.mubr.bf16.mxu0 %v3358_v51  ;;  %v3332_v56 = vmul.f32 %v7074_v63, %v9405_v35  ;;  %v3331_v18 = vmul.f32 %v7074_v63, %v9403_v6  ;;  %v10662_v35 = vld [vmem:[#allocation30_spill] sm:$0xff]  ;;  %v4028_v52 = vmul.f32 1.442695, %v3971_v27 }
 0xa44   : > { %3460 = vmatmul.mubr.bf16.gmra.mrb[100].mxu0 %v3357_v2  ;;  %7081 = vpow2.f32 %v4014_v10 }
 0xa45   : > { %v7076_v33 = vpop.eup %7075  ;;  %7083 = vpow2.f32 %v4016_v3  ;;  %v4034_v3 = vmul.f32 1.442695, %v3974_v16 }
 0xa46   : > { %v3334_v39 = vmul.f32 %v7076_v33, %v9413_v47  ;;  %v3333_v48 = vmul.f32 %v7076_v33, %v9407_v40  ;;  %7085 = vpow2.f32 %v4018_v11  ;;  %v3975_v47 = vsub.f32 %v10662_v35, %v9586_v41 }
 0xa47   : > { %v3285_v31 = vpop.xlane.xlu0 %3284 }
 0xa48   : > { %v3360_v45 = vpack.c.bf16 %v3334_v39, %v3332_v56  ;;  %7087 = vrcp.f32 %v3285_v31  ;;  %v3359_v60 = vpack.c.bf16 %v3333_v48, %v3331_v18  ;;  %v4036_v2 = vmul.f32 1.442695, %v3975_v47 }
 0xa49   : > { %7089 = vpow2.f32 %v4020_v21 }
 0xa4a   : > { %3467 = vmatprep.mubr.bf16.mxu0 %v3360_v45  ;;  %v3288_v40 = vpop.xlane.xlu1 %3287  ;;  %v7078_v8 = vpop.eup %7077 }
 0xa4b   : > { %7091 = vrcp.f32 %v3288_v40  ;;  %v3336_v10 = vmul.f32 %v7078_v8, %v9421_v25  ;;  %v3335_v33 = vmul.f32 %v7078_v8, %v9419_v30 }
 0xa4c   : > { %3468 = vmatmul.mubr.bf16.gmra.mrb[104].mxu0 %v3359_v60  ;;  %7093 = vpow2.f32 %v4026_v1 }
 0xa4d   : > { %v7080_v51 = vpop.eup %7079  ;;  %7095 = vpow2.f32 %v4028_v52 }
 0xa4e   : > { %v3338_v6 = vmul.f32 %v7080_v51, %v9429_v19  ;;  %v3337_v59 = vmul.f32 %v7080_v51, %v9423_v62  ;;  %v9628_v41 = vpop.eup %7081  ;;  %7097 = vpow2.f32 %v4034_v3 }
 0xa4f   : > { %v3291_v63 = vpop.xlane.xlu0 %3290  ;;  %v9631_v21 = vpop.eup %7083 }
 0xa50   : > { %v3362_v11 = vpack.c.bf16 %v3338_v6, %v3336_v10  ;;  %7099 = vrcp.f32 %v3291_v63  ;;  %v9633_v24 = vpop.eup %7085  ;;  %v3361_v7 = vpack.c.bf16 %v3337_v59, %v3335_v33  ;;  %v4069_v56 = vadd.f32 %v9631_v21, %v9628_v41 }
 0xa51   : > { %7101 = vpow2.f32 %v4036_v2 }
 0xa52   : > { %3475 = vmatprep.mubr.bf16.mxu0 %v3362_v11  ;;  %v3294_v25 = vpop.xlane.xlu1 %3293  ;;  %v7088_v19 = vpop.eup %7087 }
 0xa53   : > { %7103 = vrcp.f32 %v3294_v25  ;;  %v9635_v62 = vpop.eup %7089  ;;  %v3340_v30 = vmul.f32 %v7088_v19, %v9437_v46  ;;  %v3339_v45 = vmul.f32 %v7088_v19, %v9435_v55 }
 0xa54   : > { %3476 = vmatmul.mubr.bf16.gmra.mrb[108].mxu0 %v3361_v7  ;;  %v4072_v16 = vadd.f32 %v9635_v62, %v9633_v24 }
 0xa55   : > { %v7092_v39 = vpop.eup %7091 }
 0xa56   : > { %4070 = vadd.xlane.f32.xlu0 %v4069_v56  ;;  %v3342_v48 = vmul.f32 %v7092_v39, %v9445_v20  ;;  %v3341_v15 = vmul.f32 %v7092_v39, %v9439_v50  ;;  %v9642_v27 = vpop.eup %7093 }
 0xa57   : > { %v3297_v31 = vpop.xlane.xlu0 %3296  ;;  %v9647_v18 = vpop.eup %7095 }
 0xa58   : > { %v3364_v14 = vpack.c.bf16 %v3342_v48, %v3340_v30  ;;  %7105 = vrcp.f32 %v3297_v31  ;;  %v9649_v1 = vpop.eup %7097  ;;  %v3363_v20 = vpack.c.bf16 %v3341_v15, %v3339_v45  ;;  %v4078_v47 = vadd.f32 %v9647_v18, %v9642_v27 }
 0xa5a   : > { %3483 = vmatprep.mubr.bf16.mxu0 %v3364_v14  ;;  %v3300_v46 = vpop.xlane.xlu1 %3299  ;;  %4073 = vadd.xlane.f32.xlu0 %v4072_v16  ;;  %v7100_v35 = vpop.eup %7099 }
 0xa5b   : > { %7107 = vrcp.f32 %v3300_v46  ;;  %v9651_v50 = vpop.eup %7101  ;;  %v3344_v55 = vmul.f32 %v7100_v35, %v9453_v61  ;;  %v3343_v2 = vmul.f32 %v7100_v35, %v9451_v42  ;;  %v10663_v46 = vld [vmem:[#allocation19_spill] sm:$0xff] }
 0xa5c   : > { %3484 = vmatmul.mubr.bf16.gmra.mrb[112].mxu0 %v3363_v20  ;;  %v4084_v51 = vadd.f32 %v9651_v50, %v9649_v1  ;;  %v3524_v20 = vrot.slane %v10663_v46, 2 }
 0xa5d   : > { %v7104_v40 = vpop.eup %7103 }
 0xa5e   : > { %4079 = vadd.xlane.f32.xlu0 %v4078_v47  ;;  %v3346_v60 = vmul.f32 %v7104_v40, %v9461_v13  ;;  %v3345_v8 = vmul.f32 %v7104_v40, %v9455_v29  ;;  %6670 = vmatprep.subr.msk.bf16.mxu0 %vm2657_vm7, %v3524_v20  ;;  %v3550_v35 = vsel %vm2657_vm7, %v3524_v20, 0 }
 0xa5f   : > { %v3303_v52 = vpop.xlane.xlu0 %3302  ;;  %6502 = vmatpush3.bf16.msra.mxu0 %v3550_v35 }
 0xa60   : > { %v3366_v3 = vpack.c.bf16 %v3346_v60, %v3344_v55  ;;  %7109 = vrcp.f32 %v3303_v52  ;;  %v3365_v6 = vpack.c.bf16 %v3345_v8, %v3343_v2 }
 0xa62   : > { %3491 = vmatprep.mubr.bf16.mxu0 %v3366_v3  ;;  %v3306_v10 = vpop.xlane.xlu1 %3305  ;;  %4085 = vadd.xlane.f32.xlu0 %v4084_v51  ;;  %v7106_v59 = vpop.eup %7105 }
 0xa63   : > { %7111 = vrcp.f32 %v3306_v10  ;;  %v3348_v13 = vmul.f32 %v7106_v59, %v9469_v26  ;;  %v3347_v25 = vmul.f32 %v7106_v59, %v9467_v38 }
 0xa64   : > { %3492 = vmatmul.mubr.bf16.gmra.mrb[116].mxu0 %v3365_v6 }
 0xa65   : > { %v7108_v61 = vpop.eup %7107 }
 0xa66   : > { %v3350_v29 = vmul.f32 %v7108_v61, %v9477_v22  ;;  %v3349_v63 = vmul.f32 %v7108_v61, %v9471_v0  ;;  %v4169_v8 = vpop.permute.xlu1 %4168 }
 0xa67   : > { %v4044_v11 = vpop.xlane.xlu0 %4043 }
 0xa68   : > { %v3368_v33 = vpack.c.bf16 %v3350_v29, %v3348_v13  ;;  %7113 = vrcp.f32 %v4044_v11  ;;  %v3367_v42 = vpack.c.bf16 %v3349_v63, %v3347_v25 }
 0xa6a   : > { %3499 = vmatprep.mubr.bf16.mxu0 %v3368_v33  ;;  %v7110_v7 = vpop.eup %7109  ;;  %v10664_v33 = vld [vmem:[#allocation33_spill] sm:$0xff] }
 0xa6b   : > { %v4047_v19 = vpop.xlane.xlu0 %4046  ;;  %v3352_v39 = vmul.f32 %v7110_v7, %v9485_v34  ;;  %v3351_v0 = vmul.f32 %v7110_v7, %v9483_v17 }
 0xa6c   : > { %7115 = vrcp.f32 %v4047_v19  ;;  %3500 = vmatmul.mubr.bf16.gmra.mrb[120].mxu0 %v3367_v42 }
 0xa6d   : > { %v7112_v56 = vpop.eup %7111 }
 0xa6e   : > { %v3354_v26 = vmul.f32 %v7112_v56, %v9493_v58  ;;  %v3353_v22 = vmul.f32 %v7112_v56, %v9487_v37 }
 0xa6f   : > { %v4050_v37 = vpop.xlane.xlu0 %4049 }
 0xa70   : > { %v3370_v30 = vpack.c.bf16 %v3354_v26, %v3352_v39  ;;  %v3369_v48 = vpack.c.bf16 %v3353_v22, %v3351_v0 }
 0xa72   : > { %3507 = vmatprep.mubr.bf16.mxu0 %v3370_v30  ;;  %v7114_v38 = vpop.eup %7113 }
 0xa73   : > { %v4106_v31 = vmul.f32 %v7114_v38, %v9499_v4  ;;  %v4107_v16 = vmul.f32 %v7114_v38, %v9501_v43  ;;  %v4053_v17 = vpop.xlane.xlu0 %4052 }
 0xa74   : > { %3508 = vmatmul.mubr.bf16.gmra.mrb[124].mxu0 %v3369_v48  ;;  %7117 = vrcp.f32 %v4053_v17  ;;  %v10668_v17 = vld [vmem:[#allocation26_spill] sm:$0xff] }
 0xa75   : > { %7119 = vrcp.f32 %v4050_v37 }
 0xa76   : > { %v7116_v15 = vpop.eup %7115 }
 0xa77   : > { %v4108_v14 = vmul.f32 %v7116_v15, %v9503_v9  ;;  %v4109_v34 = vmul.f32 %v7116_v15, %v9509_v44  ;;  %v4056_v47 = vpop.xlane.xlu0 %4055  ;;  %v10667_v15 = vld [vmem:[#allocation25_spill] sm:$0xff] }
 0xa79   : > { %v4139_v45 = vpack.c.bf16 %v4109_v34, %v4107_v16  ;;  %v4138_v58 = vpack.c.bf16 %v4108_v14, %v4106_v31 }
 0xa7b   : > { %4234 = vmatprep.mubr.bf16.mxu1 %v4139_v45 }
 0xa7e   : > { %v7118_v44 = vpop.eup %7117 }
 0xa7f   : > { %v7120_v40 = vpop.eup %7119  ;;  %v4113_v60 = vmul.f32 %v7118_v44, %v9521_v57  ;;  %v4112_v10 = vmul.f32 %v7118_v44, %v9517_v53 }
 0xa80   : > { %v4111_v52 = vmul.f32 %v7120_v40, %v9515_v23  ;;  %v4110_v59 = vmul.f32 %v7120_v40, %v9513_v32  ;;  %v10670_v40 = vld [vmem:[#allocation29_spill] sm:$0xff] }
 0xa82   : > { %v4141_v3 = vpack.c.bf16 %v4113_v60, %v4111_v52  ;;  %v4140_v61 = vpack.c.bf16 %v4112_v10, %v4110_v59 }
 0xa97   : > { %v4068_v56 = vpop.xlane.xlu1 %4067 }
 0xaa6   : > { %v4059_v4 = vpop.xlane.xlu0 %4058 }
 0xaa7   : > { %7121 = vrcp.f32 %v4059_v4 }
 0xaa8   : > { %7123 = vrcp.f32 %v4056_v47 }
 0xaaa   : > { %v4062_v9 = vpop.xlane.xlu0 %4061 }
 0xaae   : > { %v4065_v43 = vpop.xlane.xlu0 %4064 }
 0xaaf   : > { %7125 = vrcp.f32 %v4065_v43  ;;  %v10669_v43 = vld [vmem:[#allocation31_spill] sm:$0xff] }
 0xab0   : > { %7127 = vrcp.f32 %v4062_v9 }
 0xab1   : > { %v7122_v51 = vpop.eup %7121  ;;  %7129 = vrcp.f32 %v4068_v56 }
 0xab2   : > { %v4185_v55 = vpop.permute.xlu0 %4184  ;;  %v7124_v2 = vpop.eup %7123  ;;  %v4117_v6 = vmul.f32 %v7122_v51, %v9557_v12  ;;  %v4116_v63 = vmul.f32 %v7122_v51, %v9554_v5 }
 0xab3   : > { %6327 = vmatprep.subr.bf16.mxu1 %v4185_v55  ;;  %v4115_v57 = vmul.f32 %v7124_v2, %v9528_v49  ;;  %v4114_v25 = vmul.f32 %v7124_v2, %v10664_v33  ;;  %v10665_v49 = vld [vmem:[#allocation24_spill] sm:$0xff]  ;;  %v4077_v39 = vpop.xlane.xlu1 %4076  ;;  %v10671_v2 = vld [vmem:[#allocation35_spill] sm:$0xff] }
 0xab4   : > { %6328 = vmatpush3.bf16.msra.mxu1 %v4169_v8 }
 0xab5   : > { %v4143_v13 = vpack.c.bf16 %v4117_v6, %v4115_v57  ;;  %v4142_v42 = vpack.c.bf16 %v4116_v63, %v4114_v25 }
 0xab7   : > { %4235 = vmatmul.mubr.bf16.vlgmr.msra.gmra.mrb[128].mxu1 %v4138_v58  ;;  %v4083_v26 = vpop.xlane.xlu1 %4082 }
 0xab8   : > { %4242 = vmatprep.mubr.bf16.mxu1 %v4141_v3 }
 0xab9   : > { %v7126_v29 = vpop.eup %7125 }
 0xaba   : > { %v7128_v23 = vpop.eup %7127  ;;  %v4121_v11 = vmul.f32 %v7126_v29, %v9572_v28  ;;  %v4120_v32 = vmul.f32 %v7126_v29, %v9568_v36  ;;  %v10666_v36 = vld [vmem:[#allocation27_spill] sm:$0xff] }
 0xabb   : > { %v4119_v53 = vmul.f32 %v7128_v23, %v9566_v54  ;;  %v4118_v7 = vmul.f32 %v7128_v23, %v10665_v49  ;;  %v7130_v22 = vpop.eup %7129  ;;  %v4089_v34 = vpop.xlane.xlu1 %4088 }
 0xabc   : > { %v4123_v48 = vmul.f32 %v7130_v22, %v10666_v36  ;;  %v4122_v31 = vmul.f32 %v7130_v22, %v10667_v15 }
 0xabd   : > { %v4145_v12 = vpack.c.bf16 %v4121_v11, %v4119_v53  ;;  %v4144_v19 = vpack.c.bf16 %v4120_v32, %v4118_v7  ;;  %v4307_v53 = vrot.slane %v10663_v46, 3 }
 0xabf   : > { %4243 = vmatmul.mubr.bf16.gmra.mrb[132].mxu1 %v4140_v61  ;;  %v10673_v61 = vld [vmem:[#allocation32_spill] sm:$0xff]  ;;  %6679 = vmatprep.subr.msk.bf16.mxu0 %vm2657_vm7, %v4307_v53  ;;  %v4333_v56 = vsel %vm2657_vm7, %v4307_v53, 0 }
 0xac0   : > { %4250 = vmatprep.mubr.bf16.mxu1 %v4143_v13 }
 0xac7   : > { %4251 = vmatmul.mubr.bf16.gmra.mrb[136].mxu1 %v4142_v42 }
 0xac8   : > { %4258 = vmatprep.mubr.bf16.mxu1 %v4145_v12 }
 0xacf   : > { %4259 = vmatmul.mubr.bf16.gmra.mrb[140].mxu1 %v4144_v19 }
 0xae3   : > { %v4071_v5 = vpop.xlane.xlu0 %4070 }
 0xae4   : > { %7131 = vrcp.f32 %v4071_v5 }
 0xae5   : > { %7133 = vrcp.f32 %v4077_v39 }
 0xae7   : > { %v4074_v28 = vpop.xlane.xlu0 %4073 }
 0xae8   : > { %7135 = vrcp.f32 %v4074_v28 }
 0xae9   : > { %7137 = vrcp.f32 %v4083_v26 }
 0xaeb   : > { %v4080_v54 = vpop.xlane.xlu0 %4079 }
 0xaec   : > { %7139 = vrcp.f32 %v4080_v54 }
 0xaee   : > { %v7132_v30 = vpop.eup %7131 }
 0xaef   : > { %v4086_v0 = vpop.xlane.xlu0 %4085  ;;  %v4125_v38 = vmul.f32 %v7132_v30, %v9631_v21  ;;  %v4124_v14 = vmul.f32 %v7132_v30, %v9628_v41  ;;  %v7134_v16 = vpop.eup %7133 }
 0xaf0   : > { %7141 = vrcp.f32 %v4086_v0  ;;  %v4129_v35 = vmul.f32 %v7134_v16, %v10668_v17  ;;  %v4128_v44 = vmul.f32 %v7134_v16, %v10669_v43 }
 0xaf1   : > { %v4147_v45 = vpack.c.bf16 %v4125_v38, %v4123_v48  ;;  %v4146_v58 = vpack.c.bf16 %v4124_v14, %v4122_v31  ;;  %7143 = vrcp.f32 %v4089_v34 }
 0xaf2   : > { %v7136_v37 = vpop.eup %7135 }
 0xaf3   : > { %4266 = vmatprep.mubr.bf16.mxu1 %v4147_v45  ;;  %v4127_v20 = vmul.f32 %v7136_v37, %v9635_v62  ;;  %v7138_v47 = vpop.eup %7137  ;;  %v4126_v9 = vmul.f32 %v7136_v37, %v9633_v24  ;;  %v10672_v24 = vld [vmem:[#allocation28_spill] sm:$0xff] }
 0xaf4   : > { %4267 = vmatmul.mubr.bf16.gmra.mrb[144].mxu1 %v4146_v58  ;;  %v4133_v55 = vmul.f32 %v7138_v47, %v10670_v40  ;;  %v4132_v10 = vmul.f32 %v7138_v47, %v10671_v2 }
 0xaf5   : > { %v4149_v4 = vpack.c.bf16 %v4129_v35, %v4127_v20  ;;  %v4148_v60 = vpack.c.bf16 %v4128_v44, %v4126_v9 }
 0xaf6   : > { %v7140_v21 = vpop.eup %7139 }
 0xaf7   : > { %4274 = vmatprep.mubr.bf16.mxu1 %v4149_v4  ;;  %v4131_v41 = vmul.f32 %v7140_v21, %v9647_v18  ;;  %v4130_v3 = vmul.f32 %v7140_v21, %v9642_v27 }
 0xaf9   : > { %v4151_v8 = vpack.c.bf16 %v4133_v55, %v4131_v41  ;;  %v4150_v59 = vpack.c.bf16 %v4132_v10, %v4130_v3 }
 0xafa   : > { %v7142_v52 = vpop.eup %7141 }
 0xafb   : > { %v7144_v62 = vpop.eup %7143  ;;  %v4135_v51 = vmul.f32 %v7142_v52, %v9651_v50  ;;  %v4134_v57 = vmul.f32 %v7142_v52, %v9649_v1 }
 0xafc   : > { %4275 = vmatmul.mubr.bf16.gmra.mrb[148].mxu1 %v4148_v60  ;;  %v4137_v6 = vmul.f32 %v7144_v62, %v10672_v24  ;;  %v4136_v13 = vmul.f32 %v7144_v62, %v10673_v61 }
 0xafd   : > { %4282 = vmatprep.mubr.bf16.mxu1 %v4151_v8 }
 0xafe   : > { %v4153_v18 = vpack.c.bf16 %v4137_v6, %v4135_v51  ;;  %v4152_v29 = vpack.c.bf16 %v4136_v13, %v4134_v57 }
 0xb04   : > { %4283 = vmatmul.mubr.bf16.gmra.mrb[152].mxu1 %v4150_v59 }
 0xb05   : > { %4290 = vmatprep.mubr.bf16.mxu1 %v4153_v18 }
 0xb0c   : > { %4291 = vmatmul.mubr.bf16.gmra.mrb[156].mxu1 %v4152_v29 }
 0xb0e   : > { %v6224_v23 = vpop.f32.mrb[96].mxu0 }
 0xb0f   : > { %v6225_v63 = vpop.f32.mrb[97].mxu0 }
 0xb10   : > { %v6226_v11 = vadd.f32 %v6225_v63, %v6224_v23  ;;  %v6227_v27 = vpop.f32.mrb[98].mxu0 }
 0xb11   : > { %v6228_v33 = vpop.f32.mrb[99].mxu0 }
 0xb12   : > { %v6229_v50 = vadd.f32 %v6228_v33, %v6227_v27 }
 0xb14   : > { %v3516_v25 = vpack.c.bf16 %v6229_v50, %v6226_v11 }
 0xb16   : > { %6503 = vmatprep.mubr.msk.bf16.mxu0 %vm1400_vm5, %v3516_v25 }
 0xb17   : > { %v6230_v42 = vpop.f32.mrb[100].mxu0 }
 0xb18   : > { %v6231_v12 = vpop.f32.mrb[101].mxu0 }
 0xb19   : > { %v6232_v1 = vadd.f32 %v6231_v12, %v6230_v42  ;;  %v6233_v32 = vpop.f32.mrb[102].mxu0 }
 0xb1a   : > { %v6234_v49 = vpop.f32.mrb[103].mxu0 }
 0xb1b   : > { %v6235_v7 = vadd.f32 %v6234_v49, %v6233_v32 }
 0xb1d   : > { %v3517_v19 = vpack.c.bf16 %v6235_v7, %v6232_v1 }
 0xb1f   : > { %v6236_v39 = vpop.f32.mrb[104].mxu0  ;;  %6504 = vmatmul.mubr.msk.bf16.vlgmr.msra.gmra.mrb[80].mxu0 %vm1400_vm5, %v3517_v19 }
 0xb20   : > { %v6237_v5 = vpop.f32.mrb[105].mxu0  ;;  %6520 = vmatpush3.bf16.msra.mxu0 %v4333_v56 }
 0xb21   : > { %v6238_v28 = vadd.f32 %v6237_v5, %v6236_v39  ;;  %v6239_v46 = vpop.f32.mrb[106].mxu0 }
 0xb22   : > { %v6240_v26 = vpop.f32.mrb[107].mxu0 }
 0xb23   : > { %v6241_v54 = vadd.f32 %v6240_v26, %v6239_v46 }
 0xb25   : > { %v3518_v22 = vpack.c.bf16 %v6241_v54, %v6238_v28 }
 0xb27   : > { %v6242_v30 = vpop.f32.mrb[108].mxu0  ;;  %6507 = vmatprep.mubr.msk.bf16.mxu0 %vm1400_vm5, %v3518_v22 }
 0xb28   : > { %v6243_v0 = vpop.f32.mrb[109].mxu0 }
 0xb29   : > { %v6244_v36 = vadd.f32 %v6243_v0, %v6242_v30  ;;  %v6245_v48 = vpop.f32.mrb[110].mxu0 }
 0xb2a   : > { %v6246_v38 = vpop.f32.mrb[111].mxu0 }
 0xb2b   : > { %v6247_v15 = vadd.f32 %v6246_v38, %v6245_v48 }
 0xb2d   : > { %v3519_v31 = vpack.c.bf16 %v6247_v15, %v6244_v36 }
 0xb2f   : > { %v6248_v14 = vpop.f32.mrb[112].mxu0  ;;  %6508 = vmatmul.mubr.msk.bf16.gmra.mrb[84].mxu0 %vm1400_vm5, %v3519_v31 }
 0xb30   : > { %v6249_v16 = vpop.f32.mrb[113].mxu0 }
 0xb31   : > { %v6250_v34 = vadd.f32 %v6249_v16, %v6248_v14  ;;  %v6251_v45 = vpop.f32.mrb[114].mxu0 }
 0xb32   : > { %v6252_v58 = vpop.f32.mrb[115].mxu0 }
 0xb33   : > { %v6253_v37 = vadd.f32 %v6252_v58, %v6251_v45 }
 0xb35   : > { %v3520_v20 = vpack.c.bf16 %v6253_v37, %v6250_v34 }
 0xb37   : > { %v6254_v17 = vpop.f32.mrb[116].mxu0  ;;  %6511 = vmatprep.mubr.msk.bf16.mxu0 %vm1400_vm5, %v3520_v20 }
 0xb38   : > { %v6255_v35 = vpop.f32.mrb[117].mxu0 }
 0xb39   : > { %v6256_v47 = vadd.f32 %v6255_v35, %v6254_v17  ;;  %v6257_v4 = vpop.f32.mrb[118].mxu0 }
 0xb3a   : > { %v6258_v21 = vpop.f32.mrb[119].mxu0 }
 0xb3b   : > { %v6259_v9 = vadd.f32 %v6258_v21, %v6257_v4 }
 0xb3d   : > { %v3521_v41 = vpack.c.bf16 %v6259_v9, %v6256_v47 }
 0xb3f   : > { %v6260_v43 = vpop.f32.mrb[120].mxu0  ;;  %6512 = vmatmul.mubr.msk.bf16.gmra.mrb[88].mxu0 %vm1400_vm5, %v3521_v41 }
 0xb40   : > { %v6261_v44 = vpop.f32.mrb[121].mxu0 }
 0xb41   : > { %v6262_v40 = vadd.f32 %v6261_v44, %v6260_v43  ;;  %v6263_v55 = vpop.f32.mrb[122].mxu0 }
 0xb42   : > { %v6264_v60 = vpop.f32.mrb[123].mxu0 }
 0xb43   : > { %v6265_v8 = vadd.f32 %v6264_v60, %v6263_v55 }
 0xb45   : > { %v3522_v52 = vpack.c.bf16 %v6265_v8, %v6262_v40 }
 0xb47   : > { %v6266_v62 = vpop.f32.mrb[124].mxu0  ;;  %6515 = vmatprep.mubr.msk.bf16.mxu0 %vm1400_vm5, %v3522_v52  ;;  %v9726_v52 = vld [vmem:[%s10419_s7] ss:$0 sm:$0xff] }
 0xb48   : > { %v6267_v3 = vpop.f32.mrb[125].mxu0 }
 0xb49   : > { %v6268_v51 = vadd.f32 %v6267_v3, %v6266_v62  ;;  %v6269_v2 = vpop.f32.mrb[126].mxu0 }
 0xb4a   : > { %v6270_v10 = vpop.f32.mrb[127].mxu0 }
 0xb4b   : > { %v6271_v24 = vadd.f32 %v6270_v10, %v6269_v2 }
 0xb4d   : > { %v3523_v6 = vpack.c.bf16 %v6271_v24, %v6268_v51 }
 0xb4f   : > { %6516 = vmatmul.mubr.msk.bf16.gmra.mrb[92].mxu0 %vm1400_vm5, %v3523_v6  ;;  %v7307_v6 = vld [vmem:[%s7943_s1] sm:$0xff] }
 0xb8a   : > { %v6329_v59 = vpop.f32.mrb[128].mxu1 }
 0xb8b   : > { %v6330_v18 = vpop.f32.mrb[129].mxu1 }
 0xb8c   : > { %v6331_v57 = vadd.f32 %v6330_v18, %v6329_v59  ;;  %v6332_v61 = vpop.f32.mrb[130].mxu1 }
 0xb8d   : > { %v6333_v13 = vpop.f32.mrb[131].mxu1 }
 0xb8e   : > { %v6334_v29 = vadd.f32 %v6333_v13, %v6332_v61  ;;  %v7308_v61 = vld [vmem:[%s7943_s1 + $0x10] sm:$0xff] }
 0xb90   : > { %v4299_v23 = vpack.c.bf16 %v6334_v29, %v6331_v57  ;;  %v7309_v29 = vld [vmem:[%s7943_s1 + $0x8] sm:$0xff] }
 0xb92   : > { %v6335_v63 = vpop.f32.mrb[132].mxu1  ;;  %6521 = vmatprep.mubr.msk.bf16.mxu0 %vm1400_vm5, %v4299_v23 }
 0xb93   : > { %v6336_v11 = vpop.f32.mrb[133].mxu1 }
 0xb94   : > { %v6337_v27 = vadd.f32 %v6336_v11, %v6335_v63  ;;  %v6338_v33 = vpop.f32.mrb[134].mxu1  ;;  %v7310_v11 = vld [vmem:[%s7943_s1 + $0x18] sm:$0xff] }
 0xb95   : > { %v6339_v50 = vpop.f32.mrb[135].mxu1 }
 0xb96   : > { %v6340_v25 = vadd.f32 %v6339_v50, %v6338_v33 }
 0xb98   : > { %v4300_v53 = vpack.c.bf16 %v6340_v25, %v6337_v27 }
 0xb9a   : > { %v6341_v42 = vpop.f32.mrb[136].mxu1  ;;  %6522 = vmatmul.mubr.msk.bf16.vlgmr.msra.gmra.mrb[80].mxu0 %vm1400_vm5, %v4300_v53 }
 0xb9b   : > { %v6342_v12 = vpop.f32.mrb[137].mxu1 }
 0xb9c   : > { %v6343_v1 = vadd.f32 %v6342_v12, %v6341_v42  ;;  %v6344_v32 = vpop.f32.mrb[138].mxu1 }
 0xb9d   : > { %v6345_v49 = vpop.f32.mrb[139].mxu1 }
 0xb9e   : > { %v6346_v7 = vadd.f32 %v6345_v49, %v6344_v32 }
 0xba0   : > { %v4301_v19 = vpack.c.bf16 %v6346_v7, %v6343_v1  ;;  %v7311_v7 = vld [vmem:[%s7943_s1 + $0x20] sm:$0xff] }
 0xba2   : > { %v6347_v56 = vpop.f32.mrb[140].mxu1  ;;  %6525 = vmatprep.mubr.msk.bf16.mxu0 %vm1400_vm5, %v4301_v19 }
 0xba3   : > { %v6348_v39 = vpop.f32.mrb[141].mxu1 }
 0xba4   : > { %v6349_v5 = vadd.f32 %v6348_v39, %v6347_v56  ;;  %v6350_v28 = vpop.f32.mrb[142].mxu1 }
 0xba5   : > { %v6351_v46 = vpop.f32.mrb[143].mxu1 }
 0xba6   : > { %v6352_v26 = vadd.f32 %v6351_v46, %v6350_v28  ;;  %v7313_v46 = vld [vmem:[%s7943_s1 + $0x28] sm:$0xff] }
 0xba8   : > { %v4302_v54 = vpack.c.bf16 %v6352_v26, %v6349_v5  ;;  %v7312_v5 = vld [vmem:[%s7943_s1 + $0x30] sm:$0xff] }
 0xbaa   : > { %6526 = vmatmul.mubr.msk.bf16.gmra.mrb[84].mxu0 %vm1400_vm5, %v4302_v54 }
 0xbc7   : > { %v6353_v22 = vpop.f32.mrb[144].mxu1 }
 0xbc8   : > { %v6354_v30 = vpop.f32.mrb[145].mxu1 }
 0xbc9   : > { %v6355_v0 = vadd.f32 %v6354_v30, %v6353_v22  ;;  %v6356_v36 = vpop.f32.mrb[146].mxu1  ;;  %v7314_v22 = vld [vmem:[%s7943_s1 + $0x38] sm:$0xff] }
 0xbca   : > { %v6357_v48 = vpop.f32.mrb[147].mxu1 }
 0xbcb   : > { %v6358_v38 = vadd.f32 %v6357_v48, %v6356_v36 }
 0xbcd   : > { %v4303_v15 = vpack.c.bf16 %v6358_v38, %v6355_v0 }
 0xbcf   : > { %v6359_v31 = vpop.f32.mrb[148].mxu1  ;;  %6529 = vmatprep.mubr.msk.bf16.mxu0 %vm1400_vm5, %v4303_v15 }
 0xbd0   : > { %v6360_v14 = vpop.f32.mrb[149].mxu1 }
 0xbd1   : > { %v6361_v16 = vadd.f32 %v6360_v14, %v6359_v31  ;;  %v6362_v34 = vpop.f32.mrb[150].mxu1 }
 0xbd2   : > { %v6363_v45 = vpop.f32.mrb[151].mxu1 }
 0xbd3   : > { %v6364_v58 = vadd.f32 %v6363_v45, %v6362_v34  ;;  %v7315_v45 = vld [vmem:[%s7943_s1 + $0x40] sm:$0xff] }
 0xbd5   : > { %v4304_v37 = vpack.c.bf16 %v6364_v58, %v6361_v16 }
 0xbd7   : > { %v6365_v20 = vpop.f32.mrb[152].mxu1  ;;  %6530 = vmatmul.mubr.msk.bf16.gmra.mrb[88].mxu0 %vm1400_vm5, %v4304_v37 }
 0xbd8   : > { %v6366_v17 = vpop.f32.mrb[153].mxu1 }
 0xbd9   : > { %v6367_v35 = vadd.f32 %v6366_v17, %v6365_v20  ;;  %v6368_v47 = vpop.f32.mrb[154].mxu1  ;;  %v7316_v17 = vld [vmem:[%s7943_s1 + $0x50] sm:$0xff] }
 0xbda   : > { %v6369_v4 = vpop.f32.mrb[155].mxu1 }
 0xbdb   : > { %v6370_v21 = vadd.f32 %v6369_v4, %v6368_v47  ;;  %v7317_v47 = vld [vmem:[%s7943_s1 + $0x48] sm:$0xff] }
 0xbdd   : > { %v4305_v9 = vpack.c.bf16 %v6370_v21, %v6367_v35 }
 0xbdf   : > { %v6371_v41 = vpop.f32.mrb[156].mxu1  ;;  %6533 = vmatprep.mubr.msk.bf16.mxu0 %vm1400_vm5, %v4305_v9  ;;  %v7318_v9 = vld [vmem:[%s7943_s1 + $0x58] sm:$0xff] }
 0xbe0   : > { %v6372_v43 = vpop.f32.mrb[157].mxu1 }
 0xbe1   : > { %v6373_v44 = vadd.f32 %v6372_v43, %v6371_v41  ;;  %v6374_v40 = vpop.f32.mrb[158].mxu1 }
 0xbe2   : > { %v6375_v55 = vpop.f32.mrb[159].mxu1 }
 0xbe3   : > { %v6376_v60 = vadd.f32 %v6375_v55, %v6374_v40 }
 0xbe5   : > { %v4306_v8 = vpack.c.bf16 %v6376_v60, %v6373_v44 }
 0xbe7   : > { %6534 = vmatmul.mubr.msk.bf16.gmra.mrb[92].mxu0 %vm1400_vm5, %v4306_v8 }
 0xc6d   : > { %v6523_v62 = vpop.f32.mrb[80].mxu0 }
 0xc6e   : > { %v4369_v3 = vpop.f32.mrb[81].mxu0  ;;  %v4457_v51 = vadd.f32 %v6523_v62, %v9726_v52 }
 0xc6f   : > { %v4455_v2 = vadd.f32 %v9726_v52, %v4369_v3  ;;  %v6524_v10 = vpop.f32.mrb[82].mxu0 }
 0xc70   : > { %v4372_v24 = vpop.f32.mrb[83].mxu0  ;;  %v4458_v18 = vadd.f32 %v6524_v10, %v9726_v52  ;;  %v9736_v13 = vadd.f32 %v7308_v61, %v4457_v51  ;;  %v7321_v61 = vld [vmem:[%s7943_s1 + $0x68] sm:$0xff] }
 0xc71   : > { %v9731_v59 = vadd.f32 %v7307_v6, %v4455_v2  ;;  %v4456_v57 = vadd.f32 %v9726_v52, %v4372_v24  ;;  %v7319_v2 = vld [vmem:[%s7943_s1 + $0x60] sm:$0xff] }
 0xc72   : > { %v9744_v27 = vadd.f32 %v7310_v11, %v4458_v18  ;;  %v4495_v50 = vsel %vm1233_vm6, %v9736_v13, 0.0  ;;  %v7320_v18 = vld [vmem:[%s7943_s1 + $0x70] sm:$0xff]  ;;  %v7322_v11 = vld [vmem:[%s7943_s1 + $0x78] sm:$0xff] }
 0xc73   : > { %v9739_v23 = vadd.f32 %v7309_v29, %v4456_v57  ;;  %v4489_v63 = vsel %vm1233_vm6, %v9731_v59, 0.0 }
 0xc74   : > { %4490 = vadd.xlane.f32.xlu0 %v4489_v63  ;;  %v4498_v25 = vsel %vm1233_vm6, %v9744_v27, 0.0 }
 0xc75   : > { %v4492_v33 = vsel %vm1233_vm6, %v9739_v23, 0.0 }
 0xc76   : > { %4493 = vadd.xlane.f32.xlu1 %v4492_v33 }
 0xc78   : > { %4496 = vadd.xlane.f32.xlu0 %v4495_v50 }
 0xc7a   : > { %4499 = vadd.xlane.f32.xlu1 %v4498_v25 }
 0xc7d   : > { %v6527_v53 = vpop.f32.mrb[84].mxu0 }
 0xc7e   : > { %v4385_v42 = vpop.f32.mrb[85].mxu0  ;;  %v4461_v12 = vadd.f32 %v6527_v53, %v9726_v52 }
 0xc7f   : > { %v4459_v1 = vadd.f32 %v9726_v52, %v4385_v42  ;;  %v6528_v32 = vpop.f32.mrb[86].mxu0 }
 0xc80   : > { %v4388_v49 = vpop.f32.mrb[87].mxu0  ;;  %v4462_v56 = vadd.f32 %v6528_v32, %v9726_v52  ;;  %v9760_v28 = vadd.f32 %v7312_v5, %v4461_v12 }
 0xc81   : > { %v9755_v19 = vadd.f32 %v7311_v7, %v4459_v1  ;;  %v4460_v39 = vadd.f32 %v9726_v52, %v4388_v49 }
 0xc82   : > { %v9768_v30 = vadd.f32 %v7314_v22, %v4462_v56  ;;  %v4507_v36 = vsel %vm1233_vm6, %v9760_v28, 0.0 }
 0xc83   : > { %v9763_v26 = vadd.f32 %v7313_v46, %v4460_v39  ;;  %v4501_v54 = vsel %vm1233_vm6, %v9755_v19, 0.0 }
 0xc84   : > { %4502 = vadd.xlane.f32.xlu0 %v4501_v54  ;;  %v4510_v48 = vsel %vm1233_vm6, %v9768_v30, 0.0 }
 0xc85   : > { %v4504_v0 = vsel %vm1233_vm6, %v9763_v26, 0.0 }
 0xc86   : > { %4505 = vadd.xlane.f32.xlu1 %v4504_v0 }
 0xc88   : > { %4508 = vadd.xlane.f32.xlu0 %v4507_v36 }
 0xc8a   : > { %4511 = vadd.xlane.f32.xlu1 %v4510_v48 }
 0xcaa   : > { %v6531_v38 = vpop.f32.mrb[88].mxu0 }
 0xcab   : > { %v4401_v15 = vpop.f32.mrb[89].mxu0  ;;  %v4465_v31 = vadd.f32 %v6531_v38, %v9726_v52 }
 0xcac   : > { %v4463_v14 = vadd.f32 %v9726_v52, %v4401_v15  ;;  %v6532_v16 = vpop.f32.mrb[90].mxu0 }
 0xcad   : > { %v4404_v34 = vpop.f32.mrb[91].mxu0  ;;  %v4466_v37 = vadd.f32 %v6532_v16, %v9726_v52  ;;  %v9784_v35 = vadd.f32 %v7316_v17, %v4465_v31 }
 0xcae   : > { %v9779_v58 = vadd.f32 %v7315_v45, %v4463_v14  ;;  %v4464_v20 = vadd.f32 %v9726_v52, %v4404_v34 }
 0xcaf   : > { %v9792_v41 = vadd.f32 %v7318_v9, %v4466_v37  ;;  %v4519_v44 = vsel %vm1233_vm6, %v9784_v35, 0.0 }
 0xcb0   : > { %v9787_v4 = vadd.f32 %v7317_v47, %v4464_v20  ;;  %v4513_v21 = vsel %vm1233_vm6, %v9779_v58, 0.0 }
 0xcb1   : > { %4514 = vadd.xlane.f32.xlu0 %v4513_v21  ;;  %v4522_v40 = vsel %vm1233_vm6, %v9792_v41, 0.0 }
 0xcb2   : > { %v4516_v43 = vsel %vm1233_vm6, %v9787_v4, 0.0 }
 0xcb3   : > { %4517 = vadd.xlane.f32.xlu1 %v4516_v43 }
 0xcb5   : > { %4520 = vadd.xlane.f32.xlu0 %v4519_v44 }
 0xcb7   : > { %4523 = vadd.xlane.f32.xlu1 %v4522_v40 }
 0xcba   : > { %v6535_v55 = vpop.f32.mrb[92].mxu0 }
 0xcbb   : > { %v4417_v60 = vpop.f32.mrb[93].mxu0  ;;  %v4469_v8 = vadd.f32 %v6535_v55, %v9726_v52 }
 0xcbc   : > { %v4467_v62 = vadd.f32 %v9726_v52, %v4417_v60  ;;  %v6536_v3 = vpop.f32.mrb[94].mxu0 }
 0xcbd   : > { %v4420_v51 = vpop.f32.mrb[95].mxu0  ;;  %v4470_v24 = vadd.f32 %v6536_v3, %v9726_v52  ;;  %v9808_v57 = vadd.f32 %v7320_v18, %v4469_v8 }
 0xcbe   : > { %v9803_v10 = vadd.f32 %v7319_v2, %v4467_v62  ;;  %v4468_v6 = vadd.f32 %v9726_v52, %v4420_v51 }
 0xcbf   : > { %v9816_v33 = vadd.f32 %v7322_v11, %v4470_v24  ;;  %v4531_v52 = vsel %vm1233_vm6, %v9808_v57, 0.0 }
 0xcc0   : > { %v9811_v29 = vadd.f32 %v7321_v61, %v4468_v6  ;;  %v4525_v63 = vsel %vm1233_vm6, %v9803_v10, 0.0 }
 0xcc1   : > { %4526 = vadd.xlane.f32.xlu0 %v4525_v63  ;;  %v4534_v25 = vsel %vm1233_vm6, %v9816_v33, 0.0 }
 0xcc2   : > { %v4528_v50 = vsel %vm1233_vm6, %v9811_v29, 0.0 }
 0xcc3   : > { %4529 = vadd.xlane.f32.xlu1 %v4528_v50 }
 0xcc5   : > { %4532 = vadd.xlane.f32.xlu0 %v4531_v52 }
 0xcc7   : > { %4535 = vadd.xlane.f32.xlu1 %v4534_v25 }
 0xd01   : > { %v4491_v53 = vpop.xlane.xlu0 %4490 }
 0xd02   : > { %v4538_v42 = vmul.f32 0.125, %v4491_v53 }
 0xd03   : > { %v4494_v12 = vpop.xlane.xlu1 %4493 }
 0xd04   : > { %v9825_v1 = vsub.f32 %v9731_v59, %v4538_v42  ;;  %v4539_v32 = vmul.f32 0.125, %v4494_v12 }
 0xd05   : > { %v4497_v49 = vpop.xlane.xlu0 %4496 }
 0xd06   : > { %v9828_v7 = vsub.f32 %v9739_v23, %v4539_v32  ;;  %v4540_v56 = vmul.f32 0.125, %v4497_v49  ;;  %v4570_v39 = vmul.f32 %v9825_v1, %v9825_v1 }
 0xd07   : > { %v4500_v5 = vpop.xlane.xlu1 %4499 }
 0xd08   : > { %v9833_v46 = vsub.f32 %v9736_v13, %v4540_v56  ;;  %v4541_v54 = vmul.f32 0.125, %v4500_v5  ;;  %v4586_v22 = vsel %vm1233_vm6, %v4570_v39, 0.0  ;;  %v4571_v59 = vmul.f32 %v9828_v7, %v9828_v7 }
 0xd09   : > { %4587 = vadd.xlane.f32.xlu0 %v4586_v22 }
 0xd0a   : > { %v9839_v0 = vsub.f32 %v9744_v27, %v4541_v54  ;;  %v4572_v23 = vmul.f32 %v9833_v46, %v9833_v46  ;;  %v4589_v36 = vsel %vm1233_vm6, %v4571_v59, 0.0 }
 0xd0b   : > { %4590 = vadd.xlane.f32.xlu1 %v4589_v36 }
 0xd0c   : > { %v4592_v48 = vsel %vm1233_vm6, %v4572_v23, 0.0  ;;  %v4573_v13 = vmul.f32 %v9839_v0, %v9839_v0 }
 0xd0d   : > { %4593 = vadd.xlane.f32.xlu0 %v4592_v48 }
 0xd0e   : > { %v4595_v38 = vsel %vm1233_vm6, %v4573_v13, 0.0 }
 0xd0f   : > { %4596 = vadd.xlane.f32.xlu1 %v4595_v38 }
 0xd11   : > { %v4503_v15 = vpop.xlane.xlu0 %4502 }
 0xd12   : > { %v4542_v31 = vmul.f32 0.125, %v4503_v15 }
 0xd13   : > { %v4506_v14 = vpop.xlane.xlu1 %4505 }
 0xd14   : > { %v9849_v27 = vsub.f32 %v9755_v19, %v4542_v31  ;;  %v4543_v16 = vmul.f32 0.125, %v4506_v14 }
 0xd15   : > { %v4509_v34 = vpop.xlane.xlu0 %4508 }
 0xd16   : > { %v9852_v45 = vsub.f32 %v9763_v26, %v4543_v16  ;;  %v4544_v37 = vmul.f32 0.125, %v4509_v34  ;;  %v4574_v20 = vmul.f32 %v9849_v27, %v9849_v27 }
 0xd17   : > { %v4512_v17 = vpop.xlane.xlu1 %4511 }
 0xd18   : > { %v9857_v47 = vsub.f32 %v9760_v28, %v4544_v37  ;;  %v4545_v21 = vmul.f32 0.125, %v4512_v17  ;;  %v4598_v9 = vsel %vm1233_vm6, %v4574_v20, 0.0  ;;  %v4575_v19 = vmul.f32 %v9852_v45, %v9852_v45 }
 0xd19   : > { %4599 = vadd.xlane.f32.xlu0 %v4598_v9 }
 0xd1a   : > { %v9863_v43 = vsub.f32 %v9768_v30, %v4545_v21  ;;  %v4576_v26 = vmul.f32 %v9857_v47, %v9857_v47  ;;  %v4601_v44 = vsel %vm1233_vm6, %v4575_v19, 0.0  ;;  %v4863_v30 = vld [vmem:[%s10422_s10] sm:$0xf] }
 0xd1b   : > { %4602 = vadd.xlane.f32.xlu1 %v4601_v44  ;;  %6680 = vmatprep.subr.msk.bf16.mxu0 %vm1258_vm4, %v4863_v30  ;;  %v4896_v2 = vsel %vm1258_vm4, %v4863_v30, 0 }
 0xd1c   : > { %v4604_v40 = vsel %vm1233_vm6, %v4576_v26, 0.0  ;;  %v4577_v28 = vmul.f32 %v9863_v43, %v9863_v43  ;;  %6538 = vmatpush3.bf16.msra.mxu0 %v4896_v2 }
 0xd1d   : > { %4605 = vadd.xlane.f32.xlu0 %v4604_v40 }
 0xd1e   : > { %v4607_v55 = vsel %vm1233_vm6, %v4577_v28, 0.0 }
 0xd1f   : > { %4608 = vadd.xlane.f32.xlu1 %v4607_v55 }
 0xd3e   : > { %v4515_v60 = vpop.xlane.xlu0 %4514 }
 0xd3f   : > { %v4546_v8 = vmul.f32 0.125, %v4515_v60 }
 0xd40   : > { %v4518_v62 = vpop.xlane.xlu1 %4517 }
 0xd41   : > { %v9876_v3 = vsub.f32 %v9779_v58, %v4546_v8  ;;  %v4547_v51 = vmul.f32 0.125, %v4518_v62 }
 0xd42   : > { %v4521_v24 = vpop.xlane.xlu0 %4520 }
 0xd43   : > { %v9881_v6 = vsub.f32 %v9787_v4, %v4547_v51  ;;  %v4548_v18 = vmul.f32 0.125, %v4521_v24  ;;  %v4578_v61 = vmul.f32 %v9876_v3, %v9876_v3 }
 0xd44   : > { %v4524_v63 = vpop.xlane.xlu1 %4523 }
 0xd45   : > { %v9886_v11 = vsub.f32 %v9784_v35, %v4548_v18  ;;  %v4549_v58 = vmul.f32 0.125, %v4524_v63  ;;  %v4610_v50 = vsel %vm1233_vm6, %v4578_v61, 0.0  ;;  %v4579_v52 = vmul.f32 %v9881_v6, %v9881_v6 }
 0xd46   : > { %4611 = vadd.xlane.f32.xlu0 %v4610_v50 }
 0xd47   : > { %v9892_v25 = vsub.f32 %v9792_v41, %v4549_v58  ;;  %v4580_v4 = vmul.f32 %v9886_v11, %v9886_v11  ;;  %v4613_v53 = vsel %vm1233_vm6, %v4579_v52, 0.0 }
 0xd48   : > { %4614 = vadd.xlane.f32.xlu1 %v4613_v53 }
 0xd49   : > { %v4616_v42 = vsel %vm1233_vm6, %v4580_v4, 0.0  ;;  %v4581_v35 = vmul.f32 %v9892_v25, %v9892_v25 }
 0xd4a   : > { %4617 = vadd.xlane.f32.xlu0 %v4616_v42 }
 0xd4b   : > { %v4619_v12 = vsel %vm1233_vm6, %v4581_v35, 0.0 }
 0xd4c   : > { %4620 = vadd.xlane.f32.xlu1 %v4619_v12 }
 0xd4e   : > { %v4527_v32 = vpop.xlane.xlu0 %4526 }
 0xd4f   : > { %v4550_v49 = vmul.f32 0.125, %v4527_v32 }
 0xd50   : > { %v4530_v56 = vpop.xlane.xlu1 %4529 }
 0xd51   : > { %v9902_v41 = vsub.f32 %v9803_v10, %v4550_v49  ;;  %v4551_v39 = vmul.f32 0.125, %v4530_v56 }
 0xd52   : > { %v4533_v5 = vpop.xlane.xlu0 %4532 }
 0xd53   : > { %v9905_v54 = vsub.f32 %v9811_v29, %v4551_v39  ;;  %v4552_v22 = vmul.f32 0.125, %v4533_v5  ;;  %v4582_v59 = vmul.f32 %v9902_v41, %v9902_v41 }
 0xd54   : > { %v4536_v23 = vpop.xlane.xlu1 %4535 }
 0xd55   : > { %v9910_v36 = vsub.f32 %v9808_v57, %v4552_v22  ;;  %v4553_v48 = vmul.f32 0.125, %v4536_v23  ;;  %v4622_v13 = vsel %vm1233_vm6, %v4582_v59, 0.0  ;;  %v4583_v10 = vmul.f32 %v9905_v54, %v9905_v54 }
 0xd56   : > { %4623 = vadd.xlane.f32.xlu0 %v4622_v13  ;;  %v9935_v13 = vld [vmem:[%s10420_s8] ss:$0 sm:$0xff] }
 0xd57   : > { %v9916_v38 = vsub.f32 %v9816_v33, %v4553_v48  ;;  %v4584_v29 = vmul.f32 %v9910_v36, %v9910_v36  ;;  %v4625_v15 = vsel %vm1233_vm6, %v4583_v10, 0.0  ;;  %v9928_v33 = vld [vmem:[%s10424_s12] sm:$0xf] }
 0xd58   : > { %4626 = vadd.xlane.f32.xlu1 %v4625_v15  ;;  %6681 = vmatprep.subr.msk.bf16.mxu1 %vm1258_vm4, %v9928_v33  ;;  %v4769_v15 = vmul.f32 %v9935_v13, %v9825_v1  ;;  %v4771_v1 = vmul.f32 %v9935_v13, %v9833_v46 }
 0xd59   : > { %v4628_v31 = vsel %vm1233_vm6, %v4584_v29, 0.0  ;;  %v4585_v57 = vmul.f32 %v9916_v38, %v9916_v38 }
 0xd5a   : > { %4629 = vadd.xlane.f32.xlu0 %v4628_v31 }
 0xd5b   : > { %v4631_v14 = vsel %vm1233_vm6, %v4585_v57, 0.0 }
 0xd5c   : > { %4632 = vadd.xlane.f32.xlu1 %v4631_v14  ;;  %v4770_v14 = vmul.f32 %v9935_v13, %v9828_v7 }
 0xd96   : > { %v4588_v16 = vpop.xlane.xlu0 %4587 }
 0xd97   : > { %v4635_v34 = vmul.f32 0.14285715, %v4588_v16 }
 0xd98   : > { %v4591_v37 = vpop.xlane.xlu1 %4590 }
 0xd99   : > { %7145 = vrsqrt.f32 %v4635_v34  ;;  %v4636_v20 = vmul.f32 0.14285715, %v4591_v37  ;;  %vm4653_vm8 = vcmp.eq.f32.partialorder %v4635_v34, inf  ;;  %v4656_v40 = vand.u32 2147483648, %v4635_v34 }
 0xd9a   : > { %v4594_v17 = vpop.xlane.xlu0 %4593  ;;  %vm4655_vm9 = vcmp.eq.f32.partialorder %v4635_v34, 0.0 }
 0xd9b   : > { %v4637_v21 = vmul.f32 0.14285715, %v4594_v17  ;;  %7147 = vrsqrt.f32 %v4636_v20  ;;  %vm4660_vm10 = vcmp.eq.f32.partialorder %v4636_v20, inf  ;;  %vm4662_vm11 = vcmp.eq.f32.partialorder %v4636_v20, 0.0  ;;  %v9944_v17 = vld [vmem:[%s10421_s9] ss:$0 sm:$0xff] }
 0xd9c   : > { %v4597_v9 = vpop.xlane.xlu1 %4596  ;;  %v4663_v24 = vand.u32 2147483648, %v4636_v20 }
 0xd9d   : > { %7149 = vrsqrt.f32 %v4637_v21  ;;  %v4638_v19 = vmul.f32 0.14285715, %v4597_v9  ;;  %vm4667_vm12 = vcmp.eq.f32.partialorder %v4637_v21, inf  ;;  %v4670_v63 = vand.u32 2147483648, %v4637_v21 }
 0xd9e   : > { %vm4669_vm13 = vcmp.eq.f32.partialorder %v4637_v21, 0.0  ;;  %v4772_v9 = vmul.f32 %v9935_v13, %v9839_v0 }
 0xd9f   : > { %7151 = vrsqrt.f32 %v4638_v19  ;;  %vm4674_vm14 = vcmp.eq.f32.partialorder %v4638_v19, inf  ;;  %v4677_v56 = vand.u32 2147483648, %v4638_v19  ;;  %vm4676_vm15 = vcmp.eq.f32.partialorder %v4638_v19, 0.0 }
 0xda3   : > { %v7146_v26 = vpop.eup %7145 }
 0xda4   : > { %v4652_v44 = vmul.f32 %v7146_v26, %v4635_v34 }
 0xda5   : > { %v7148_v28 = vpop.eup %7147 }
 0xda6   : > { %v4654_v55 = vsel %vm4653_vm8, %v4635_v34, %v4652_v44  ;;  %v4600_v60 = vpop.xlane.xlu0 %4599  ;;  %v4659_v30 = vmul.f32 %v7148_v28, %v4636_v20 }
 0xda7   : > { %v7150_v8 = vpop.eup %7149  ;;  %v4657_v62 = vsel %vm4655_vm9, %v4656_v40, %v4654_v55  ;;  %v4639_v51 = vmul.f32 0.14285715, %v4600_v60 }
 0xda8   : > { %v4785_v2 = vadd.f32 1e-06, %v4657_v62  ;;  %v4666_v18 = vmul.f32 %v7150_v8, %v4637_v21  ;;  %v4661_v61 = vsel %vm4660_vm10, %v4636_v20, %v4659_v30  ;;  %v4603_v58 = vpop.xlane.xlu1 %4602 }
 0xda9   : > { %7153 = vrsqrt.f32 %v4639_v51  ;;  %v7152_v50 = vpop.eup %7151  ;;  %v4664_v52 = vsel %vm4662_vm11, %v4663_v24, %v4661_v61  ;;  %v4640_v32 = vmul.f32 0.14285715, %v4603_v58  ;;  %vm4681_vm0 = vcmp.eq.f32.partialorder %v4639_v51, inf }
 0xdaa   : > { %7155 = vrcp.f32 %v4785_v2  ;;  %v4668_v4 = vsel %vm4667_vm12, %v4637_v21, %v4666_v18  ;;  %v4606_v53 = vpop.xlane.xlu0 %4605  ;;  %v4786_v42 = vadd.f32 1e-06, %v4664_v52  ;;  %v4673_v12 = vmul.f32 %v7152_v50, %v4638_v19 }
 0xdab   : > { %v4671_v35 = vsel %vm4669_vm13, %v4670_v63, %v4668_v4  ;;  %v4641_v39 = vmul.f32 0.14285715, %v4606_v53  ;;  %v4684_v57 = vand.u32 2147483648, %v4639_v51  ;;  %vm4683_vm1 = vcmp.eq.f32.partialorder %v4639_v51, 0.0 }
 0xdac   : > { %v4787_v49 = vadd.f32 1e-06, %v4671_v35  ;;  %7157 = vrcp.f32 %v4786_v42  ;;  %v4675_v5 = vsel %vm4674_vm14, %v4638_v19, %v4673_v12  ;;  %v4609_v22 = vpop.xlane.xlu1 %4608  ;;  %vm4688_vm2 = vcmp.eq.f32.partialorder %v4640_v32, inf }
 0xdad   : > { %v4678_v59 = vsel %vm4676_vm15, %v4677_v56, %v4675_v5  ;;  %v4642_v48 = vmul.f32 0.14285715, %v4609_v22  ;;  %vm4690_vm3 = vcmp.eq.f32.partialorder %v4640_v32, 0.0  ;;  %v4691_v44 = vand.u32 2147483648, %v4640_v32 }
 0xdae   : > { %7159 = vrcp.f32 %v4787_v49  ;;  %v4788_v23 = vadd.f32 1e-06, %v4678_v59  ;;  %vm4695_vm5 = vcmp.eq.f32.partialorder %v4641_v39, inf  ;;  %vm4697_vm7 = vcmp.eq.f32.partialorder %v4641_v39, 0.0 }
 0xdaf   : > { %7161 = vrsqrt.f32 %v4640_v32  ;;  %v4698_v0 = vand.u32 2147483648, %v4641_v39  ;;  %vm4702_vm8 = vcmp.eq.f32.partialorder %v4642_v48, inf  ;;  %v4705_v58 = vand.u32 2147483648, %v4642_v48 }
 0xdb0   : > { %7163 = vrsqrt.f32 %v4641_v39  ;;  %vm4704_vm9 = vcmp.eq.f32.partialorder %v4642_v48, 0.0  ;;  %v4774_v5 = vmul.f32 %v9935_v13, %v9852_v45 }
 0xdb1   : > { %7165 = vrcp.f32 %v4788_v23  ;;  %v4775_v23 = vmul.f32 %v9935_v13, %v9857_v47 }
 0xdb2   : > { %7167 = vrsqrt.f32 %v4642_v48 }
 0xdb3   : > { %v7154_v10 = vpop.eup %7153 }
 0xdb4   : > { %v7156_v29 = vpop.eup %7155  ;;  %v4680_v31 = vmul.f32 %v7154_v10, %v4639_v51 }
 0xdb5   : > { %v4817_v34 = vmul.f32 %v7156_v29, %v4769_v15  ;;  %v4776_v29 = vmul.f32 %v9935_v13, %v9863_v43 }
 0xdb6   : > { %v4682_v16 = vsel %vm4681_vm0, %v4639_v51, %v4680_v31  ;;  %v7158_v37 = vpop.eup %7157 }
 0xdb7   : > { %v4685_v20 = vsel %vm4683_vm1, %v4684_v57, %v4682_v16  ;;  %v4818_v26 = vmul.f32 %v7158_v37, %v4770_v14  ;;  %v9951_v55 = vadd.f32 %v9944_v17, %v4817_v34 }
 0xdb8   : > { %v7160_v21 = vpop.eup %7159  ;;  %v4789_v19 = vadd.f32 1e-06, %v4685_v20 }
 0xdb9   : > { %v7162_v7 = vpop.eup %7161  ;;  %v9954_v60 = vadd.f32 %v9944_v17, %v4818_v26  ;;  %v4819_v8 = vmul.f32 %v7160_v21, %v4771_v1 }
 0xdba   : > { %v7164_v40 = vpop.eup %7163  ;;  %v4687_v28 = vmul.f32 %v7162_v7, %v4640_v32  ;;  %7169 = vrcp.f32 %v4789_v19 }
 0xdbb   : > { %v7166_v46 = vpop.eup %7165  ;;  %v4694_v62 = vmul.f32 %v7164_v40, %v4641_v39  ;;  %v4855_v2 = vpack.c.bf16 %v9954_v60, %v9951_v55  ;;  %v9963_v4 = vadd.f32 %v9944_v17, %v4819_v8 }
 0xdbc   : > { %v7168_v30 = vpop.eup %7167  ;;  %v4689_v51 = vsel %vm4688_vm2, %v4640_v32, %v4687_v28  ;;  %v4820_v24 = vmul.f32 %v7166_v46, %v4772_v9 }
 0xdbd   : > { %v4692_v18 = vsel %vm4690_vm3, %v4691_v44, %v4689_v51  ;;  %v4696_v61 = vsel %vm4695_vm5, %v4641_v39, %v4694_v62  ;;  %v4701_v63 = vmul.f32 %v7168_v30, %v4642_v48  ;;  %6539 = vmatprep.mubr.msk.bf16.mxu0 %vm1233_vm6, %v4855_v2  ;;  %v4773_v39 = vmul.f32 %v9935_v13, %v9849_v27 }
 0xdbe   : > { %v4790_v50 = vadd.f32 1e-06, %v4692_v18  ;;  %v4699_v52 = vsel %vm4697_vm7, %v4698_v0, %v4696_v61  ;;  %v9966_v53 = vadd.f32 %v9944_v17, %v4820_v24 }
 0xdbf   : > { %v4791_v42 = vadd.f32 1e-06, %v4699_v52  ;;  %v4703_v35 = vsel %vm4702_vm8, %v4642_v48, %v4701_v63 }
 0xdc0   : > { %7171 = vrcp.f32 %v4790_v50  ;;  %v4706_v12 = vsel %vm4704_vm9, %v4705_v58, %v4703_v35  ;;  %v4856_v32 = vpack.c.bf16 %v9966_v53, %v9963_v4 }
 0xdc1   : > { %7173 = vrcp.f32 %v4791_v42  ;;  %v4792_v49 = vadd.f32 1e-06, %v4706_v12 }
 0xdc2   : > { %6540 = vmatmul.mubr.msk.bf16.vlgmr.msra.gmra.mrb[128].mxu0 %vm1233_vm6, %v4856_v32 }
 0xdc3   : > { %7175 = vrcp.f32 %v4792_v49 }
 0xdc4   : > { %v7170_v56 = vpop.eup %7169 }
 0xdc5   : > { %v4821_v22 = vmul.f32 %v7170_v56, %v4773_v39 }
 0xdc7   : > { %v9981_v57 = vadd.f32 %v9944_v17, %v4821_v22 }
 0xdca   : > { %v7172_v59 = vpop.eup %7171 }
 0xdcb   : > { %v7174_v48 = vpop.eup %7173  ;;  %v4822_v10 = vmul.f32 %v7172_v59, %v4774_v5 }
 0xdcc   : > { %v4823_v15 = vmul.f32 %v7174_v48, %v4775_v23 }
 0xdcd   : > { %v7176_v31 = vpop.eup %7175  ;;  %v9984_v27 = vadd.f32 %v9944_v17, %v4822_v10 }
 0xdce   : > { %v4824_v14 = vmul.f32 %v7176_v31, %v4776_v29  ;;  %v9989_v16 = vadd.f32 %v9944_v17, %v4823_v15 }
 0xdcf   : > { %v4857_v45 = vpack.c.bf16 %v9984_v27, %v9981_v57 }
 0xdd0   : > { %v9992_v47 = vadd.f32 %v9944_v17, %v4824_v14  ;;  %v4777_v14 = vmul.f32 %v9935_v13, %v9876_v3 }
 0xdd1   : > { %6543 = vmatprep.mubr.msk.bf16.mxu0 %vm1233_vm6, %v4857_v45 }
 0xdd2   : > { %v4858_v43 = vpack.c.bf16 %v9992_v47, %v9989_v16 }
 0xdd3   : > { %v4612_v34 = vpop.xlane.xlu0 %4611 }
 0xdd4   : > { %6544 = vmatmul.mubr.msk.bf16.gmra.mrb[132].mxu0 %vm1233_vm6, %v4858_v43  ;;  %v4643_v37 = vmul.f32 0.14285715, %v4612_v34  ;;  %v4778_v34 = vmul.f32 %v9935_v13, %v9881_v6 }
 0xdd5   : > { %v4615_v20 = vpop.xlane.xlu1 %4614 }
 0xdd6   : > { %7177 = vrsqrt.f32 %v4643_v37  ;;  %v4644_v21 = vmul.f32 0.14285715, %v4615_v20  ;;  %vm4709_vm10 = vcmp.eq.f32.partialorder %v4643_v37, inf  ;;  %v4712_v40 = vand.u32 2147483648, %v4643_v37 }
 0xdd7   : > { %v4618_v1 = vpop.xlane.xlu0 %4617  ;;  %vm4711_vm11 = vcmp.eq.f32.partialorder %v4643_v37, 0.0 }
 0xdd8   : > { %v4645_v9 = vmul.f32 0.14285715, %v4618_v1  ;;  %7179 = vrsqrt.f32 %v4644_v21  ;;  %vm4716_vm12 = vcmp.eq.f32.partialorder %v4644_v21, inf  ;;  %vm4718_vm13 = vcmp.eq.f32.partialorder %v4644_v21, 0.0 }
 0xdd9   : > { %v4621_v19 = vpop.xlane.xlu1 %4620  ;;  %v4719_v24 = vand.u32 2147483648, %v4644_v21 }
 0xdda   : > { %7181 = vrsqrt.f32 %v4645_v9  ;;  %v4646_v26 = vmul.f32 0.14285715, %v4621_v19  ;;  %vm4723_vm14 = vcmp.eq.f32.partialorder %v4645_v9, inf  ;;  %v4726_v63 = vand.u32 2147483648, %v4645_v9 }
 0xddb   : > { %vm4725_vm15 = vcmp.eq.f32.partialorder %v4645_v9, 0.0  ;;  %v4779_v19 = vmul.f32 %v9935_v13, %v9886_v11 }
 0xddc   : > { %7183 = vrsqrt.f32 %v4646_v26  ;;  %vm4730_vm0 = vcmp.eq.f32.partialorder %v4646_v26, inf  ;;  %v4733_v5 = vand.u32 2147483648, %v4646_v26  ;;  %vm4732_vm1 = vcmp.eq.f32.partialorder %v4646_v26, 0.0 }
 0xde0   : > { %v7178_v7 = vpop.eup %7177 }
 0xde1   : > { %v4708_v44 = vmul.f32 %v7178_v7, %v4643_v37 }
 0xde2   : > { %v7180_v28 = vpop.eup %7179 }
 0xde3   : > { %v4710_v8 = vsel %vm4709_vm10, %v4643_v37, %v4708_v44  ;;  %v4624_v46 = vpop.xlane.xlu0 %4623  ;;  %v4715_v30 = vmul.f32 %v7180_v28, %v4644_v21 }
 0xde4   : > { %v7182_v62 = vpop.eup %7181  ;;  %v4713_v0 = vsel %vm4711_vm11, %v4712_v40, %v4710_v8  ;;  %v4647_v51 = vmul.f32 0.14285715, %v4624_v46 }
 0xde5   : > { %v4793_v2 = vadd.f32 1e-06, %v4713_v0  ;;  %v4722_v18 = vmul.f32 %v7182_v62, %v4645_v9  ;;  %v4717_v61 = vsel %vm4716_vm12, %v4644_v21, %v4715_v30  ;;  %v4627_v58 = vpop.xlane.xlu1 %4626 }
 0xde6   : > { %7185 = vrsqrt.f32 %v4647_v51  ;;  %v7184_v50 = vpop.eup %7183  ;;  %v4720_v52 = vsel %vm4718_vm13, %v4719_v24, %v4717_v61  ;;  %v4648_v56 = vmul.f32 0.14285715, %v4627_v58  ;;  %vm4737_vm2 = vcmp.eq.f32.partialorder %v4647_v51, inf }
 0xde7   : > { %7187 = vrcp.f32 %v4793_v2  ;;  %v4724_v42 = vsel %vm4723_vm14, %v4645_v9, %v4722_v18  ;;  %v4630_v35 = vpop.xlane.xlu0 %4629  ;;  %v4794_v12 = vadd.f32 1e-06, %v4720_v52  ;;  %v4729_v49 = vmul.f32 %v7184_v50, %v4646_v26 }
 0xde8   : > { %v4727_v32 = vsel %vm4725_vm15, %v4726_v63, %v4724_v42  ;;  %v4649_v22 = vmul.f32 0.14285715, %v4630_v35  ;;  %v4740_v43 = vand.u32 2147483648, %v4647_v51  ;;  %vm4739_vm3 = vcmp.eq.f32.partialorder %v4647_v51, 0.0 }
 0xde9   : > { %v4795_v39 = vadd.f32 1e-06, %v4727_v32  ;;  %7189 = vrcp.f32 %v4794_v12  ;;  %v4731_v59 = vsel %vm4730_vm0, %v4646_v26, %v4729_v49  ;;  %v4633_v23 = vpop.xlane.xlu1 %4632  ;;  %v4780_v26 = vmul.f32 %v9935_v13, %v9892_v25 }
 0xdea   : > { %v4734_v48 = vsel %vm4732_vm1, %v4733_v5, %v4731_v59  ;;  %v4650_v29 = vmul.f32 0.14285715, %v4633_v23  ;;  %vm4744_vm5 = vcmp.eq.f32.partialorder %v4648_v56, inf  ;;  %vm4746_vm7 = vcmp.eq.f32.partialorder %v4648_v56, 0.0 }
 0xdeb   : > { %7191 = vrcp.f32 %v4795_v39  ;;  %v4796_v10 = vadd.f32 1e-06, %v4734_v48  ;;  %v4747_v40 = vand.u32 2147483648, %v4648_v56  ;;  %vm4751_vm8 = vcmp.eq.f32.partialorder %v4649_v22, inf }
 0xdec   : > { %7193 = vrsqrt.f32 %v4648_v56  ;;  %vm4753_vm9 = vcmp.eq.f32.partialorder %v4649_v22, 0.0  ;;  %v4754_v25 = vand.u32 2147483648, %v4649_v22  ;;  %vm4758_vm10 = vcmp.eq.f32.partialorder %v4650_v29, inf }
 0xded   : > { %7195 = vrsqrt.f32 %v4649_v22  ;;  %v4761_v58 = vand.u32 2147483648, %v4650_v29  ;;  %vm4760_vm11 = vcmp.eq.f32.partialorder %v4650_v29, 0.0  ;;  %v4782_v59 = vmul.f32 %v9935_v13, %v9905_v54 }
 0xdee   : > { %7197 = vrcp.f32 %v4796_v10  ;;  %v4783_v10 = vmul.f32 %v9935_v13, %v9910_v36 }
 0xdef   : > { %7199 = vrsqrt.f32 %v4650_v29 }
 0xdf0   : > { %v7186_v15 = vpop.eup %7185 }
 0xdf1   : > { %v7188_v31 = vpop.eup %7187  ;;  %v4736_v45 = vmul.f32 %v7186_v15, %v4647_v51 }
 0xdf2   : > { %v4825_v20 = vmul.f32 %v7188_v31, %v4777_v14  ;;  %v4784_v31 = vmul.f32 %v9935_v13, %v9916_v38 }
 0xdf3   : > { %v4738_v37 = vsel %vm4737_vm2, %v4647_v51, %v4736_v45  ;;  %v7190_v21 = vpop.eup %7189 }
 0xdf4   : > { %v4741_v1 = vsel %vm4739_vm3, %v4740_v43, %v4738_v37  ;;  %v4826_v3 = vmul.f32 %v7190_v21, %v4778_v34  ;;  %v10007_v8 = vadd.f32 %v9944_v17, %v4825_v20  ;;  %v5906_v20 = vld [vmem:[%s10423_s11] ss:$0 sm:$0xff] }
 0xdf5   : > { %v7192_v9 = vpop.eup %7191  ;;  %v4797_v7 = vadd.f32 1e-06, %v4741_v1 }
 0xdf6   : > { %v7194_v44 = vpop.eup %7193  ;;  %v10010_v46 = vadd.f32 %v9944_v17, %v4826_v3  ;;  %v4827_v62 = vmul.f32 %v7192_v9, %v4779_v19 }
 0xdf7   : > { %v7196_v6 = vpop.eup %7195  ;;  %v4743_v28 = vmul.f32 %v7194_v44, %v4648_v56  ;;  %7201 = vrcp.f32 %v4797_v7 }
 0xdf8   : > { %v7198_v11 = vpop.eup %7197  ;;  %v4750_v0 = vmul.f32 %v7196_v6, %v4649_v22  ;;  %v4859_v2 = vpack.c.bf16 %v10010_v46, %v10007_v8  ;;  %v10019_v42 = vadd.f32 %v9944_v17, %v4827_v62 }
 0xdf9   : > { %v7200_v30 = vpop.eup %7199  ;;  %v4745_v51 = vsel %vm4744_vm5, %v4648_v56, %v4743_v28  ;;  %v4828_v24 = vmul.f32 %v7198_v11, %v4780_v26 }
 0xdfa   : > { %v4748_v18 = vsel %vm4746_vm7, %v4747_v40, %v4745_v51  ;;  %v4752_v61 = vsel %vm4751_vm8, %v4649_v22, %v4750_v0  ;;  %v4757_v63 = vmul.f32 %v7200_v30, %v4650_v29  ;;  %6547 = vmatprep.mubr.msk.bf16.mxu0 %vm1233_vm6, %v4859_v2  ;;  %v4781_v22 = vmul.f32 %v9935_v13, %v9902_v41 }
 0xdfb   : > { %v4798_v50 = vadd.f32 1e-06, %v4748_v18  ;;  %v4755_v52 = vsel %vm4753_vm9, %v4754_v25, %v4752_v61  ;;  %v10022_v35 = vadd.f32 %v9944_v17, %v4828_v24  ;;  %v5052_v13 = vsel %vm1258_vm4, %v9928_v33, 0 }
 0xdfc   : > { %v4799_v12 = vadd.f32 1e-06, %v4755_v52  ;;  %v4759_v32 = vsel %vm4758_vm10, %v4650_v29, %v4757_v63  ;;  %6556 = vmatpush3.bf16.msra.mxu1 %v5052_v13 }
 0xdfd   : > { %7203 = vrcp.f32 %v4798_v50  ;;  %v4762_v49 = vsel %vm4760_vm11, %v4761_v58, %v4759_v32  ;;  %v4860_v56 = vpack.c.bf16 %v10022_v35, %v10019_v42 }
 0xdfe   : > { %7205 = vrcp.f32 %v4799_v12  ;;  %v4800_v39 = vadd.f32 1e-06, %v4762_v49 }
 0xdff   : > { %6548 = vmatmul.mubr.msk.bf16.gmra.mrb[136].mxu0 %vm1233_vm6, %v4860_v56 }
 0xe00   : > { %7207 = vrcp.f32 %v4800_v39 }
 0xe01   : > { %v7202_v5 = vpop.eup %7201 }
 0xe02   : > { %v4829_v23 = vmul.f32 %v7202_v5, %v4781_v22 }
 0xe04   : > { %v10037_v43 = vadd.f32 %v9944_v17, %v4829_v23 }
 0xe07   : > { %v7204_v48 = vpop.eup %7203 }
 0xe08   : > { %v7206_v29 = vpop.eup %7205  ;;  %v4830_v15 = vmul.f32 %v7204_v48, %v4782_v59 }
 0xe09   : > { %v4831_v14 = vmul.f32 %v7206_v29, %v4783_v10 }
 0xe0a   : > { %v7208_v45 = vpop.eup %7207  ;;  %v10040_v41 = vadd.f32 %v9944_v17, %v4830_v15 }
 0xe0b   : > { %v4832_v34 = vmul.f32 %v7208_v45, %v4784_v31  ;;  %v10045_v37 = vadd.f32 %v9944_v17, %v4831_v14 }
 0xe0c   : > { %v4861_v54 = vpack.c.bf16 %v10040_v41, %v10037_v43 }
 0xe0d   : > { %v10048_v36 = vadd.f32 %v9944_v17, %v4832_v34 }
 0xe0e   : > { %6551 = vmatprep.mubr.msk.bf16.mxu0 %vm1233_vm6, %v4861_v54 }
 0xe0f   : > { %v4862_v38 = vpack.c.bf16 %v10048_v36, %v10045_v37 }
 0xe11   : > { %6552 = vmatmul.mubr.msk.bf16.gmra.mrb[140].mxu0 %vm1233_vm6, %v4862_v38 }
 0xe95   : > { %v6541_v21 = vpop.f32.mrb[128].mxu0 }
 0xe96   : > { %v4941_v1 = vadd.f32 %v6541_v21, %v5906_v20  ;;  %v4932_v9 = vpop.f32.mrb[129].mxu0 }
 0xe97   : > { %v4933_v17 = vadd.f32 %v5906_v20, %v4932_v9  ;;  %v6542_v19 = vpop.f32.mrb[130].mxu0 }
 0xe98   : > { %v4944_v26 = vadd.f32 %v6542_v19, %v5906_v20  ;;  %v4935_v7 = vpop.f32.mrb[131].mxu0  ;;  %v4997_v44 = vmax.f32 %v4941_v1, 0.0 }
 0xe99   : > { %v4936_v3 = vadd.f32 %v5906_v20, %v4935_v7  ;;  %v4995_v6 = vmax.f32 %v4933_v17, 0.0 }
 0xe9a   : > { %v4998_v40 = vmax.f32 %v4944_v26, 0.0 }
 0xe9b   : > { %v4996_v28 = vmax.f32 %v4936_v3, 0.0 }
 0xe9c   : > { %v5012_v62 = vpack.c.bf16 %v4998_v40, %v4997_v44  ;;  %v10070_v40 = vld [vmem:[%s10425_s13] ss:$0 sm:$0xff] }
 0xe9d   : > { %v5011_v11 = vpack.c.bf16 %v4996_v28, %v4995_v6 }
 0xe9f   : > { %6557 = vmatprep.mubr.msk.bf16.mxu1 %vm1233_vm6, %v5011_v11 }
 0xea0   : > { %6558 = vmatmul.mubr.msk.bf16.vlgmr.msra.gmra.mrb[160].mxu1 %vm1233_vm6, %v5012_v62 }
 0xea7   : > { %v6545_v33 = vpop.f32.mrb[132].mxu0 }
 0xea8   : > { %v4957_v0 = vadd.f32 %v6545_v33, %v5906_v20  ;;  %v4948_v25 = vpop.f32.mrb[133].mxu0 }
 0xea9   : > { %v4949_v30 = vadd.f32 %v5906_v20, %v4948_v25  ;;  %v6546_v51 = vpop.f32.mrb[134].mxu0 }
 0xeaa   : > { %v4960_v2 = vadd.f32 %v6546_v51, %v5906_v20  ;;  %v4951_v24 = vpop.f32.mrb[135].mxu0  ;;  %v5001_v61 = vmax.f32 %v4957_v0, 0.0 }
 0xeab   : > { %v4952_v18 = vadd.f32 %v5906_v20, %v4951_v24  ;;  %v4999_v58 = vmax.f32 %v4949_v30, 0.0 }
 0xeac   : > { %v5002_v63 = vmax.f32 %v4960_v2, 0.0 }
 0xead   : > { %v5000_v50 = vmax.f32 %v4952_v18, 0.0 }
 0xeae   : > { %v5014_v52 = vpack.c.bf16 %v5002_v63, %v5001_v61 }
 0xeaf   : > { %v5013_v12 = vpack.c.bf16 %v5000_v50, %v4999_v58 }
 0xeb1   : > { %6561 = vmatprep.mubr.msk.bf16.mxu1 %vm1233_vm6, %v5013_v12 }
 0xeb2   : > { %6562 = vmatmul.mubr.msk.bf16.gmra.mrb[164].mxu1 %vm1233_vm6, %v5014_v52 }
 0xed2   : > { %v6549_v32 = vpop.f32.mrb[136].mxu0 }
 0xed3   : > { %v4973_v49 = vadd.f32 %v6549_v32, %v5906_v20  ;;  %v4964_v56 = vpop.f32.mrb[137].mxu0 }
 0xed4   : > { %v4965_v39 = vadd.f32 %v5906_v20, %v4964_v56  ;;  %v6550_v5 = vpop.f32.mrb[138].mxu0 }
 0xed5   : > { %v4976_v22 = vadd.f32 %v6550_v5, %v5906_v20  ;;  %v4967_v59 = vpop.f32.mrb[139].mxu0  ;;  %v5005_v48 = vmax.f32 %v4973_v49, 0.0 }
 0xed6   : > { %v4968_v23 = vadd.f32 %v5906_v20, %v4967_v59  ;;  %v5003_v29 = vmax.f32 %v4965_v39, 0.0 }
 0xed7   : > { %v5006_v10 = vmax.f32 %v4976_v22, 0.0 }
 0xed8   : > { %v5004_v15 = vmax.f32 %v4968_v23, 0.0 }
 0xed9   : > { %v5016_v31 = vpack.c.bf16 %v5006_v10, %v5005_v48 }
 0xeda   : > { %v5015_v14 = vpack.c.bf16 %v5004_v15, %v5003_v29 }
 0xedc   : > { %6565 = vmatprep.mubr.msk.bf16.mxu1 %vm1233_vm6, %v5015_v14 }
 0xedd   : > { %6566 = vmatmul.mubr.msk.bf16.gmra.mrb[168].mxu1 %vm1233_vm6, %v5016_v31 }
 0xee4   : > { %v6553_v45 = vpop.f32.mrb[140].mxu0 }
 0xee5   : > { %v4989_v34 = vadd.f32 %v6553_v45, %v5906_v20  ;;  %v4980_v54 = vpop.f32.mrb[141].mxu0 }
 0xee6   : > { %v4981_v38 = vadd.f32 %v5906_v20, %v4980_v54  ;;  %v6554_v13 = vpop.f32.mrb[142].mxu0 }
 0xee7   : > { %v4992_v21 = vadd.f32 %v6554_v13, %v5906_v20  ;;  %v4983_v1 = vpop.f32.mrb[143].mxu0  ;;  %v5009_v17 = vmax.f32 %v4989_v34, 0.0 }
 0xee8   : > { %v4984_v9 = vadd.f32 %v5906_v20, %v4983_v1  ;;  %v5007_v26 = vmax.f32 %v4981_v38, 0.0 }
 0xee9   : > { %v5010_v19 = vmax.f32 %v4992_v21, 0.0 }
 0xeea   : > { %v5008_v7 = vmax.f32 %v4984_v9, 0.0 }
 0xeeb   : > { %v5018_v3 = vpack.c.bf16 %v5010_v19, %v5009_v17 }
 0xeec   : > { %v5017_v44 = vpack.c.bf16 %v5008_v7, %v5007_v26 }
 0xeee   : > { %6569 = vmatprep.mubr.msk.bf16.mxu1 %vm1233_vm6, %v5017_v44 }
 0xeef   : > { %6570 = vmatmul.mubr.msk.bf16.gmra.mrb[172].mxu1 %vm1233_vm6, %v5018_v3 }
 0xf73   : > { %v6559_v6 = vpop.f32.mrb[160].mxu1 }
 0xf74   : > { %v5088_v28 = vpop.f32.mrb[161].mxu1  ;;  %v5097_v62 = vadd.f32 %v6559_v6, %v10070_v40 }
 0xf75   : > { %v5089_v20 = vadd.f32 %v10070_v40, %v5088_v28  ;;  %v6560_v11 = vpop.f32.mrb[162].mxu1 }
 0xf76   : > { %v5091_v33 = vpop.f32.mrb[163].mxu1  ;;  %v5100_v25 = vadd.f32 %v6560_v11, %v10070_v40  ;;  %v10080_v51 = vadd.f32 %v5097_v62, %v9963_v4 }
 0xf77   : > { %v10075_v0 = vadd.f32 %v5089_v20, %v9951_v55  ;;  %v5092_v30 = vadd.f32 %v10070_v40, %v5091_v33 }
 0xf78   : > { %v10088_v18 = vadd.f32 %v5100_v25, %v9966_v53  ;;  %v5175_v61 = vsel %vm1233_vm6, %v10080_v51, 0.0 }
 0xf79   : > { %v10083_v2 = vadd.f32 %v5092_v30, %v9954_v60  ;;  %v5169_v24 = vsel %vm1233_vm6, %v10075_v0, 0.0 }
 0xf7a   : > { %5170 = vadd.xlane.f32.xlu0 %v5169_v24  ;;  %v5178_v4 = vsel %vm1233_vm6, %v10088_v18, 0.0 }
 0xf7b   : > { %v5172_v55 = vsel %vm1233_vm6, %v10083_v2, 0.0 }
 0xf7c   : > { %5173 = vadd.xlane.f32.xlu1 %v5172_v55 }
 0xf7e   : > { %5176 = vadd.xlane.f32.xlu0 %v5175_v61 }
 0xf80   : > { %5179 = vadd.xlane.f32.xlu1 %v5178_v4 }
 0xf85   : > { %v6563_v60 = vpop.f32.mrb[164].mxu1 }
 0xf86   : > { %v5104_v63 = vpop.f32.mrb[165].mxu1  ;;  %v5113_v58 = vadd.f32 %v6563_v60, %v10070_v40 }
 0xf87   : > { %v5105_v50 = vadd.f32 %v10070_v40, %v5104_v63  ;;  %v6564_v53 = vpop.f32.mrb[166].mxu1 }
 0xf88   : > { %v5107_v52 = vpop.f32.mrb[167].mxu1  ;;  %v5116_v32 = vadd.f32 %v6564_v53, %v10070_v40  ;;  %v10104_v56 = vadd.f32 %v5113_v58, %v9989_v16 }
 0xf89   : > { %v10099_v12 = vadd.f32 %v5105_v50, %v9981_v57  ;;  %v5108_v49 = vadd.f32 %v10070_v40, %v5107_v52 }
 0xf8a   : > { %v10112_v22 = vadd.f32 %v5116_v32, %v9992_v47  ;;  %v5187_v59 = vsel %vm1233_vm6, %v10104_v56, 0.0 }
 0xf8b   : > { %v10107_v39 = vadd.f32 %v5108_v49, %v9984_v27  ;;  %v5181_v5 = vsel %vm1233_vm6, %v10099_v12, 0.0 }
 0xf8c   : > { %5182 = vadd.xlane.f32.xlu0 %v5181_v5  ;;  %v5190_v16 = vsel %vm1233_vm6, %v10112_v22, 0.0 }
 0xf8d   : > { %v5184_v57 = vsel %vm1233_vm6, %v10107_v39, 0.0 }
 0xf8e   : > { %5185 = vadd.xlane.f32.xlu1 %v5184_v57 }
 0xf90   : > { %5188 = vadd.xlane.f32.xlu0 %v5187_v59 }
 0xf92   : > { %5191 = vadd.xlane.f32.xlu1 %v5190_v16 }
 0xfb0   : > { %v6567_v27 = vpop.f32.mrb[168].mxu1 }
 0xfb1   : > { %v5120_v23 = vpop.f32.mrb[169].mxu1  ;;  %v5129_v48 = vadd.f32 %v6567_v27, %v10070_v40 }
 0xfb2   : > { %v5121_v10 = vadd.f32 %v10070_v40, %v5120_v23  ;;  %v6568_v47 = vpop.f32.mrb[170].mxu1 }
 0xfb3   : > { %v5123_v29 = vpop.f32.mrb[171].mxu1  ;;  %v5132_v31 = vadd.f32 %v6568_v47, %v10070_v40  ;;  %v10128_v45 = vadd.f32 %v5129_v48, %v10019_v42 }
 0xfb4   : > { %v10123_v15 = vadd.f32 %v5121_v10, %v10007_v8  ;;  %v5124_v14 = vadd.f32 %v10070_v40, %v5123_v29 }
 0xfb5   : > { %v10136_v38 = vadd.f32 %v5132_v31, %v10022_v35  ;;  %v5199_v13 = vsel %vm1233_vm6, %v10128_v45, 0.0 }
 0xfb6   : > { %v10131_v34 = vadd.f32 %v5124_v14, %v10010_v46  ;;  %v5193_v54 = vsel %vm1233_vm6, %v10123_v15, 0.0 }
 0xfb7   : > { %5194 = vadd.xlane.f32.xlu0 %v5193_v54  ;;  %v5202_v42 = vsel %vm1233_vm6, %v10136_v38, 0.0 }
 0xfb8   : > { %v5196_v8 = vsel %vm1233_vm6, %v10131_v34, 0.0 }
 0xfb9   : > { %5197 = vadd.xlane.f32.xlu1 %v5196_v8 }
 0xfbb   : > { %5200 = vadd.xlane.f32.xlu0 %v5199_v13 }
 0xfbd   : > { %5203 = vadd.xlane.f32.xlu1 %v5202_v42 }
 0xfc2   : > { %v6571_v46 = vpop.f32.mrb[172].mxu1 }
 0xfc3   : > { %v5136_v21 = vpop.f32.mrb[173].mxu1  ;;  %v5145_v1 = vadd.f32 %v6571_v46, %v10070_v40 }
 0xfc4   : > { %v5137_v9 = vadd.f32 %v10070_v40, %v5136_v21  ;;  %v6572_v35 = vpop.f32.mrb[174].mxu1  ;;  %v5541_v21 = vld [vmem:[%s10428_s16] sm:$0xf] }
 0xfc5   : > { %v5139_v17 = vpop.f32.mrb[175].mxu1  ;;  %v5148_v26 = vadd.f32 %v6572_v35, %v10070_v40  ;;  %v10152_v3 = vadd.f32 %v5145_v1, %v10045_v37  ;;  %6682 = vmatprep.subr.msk.bf16.mxu0 %vm1258_vm4, %v5541_v21 }
 0xfc6   : > { %v10147_v19 = vadd.f32 %v5137_v9, %v10037_v43  ;;  %v5140_v7 = vadd.f32 %v10070_v40, %v5139_v17  ;;  %v5574_v9 = vsel %vm1258_vm4, %v5541_v21, 0 }
 0xfc7   : > { %v10160_v28 = vadd.f32 %v5148_v26, %v10048_v36  ;;  %v5211_v40 = vsel %vm1233_vm6, %v10152_v3, 0.0  ;;  %6574 = vmatpush3.bf16.msra.mxu0 %v5574_v9 }
 0xfc8   : > { %v10155_v44 = vadd.f32 %v5140_v7, %v10040_v41  ;;  %v5205_v6 = vsel %vm1233_vm6, %v10147_v19, 0.0 }
 0xfc9   : > { %5206 = vadd.xlane.f32.xlu0 %v5205_v6  ;;  %v5214_v37 = vsel %vm1233_vm6, %v10160_v28, 0.0 }
 0xfca   : > { %v5208_v43 = vsel %vm1233_vm6, %v10155_v44, 0.0 }
 0xfcb   : > { %5209 = vadd.xlane.f32.xlu1 %v5208_v43 }
 0xfcd   : > { %5212 = vadd.xlane.f32.xlu0 %v5211_v40 }
 0xfcf   : > { %5215 = vadd.xlane.f32.xlu1 %v5214_v37 }
0x1007   : > { %v5171_v41 = vpop.xlane.xlu0 %5170 }
0x1008   : > { %v5217_v62 = vmul.f32 0.125, %v5171_v41 }
0x1009   : > { %v5174_v20 = vpop.xlane.xlu1 %5173 }
0x100a   : > { %v10169_v11 = vsub.f32 %v10075_v0, %v5217_v62  ;;  %v5218_v36 = vmul.f32 0.125, %v5174_v20 }
0x100b   : > { %v5177_v33 = vpop.xlane.xlu0 %5176 }
0x100c   : > { %v10172_v25 = vsub.f32 %v10083_v2, %v5218_v36  ;;  %v5219_v30 = vmul.f32 0.125, %v5177_v33  ;;  %v5249_v24 = vmul.f32 %v10169_v11, %v10169_v11 }
0x100d   : > { %v5180_v55 = vpop.xlane.xlu1 %5179 }
0x100e   : > { %v10177_v61 = vsub.f32 %v10080_v51, %v5219_v30  ;;  %v5220_v4 = vmul.f32 0.125, %v5180_v55  ;;  %v5265_v60 = vsel %vm1233_vm6, %v5249_v24, 0.0  ;;  %v5250_v0 = vmul.f32 %v10172_v25, %v10172_v25 }
0x100f   : > { %5266 = vadd.xlane.f32.xlu0 %v5265_v60 }
0x1010   : > { %v10183_v63 = vsub.f32 %v10088_v18, %v5220_v4  ;;  %v5251_v2 = vmul.f32 %v10177_v61, %v10177_v61  ;;  %v5268_v58 = vsel %vm1233_vm6, %v5250_v0, 0.0 }
0x1011   : > { %5269 = vadd.xlane.f32.xlu1 %v5268_v58 }
0x1012   : > { %v5271_v50 = vsel %vm1233_vm6, %v5251_v2, 0.0  ;;  %v5252_v51 = vmul.f32 %v10183_v63, %v10183_v63 }
0x1013   : > { %5272 = vadd.xlane.f32.xlu0 %v5271_v50 }
0x1014   : > { %v5274_v53 = vsel %vm1233_vm6, %v5252_v51, 0.0 }
0x1015   : > { %5275 = vadd.xlane.f32.xlu1 %v5274_v53 }
0x1019   : > { %v5183_v52 = vpop.xlane.xlu0 %5182 }
0x101a   : > { %v5221_v32 = vmul.f32 0.125, %v5183_v52 }
0x101b   : > { %v5186_v49 = vpop.xlane.xlu1 %5185 }
0x101c   : > { %v10193_v18 = vsub.f32 %v10099_v12, %v5221_v32  ;;  %v5222_v5 = vmul.f32 0.125, %v5186_v49 }
0x101d   : > { %v5189_v57 = vpop.xlane.xlu0 %5188 }
0x101e   : > { %v10196_v59 = vsub.f32 %v10107_v39, %v5222_v5  ;;  %v5223_v16 = vmul.f32 0.125, %v5189_v57  ;;  %v5253_v27 = vmul.f32 %v10193_v18, %v10193_v18 }
0x101f   : > { %v5192_v23 = vpop.xlane.xlu1 %5191 }
0x1020   : > { %v10201_v48 = vsub.f32 %v10104_v56, %v5223_v16  ;;  %v5224_v10 = vmul.f32 0.125, %v5192_v23  ;;  %v5277_v47 = vsel %vm1233_vm6, %v5253_v27, 0.0  ;;  %v5254_v12 = vmul.f32 %v10196_v59, %v10196_v59 }
0x1021   : > { %5278 = vadd.xlane.f32.xlu0 %v5277_v47 }
0x1022   : > { %v10207_v29 = vsub.f32 %v10112_v22, %v5224_v10  ;;  %v5255_v39 = vmul.f32 %v10201_v48, %v10201_v48  ;;  %v5280_v31 = vsel %vm1233_vm6, %v5254_v12, 0.0 }
0x1023   : > { %5281 = vadd.xlane.f32.xlu1 %v5280_v31 }
0x1024   : > { %v5283_v14 = vsel %vm1233_vm6, %v5255_v39, 0.0  ;;  %v5256_v56 = vmul.f32 %v10207_v29, %v10207_v29 }
0x1025   : > { %5284 = vadd.xlane.f32.xlu0 %v5283_v14 }
0x1026   : > { %v5286_v54 = vsel %vm1233_vm6, %v5256_v56, 0.0 }
0x1027   : > { %5287 = vadd.xlane.f32.xlu1 %v5286_v54 }
0x1044   : > { %v5195_v8 = vpop.xlane.xlu0 %5194 }
0x1045   : > { %v5225_v13 = vmul.f32 0.125, %v5195_v8 }
0x1046   : > { %v5198_v42 = vpop.xlane.xlu1 %5197 }
0x1047   : > { %v10217_v22 = vsub.f32 %v10123_v15, %v5225_v13  ;;  %v5226_v46 = vmul.f32 0.125, %v5198_v42 }
0x1048   : > { %v5201_v1 = vpop.xlane.xlu0 %5200 }
0x1049   : > { %v10225_v35 = vsub.f32 %v10131_v34, %v5226_v46  ;;  %v5227_v17 = vmul.f32 0.125, %v5201_v1  ;;  %v5257_v26 = vmul.f32 %v10217_v22, %v10217_v22 }
0x104a   : > { %v5204_v15 = vpop.xlane.xlu1 %5203 }
0x104b   : > { %v10230_v7 = vsub.f32 %v10128_v45, %v5227_v17  ;;  %v5228_v6 = vmul.f32 0.125, %v5204_v15  ;;  %v5289_v43 = vsel %vm1233_vm6, %v5257_v26, 0.0  ;;  %v5258_v40 = vmul.f32 %v10225_v35, %v10225_v35 }
0x104c   : > { %5290 = vadd.xlane.f32.xlu0 %v5289_v43 }
0x104d   : > { %v10236_v37 = vsub.f32 %v10136_v38, %v5228_v6  ;;  %v5259_v34 = vmul.f32 %v10230_v7, %v10230_v7  ;;  %v5292_v41 = vsel %vm1233_vm6, %v5258_v40, 0.0 }
0x104e   : > { %5293 = vadd.xlane.f32.xlu1 %v5292_v41 }
0x104f   : > { %v5295_v62 = vsel %vm1233_vm6, %v5259_v34, 0.0  ;;  %v5260_v45 = vmul.f32 %v10236_v37, %v10236_v37 }
0x1050   : > { %5296 = vadd.xlane.f32.xlu0 %v5295_v62 }
0x1051   : > { %v5298_v20 = vsel %vm1233_vm6, %v5260_v45, 0.0 }
0x1052   : > { %5299 = vadd.xlane.f32.xlu1 %v5298_v20 }
0x1056   : > { %v5207_v36 = vpop.xlane.xlu0 %5206 }
0x1057   : > { %v5229_v33 = vmul.f32 0.125, %v5207_v36 }
0x1058   : > { %v5210_v30 = vpop.xlane.xlu1 %5209 }
0x1059   : > { %v10246_v38 = vsub.f32 %v10147_v19, %v5229_v33  ;;  %v5230_v24 = vmul.f32 0.125, %v5210_v30 }
0x105a   : > { %v5213_v55 = vpop.xlane.xlu0 %5212 }
0x105b   : > { %v10249_v4 = vsub.f32 %v10155_v44, %v5230_v24  ;;  %v5231_v60 = vmul.f32 0.125, %v5213_v55  ;;  %v5261_v0 = vmul.f32 %v10246_v38, %v10246_v38 }
0x105c   : > { %v5216_v2 = vpop.xlane.xlu1 %5215 }
0x105d   : > { %v10254_v58 = vsub.f32 %v10152_v3, %v5231_v60  ;;  %v5232_v50 = vmul.f32 0.125, %v5216_v2  ;;  %v5301_v51 = vsel %vm1233_vm6, %v5261_v0, 0.0  ;;  %v5262_v19 = vmul.f32 %v10249_v4, %v10249_v4  ;;  %v10272_v2 = vld [vmem:[%s10426_s14] ss:$0 sm:$0xff] }
0x105e   : > { %5302 = vadd.xlane.f32.xlu0 %v5301_v51 }
0x105f   : > { %v10260_v53 = vsub.f32 %v10160_v28, %v5232_v50  ;;  %v5263_v44 = vmul.f32 %v10254_v58, %v10254_v58  ;;  %v5304_v52 = vsel %vm1233_vm6, %v5262_v19, 0.0  ;;  %v5447_v19 = vmul.f32 %v10272_v2, %v10169_v11 }
0x1060   : > { %5305 = vadd.xlane.f32.xlu1 %v5304_v52  ;;  %v5448_v52 = vmul.f32 %v10272_v2, %v10172_v25  ;;  %v5450_v11 = vmul.f32 %v10272_v2, %v10183_v63 }
0x1061   : > { %v5307_v32 = vsel %vm1233_vm6, %v5263_v44, 0.0  ;;  %v5264_v3 = vmul.f32 %v10260_v53, %v10260_v53 }
0x1062   : > { %5308 = vadd.xlane.f32.xlu0 %v5307_v32 }
0x1063   : > { %v5310_v49 = vsel %vm1233_vm6, %v5264_v3, 0.0 }
0x1064   : > { %5311 = vadd.xlane.f32.xlu1 %v5310_v49 }
0x109c   : > { %v5267_v5 = vpop.xlane.xlu0 %5266 }
0x109d   : > { %v5313_v57 = vmul.f32 0.14285715, %v5267_v5  ;;  %v5449_v5 = vmul.f32 %v10272_v2, %v10177_v61 }
0x109e   : > { %v5270_v28 = vpop.xlane.xlu1 %5269 }
0x109f   : > { %7209 = vrsqrt.f32 %v5313_v57  ;;  %v5314_v16 = vmul.f32 0.14285715, %v5270_v28  ;;  %vm5331_vm4 = vcmp.eq.f32.partialorder %v5313_v57, inf  ;;  %v5334_v31 = vand.u32 2147483648, %v5313_v57  ;;  %v10283_v28 = vld [vmem:[%s10427_s15] ss:$0 sm:$0xff] }
0x10a0   : > { %v5273_v27 = vpop.xlane.xlu0 %5272  ;;  %vm5333_vm12 = vcmp.eq.f32.partialorder %v5313_v57, 0.0 }
0x10a1   : > { %v5315_v23 = vmul.f32 0.14285715, %v5273_v27  ;;  %7211 = vrsqrt.f32 %v5314_v16  ;;  %vm5338_vm13 = vcmp.eq.f32.partialorder %v5314_v16, inf  ;;  %vm5340_vm14 = vcmp.eq.f32.partialorder %v5314_v16, 0.0 }
0x10a2   : > { %v5276_v10 = vpop.xlane.xlu1 %5275  ;;  %v5341_v46 = vand.u32 2147483648, %v5314_v16 }
0x10a3   : > { %7213 = vrsqrt.f32 %v5315_v23  ;;  %v5316_v47 = vmul.f32 0.14285715, %v5276_v10  ;;  %vm5345_vm15 = vcmp.eq.f32.partialorder %v5315_v23, inf  ;;  %v5348_v17 = vand.u32 2147483648, %v5315_v23 }
0x10a4   : > { %vm5347_vm0 = vcmp.eq.f32.partialorder %v5315_v23, 0.0 }
0x10a5   : > { %7215 = vrsqrt.f32 %v5316_v47  ;;  %vm5352_vm1 = vcmp.eq.f32.partialorder %v5316_v47, inf  ;;  %vm5354_vm2 = vcmp.eq.f32.partialorder %v5316_v47, 0.0  ;;  %v5355_v20 = vand.u32 2147483648, %v5316_v47 }
0x10a9   : > { %v7210_v12 = vpop.eup %7209 }
0x10aa   : > { %v5330_v39 = vmul.f32 %v7210_v12, %v5313_v57 }
0x10ab   : > { %v7212_v14 = vpop.eup %7211 }
0x10ac   : > { %v5332_v56 = vsel %vm5331_vm4, %v5313_v57, %v5330_v39  ;;  %v5337_v13 = vmul.f32 %v7212_v14, %v5314_v16 }
0x10ad   : > { %v7214_v54 = vpop.eup %7213  ;;  %v5335_v8 = vsel %vm5333_vm12, %v5334_v31, %v5332_v56 }
0x10ae   : > { %v5463_v42 = vadd.f32 1e-06, %v5335_v8  ;;  %v5344_v21 = vmul.f32 %v7214_v54, %v5315_v23  ;;  %v5279_v1 = vpop.xlane.xlu0 %5278  ;;  %v5339_v9 = vsel %vm5338_vm13, %v5314_v16, %v5337_v13 }
0x10af   : > { %v5317_v26 = vmul.f32 0.14285715, %v5279_v1  ;;  %v7216_v15 = vpop.eup %7215  ;;  %v5342_v6 = vsel %vm5340_vm14, %v5341_v46, %v5339_v9 }
0x10b0   : > { %7217 = vrcp.f32 %v5463_v42  ;;  %v5346_v43 = vsel %vm5345_vm15, %v5315_v23, %v5344_v21  ;;  %v5464_v40 = vadd.f32 1e-06, %v5342_v6  ;;  %v5351_v41 = vmul.f32 %v7216_v15, %v5316_v47  ;;  %v5282_v62 = vpop.xlane.xlu1 %5281 }
0x10b1   : > { %v5349_v34 = vsel %vm5347_vm0, %v5348_v17, %v5346_v43  ;;  %7219 = vrsqrt.f32 %v5317_v26  ;;  %v5318_v30 = vmul.f32 0.14285715, %v5282_v62  ;;  %vm5359_vm3 = vcmp.eq.f32.partialorder %v5317_v26, inf }
0x10b2   : > { %v5465_v45 = vadd.f32 1e-06, %v5349_v34  ;;  %v5285_v36 = vpop.xlane.xlu0 %5284  ;;  %7221 = vrcp.f32 %v5464_v40  ;;  %v5353_v33 = vsel %vm5352_vm1, %v5316_v47, %v5351_v41  ;;  %v5362_v57 = vand.u32 2147483648, %v5317_v26 }
0x10b3   : > { %v5319_v24 = vmul.f32 0.14285715, %v5285_v36  ;;  %v5356_v55 = vsel %vm5354_vm2, %v5355_v20, %v5353_v33  ;;  %vm5361_vm5 = vcmp.eq.f32.partialorder %v5317_v26, 0.0  ;;  %vm5366_vm7 = vcmp.eq.f32.partialorder %v5318_v30, inf }
0x10b4   : > { %7223 = vrcp.f32 %v5465_v45  ;;  %v5466_v60 = vadd.f32 1e-06, %v5356_v55  ;;  %v5288_v0 = vpop.xlane.xlu1 %5287  ;;  %vm5368_vm8 = vcmp.eq.f32.partialorder %v5318_v30, 0.0  ;;  %v5369_v54 = vand.u32 2147483648, %v5318_v30 }
0x10b5   : > { %7225 = vrsqrt.f32 %v5318_v30  ;;  %v5320_v50 = vmul.f32 0.14285715, %v5288_v0  ;;  %vm5373_vm9 = vcmp.eq.f32.partialorder %v5319_v24, inf  ;;  %v5376_v63 = vand.u32 2147483648, %v5319_v24 }
0x10b6   : > { %7227 = vrsqrt.f32 %v5319_v24  ;;  %vm5375_vm10 = vcmp.eq.f32.partialorder %v5319_v24, 0.0  ;;  %v5451_v33 = vmul.f32 %v10272_v2, %v10193_v18  ;;  %v5453_v0 = vmul.f32 %v10272_v2, %v10201_v48 }
0x10b7   : > { %7229 = vrcp.f32 %v5466_v60  ;;  %vm5380_vm11 = vcmp.eq.f32.partialorder %v5320_v50, inf  ;;  %v5383_v34 = vand.u32 2147483648, %v5320_v50  ;;  %vm5382_vm4 = vcmp.eq.f32.partialorder %v5320_v50, 0.0 }
0x10b8   : > { %7231 = vrsqrt.f32 %v5320_v50 }
0x10ba   : > { %v7218_v51 = vpop.eup %7217 }
0x10bb   : > { %v7220_v44 = vpop.eup %7219  ;;  %v5495_v3 = vmul.f32 %v7218_v51, %v5447_v19  ;;  %v5454_v51 = vmul.f32 %v10272_v2, %v10207_v29 }
0x10bc   : > { %v5358_v32 = vmul.f32 %v7220_v44, %v5317_v26  ;;  %v7222_v49 = vpop.eup %7221 }
0x10bd   : > { %v5496_v25 = vmul.f32 %v7222_v49, %v5448_v52  ;;  %v5517_v31 = vadd.f32 %v10283_v28, %v5495_v3 }
0x10be   : > { %v7224_v16 = vpop.eup %7223  ;;  %v5360_v27 = vsel %vm5359_vm3, %v5317_v26, %v5358_v32 }
0x10bf   : > { %v7226_v23 = vpop.eup %7225  ;;  %v5363_v10 = vsel %vm5361_vm5, %v5362_v57, %v5360_v27  ;;  %v5497_v47 = vmul.f32 %v7224_v16, %v5449_v5  ;;  %v5518_v14 = vadd.f32 %v10283_v28, %v5496_v25 }
0x10c0   : > { %v7228_v61 = vpop.eup %7227  ;;  %v5467_v12 = vadd.f32 1e-06, %v5363_v10  ;;  %v5365_v39 = vmul.f32 %v7226_v23, %v5318_v30 }
0x10c1   : > { %v7230_v56 = vpop.eup %7229  ;;  %v5372_v8 = vmul.f32 %v7228_v61, %v5319_v24  ;;  %v5533_v42 = vpack.c.bf16 %v5518_v14, %v5517_v31  ;;  %v5519_v17 = vadd.f32 %v10283_v28, %v5497_v47 }
0x10c2   : > { %7233 = vrcp.f32 %v5467_v12  ;;  %v5367_v13 = vsel %vm5366_vm7, %v5318_v30, %v5365_v39  ;;  %v5498_v46 = vmul.f32 %v7230_v56, %v5450_v11  ;;  %v7232_v21 = vpop.eup %7231  ;;  %v5452_v30 = vmul.f32 %v10272_v2, %v10196_v59 }
0x10c3   : > { %v5370_v1 = vsel %vm5368_vm8, %v5369_v54, %v5367_v13  ;;  %v5374_v9 = vsel %vm5373_vm9, %v5319_v24, %v5372_v8  ;;  %v5379_v6 = vmul.f32 %v7232_v21, %v5320_v50  ;;  %6575 = vmatprep.mubr.msk.bf16.mxu0 %vm1233_vm6, %v5533_v42 }
0x10c4   : > { %v5468_v26 = vadd.f32 1e-06, %v5370_v1  ;;  %v5377_v15 = vsel %vm5375_vm10, %v5376_v63, %v5374_v9  ;;  %v5520_v43 = vadd.f32 %v10283_v28, %v5498_v46 }
0x10c5   : > { %v5469_v40 = vadd.f32 1e-06, %v5377_v15  ;;  %v5381_v41 = vsel %vm5380_vm11, %v5320_v50, %v5379_v6 }
0x10c6   : > { %7235 = vrcp.f32 %v5468_v26  ;;  %v5534_v62 = vpack.c.bf16 %v5520_v43, %v5519_v17  ;;  %v5384_v45 = vsel %vm5382_vm4, %v5383_v34, %v5381_v41 }
0x10c7   : > { %7237 = vrcp.f32 %v5469_v40  ;;  %v5470_v20 = vadd.f32 1e-06, %v5384_v45 }
0x10c8   : > { %6576 = vmatmul.mubr.msk.bf16.vlgmr.msra.gmra.mrb[144].mxu0 %vm1233_vm6, %v5534_v62 }
0x10c9   : > { %7239 = vrcp.f32 %v5470_v20 }
0x10cc   : > { %v7234_v36 = vpop.eup %7233 }
0x10cd   : > { %v5499_v24 = vmul.f32 %v7234_v36, %v5451_v33 }
0x10cf   : > { %v5521_v19 = vadd.f32 %v10283_v28, %v5499_v24 }
0x10d0   : > { %v7236_v55 = vpop.eup %7235 }
0x10d1   : > { %v7238_v60 = vpop.eup %7237  ;;  %v5500_v50 = vmul.f32 %v7236_v55, %v5452_v30 }
0x10d2   : > { %v5501_v52 = vmul.f32 %v7238_v60, %v5453_v0  ;;  %v5455_v60 = vmul.f32 %v10272_v2, %v10217_v22 }
0x10d3   : > { %v5522_v44 = vadd.f32 %v10283_v28, %v5500_v50  ;;  %v7240_v32 = vpop.eup %7239  ;;  %v5456_v50 = vmul.f32 %v10272_v2, %v10225_v35 }
0x10d4   : > { %v5502_v3 = vmul.f32 %v7240_v32, %v5454_v51  ;;  %v5523_v59 = vadd.f32 %v10283_v28, %v5501_v52  ;;  %v5457_v52 = vmul.f32 %v10272_v2, %v10230_v7 }
0x10d5   : > { %v5535_v18 = vpack.c.bf16 %v5522_v44, %v5521_v19 }
0x10d6   : > { %v5524_v49 = vadd.f32 %v10283_v28, %v5502_v3  ;;  %v5458_v3 = vmul.f32 %v10272_v2, %v10236_v37 }
0x10d7   : > { %6579 = vmatprep.mubr.msk.bf16.mxu0 %vm1233_vm6, %v5535_v18 }
0x10d8   : > { %v5536_v5 = vpack.c.bf16 %v5524_v49, %v5523_v59 }
0x10d9   : > { %v5291_v48 = vpop.xlane.xlu0 %5290 }
0x10da   : > { %v5321_v57 = vmul.f32 0.14285715, %v5291_v48  ;;  %6580 = vmatmul.mubr.msk.bf16.gmra.mrb[148].mxu0 %vm1233_vm6, %v5536_v5 }
0x10db   : > { %v5294_v29 = vpop.xlane.xlu1 %5293 }
0x10dc   : > { %7241 = vrsqrt.f32 %v5321_v57  ;;  %v5322_v16 = vmul.f32 0.14285715, %v5294_v29  ;;  %vm5387_vm12 = vcmp.eq.f32.partialorder %v5321_v57, inf  ;;  %v5390_v61 = vand.u32 2147483648, %v5321_v57 }
0x10dd   : > { %v5297_v11 = vpop.xlane.xlu0 %5296  ;;  %vm5389_vm13 = vcmp.eq.f32.partialorder %v5321_v57, 0.0 }
0x10de   : > { %v5323_v27 = vmul.f32 0.14285715, %v5297_v11  ;;  %7243 = vrsqrt.f32 %v5322_v16  ;;  %vm5394_vm14 = vcmp.eq.f32.partialorder %v5322_v16, inf  ;;  %vm5396_vm15 = vcmp.eq.f32.partialorder %v5322_v16, 0.0 }
0x10df   : > { %v5300_v25 = vpop.xlane.xlu1 %5299  ;;  %v5397_v8 = vand.u32 2147483648, %v5322_v16 }
0x10e0   : > { %7245 = vrsqrt.f32 %v5323_v27  ;;  %v5324_v23 = vmul.f32 0.14285715, %v5300_v25  ;;  %vm5401_vm0 = vcmp.eq.f32.partialorder %v5323_v27, inf  ;;  %v5404_v46 = vand.u32 2147483648, %v5323_v27 }
0x10e1   : > { %vm5403_vm1 = vcmp.eq.f32.partialorder %v5323_v27, 0.0 }
0x10e2   : > { %7247 = vrsqrt.f32 %v5324_v23  ;;  %vm5408_vm2 = vcmp.eq.f32.partialorder %v5324_v23, inf  ;;  %vm5410_vm3 = vcmp.eq.f32.partialorder %v5324_v23, 0.0  ;;  %v5411_v34 = vand.u32 2147483648, %v5324_v23 }
0x10e6   : > { %v7242_v10 = vpop.eup %7241 }
0x10e7   : > { %v5386_v47 = vmul.f32 %v7242_v10, %v5321_v57 }
0x10e8   : > { %v7244_v12 = vpop.eup %7243 }
0x10e9   : > { %v5388_v39 = vsel %vm5387_vm12, %v5321_v57, %v5386_v47  ;;  %v5393_v56 = vmul.f32 %v7244_v12, %v5322_v16 }
0x10ea   : > { %v7246_v31 = vpop.eup %7245  ;;  %v5391_v14 = vsel %vm5389_vm13, %v5390_v61, %v5388_v39  ;;  %vm5674_vm13 = vcmask 31744  }
0x10eb   : > { %v5471_v54 = vadd.f32 1e-06, %v5391_v14  ;;  %v5400_v63 = vmul.f32 %v7246_v31, %v5323_v27  ;;  %v5303_v13 = vpop.xlane.xlu0 %5302  ;;  %v5395_v42 = vsel %vm5394_vm14, %v5322_v16, %v5393_v56 }
0x10ec   : > { %v5325_v21 = vmul.f32 0.14285715, %v5303_v13  ;;  %v7248_v1 = vpop.eup %7247  ;;  %v5398_v9 = vsel %vm5396_vm15, %v5397_v8, %v5395_v42 }
0x10ed   : > { %7249 = vrcp.f32 %v5471_v54  ;;  %v5402_v17 = vsel %vm5401_vm0, %v5323_v27, %v5400_v63  ;;  %v5472_v26 = vadd.f32 1e-06, %v5398_v9  ;;  %v5407_v6 = vmul.f32 %v7248_v1, %v5324_v23  ;;  %v5306_v43 = vpop.xlane.xlu1 %5305 }
0x10ee   : > { %v5405_v15 = vsel %vm5403_vm1, %v5404_v46, %v5402_v17  ;;  %7251 = vrsqrt.f32 %v5325_v21  ;;  %v5326_v45 = vmul.f32 0.14285715, %v5306_v43  ;;  %vm5415_vm5 = vcmp.eq.f32.partialorder %v5325_v21, inf }
0x10ef   : > { %v5473_v40 = vadd.f32 1e-06, %v5405_v15  ;;  %v5309_v41 = vpop.xlane.xlu0 %5308  ;;  %7253 = vrcp.f32 %v5472_v26  ;;  %v5409_v62 = vsel %vm5408_vm2, %v5324_v23, %v5407_v6  ;;  %v5418_v32 = vand.u32 2147483648, %v5325_v21 }
0x10f0   : > { %v5327_v20 = vmul.f32 0.14285715, %v5309_v41  ;;  %v5412_v36 = vsel %vm5410_vm3, %v5411_v34, %v5409_v62  ;;  %vm5417_vm7 = vcmp.eq.f32.partialorder %v5325_v21, 0.0  ;;  %vm5422_vm8 = vcmp.eq.f32.partialorder %v5326_v45, inf }
0x10f1   : > { %7255 = vrcp.f32 %v5473_v40  ;;  %v5474_v33 = vadd.f32 1e-06, %v5412_v36  ;;  %v5312_v30 = vpop.xlane.xlu1 %5311  ;;  %vm5424_vm9 = vcmp.eq.f32.partialorder %v5326_v45, 0.0  ;;  %v5425_v27 = vand.u32 2147483648, %v5326_v45 }
0x10f2   : > { %7257 = vrsqrt.f32 %v5326_v45  ;;  %v5328_v24 = vmul.f32 0.14285715, %v5312_v30  ;;  %vm5429_vm10 = vcmp.eq.f32.partialorder %v5327_v20, inf  ;;  %v5432_v37 = vand.u32 2147483648, %v5327_v20 }
0x10f3   : > { %7259 = vrsqrt.f32 %v5327_v20  ;;  %vm5431_vm11 = vcmp.eq.f32.partialorder %v5327_v20, 0.0  ;;  %v5459_v17 = vmul.f32 %v10272_v2, %v10246_v38  ;;  %v5460_v26 = vmul.f32 %v10272_v2, %v10249_v4 }
0x10f4   : > { %7261 = vrcp.f32 %v5474_v33  ;;  %vm5436_vm4 = vcmp.eq.f32.partialorder %v5328_v24, inf  ;;  %v5439_v13 = vand.u32 2147483648, %v5328_v24  ;;  %vm5438_vm12 = vcmp.eq.f32.partialorder %v5328_v24, 0.0 }
0x10f5   : > { %7263 = vrsqrt.f32 %v5328_v24  ;;  %v5461_v40 = vmul.f32 %v10272_v2, %v10254_v58  ;;  %v5462_v41 = vmul.f32 %v10272_v2, %v10260_v53  ;;  %v5926_v58 = vld [vmem:[%s10674_s27] ss:$0 sm:$0xff] }
0x10f7   : > { %v7250_v55 = vpop.eup %7249 }
0x10f8   : > { %v7252_v0 = vpop.eup %7251  ;;  %v5503_v19 = vmul.f32 %v7250_v55, %v5455_v60 }
0x10f9   : > { %v5414_v51 = vmul.f32 %v7252_v0, %v5325_v21  ;;  %v7254_v44 = vpop.eup %7253 }
0x10fa   : > { %v5504_v49 = vmul.f32 %v7254_v44, %v5456_v50  ;;  %v5525_v16 = vadd.f32 %v10283_v28, %v5503_v19 }
0x10fb   : > { %v7256_v18 = vpop.eup %7255  ;;  %v5416_v59 = vsel %vm5415_vm5, %v5325_v21, %v5414_v51 }
0x10fc   : > { %v7258_v22 = vpop.eup %7257  ;;  %v5419_v5 = vsel %vm5417_vm7, %v5418_v32, %v5416_v59  ;;  %v5505_v35 = vmul.f32 %v7256_v18, %v5457_v52  ;;  %v5526_v7 = vadd.f32 %v10283_v28, %v5504_v49 }
0x10fd   : > { %v7260_v48 = vpop.eup %7259  ;;  %v5475_v57 = vadd.f32 1e-06, %v5419_v5  ;;  %v5421_v29 = vmul.f32 %v7258_v22, %v5326_v45 }
0x10fe   : > { %v7262_v11 = vpop.eup %7261  ;;  %v5428_v25 = vmul.f32 %v7260_v48, %v5327_v20  ;;  %v5537_v10 = vpack.c.bf16 %v5526_v7, %v5525_v16  ;;  %v5527_v31 = vadd.f32 %v10283_v28, %v5505_v35 }
0x10ff   : > { %7265 = vrcp.f32 %v5475_v57  ;;  %v5423_v23 = vsel %vm5422_vm8, %v5326_v45, %v5421_v29  ;;  %v5506_v47 = vmul.f32 %v7262_v11, %v5458_v3  ;;  %v7264_v61 = vpop.eup %7263 }
0x1100   : > { %v5426_v12 = vsel %vm5424_vm9, %v5425_v27, %v5423_v23  ;;  %v5430_v39 = vsel %vm5429_vm10, %v5327_v20, %v5428_v25  ;;  %v5435_v54 = vmul.f32 %v7264_v61, %v5328_v24  ;;  %6583 = vmatprep.mubr.msk.bf16.mxu0 %vm1233_vm6, %v5537_v10 }
0x1101   : > { %v5476_v14 = vadd.f32 1e-06, %v5426_v12  ;;  %v5433_v56 = vsel %vm5431_vm11, %v5432_v37, %v5430_v39  ;;  %v5528_v8 = vadd.f32 %v10283_v28, %v5506_v47 }
0x1102   : > { %v5477_v63 = vadd.f32 1e-06, %v5433_v56  ;;  %v5437_v42 = vsel %vm5436_vm4, %v5328_v24, %v5435_v54 }
0x1103   : > { %7267 = vrcp.f32 %v5476_v14  ;;  %v5538_v46 = vpack.c.bf16 %v5528_v8, %v5527_v31  ;;  %v5440_v21 = vsel %vm5438_vm12, %v5439_v13, %v5437_v42 }
0x1104   : > { %7269 = vrcp.f32 %v5477_v63  ;;  %v5478_v1 = vadd.f32 1e-06, %v5440_v21 }
0x1105   : > { %6584 = vmatmul.mubr.msk.bf16.gmra.mrb[152].mxu0 %vm1233_vm6, %v5538_v46 }
0x1106   : > { %7271 = vrcp.f32 %v5478_v1 }
0x1109   : > { %v7266_v9 = vpop.eup %7265 }
0x110a   : > { %v5507_v15 = vmul.f32 %v7266_v9, %v5459_v17 }
0x110c   : > { %v5529_v62 = vadd.f32 %v10283_v28, %v5507_v15 }
0x110d   : > { %v7268_v6 = vpop.eup %7267 }
0x110e   : > { %v7270_v43 = vpop.eup %7269  ;;  %v5508_v34 = vmul.f32 %v7268_v6, %v5460_v26 }
0x110f   : > { %v5509_v20 = vmul.f32 %v7270_v43, %v5461_v40 }
0x1110   : > { %v5530_v45 = vadd.f32 %v10283_v28, %v5508_v34  ;;  %v7272_v36 = vpop.eup %7271 }
0x1111   : > { %v5510_v33 = vmul.f32 %v7272_v36, %v5462_v41  ;;  %v5531_v4 = vadd.f32 %v10283_v28, %v5509_v20 }
0x1112   : > { %v5539_v38 = vpack.c.bf16 %v5530_v45, %v5529_v62 }
0x1113   : > { %v5532_v30 = vadd.f32 %v10283_v28, %v5510_v33 }
0x1114   : > { %6587 = vmatprep.mubr.msk.bf16.mxu0 %vm1233_vm6, %v5539_v38 }
0x1115   : > { %v5540_v24 = vpack.c.bf16 %v5532_v30, %v5531_v4 }
0x1117   : > { %6588 = vmatmul.mubr.msk.bf16.gmra.mrb[156].mxu0 %vm1233_vm6, %v5540_v24  ;;  %vm5713_vm6 = vcmask 24576  }
0x119b   : > { %v6577_v53 = vpop.f32.mrb[144].mxu0 }
0x119c   : > { %v5610_v2 = vpop.f32.mrb[145].mxu0  ;;  %v5619_v50 = vadd.f32 %v6577_v53, %v5926_v58 }
0x119d   : > { %v5611_v55 = vadd.f32 %v5926_v58, %v5610_v2  ;;  %v6578_v60 = vpop.f32.mrb[146].mxu0 }
0x119e   : > { %v5613_v0 = vpop.f32.mrb[147].mxu0  ;;  %v5622_v44 = vadd.f32 %v6578_v60, %v5926_v58  ;;  %v5678_v32 = vsel %vm5674_vm13, %v5619_v50, 0.0  ;;  %v5673_v50 = vld [vmem:[#allocation5] sm:$0x1] }
0x119f   : > { %v5614_v51 = vadd.f32 %v5926_v58, %v5613_v0  ;;  %v5675_v19 = vsel %vm5674_vm13, %v5611_v55, 0.0 }
0x11a0   : > { %v5680_v3 = vsel %vm5674_vm13, %v5622_v44, 0.0 }
0x11a1   : > { %v5676_v28 = vsel %vm5674_vm13, %v5614_v51, 0.0 }
0x11a2   : > { %v5677_v52 = vadd.f32 %v5676_v28, %v5675_v19 }
0x11a4   : > { %v5679_v18 = vadd.f32 %v5678_v32, %v5677_v52 }
0x11a6   : > { %v5681_v59 = vadd.f32 %v5680_v3, %v5679_v18 }
0x11ad   : > { %v6581_v49 = vpop.f32.mrb[148].mxu0 }
0x11ae   : > { %v5626_v22 = vpop.f32.mrb[149].mxu0  ;;  %v5635_v57 = vadd.f32 %v6581_v49, %v5926_v58 }
0x11af   : > { %v5627_v5 = vadd.f32 %v5926_v58, %v5626_v22  ;;  %v6582_v35 = vpop.f32.mrb[150].mxu0 }
0x11b0   : > { %v5629_v48 = vpop.f32.mrb[151].mxu0  ;;  %v5638_v11 = vadd.f32 %v6582_v35, %v5926_v58  ;;  %v5686_v37 = vsel %vm5674_vm13, %v5635_v57, 0.0 }
0x11b1   : > { %v5682_v29 = vsel %vm5674_vm13, %v5627_v5, 0.0  ;;  %v5630_v16 = vadd.f32 %v5926_v58, %v5629_v48 }
0x11b2   : > { %v5683_v7 = vadd.f32 %v5682_v29, %v5681_v59  ;;  %v5688_v10 = vsel %vm5674_vm13, %v5638_v11, 0.0 }
0x11b3   : > { %v5684_v27 = vsel %vm5674_vm13, %v5630_v16, 0.0 }
0x11b4   : > { %v5685_v25 = vadd.f32 %v5684_v27, %v5683_v7 }
0x11b6   : > { %v5687_v23 = vadd.f32 %v5686_v37, %v5685_v25 }
0x11b8   : > { %v5689_v47 = vadd.f32 %v5688_v10, %v5687_v23 }
0x11d8   : > { %v6585_v61 = vpop.f32.mrb[152].mxu0 }
0x11d9   : > { %v5642_v12 = vpop.f32.mrb[153].mxu0  ;;  %v5651_v56 = vadd.f32 %v6585_v61, %v5926_v58 }
0x11da   : > { %v5643_v39 = vadd.f32 %v5926_v58, %v5642_v12  ;;  %v6586_v31 = vpop.f32.mrb[154].mxu0 }
0x11db   : > { %v5645_v14 = vpop.f32.mrb[155].mxu0  ;;  %v5654_v13 = vadd.f32 %v6586_v31, %v5926_v58  ;;  %v5694_v21 = vsel %vm5674_vm13, %v5651_v56, 0.0 }
0x11dc   : > { %v5690_v54 = vsel %vm5674_vm13, %v5643_v39, 0.0  ;;  %v5646_v8 = vadd.f32 %v5926_v58, %v5645_v14 }
0x11dd   : > { %v5691_v63 = vadd.f32 %v5690_v54, %v5689_v47  ;;  %v5696_v9 = vsel %vm5674_vm13, %v5654_v13, 0.0 }
0x11de   : > { %v5692_v42 = vsel %vm5674_vm13, %v5646_v8, 0.0 }
0x11df   : > { %v5693_v46 = vadd.f32 %v5692_v42, %v5691_v63 }
0x11e1   : > { %v5695_v1 = vadd.f32 %v5694_v21, %v5693_v46 }
0x11e3   : > { %v5697_v17 = vadd.f32 %v5696_v9, %v5695_v1 }
0x11ea   : > { %v6589_v26 = vpop.f32.mrb[156].mxu0 }
0x11eb   : > { %v5658_v15 = vpop.f32.mrb[157].mxu0  ;;  %v5667_v34 = vadd.f32 %v6589_v26, %v5926_v58 }
0x11ec   : > { %v5659_v6 = vadd.f32 %v5926_v58, %v5658_v15  ;;  %v6590_v43 = vpop.f32.mrb[158].mxu0 }
0x11ed   : > { %v5661_v40 = vpop.f32.mrb[159].mxu0  ;;  %v5670_v20 = vadd.f32 %v6590_v43, %v5926_v58  ;;  %v5702_v33 = vsel %vm5674_vm13, %v5667_v34, 0.0 }
0x11ee   : > { %v5698_v41 = vsel %vm5674_vm13, %v5659_v6, 0.0  ;;  %v5662_v62 = vadd.f32 %v5926_v58, %v5661_v40 }
0x11ef   : > { %v5699_v45 = vadd.f32 %v5698_v41, %v5697_v17  ;;  %v5704_v30 = vsel %vm5674_vm13, %v5670_v20, 0.0 }
0x11f0   : > { %v5700_v36 = vsel %vm5674_vm13, %v5662_v62, 0.0 }
0x11f1   : > { %v5701_v38 = vadd.f32 %v5700_v36, %v5699_v45 }
0x11f3   : > { %v5703_v4 = vadd.f32 %v5702_v33, %v5701_v38 }
0x11f5   : > { %v5705_v24 = vadd.f32 %v5704_v30, %v5703_v4 }
0x11f7   : > { %v5706_v53 = vrot.slane %v5705_v24, 4 }
0x11f9   : > { %v5707_v2 = vadd.f32 %v5706_v53, %v5705_v24 }
0x11fb   : > { %v5708_v55 = vrot.slane %v5707_v2, 2 }
0x11fd   : > { %v5709_v60 = vadd.f32 %v5708_v55, %v5707_v2 }
0x11ff   : > { %v5710_v0 = vrot.slane %v5709_v60, 1  ;;  %5718 = sbr.rel (%p5935_p0) target bundleno = 4624 (0x1210), region = 100 }
0x1201   : > { %v5711_v51 = vadd.f32 %v5710_v0, %v5709_v60 }
0x1203   : > { %v5712_v19 = vadd.f32 %v5711_v51, %v5673_v50 }
0x1205   : > { %5714 = vst.msk [vmem:[#allocation5] sm:$0x1] %vm5713_vm6, %v5712_v19 }
0x120c   : > { %v5719_v58 = vld [vmem:[#allocation5] sm:$0x1] }
0x120d   : > { %v5720_v44 = vmul.f32 0.00390625, %v5719_v58 }
0x120f   : > { %5721 = vst.msk [vmem:[%s7600_s23] sm:$0x1] %vm5713_vm6, %v5720_v44 }
0x1210 PF: > { %s5936_s24 = sshll.u32 %s7405_s0, 4  ;;  %s10676_s25 = sld [smem:[#allocation52_spill]] }
0x1211   : > { %s5735_s19 = sshll.u32 %s7600_s23, 4  ;;  %s5723_s30 = scalar_lea.sflag [#allocation7], %s578_s22  ;;  %s5736_s19 = int_to_ptr.vmem [resolvable:$true] %s5735_s19 }
0x1212   : > { %s7323_s21 = scalar_lea.vmem %s5736_s19, 16  ;;  %s7425_s17 = smov [#allocation6]  }
0x1213   : > { %p7324_p1 = scmp.ne.s32.totalorder %s5736_s19, %s7323_s21  ;;  %s7327_s18 = sshll.u32 %s7425_s17, 4  ;;  %s7328_s18 = int_to_ptr.vmem [resolvable:$false] %s7327_s18 }
0x1214   : > { %s7329_s27 = scalar_lea.vmem %s7328_s18, 32  ;;  %p7330_p5 = scmp.lt.s32.totalorder %s5736_s19, %s7328_s18 }
0x1215   : > { %p7325_p2 = pnand %p7324_p1, %p7570_p3  ;;  %p7331_p6 = scmp.lt.s32.totalorder %s7329_s27, %s7323_s21 }
0x1216   : > { %s10362_s26 = scalar_lea.hbm %s10676_s25, %s5936_s24 }
0x1217   : > { %p7326_p4 = pneg %p7325_p2  ;;  %p7332_p7 = por %p7331_p6, %p7330_p5 }
0x1219   : > { %p7333_p8 = pnand %p7332_p7, %p7326_p4 }
0x121b   : > { %7336 = shalt.err (!%p7333_p8)
}
0x121c   : > { %s7337_s0 = scalar_lea.hbm %s10362_s26, 16  ;;  %s7341_s24 = scalar_lea.hbm %s10676_s25, 32 }
0x121d   : > { %p7338_p10 = scmp.ne.s32.totalorder %s10362_s26, %s7337_s0  ;;  %p7342_p13 = scmp.lt.u32.totalorder %s10362_s26, %s10676_s25 }
0x121e   : > { %p7343_p0 = scmp.lt.u32.totalorder %s7341_s24, %s7337_s0  ;;  %p7345_p2 = scmp.lt.u32.totalorder %s7337_s0, %s10362_s26 }
0x121f   : > { %p7339_p11 = pnand %p7338_p10, %p7570_p3 }
0x1220   : > { %p7344_p1 = por %p7343_p0, %p7342_p13 }
0x1221   : > { %p7340_p12 = pneg %p7339_p11 }
0x1222   : > { %p7346_p4 = por %p7345_p2, %p7344_p1 }
0x1224   : > { %p7347_p5 = pnand %p7346_p4, %p7340_p12 }
0x1226   : > { %7350 = shalt.err (!%p7347_p5)
}
0x1227   : > { %6683 = dma.vmem_to_hbm [thread:$0]  (%p7570_p3), %s5736_s19, 16, %s10362_s26, %s5723_s30  }
0x1228 PF: > { %s10677_s21 = sld [smem:[#allocation13_spill]]  ;;  %s10678_s17 = sld [smem:[#allocation9_spill]] }
0x122e   : > { %p6689_p6 = scmp.ge.s32.totalorder %s10677_s21, 2  ;;  %s5747_s27 = sand.u32 1, %s10678_s17  }
0x122f   : > { %s5748_s23 = scalar_lea.sflag [#allocation7], %s5747_s27 }
0x1230   : > { %p6686_p7 = pnand %p6689_p6, %p7580_p9 }
0x1232   : > { %7384 = dma.done.wait (!%p6686_p7), %s5748_s23, 16  }
0x1233   : > { %7386 = vsyncadd (!%p6686_p7), %s5748_s23, 4294967280  ;;  %s31_s20 = sadd.s32 1, %s10677_s21   ;;  %s10680_s0 = sld [smem:[#allocation10_spill]] }
0x1234   : > { %p28_p8 = scmp.ge.s32.totalorder %s31_s20, 6   ;;  %s10681_s29 = sld [smem:[#allocation18_spill]] }
0x1235   : > { %s10682_s30 = sld [smem:[#allocation11_spill]]  ;;  %s10683_s22 = sld [smem:[#allocation12_spill]] }
0x1236   : > { %s10684_s19 = sld [smem:[#allocation14_spill]]  ;;  %s10685_s1 = sld [smem:[#allocation16_spill]] }
0x1237   : > { %s10686_s27 = smov %s7393_s28  ;;  %30 = sbr.rel (!%p28_p8) target bundleno = 11 (0xb), region = 136 }
0x1239   : > { %s10687_s28 = smov %s10680_s0 }
0x123b   : > { %s10688_s0 = smov %s10683_s22 }
0x123e   :  { %5752 = vsyncpa [#allocation7], 1 }
0x123f   :  { %5754 = vsyncpa [#allocation7 + $0x1], 1 }

</bundles_post_ra>
